<compile_context>
chip_gen: v5e
topology: v5e:2x2
jax: 0.10.0
libtpu: 0.0.40
codegen_flags: <defaults>
</compile_context>

<pallas_src>
import functools

import jax
import jax.numpy as jnp
from jax import lax
from jax.experimental import pallas as pl
from jax.experimental.pallas import tpu as pltpu


# ----------------------------------------------------------------------------
# In-kernel building blocks (pure jnp on VMEM-resident values).
# Grouped layout convention used throughout:
#     act[b, y, k, g*C + c]  ==  NHWC activation at (b, y, x = G*k + g, c)
# with Wg = W // G == 8 groups on the sublane axis (so every leading-dim
# reshape is a pure layout reinterpretation).
# ----------------------------------------------------------------------------
def _conv3x3_block(act, w, b, *, G, Cin, Cout, H, Wg):
    """3x3 conv (padding=1) + bias + ReLU as a single MXU matmul.

    act: (B, H, Wg, G*Cin) grouped activation -> (B, H, Wg, G*Cout).
    w:   (3*(G+2)*Cin, G*Cout) block-sparse grouped weight (built offline).
    b:   (1, G*Cout) tiled bias.
    """
    B = act.shape[0]
    GC = G * Cin
    # zero-pad H (leading dim) and the group axis (sublane dim) by one.
    zh = jnp.zeros((B, 1, Wg, GC), jnp.float32)
    ap = jnp.concatenate([zh, act, zh], axis=1)             # (B, H+2, Wg,   GC)
    zw = jnp.zeros((B, H + 2, 1, GC), jnp.float32)
    ap = jnp.concatenate([zw, ap, zw], axis=2)              # (B, H+2, Wg+2, GC)

    # im2col: output column x = G*k + g only needs input columns
    # G*k - 1 ... G*k + G, i.e. the last column of group k-1, all of group k
    # and the first column of group k+1  ->  static slices + lane concat.
    slabs = []
    for dy in range(3):
        base = ap[:, dy:dy + H]                             # (B, H, Wg+2, GC)
        left = base[:, :, 0:Wg, (G - 1) * Cin:G * Cin]      # column G*k - 1
        cent = base[:, :, 1:Wg + 1, :]                      # columns G*k .. G*k+G-1
        right = base[:, :, 2:Wg + 2, 0:Cin]                 # column G*k + G
        slabs.append(jnp.concatenate([left, cent, right], axis=-1))
    patches = jnp.concatenate(slabs, axis=-1)               # (B, H, Wg, 3*(G+2)*Cin)
    patches = patches.reshape(B * H * Wg, 3 * (G + 2) * Cin)

    y = jnp.dot(patches, w, preferred_element_type=jnp.float32) + b
    y = jnp.maximum(y, 0.0)
    return y.reshape(B, H, Wg, G * Cout)


def _pool2x2_block(y, *, G, Cout, H, Wg):
    """2x2 / stride-2 max pool in the grouped layout.

    y: (B, H, Wg, G*Cout) -> (B, H//2, Wg, (G//2)*Cout)  (group size halves).
    """
    B = y.shape[0]
    # W direction: adjacent columns are adjacent lane blocks within a group.
    pieces = [jnp.maximum(y[..., (2 * p) * Cout:(2 * p + 1) * Cout],
                          y[..., (2 * p + 1) * Cout:(2 * p + 2) * Cout])
              for p in range(G // 2)]
    m = pieces[0] if len(pieces) == 1 else jnp.concatenate(pieces, axis=-1)
    # H direction: H is a leading dim -> split + pairwise max (no strides).
    m = m.reshape(B, H // 2, 2, Wg, (G // 2) * Cout)
    return jnp.maximum(m[:, :, 0], m[:, :, 1])


# ----------------------------------------------------------------------------
# The single fused kernel.
# ----------------------------------------------------------------------------
def _fused_cnn_kernel(x_ref, w1_ref, b1_ref, w2_ref, b2_ref,
                      wf1_ref, bf1_ref, wf2_ref, bf2_ref, wf3_ref, bf3_ref,
                      o_ref):
    x = x_ref[...]                                          # (B, 32, 8, 12)
    B = x.shape[0]

    # conv1 + ReLU  ->  pool1
    y1 = _conv3x3_block(x, w1_ref[...], b1_ref[...],
                        G=4, Cin=3, Cout=8, H=32, Wg=8)     # (B, 32, 8, 32)
    a1 = _pool2x2_block(y1, G=4, Cout=8, H=32, Wg=8)        # (B, 16, 8, 16)

    # conv2 + ReLU  ->  pool2
    y2 = _conv3x3_block(a1, w2_ref[...], b2_ref[...],
                        G=2, Cin=8, Cout=16, H=16, Wg=8)    # (B, 16, 8, 32)
    a2 = _pool2x2_block(y2, G=2, Cout=16, H=16, Wg=8)       # (B, 8, 8, 16)

    # Flatten to (B, 1024) in NHWC order.  fc1's weight rows were permuted
    # offline so this is numerically identical to PyTorch's channel-major
    # x.view(-1, 8*8*16).
    wide = jnp.concatenate([a2[:, :, k, :] for k in range(8)], axis=-1)  # (B, 8, 128)
    flat = jnp.concatenate([wide[:, r, :] for r in range(8)], axis=-1)   # (B, 1024)

    # MLP head + log_softmax (fused).
    h = jnp.dot(flat, wf1_ref[...], preferred_element_type=jnp.float32) + bf1_ref[...]
    h = jnp.maximum(h, 0.0)
    h = jnp.dot(h, wf2_ref[...], preferred_element_type=jnp.float32) + bf2_ref[...]
    h = jnp.maximum(h, 0.0)
    logits = jnp.dot(h, wf3_ref[...], preferred_element_type=jnp.float32) + bf3_ref[...]
    z = logits - jnp.max(logits, axis=1, keepdims=True)
    o_ref[...] = z - jnp.log(jnp.sum(jnp.exp(z), axis=1, keepdims=True))


def _full_spec(shape):
    nd = len(shape)
    return pl.BlockSpec(shape, lambda *_: (0,) * nd)


def cnn_forward(x_nchw, kp):
    """x_nchw: (B, 3, 32, 32) float32; kp: kernel-layout params (see below)."""
    B = x_nchw.shape[0]
    # One-time input layout prep (tiny XLA op on the 24 KB network input):
    # NCHW -> NHWC -> width-grouped (B, 32, Wg=8, 4*3).
    xg = jnp.transpose(x_nchw.astype(jnp.float32), (0, 2, 3, 1)).reshape(B, 32, 8, 12)
    args = (xg, kp["w1g"], kp["b1g"], kp["w2g"], kp["b2g"],
            kp["wf1"], kp["bf1"], kp["wf2"], kp["bf2"], kp["wf3"], kp["bf3"])
    return pl.pallas_call(
        _fused_cnn_kernel,
        out_shape=jax.ShapeDtypeStruct((B, 10), jnp.float32),
        grid=(1,),
        in_specs=[_full_spec(a.shape) for a in args],
        out_specs=_full_spec((B, 10)),
        compiler_params=pltpu.CompilerParams(
            dimension_semantics=("arbitrary",)),
    )(*args)


# ----------------------------------------------------------------------------
# One-time parameter preparation (PyTorch layouts -> kernel layouts).
# ----------------------------------------------------------------------------
def _grouped_conv_weight(w_oihw, G):
    """(Cout, Cin, 3, 3) -> block-sparse (3*(G+2)*Cin, G*Cout) grouped weight."""
    Cout, Cin = w_oihw.shape[0], w_oihw.shape[1]
    wt = jnp.transpose(w_oihw, (2, 3, 1, 0)).astype(jnp.float32)  # (dy, dx, ci, co)
    K = 3 * (G + 2) * Cin
    out = jnp.zeros((K, G * Cout), jnp.float32)
    for dy in range(3):
        blk = wt[dy].reshape(3 * Cin, Cout)        # rows: dx*Cin + ci
        r0 = dy * (G + 2) * Cin
        for g in range(G):
            out = out.at[r0 + g * Cin: r0 + (g + 3) * Cin,
                         g * Cout:(g + 1) * Cout].set(blk)
    return out


def prepare_params(p):
    kp = {}
    kp["w1g"] = _grouped_conv_weight(p["w_conv1"], 4)          # (54, 32)
    kp["b1g"] = jnp.tile(p["b_conv1"], 4).reshape(1, 32)
    kp["w2g"] = _grouped_conv_weight(p["w_conv2"], 2)          # (96, 32)
    kp["b2g"] = jnp.tile(p["b_conv2"], 2).reshape(1, 32)
    # fc1: permute the input dimension from PyTorch's channel-major NCHW
    # flatten (c*64 + h*8 + w) to the kernel's NHWC flatten (h*128 + w*16 + c),
    # and store as (in, out).
    kp["wf1"] = jnp.transpose(p["w_fc1"].reshape(64, 16, 8, 8),
                              (2, 3, 1, 0)).reshape(1024, 64)
    kp["bf1"] = p["b_fc1"].reshape(1, 64)
    kp["wf2"] = p["w_fc2"].T                                   # (64, 32)
    kp["bf2"] = p["b_fc2"].reshape(1, 32)
    kp["wf3"] = p["w_fc3"].T                                   # (32, 10)
    kp["bf3"] = p["b_fc3"].reshape(1, 10)
    return kp


# ----------------------------------------------------------------------------
# Deterministic PyTorch-layout parameter init (uniform(-1/sqrt(fan_in), ...)).
# ----------------------------------------------------------------------------
def init_params(key):
    ks = jax.random.split(key, 10)

    def u(k, shape, fan_in):
        bound = 1.0 / (fan_in ** 0.5)
        return jax.random.uniform(k, shape, jnp.float32, -bound, bound)

    p = {}
    p["w_conv1"] = u(ks[0], (8, 3, 3, 3), 3 * 9)
    p["b_conv1"] = u(ks[1], (8,), 3 * 9)
    p["w_conv2"] = u(ks[2], (16, 8, 3, 3), 8 * 9)
    p["b_conv2"] = u(ks[3], (16,), 8 * 9)
    p["w_fc1"] = u(ks[4], (64, 1024), 1024)
    p["b_fc1"] = u(ks[5], (64,), 1024)
    p["w_fc2"] = u(ks[6], (32, 64), 64)
    p["b_fc2"] = u(ks[7], (32,), 64)
    p["w_fc3"] = u(ks[8], (10, 32), 32)
    p["b_fc3"] = u(ks[9], (10,), 32)
    return p


# ----------------------------------------------------------------------------
# Pure-XLA reference of the PyTorch module (for numerical validation only).
# ----------------------------------------------------------------------------
def reference_forward(x_nchw, p):
    dn = ("NCHW", "OIHW", "NCHW")
    y = lax.conv_general_dilated(x_nchw, p["w_conv1"], (1, 1),
                                 ((1, 1), (1, 1)), dimension_numbers=dn,
                                 precision=lax.Precision.HIGHEST)
    y = jnp.maximum(y + p["b_conv1"].reshape(1, -1, 1, 1), 0.0)
    y = lax.reduce_window(y, -jnp.inf, lax.max, (1, 1, 2, 2), (1, 1, 2, 2), "VALID")
    y = lax.conv_general_dilated(y, p["w_conv2"], (1, 1),
                                 ((1, 1), (1, 1)), dimension_numbers=dn,
                                 precision=lax.Precision.HIGHEST)
    y = jnp.maximum(y + p["b_conv2"].reshape(1, -1, 1, 1), 0.0)
    y = lax.reduce_window(y, -jnp.inf, lax.max, (1, 1, 2, 2), (1, 1, 2, 2), "VALID")
    f = y.reshape(y.shape[0], 16 * 8 * 8)                      # NCHW flatten
    h = jnp.maximum(f @ p["w_fc1"].T + p["b_fc1"], 0.0)
    h = jnp.maximum(h @ p["w_fc2"].T + p["b_fc2"], 0.0)
    logits = h @ p["w_fc3"].T + p["b_fc3"]
    return jax.nn.log_softmax(logits, axis=1)


if __name__ == "__main__":
    key = jax.random.PRNGKey(0)
    k_param, k_x = jax.random.split(key)
    params = init_params(k_param)
    kparams = prepare_params(params)

    # Input consistent with the module: NCHW, 3 channels, 32x32 spatial, batch=2.
    x = jax.random.normal(k_x, (2, 3, 32, 32), jnp.float32)

    fwd = jax.jit(functools.partial(cnn_forward, kp=kparams))
    out = jax.block_until_ready(fwd(x))

    assert out.shape == (2, 10)
    assert bool(jnp.all(jnp.isfinite(out)))
    # log_softmax sanity: rows exponentiate-and-sum to ~1
    assert bool(jnp.allclose(jnp.sum(jnp.exp(out), axis=1), 1.0, atol=1e-4))
    # cross-check against the pure-XLA reference of the PyTorch module
    ref = reference_forward(x, params)
    assert bool(jnp.allclose(out, ref, atol=2e-3, rtol=2e-3))
    print("KERNEL_OK")
</pallas_src>

<mosaic_0001>
module attributes {stable_mosaic.version = 11 : i64} {
  func.func @_fused_cnn_kernel(%arg0: i32, %arg1: memref<2x32x8x12xf32, #tpu.memory_space<vmem>>, %arg2: memref<54x32xf32, #tpu.memory_space<vmem>>, %arg3: memref<1x32xf32, #tpu.memory_space<vmem>>, %arg4: memref<96x32xf32, #tpu.memory_space<vmem>>, %arg5: memref<1x32xf32, #tpu.memory_space<vmem>>, %arg6: memref<1024x64xf32, #tpu.memory_space<vmem>>, %arg7: memref<1x64xf32, #tpu.memory_space<vmem>>, %arg8: memref<64x32xf32, #tpu.memory_space<vmem>>, %arg9: memref<1x32xf32, #tpu.memory_space<vmem>>, %arg10: memref<32x10xf32, #tpu.memory_space<vmem>>, %arg11: memref<1x10xf32, #tpu.memory_space<vmem>>, %arg12: memref<2x10xf32, #tpu.memory_space<vmem>>) attributes {dimension_semantics = [#tpu.dimension_semantics<arbitrary>], iteration_bounds = array<i64: 1>, scalar_prefetch = 0 : i64, scratch_operands = 0 : i64, tpu.core_type = #tpu.core_type<tc>, window_params = [{pipeline_mode = #tpu.pipeline_mode<synchronous>, transform_indices = @transform_0, window_bounds = array<i64: 2, 32, 8, 12>}, {pipeline_mode = #tpu.pipeline_mode<synchronous>, transform_indices = @transform_1, window_bounds = array<i64: 54, 32>}, {pipeline_mode = #tpu.pipeline_mode<synchronous>, transform_indices = @transform_2, window_bounds = array<i64: 1, 32>}, {pipeline_mode = #tpu.pipeline_mode<synchronous>, transform_indices = @transform_3, window_bounds = array<i64: 96, 32>}, {pipeline_mode = #tpu.pipeline_mode<synchronous>, transform_indices = @transform_4, window_bounds = array<i64: 1, 32>}, {pipeline_mode = #tpu.pipeline_mode<synchronous>, transform_indices = @transform_5, window_bounds = array<i64: 1024, 64>}, {pipeline_mode = #tpu.pipeline_mode<synchronous>, transform_indices = @transform_6, window_bounds = array<i64: 1, 64>}, {pipeline_mode = #tpu.pipeline_mode<synchronous>, transform_indices = @transform_7, window_bounds = array<i64: 64, 32>}, {pipeline_mode = #tpu.pipeline_mode<synchronous>, transform_indices = @transform_8, window_bounds = array<i64: 1, 32>}, {pipeline_mode = #tpu.pipeline_mode<synchronous>, transform_indices = @transform_9, window_bounds = array<i64: 32, 10>}, {pipeline_mode = #tpu.pipeline_mode<synchronous>, transform_indices = @transform_10, window_bounds = array<i64: 1, 10>}, {pipeline_mode = #tpu.pipeline_mode<synchronous>, transform_indices = @transform_11, window_bounds = array<i64: 2, 10>}]} {
    %c0 = arith.constant 0 : index
    %c0_0 = arith.constant 0 : index
    %c0_1 = arith.constant 0 : index
    %c0_2 = arith.constant 0 : index
    %0 = vector.load %arg1[%c0, %c0_0, %c0_1, %c0_2] : memref<2x32x8x12xf32, #tpu.memory_space<vmem>>, vector<2x32x8x12xf32>
    %c0_3 = arith.constant 0 : index
    %c0_4 = arith.constant 0 : index
    %1 = vector.load %arg2[%c0_3, %c0_4] : memref<54x32xf32, #tpu.memory_space<vmem>>, vector<54x32xf32>
    %c0_5 = arith.constant 0 : index
    %c0_6 = arith.constant 0 : index
    %2 = vector.load %arg3[%c0_5, %c0_6] : memref<1x32xf32, #tpu.memory_space<vmem>>, vector<1x32xf32>
    %cst = arith.constant 0.000000e+00 : f32
    %3 = vector.broadcast %cst : f32 to vector<2x1x8x12xf32>
    %4 = tpu.concatenate %3, %0, %3 in 1 : vector<2x1x8x12xf32>, vector<2x32x8x12xf32>, vector<2x1x8x12xf32> -> vector<2x34x8x12xf32>
    %cst_7 = arith.constant 0.000000e+00 : f32
    %5 = vector.broadcast %cst_7 : f32 to vector<2x34x1x12xf32>
    %6 = tpu.concatenate %5, %4, %5 in 2 : vector<2x34x1x12xf32>, vector<2x34x8x12xf32>, vector<2x34x1x12xf32> -> vector<2x34x10x12xf32>
    %7 = vector.extract_strided_slice %6 {offsets = [0, 0, 0, 0], sizes = [2, 32, 10, 12], strides = [1, 1, 1, 1]} : vector<2x34x10x12xf32> to vector<2x32x10x12xf32>
    %8 = vector.extract_strided_slice %7 {offsets = [0, 0, 0, 9], sizes = [2, 32, 8, 3], strides = [1, 1, 1, 1]} : vector<2x32x10x12xf32> to vector<2x32x8x3xf32>
    %9 = vector.extract_strided_slice %7 {offsets = [0, 0, 1, 0], sizes = [2, 32, 8, 12], strides = [1, 1, 1, 1]} : vector<2x32x10x12xf32> to vector<2x32x8x12xf32>
    %10 = vector.extract_strided_slice %7 {offsets = [0, 0, 2, 0], sizes = [2, 32, 8, 3], strides = [1, 1, 1, 1]} : vector<2x32x10x12xf32> to vector<2x32x8x3xf32>
    %11 = tpu.concatenate %8, %9, %10 in 3 : vector<2x32x8x3xf32>, vector<2x32x8x12xf32>, vector<2x32x8x3xf32> -> vector<2x32x8x18xf32>
    %12 = vector.extract_strided_slice %6 {offsets = [0, 1, 0, 0], sizes = [2, 32, 10, 12], strides = [1, 1, 1, 1]} : vector<2x34x10x12xf32> to vector<2x32x10x12xf32>
    %13 = vector.extract_strided_slice %12 {offsets = [0, 0, 0, 9], sizes = [2, 32, 8, 3], strides = [1, 1, 1, 1]} : vector<2x32x10x12xf32> to vector<2x32x8x3xf32>
    %14 = vector.extract_strided_slice %12 {offsets = [0, 0, 1, 0], sizes = [2, 32, 8, 12], strides = [1, 1, 1, 1]} : vector<2x32x10x12xf32> to vector<2x32x8x12xf32>
    %15 = vector.extract_strided_slice %12 {offsets = [0, 0, 2, 0], sizes = [2, 32, 8, 3], strides = [1, 1, 1, 1]} : vector<2x32x10x12xf32> to vector<2x32x8x3xf32>
    %16 = tpu.concatenate %13, %14, %15 in 3 : vector<2x32x8x3xf32>, vector<2x32x8x12xf32>, vector<2x32x8x3xf32> -> vector<2x32x8x18xf32>
    %17 = vector.extract_strided_slice %6 {offsets = [0, 2, 0, 0], sizes = [2, 32, 10, 12], strides = [1, 1, 1, 1]} : vector<2x34x10x12xf32> to vector<2x32x10x12xf32>
    %18 = vector.extract_strided_slice %17 {offsets = [0, 0, 0, 9], sizes = [2, 32, 8, 3], strides = [1, 1, 1, 1]} : vector<2x32x10x12xf32> to vector<2x32x8x3xf32>
    %19 = vector.extract_strided_slice %17 {offsets = [0, 0, 1, 0], sizes = [2, 32, 8, 12], strides = [1, 1, 1, 1]} : vector<2x32x10x12xf32> to vector<2x32x8x12xf32>
    %20 = vector.extract_strided_slice %17 {offsets = [0, 0, 2, 0], sizes = [2, 32, 8, 3], strides = [1, 1, 1, 1]} : vector<2x32x10x12xf32> to vector<2x32x8x3xf32>
    %21 = tpu.concatenate %18, %19, %20 in 3 : vector<2x32x8x3xf32>, vector<2x32x8x12xf32>, vector<2x32x8x3xf32> -> vector<2x32x8x18xf32>
    %22 = tpu.concatenate %11, %16, %21 in 3 : vector<2x32x8x18xf32>, vector<2x32x8x18xf32>, vector<2x32x8x18xf32> -> vector<2x32x8x54xf32>
    %23 = vector.shape_cast %22 : vector<2x32x8x54xf32> to vector<512x54xf32>
    %cst_8 = arith.constant dense<0.000000e+00> : vector<512x32xf32>
    %24 = tpu.matmul %23, %1, %cst_8 {dimension_numbers = #tpu.dot_dimension_numbers<[1], [0], [0], [1], [0, 0, 1, 1], [], []>} : vector<512x54xf32>, vector<54x32xf32>, vector<512x32xf32> -> vector<512x32xf32>
    %25 = vector.broadcast %2 : vector<1x32xf32> to vector<512x32xf32>
    %26 = arith.addf %24, %25 : vector<512x32xf32>
    %cst_9 = arith.constant 0.000000e+00 : f32
    %27 = vector.broadcast %cst_9 : f32 to vector<512x32xf32>
    %28 = arith.maximumf %26, %27 : vector<512x32xf32>
    %29 = vector.shape_cast %28 : vector<512x32xf32> to vector<2x32x8x32xf32>
    %30 = vector.extract_strided_slice %29 {offsets = [0, 0, 0, 0], sizes = [2, 32, 8, 8], strides = [1, 1, 1, 1]} : vector<2x32x8x32xf32> to vector<2x32x8x8xf32>
    %31 = vector.extract_strided_slice %29 {offsets = [0, 0, 0, 8], sizes = [2, 32, 8, 8], strides = [1, 1, 1, 1]} : vector<2x32x8x32xf32> to vector<2x32x8x8xf32>
    %32 = arith.maximumf %30, %31 : vector<2x32x8x8xf32>
    %33 = vector.extract_strided_slice %29 {offsets = [0, 0, 0, 16], sizes = [2, 32, 8, 8], strides = [1, 1, 1, 1]} : vector<2x32x8x32xf32> to vector<2x32x8x8xf32>
    %34 = vector.extract_strided_slice %29 {offsets = [0, 0, 0, 24], sizes = [2, 32, 8, 8], strides = [1, 1, 1, 1]} : vector<2x32x8x32xf32> to vector<2x32x8x8xf32>
    %35 = arith.maximumf %33, %34 : vector<2x32x8x8xf32>
    %36 = tpu.concatenate %32, %35 in 3 : vector<2x32x8x8xf32>, vector<2x32x8x8xf32> -> vector<2x32x8x16xf32>
    %37 = vector.shape_cast %36 : vector<2x32x8x16xf32> to vector<2x16x2x8x16xf32>
    %38 = vector.extract_strided_slice %37 {offsets = [0, 0, 0, 0, 0], sizes = [2, 16, 1, 8, 16], strides = [1, 1, 1, 1, 1]} : vector<2x16x2x8x16xf32> to vector<2x16x1x8x16xf32>
    %39 = vector.shape_cast %38 : vector<2x16x1x8x16xf32> to vector<2x16x8x16xf32>
    %40 = vector.extract_strided_slice %37 {offsets = [0, 0, 1, 0, 0], sizes = [2, 16, 1, 8, 16], strides = [1, 1, 1, 1, 1]} : vector<2x16x2x8x16xf32> to vector<2x16x1x8x16xf32>
    %41 = vector.shape_cast %40 : vector<2x16x1x8x16xf32> to vector<2x16x8x16xf32>
    %42 = arith.maximumf %39, %41 : vector<2x16x8x16xf32>
    %c0_10 = arith.constant 0 : index
    %c0_11 = arith.constant 0 : index
    %43 = vector.load %arg4[%c0_10, %c0_11] : memref<96x32xf32, #tpu.memory_space<vmem>>, vector<96x32xf32>
    %c0_12 = arith.constant 0 : index
    %c0_13 = arith.constant 0 : index
    %44 = vector.load %arg5[%c0_12, %c0_13] : memref<1x32xf32, #tpu.memory_space<vmem>>, vector<1x32xf32>
    %cst_14 = arith.constant 0.000000e+00 : f32
    %45 = vector.broadcast %cst_14 : f32 to vector<2x1x8x16xf32>
    %46 = tpu.concatenate %45, %42, %45 in 1 : vector<2x1x8x16xf32>, vector<2x16x8x16xf32>, vector<2x1x8x16xf32> -> vector<2x18x8x16xf32>
    %cst_15 = arith.constant 0.000000e+00 : f32
    %47 = vector.broadcast %cst_15 : f32 to vector<2x18x1x16xf32>
    %48 = tpu.concatenate %47, %46, %47 in 2 : vector<2x18x1x16xf32>, vector<2x18x8x16xf32>, vector<2x18x1x16xf32> -> vector<2x18x10x16xf32>
    %49 = vector.extract_strided_slice %48 {offsets = [0, 0, 0, 0], sizes = [2, 16, 10, 16], strides = [1, 1, 1, 1]} : vector<2x18x10x16xf32> to vector<2x16x10x16xf32>
    %50 = vector.extract_strided_slice %49 {offsets = [0, 0, 0, 8], sizes = [2, 16, 8, 8], strides = [1, 1, 1, 1]} : vector<2x16x10x16xf32> to vector<2x16x8x8xf32>
    %51 = vector.extract_strided_slice %49 {offsets = [0, 0, 1, 0], sizes = [2, 16, 8, 16], strides = [1, 1, 1, 1]} : vector<2x16x10x16xf32> to vector<2x16x8x16xf32>
    %52 = vector.extract_strided_slice %49 {offsets = [0, 0, 2, 0], sizes = [2, 16, 8, 8], strides = [1, 1, 1, 1]} : vector<2x16x10x16xf32> to vector<2x16x8x8xf32>
    %53 = tpu.concatenate %50, %51, %52 in 3 : vector<2x16x8x8xf32>, vector<2x16x8x16xf32>, vector<2x16x8x8xf32> -> vector<2x16x8x32xf32>
    %54 = vector.extract_strided_slice %48 {offsets = [0, 1, 0, 0], sizes = [2, 16, 10, 16], strides = [1, 1, 1, 1]} : vector<2x18x10x16xf32> to vector<2x16x10x16xf32>
    %55 = vector.extract_strided_slice %54 {offsets = [0, 0, 0, 8], sizes = [2, 16, 8, 8], strides = [1, 1, 1, 1]} : vector<2x16x10x16xf32> to vector<2x16x8x8xf32>
    %56 = vector.extract_strided_slice %54 {offsets = [0, 0, 1, 0], sizes = [2, 16, 8, 16], strides = [1, 1, 1, 1]} : vector<2x16x10x16xf32> to vector<2x16x8x16xf32>
    %57 = vector.extract_strided_slice %54 {offsets = [0, 0, 2, 0], sizes = [2, 16, 8, 8], strides = [1, 1, 1, 1]} : vector<2x16x10x16xf32> to vector<2x16x8x8xf32>
    %58 = tpu.concatenate %55, %56, %57 in 3 : vector<2x16x8x8xf32>, vector<2x16x8x16xf32>, vector<2x16x8x8xf32> -> vector<2x16x8x32xf32>
    %59 = vector.extract_strided_slice %48 {offsets = [0, 2, 0, 0], sizes = [2, 16, 10, 16], strides = [1, 1, 1, 1]} : vector<2x18x10x16xf32> to vector<2x16x10x16xf32>
    %60 = vector.extract_strided_slice %59 {offsets = [0, 0, 0, 8], sizes = [2, 16, 8, 8], strides = [1, 1, 1, 1]} : vector<2x16x10x16xf32> to vector<2x16x8x8xf32>
    %61 = vector.extract_strided_slice %59 {offsets = [0, 0, 1, 0], sizes = [2, 16, 8, 16], strides = [1, 1, 1, 1]} : vector<2x16x10x16xf32> to vector<2x16x8x16xf32>
    %62 = vector.extract_strided_slice %59 {offsets = [0, 0, 2, 0], sizes = [2, 16, 8, 8], strides = [1, 1, 1, 1]} : vector<2x16x10x16xf32> to vector<2x16x8x8xf32>
    %63 = tpu.concatenate %60, %61, %62 in 3 : vector<2x16x8x8xf32>, vector<2x16x8x16xf32>, vector<2x16x8x8xf32> -> vector<2x16x8x32xf32>
    %64 = tpu.concatenate %53, %58, %63 in 3 : vector<2x16x8x32xf32>, vector<2x16x8x32xf32>, vector<2x16x8x32xf32> -> vector<2x16x8x96xf32>
    %65 = vector.shape_cast %64 : vector<2x16x8x96xf32> to vector<256x96xf32>
    %cst_16 = arith.constant dense<0.000000e+00> : vector<256x32xf32>
    %66 = tpu.matmul %65, %43, %cst_16 {dimension_numbers = #tpu.dot_dimension_numbers<[1], [0], [0], [1], [0, 0, 1, 1], [], []>} : vector<256x96xf32>, vector<96x32xf32>, vector<256x32xf32> -> vector<256x32xf32>
    %67 = vector.broadcast %44 : vector<1x32xf32> to vector<256x32xf32>
    %68 = arith.addf %66, %67 : vector<256x32xf32>
    %cst_17 = arith.constant 0.000000e+00 : f32
    %69 = vector.broadcast %cst_17 : f32 to vector<256x32xf32>
    %70 = arith.maximumf %68, %69 : vector<256x32xf32>
    %71 = vector.shape_cast %70 : vector<256x32xf32> to vector<2x16x8x32xf32>
    %72 = vector.extract_strided_slice %71 {offsets = [0, 0, 0, 0], sizes = [2, 16, 8, 16], strides = [1, 1, 1, 1]} : vector<2x16x8x32xf32> to vector<2x16x8x16xf32>
    %73 = vector.extract_strided_slice %71 {offsets = [0, 0, 0, 16], sizes = [2, 16, 8, 16], strides = [1, 1, 1, 1]} : vector<2x16x8x32xf32> to vector<2x16x8x16xf32>
    %74 = arith.maximumf %72, %73 : vector<2x16x8x16xf32>
    %75 = vector.shape_cast %74 : vector<2x16x8x16xf32> to vector<2x8x2x8x16xf32>
    %76 = vector.extract_strided_slice %75 {offsets = [0, 0, 0, 0, 0], sizes = [2, 8, 1, 8, 16], strides = [1, 1, 1, 1, 1]} : vector<2x8x2x8x16xf32> to vector<2x8x1x8x16xf32>
    %77 = vector.shape_cast %76 : vector<2x8x1x8x16xf32> to vector<2x8x8x16xf32>
    %78 = vector.extract_strided_slice %75 {offsets = [0, 0, 1, 0, 0], sizes = [2, 8, 1, 8, 16], strides = [1, 1, 1, 1, 1]} : vector<2x8x2x8x16xf32> to vector<2x8x1x8x16xf32>
    %79 = vector.shape_cast %78 : vector<2x8x1x8x16xf32> to vector<2x8x8x16xf32>
    %80 = arith.maximumf %77, %79 : vector<2x8x8x16xf32>
    %81 = vector.extract_strided_slice %80 {offsets = [0, 0, 0, 0], sizes = [2, 8, 1, 16], strides = [1, 1, 1, 1]} : vector<2x8x8x16xf32> to vector<2x8x1x16xf32>
    %82 = vector.shape_cast %81 : vector<2x8x1x16xf32> to vector<2x8x16xf32>
    %83 = vector.extract_strided_slice %80 {offsets = [0, 0, 1, 0], sizes = [2, 8, 1, 16], strides = [1, 1, 1, 1]} : vector<2x8x8x16xf32> to vector<2x8x1x16xf32>
    %84 = vector.shape_cast %83 : vector<2x8x1x16xf32> to vector<2x8x16xf32>
    %85 = vector.extract_strided_slice %80 {offsets = [0, 0, 2, 0], sizes = [2, 8, 1, 16], strides = [1, 1, 1, 1]} : vector<2x8x8x16xf32> to vector<2x8x1x16xf32>
    %86 = vector.shape_cast %85 : vector<2x8x1x16xf32> to vector<2x8x16xf32>
    %87 = vector.extract_strided_slice %80 {offsets = [0, 0, 3, 0], sizes = [2, 8, 1, 16], strides = [1, 1, 1, 1]} : vector<2x8x8x16xf32> to vector<2x8x1x16xf32>
    %88 = vector.shape_cast %87 : vector<2x8x1x16xf32> to vector<2x8x16xf32>
    %89 = vector.extract_strided_slice %80 {offsets = [0, 0, 4, 0], sizes = [2, 8, 1, 16], strides = [1, 1, 1, 1]} : vector<2x8x8x16xf32> to vector<2x8x1x16xf32>
    %90 = vector.shape_cast %89 : vector<2x8x1x16xf32> to vector<2x8x16xf32>
    %91 = vector.extract_strided_slice %80 {offsets = [0, 0, 5, 0], sizes = [2, 8, 1, 16], strides = [1, 1, 1, 1]} : vector<2x8x8x16xf32> to vector<2x8x1x16xf32>
    %92 = vector.shape_cast %91 : vector<2x8x1x16xf32> to vector<2x8x16xf32>
    %93 = vector.extract_strided_slice %80 {offsets = [0, 0, 6, 0], sizes = [2, 8, 1, 16], strides = [1, 1, 1, 1]} : vector<2x8x8x16xf32> to vector<2x8x1x16xf32>
    %94 = vector.shape_cast %93 : vector<2x8x1x16xf32> to vector<2x8x16xf32>
    %95 = vector.extract_strided_slice %80 {offsets = [0, 0, 7, 0], sizes = [2, 8, 1, 16], strides = [1, 1, 1, 1]} : vector<2x8x8x16xf32> to vector<2x8x1x16xf32>
    %96 = vector.shape_cast %95 : vector<2x8x1x16xf32> to vector<2x8x16xf32>
    %97 = tpu.concatenate %82, %84, %86, %88, %90, %92, %94, %96 in 2 : vector<2x8x16xf32>, vector<2x8x16xf32>, vector<2x8x16xf32>, vector<2x8x16xf32>, vector<2x8x16xf32>, vector<2x8x16xf32>, vector<2x8x16xf32>, vector<2x8x16xf32> -> vector<2x8x128xf32>
    %98 = vector.extract_strided_slice %97 {offsets = [0, 0, 0], sizes = [2, 1, 128], strides = [1, 1, 1]} : vector<2x8x128xf32> to vector<2x1x128xf32>
    %99 = vector.shape_cast %98 : vector<2x1x128xf32> to vector<2x128xf32>
    %100 = vector.extract_strided_slice %97 {offsets = [0, 1, 0], sizes = [2, 1, 128], strides = [1, 1, 1]} : vector<2x8x128xf32> to vector<2x1x128xf32>
    %101 = vector.shape_cast %100 : vector<2x1x128xf32> to vector<2x128xf32>
    %102 = vector.extract_strided_slice %97 {offsets = [0, 2, 0], sizes = [2, 1, 128], strides = [1, 1, 1]} : vector<2x8x128xf32> to vector<2x1x128xf32>
    %103 = vector.shape_cast %102 : vector<2x1x128xf32> to vector<2x128xf32>
    %104 = vector.extract_strided_slice %97 {offsets = [0, 3, 0], sizes = [2, 1, 128], strides = [1, 1, 1]} : vector<2x8x128xf32> to vector<2x1x128xf32>
    %105 = vector.shape_cast %104 : vector<2x1x128xf32> to vector<2x128xf32>
    %106 = vector.extract_strided_slice %97 {offsets = [0, 4, 0], sizes = [2, 1, 128], strides = [1, 1, 1]} : vector<2x8x128xf32> to vector<2x1x128xf32>
    %107 = vector.shape_cast %106 : vector<2x1x128xf32> to vector<2x128xf32>
    %108 = vector.extract_strided_slice %97 {offsets = [0, 5, 0], sizes = [2, 1, 128], strides = [1, 1, 1]} : vector<2x8x128xf32> to vector<2x1x128xf32>
    %109 = vector.shape_cast %108 : vector<2x1x128xf32> to vector<2x128xf32>
    %110 = vector.extract_strided_slice %97 {offsets = [0, 6, 0], sizes = [2, 1, 128], strides = [1, 1, 1]} : vector<2x8x128xf32> to vector<2x1x128xf32>
    %111 = vector.shape_cast %110 : vector<2x1x128xf32> to vector<2x128xf32>
    %112 = vector.extract_strided_slice %97 {offsets = [0, 7, 0], sizes = [2, 1, 128], strides = [1, 1, 1]} : vector<2x8x128xf32> to vector<2x1x128xf32>
    %113 = vector.shape_cast %112 : vector<2x1x128xf32> to vector<2x128xf32>
    %114 = tpu.concatenate %99, %101, %103, %105, %107, %109, %111, %113 in 1 : vector<2x128xf32>, vector<2x128xf32>, vector<2x128xf32>, vector<2x128xf32>, vector<2x128xf32>, vector<2x128xf32>, vector<2x128xf32>, vector<2x128xf32> -> vector<2x1024xf32>
    %c0_18 = arith.constant 0 : index
    %c0_19 = arith.constant 0 : index
    %115 = vector.load %arg6[%c0_18, %c0_19] : memref<1024x64xf32, #tpu.memory_space<vmem>>, vector<1024x64xf32>
    %cst_20 = arith.constant dense<0.000000e+00> : vector<2x64xf32>
    %116 = tpu.matmul %114, %115, %cst_20 {dimension_numbers = #tpu.dot_dimension_numbers<[1], [0], [0], [1], [0, 0, 1, 1], [], []>} : vector<2x1024xf32>, vector<1024x64xf32>, vector<2x64xf32> -> vector<2x64xf32>
    %c0_21 = arith.constant 0 : index
    %c0_22 = arith.constant 0 : index
    %117 = vector.load %arg7[%c0_21, %c0_22] : memref<1x64xf32, #tpu.memory_space<vmem>>, vector<1x64xf32>
    %118 = vector.broadcast %117 : vector<1x64xf32> to vector<2x64xf32>
    %119 = arith.addf %116, %118 : vector<2x64xf32>
    %cst_23 = arith.constant 0.000000e+00 : f32
    %120 = vector.broadcast %cst_23 : f32 to vector<2x64xf32>
    %121 = arith.maximumf %119, %120 : vector<2x64xf32>
    %c0_24 = arith.constant 0 : index
    %c0_25 = arith.constant 0 : index
    %122 = vector.load %arg8[%c0_24, %c0_25] : memref<64x32xf32, #tpu.memory_space<vmem>>, vector<64x32xf32>
    %cst_26 = arith.constant dense<0.000000e+00> : vector<2x32xf32>
    %123 = tpu.matmul %121, %122, %cst_26 {dimension_numbers = #tpu.dot_dimension_numbers<[1], [0], [0], [1], [0, 0, 1, 1], [], []>} : vector<2x64xf32>, vector<64x32xf32>, vector<2x32xf32> -> vector<2x32xf32>
    %c0_27 = arith.constant 0 : index
    %c0_28 = arith.constant 0 : index
    %124 = vector.load %arg9[%c0_27, %c0_28] : memref<1x32xf32, #tpu.memory_space<vmem>>, vector<1x32xf32>
    %125 = vector.broadcast %124 : vector<1x32xf32> to vector<2x32xf32>
    %126 = arith.addf %123, %125 : vector<2x32xf32>
    %cst_29 = arith.constant 0.000000e+00 : f32
    %127 = vector.broadcast %cst_29 : f32 to vector<2x32xf32>
    %128 = arith.maximumf %126, %127 : vector<2x32xf32>
    %c0_30 = arith.constant 0 : index
    %c0_31 = arith.constant 0 : index
    %129 = vector.load %arg10[%c0_30, %c0_31] : memref<32x10xf32, #tpu.memory_space<vmem>>, vector<32x10xf32>
    %cst_32 = arith.constant dense<0.000000e+00> : vector<2x10xf32>
    %130 = tpu.matmul %128, %129, %cst_32 {dimension_numbers = #tpu.dot_dimension_numbers<[1], [0], [0], [1], [0, 0, 1, 1], [], []>} : vector<2x32xf32>, vector<32x10xf32>, vector<2x10xf32> -> vector<2x10xf32>
    %c0_33 = arith.constant 0 : index
    %c0_34 = arith.constant 0 : index
    %131 = vector.load %arg11[%c0_33, %c0_34] : memref<1x10xf32, #tpu.memory_space<vmem>>, vector<1x10xf32>
    %132 = vector.broadcast %131 : vector<1x10xf32> to vector<2x10xf32>
    %133 = arith.addf %130, %132 : vector<2x10xf32>
    %cst_35 = arith.constant dense<0xFF800000> : vector<2xf32>
    %134 = vector.multi_reduction <maximumf>, %133, %cst_35 [1] : vector<2x10xf32> to vector<2xf32>
    %135 = vector.shape_cast %134 : vector<2xf32> to vector<2x1xf32>
    %136 = vector.broadcast %135 : vector<2x1xf32> to vector<2x10xf32>
    %137 = arith.subf %133, %136 : vector<2x10xf32>
    %138 = math.exp %137 : vector<2x10xf32>
    %cst_36 = arith.constant dense<0.000000e+00> : vector<2xf32>
    %139 = vector.multi_reduction <add>, %138, %cst_36 [1] : vector<2x10xf32> to vector<2xf32>
    %140 = vector.shape_cast %139 : vector<2xf32> to vector<2x1xf32>
    %141 = math.log %140 : vector<2x1xf32>
    %142 = vector.broadcast %141 : vector<2x1xf32> to vector<2x10xf32>
    %143 = arith.subf %137, %142 : vector<2x10xf32>
    %c0_37 = arith.constant 0 : index
    %c0_38 = arith.constant 0 : index
    %144 = vector.load %arg12[%c0_37, %c0_38] : memref<2x10xf32, #tpu.memory_space<vmem>>, vector<2x10xf32>
    tpu.vector_store %arg12[%c0_37, %c0_38], %143 {strides = array<i32>} : memref<2x10xf32, #tpu.memory_space<vmem>>, vector<2x10xf32>,
    return
  }
  func.func @transform_0(%arg0: i32) -> (i32, i32, i32, i32) {
    %c0_i32 = arith.constant 0 : i32
    %c0_i32_0 = arith.constant 0 : i32
    %c0_i32_1 = arith.constant 0 : i32
    %c0_i32_2 = arith.constant 0 : i32
    %c0_i32_3 = arith.constant 0 : i32
    return %c0_i32, %c0_i32_0, %c0_i32_1, %c0_i32_2 : i32, i32, i32, i32
  }
  func.func @transform_1(%arg0: i32) -> (i32, i32) {
    %c0_i32 = arith.constant 0 : i32
    %c0_i32_0 = arith.constant 0 : i32
    %c0_i32_1 = arith.constant 0 : i32
    return %c0_i32, %c0_i32_0 : i32, i32
  }
  func.func @transform_2(%arg0: i32) -> (i32, i32) {
    %c0_i32 = arith.constant 0 : i32
    %c0_i32_0 = arith.constant 0 : i32
    %c0_i32_1 = arith.constant 0 : i32
    return %c0_i32, %c0_i32_0 : i32, i32
  }
  func.func @transform_3(%arg0: i32) -> (i32, i32) {
    %c0_i32 = arith.constant 0 : i32
    %c0_i32_0 = arith.constant 0 : i32
    %c0_i32_1 = arith.constant 0 : i32
    return %c0_i32, %c0_i32_0 : i32, i32
  }
  func.func @transform_4(%arg0: i32) -> (i32, i32) {
    %c0_i32 = arith.constant 0 : i32
    %c0_i32_0 = arith.constant 0 : i32
    %c0_i32_1 = arith.constant 0 : i32
    return %c0_i32, %c0_i32_0 : i32, i32
  }
  func.func @transform_5(%arg0: i32) -> (i32, i32) {
    %c0_i32 = arith.constant 0 : i32
    %c0_i32_0 = arith.constant 0 : i32
    %c0_i32_1 = arith.constant 0 : i32
    return %c0_i32, %c0_i32_0 : i32, i32
  }
  func.func @transform_6(%arg0: i32) -> (i32, i32) {
    %c0_i32 = arith.constant 0 : i32
    %c0_i32_0 = arith.constant 0 : i32
    %c0_i32_1 = arith.constant 0 : i32
    return %c0_i32, %c0_i32_0 : i32, i32
  }
  func.func @transform_7(%arg0: i32) -> (i32, i32) {
    %c0_i32 = arith.constant 0 : i32
    %c0_i32_0 = arith.constant 0 : i32
    %c0_i32_1 = arith.constant 0 : i32
    return %c0_i32, %c0_i32_0 : i32, i32
  }
  func.func @transform_8(%arg0: i32) -> (i32, i32) {
    %c0_i32 = arith.constant 0 : i32
    %c0_i32_0 = arith.constant 0 : i32
    %c0_i32_1 = arith.constant 0 : i32
    return %c0_i32, %c0_i32_0 : i32, i32
  }
  func.func @transform_9(%arg0: i32) -> (i32, i32) {
    %c0_i32 = arith.constant 0 : i32
    %c0_i32_0 = arith.constant 0 : i32
    %c0_i32_1 = arith.constant 0 : i32
    return %c0_i32, %c0_i32_0 : i32, i32
  }
  func.func @transform_10(%arg0: i32) -> (i32, i32) {
    %c0_i32 = arith.constant 0 : i32
    %c0_i32_0 = arith.constant 0 : i32
    %c0_i32_1 = arith.constant 0 : i32
    return %c0_i32, %c0_i32_0 : i32, i32
  }
  func.func @transform_11(%arg0: i32) -> (i32, i32) {
    %c0_i32 = arith.constant 0 : i32
    %c0_i32_0 = arith.constant 0 : i32
    %c0_i32_1 = arith.constant 0 : i32
    return %c0_i32, %c0_i32_0 : i32, i32
  }
}

</mosaic_0001>

<bundles_post_ra>
// kernel: cnn_forward.1
= control target key start
LH: loop header
LB: loop body
LE: loop exit
PB: predicated region body
PF: predicated region fallthrough
CT: control target
= control target key end

     0   :  { %16 = vsyncpa [#allocation3], 0  ;;  %s11891_s0 = inlined_call_operand.vmem [shape: f32[2,32,8,12], index: 0, kind: input, shape index: {}]   ;;  %s11892_s1 = inlined_call_operand.hbm [shape: f32[54,32], index: 1, kind: input, shape index: {}]   ;;  %s11893_s2 = inlined_call_operand.vmem [shape: f32[1,32], index: 2, kind: input, shape index: {}]   ;;  %s11894_s3 = inlined_call_operand.hbm [shape: f32[96,32], index: 3, kind: input, shape index: {}]   ;;  %s11895_s4 = inlined_call_operand.vmem [shape: f32[1,32], index: 4, kind: input, shape index: {}]   ;;  %s11896_s5 = inlined_call_operand.vmem [shape: f32[1024,64], index: 5, kind: input, shape index: {}]   ;;  %s11897_s6 = inlined_call_operand.vmem [shape: f32[1,64], index: 6, kind: input, shape index: {}]   ;;  %s11898_s7 = inlined_call_operand.vmem [shape: f32[64,32], index: 7, kind: input, shape index: {}]   ;;  %s11899_s8 = inlined_call_operand.vmem [shape: f32[1,32], index: 8, kind: input, shape index: {}]   ;;  %s11900_s9 = inlined_call_operand.hbm [shape: f32[32,10], index: 9, kind: input, shape index: {}]   ;;  %s11901_s10 = inlined_call_operand.vmem [shape: f32[1,10], index: 10, kind: input, shape index: {}]   ;;  %s11902_s11 = inlined_call_operand.hbm [shape: f32[2,10], index: 11, kind: output, shape index: {}]  }
   0x1   :  { %17 = vsyncpa [#allocation6], 0 }
   0x2   :  { %18 = vsyncpa [#allocation4], 0  ;;  %s40_s19 = sshll.u32 %s11894_s3, 4  ;;  %s6041_s20 = smov [#allocation5]   ;;  %s41_s19 = int_to_ptr.hbm [resolvable:$true] %s40_s19 }
   0x3   :  { %s42_s21 = sshll.u32 %s6041_s20, 4  ;;  %s25_s24 = sshll.u32 %s11892_s1, 4  ;;  %s43_s21 = int_to_ptr.vmem [resolvable:$true] %s42_s21  ;;  %s26_s24 = int_to_ptr.hbm [resolvable:$true] %s25_s24 }
   0x4   :  { %s6042_s25 = smov 128   ;;  %s6043_s26 = smov 8  }
   0x5   :  { %48 = dma.hbm_to_vmem [thread:$0]  %s41_s19, 1536, %s43_s21, [#allocation6], %s6042_s25, %s6042_s25, %s6043_s26  }
   0x6   :  { %s6044_s27 = smov [#allocation2]   ;;  %s63_s12 = sshll.u32 %s11900_s9, 4  ;;  %s64_s12 = int_to_ptr.hbm [resolvable:$true] %s63_s12 }
   0x7   :  { %s27_s28 = sshll.u32 %s6044_s27, 4  ;;  %s6045_s3 = smov [#allocation7]   ;;  %s28_s28 = int_to_ptr.vmem [resolvable:$true] %s27_s28 }
   0x8   :  { %33 = dma.hbm_to_vmem [thread:$0]  %s26_s24, 896, %s28_s28, [#allocation3], %s6042_s25, %s6042_s25, %s6043_s26  }
   0x9   :  { %s65_s13 = sshll.u32 %s6045_s3, 4  ;;  %s66_s13 = int_to_ptr.vmem [resolvable:$true] %s65_s13 }
   0xa   :  { %71 = dma.hbm_to_vmem [thread:$0]  %s64_s12, 512, %s66_s13, [#allocation6], %s6042_s25, %s6042_s25, %s6043_s26  }
   0xb   :  { %6035 = dma.done.wait [#allocation3], 896  }
   0xc   :  { %6036 = vsyncadd [#allocation3], 4294966400 }
   0xd   :  { %6037 = dma.done.wait [#allocation6], 2048  }
   0xe   :  { %6038 = vsyncadd [#allocation6], 4294965248  ;;  %vm353_vm0 = vcmask 1040384   ;;  %v6046_v0 = vmov 0.0   ;;  %s6047_s1 = smov 119   ;;  %v6145_v3 = vld [vmem:[%s11891_s0 + $0x18] sm:$0xff] }
   0xf   :  { %v6134_v1 = vrot.slane %v6046_v0, 7  ;;  %v6150_v4 = vld [vmem:[%s11891_s0 + $0x8] sm:$0xff]  ;;  %v6155_v5 = vld [vmem:[%s11891_s0] sm:$0xff]  ;;  %v11925_v6 = vrot.slane %v6145_v3, 7  ;;  %v6168_v10 = vld [vmem:[%s11891_s0 + $0x10] sm:$0xff]  ;;  %vm799_vm1 = vcmask 1046528  }
  0x10   :  { %v11929_v7 = vrot.slane %v6150_v4, 7  ;;  %v11928_v8 = vrot.slane %v6155_v5, 7  ;;  %v6163_v9 = vld [vmem:[%s11891_s0 + $0x20] sm:$0xff]  ;;  %v6187_v13 = vld [vmem:[%s11891_s0 + $0x28] sm:$0xff]  ;;  %v11926_v16 = vrot.slane %v6168_v10, 7  ;;  %v6212_v20 = vld [vmem:[%s11891_s0 + $0x38] sm:$0xff] }
  0x11   :  { %v6138_v2 = vsel %vm353_vm0, 0.0, %v6134_v1  ;;  %v6173_v11 = vsel %vm353_vm0, 0.0, %v11925_v6  ;;  %v11922_v15 = vrot.slane %v6163_v9, 7  ;;  %v11921_v17 = vrot.slane %v6187_v13, 7  ;;  %v6217_v21 = vld [vmem:[%s11891_s0 + $0x30] sm:$0xff]  ;;  %v6231_v23 = vld [vmem:[%s11891_s0 + $0x40] sm:$0xff] }
  0x12   :  { %12127 = vst [vmem:[#allocation12_spill] sm:$0xff] %v6138_v2  ;;  %547 = vrot.lane.b32.xlu0 %v6138_v2, %s6047_s1  ;;  %v6178_v12 = vsel %vm353_vm0, 0.0, %v11929_v7  ;;  %555 = vrot.lane.b32.xlu2 %v6173_v11, %s6047_s1  ;;  %v6192_v14 = vsel %vm353_vm0, 0.0, %v11928_v8  ;;  %v6207_v19 = vsel %vm353_vm0, 0.0, %v11926_v16  ;;  %v11920_v24 = vrot.slane %v6212_v20, 7  ;;  %v6251_v29 = vld [vmem:[%s11891_s0 + $0x50] sm:$0xff] }
  0x13   :  { %12128 = vst [vmem:[#allocation13_spill] sm:$0xff] %v6178_v12  ;;  %551 = vrot.lane.b32.xlu1 %v6178_v12, %s6047_s1  ;;  %v6202_v18 = vsel %vm353_vm0, 0.0, %v11922_v15  ;;  %v6222_v22 = vsel %vm353_vm0, 0.0, %v11921_v17  ;;  %v11919_v25 = vrot.slane %v6217_v21, 7  ;;  %v11917_v26 = vrot.slane %v6231_v23, 7  ;;  %v6256_v30 = vld [vmem:[%s11891_s0 + $0x48] sm:$0xff] }
  0x14   :  { %12129 = vst [vmem:[#allocation14_spill] sm:$0xff] %v6192_v14  ;;  %v6241_v27 = vsel %vm353_vm0, 0.0, %v11920_v24  ;;  %v6270_v32 = vld [vmem:[%s11891_s0 + $0x58] sm:$0xff]  ;;  %v11916_v33 = vrot.slane %v6251_v29, 7  ;;  %v11913_v34 = vrot.slane %v6256_v30, 7  ;;  %v6290_v38 = vld [vmem:[%s11891_s0 + $0x68] sm:$0xff] }
  0x15   :  { %v6246_v28 = vsel %vm353_vm0, 0.0, %v11919_v25  ;;  %v6261_v31 = vsel %vm353_vm0, 0.0, %v11917_v26  ;;  %v11912_v35 = vrot.slane %v6270_v32, 7  ;;  %v6295_v39 = vld [vmem:[%s11891_s0 + $0x60] sm:$0xff]  ;;  %v6309_v41 = vld [vmem:[%s11891_s0 + $0x70] sm:$0xff]  ;;  %v11911_v42 = vrot.slane %v6290_v38, 7 }
  0x16   :  { %v6280_v36 = vsel %vm353_vm0, 0.0, %v11916_v33  ;;  %v6285_v37 = vsel %vm353_vm0, 0.0, %v11913_v34  ;;  %v11910_v43 = vrot.slane %v6295_v39, 7  ;;  %v11908_v44 = vrot.slane %v6309_v41, 7  ;;  %v6329_v47 = vld [vmem:[%s11891_s0 + $0x80] sm:$0xff]  ;;  %v6334_v48 = vld [vmem:[%s11891_s0 + $0x78] sm:$0xff] }
  0x17   :  { %v6300_v40 = vsel %vm353_vm0, 0.0, %v11912_v35  ;;  %v6319_v45 = vsel %vm353_vm0, 0.0, %v11911_v42  ;;  %v6348_v50 = vld [vmem:[%s11891_s0 + $0x88] sm:$0xff]  ;;  %v11907_v51 = vrot.slane %v6329_v47, 7  ;;  %v11904_v52 = vrot.slane %v6334_v48, 7  ;;  %v6368_v56 = vld [vmem:[%s11891_s0 + $0x98] sm:$0xff] }
  0x18   :  { %v6324_v46 = vsel %vm353_vm0, 0.0, %v11910_v43  ;;  %v6339_v49 = vsel %vm353_vm0, 0.0, %v11908_v44  ;;  %v11903_v53 = vrot.slane %v6348_v50, 7  ;;  %v6373_v57 = vld [vmem:[%s11891_s0 + $0x90] sm:$0xff]  ;;  %v6387_v59 = vld [vmem:[%s11891_s0 + $0xa0] sm:$0xff]  ;;  %v11905_v60 = vrot.slane %v6368_v56, 7 }
  0x19   :  { %v6358_v54 = vsel %vm353_vm0, 0.0, %v11907_v51  ;;  %v6363_v55 = vsel %vm353_vm0, 0.0, %v11904_v52  ;;  %v11906_v61 = vrot.slane %v6373_v57, 7  ;;  %v11909_v62 = vrot.slane %v6387_v59, 7  ;;  %v6412_v52 = vld [vmem:[%s11891_s0 + $0xa8] sm:$0xff]  ;;  %v6451_v34 = vld [vmem:[%s11891_s0 + $0xc0] sm:$0xff] }
  0x1a   :  { %549 = vrot.lane.b32.xlu0 %v6192_v14, %s6047_s1  ;;  %557 = vrot.lane.b32.xlu2 %v6202_v18, %s6047_s1  ;;  %v6378_v58 = vsel %vm353_vm0, 0.0, %v11903_v53  ;;  %v6397_v63 = vsel %vm353_vm0, 0.0, %v11905_v60  ;;  %v6407_v53 = vld [vmem:[%s11891_s0 + $0xb0] sm:$0xff]  ;;  %v11915_v44 = vrot.slane %v6412_v52, 7  ;;  %v6446_v35 = vld [vmem:[%s11891_s0 + $0xc8] sm:$0xff]  ;;  %v11924_v26 = vrot.slane %v6451_v34, 7 }
  0x1b   :  { %553 = vrot.lane.b32.xlu1 %v6207_v19, %s6047_s1  ;;  %v6402_v0 = vsel %vm353_vm0, 0.0, %v11906_v61  ;;  %v6417_v60 = vsel %vm353_vm0, 0.0, %v11909_v62  ;;  %v6426_v61 = vld [vmem:[%s11891_s0 + $0xb8] sm:$0xff]  ;;  %v11914_v51 = vrot.slane %v6407_v53, 7  ;;  %v11923_v33 = vrot.slane %v6446_v35, 7  ;;  %v6485_v17 = vld [vmem:[%s11891_s0 + $0xe0] sm:$0xff] }
  0x1c   :  { %v11918_v62 = vrot.slane %v6426_v61, 7  ;;  %v6441_v42 = vsel %vm353_vm0, 0.0, %v11915_v44  ;;  %v6465_v44 = vld [vmem:[%s11891_s0 + $0xd0] sm:$0xff]  ;;  %v6480_v24 = vsel %vm353_vm0, 0.0, %v11924_v26  ;;  %12133 = vst [vmem:[#allocation18_spill] sm:$0xff] %v6485_v17  ;;  %v6490_v15 = vld [vmem:[%s11891_s0 + $0xd8] sm:$0xff] }
  0x1d   :  { %v6436_v43 = vsel %vm353_vm0, 0.0, %v11914_v51  ;;  %12130 = vst [vmem:[#allocation15_spill] sm:$0xff] %v6465_v44  ;;  %v6475_v25 = vsel %vm353_vm0, 0.0, %v11923_v33  ;;  %v6504_v26 = vld [vmem:[%s11891_s0 + $0xe8] sm:$0xff]  ;;  %v11934_v6 = vrot.slane %v6485_v17, 7  ;;  %v11935_v16 = vrot.slane %v6490_v15, 7 }
  0x1e   :  { %v6456_v51 = vsel %vm353_vm0, 0.0, %v11918_v62  ;;  %v11927_v62 = vrot.slane %v6465_v44, 7  ;;  %12131 = vst [vmem:[#allocation16_spill] sm:$0xff] %v6475_v25  ;;  %s6048_s17 = smov 3   ;;  %vm1178_vm2 = vcmask 1045504   ;;  %s6049_s18 = smov 15  }
  0x1f   :  { %12132 = vst [vmem:[#allocation17_spill] sm:$0xff] %v6480_v24  ;;  %v6514_v8 = vsel %vm353_vm0, 0.0, %v11934_v6  ;;  %v6519_v7 = vsel %vm353_vm0, 0.0, %v11935_v16  ;;  %v6543_v16 = vld [vmem:[%s11891_s0 + $0x108] sm:$0xff]  ;;  %vm1557_vm3 = vcmask 23552   ;;  %vm1621_vm4 = vcmask 121856  }
  0x20   :  { %12134 = vst [vmem:[#allocation19_spill] sm:$0xff] %v6490_v15  ;;  %v6495_v33 = vsel %vm353_vm0, 0.0, %v11927_v62  ;;  %v11938_v62 = vrot.slane %v6504_v26, 7  ;;  %s6050_s19 = smov 36   ;;  %s6051_s20 = smov 18   ;;  %vm2169_vm5 = vcmask 146432  }
  0x21   :  { %12135 = vst [vmem:[#allocation20_spill] sm:$0xff] %v6495_v33  ;;  %vm2234_vm6 = vcmask 293888   ;;  %vm2302_vm7 = vcmask 441344   ;;  %s6052_s25 = smov 120   ;;  %vm3347_vm8 = vcmask 64512   ;;  %vm4167_vm9 = vcmask 195584  }
  0x22   :  { %559 = vrot.lane.b32.xlu0 %v6222_v22, %s6047_s1  ;;  %563 = vrot.lane.b32.xlu2 %v6241_v27, %s6047_s1  ;;  %12136 = vst [vmem:[#allocation21_spill] sm:$0xff] %v6504_v26  ;;  %v6534_v6 = vsel %vm353_vm0, 0.0, %v11938_v62  ;;  %v11950_v62 = vrot.slane %v6543_v16, 7  ;;  %v6563_v26 = vld [vmem:[%s11891_s0 + $0x118] sm:$0xff]  ;;  %s6054_s30 = smov 32   ;;  %s6055_s12 = smov 64  }
  0x23   :  { %561 = vrot.lane.b32.xlu1 %v6246_v28, %s6047_s1  ;;  %12137 = vst [vmem:[#allocation22_spill] sm:$0xff] %v6514_v8  ;;  %vm4459_vm10 = vcmask 261120   ;;  %vm4492_vm11 = vcmask 523264   ;;  %vm4528_vm12 = vcmask 785408   ;;  %vm4963_vm13 = vcmask 1041409   ;;  %s6057_s23 = smov 48  }
  0x24   :  { %12138 = vst [vmem:[#allocation23_spill] sm:$0xff] %v6519_v7  ;;  %vm4966_vm14 = vcmask 1042434   ;;  %vm4969_vm15 = vcmask 1043459   ;;  %s6058_s27 = smov 16   ;;  %s6060_s28 = smov 80  }
  0x25   :  { %12141 = vst [vmem:[#allocation26_spill] sm:$0xff] %v6534_v6  ;;  %s5668_s22 = sshll.u32 %s11902_s11, 4  ;;  %s5669_s22 = int_to_ptr.hbm [resolvable:$true] %s5668_s22 }
  0x26   :  { %12142 = vst [vmem:[#allocation27_spill] sm:$0xff] %v6543_v16  ;;  %v6602_v16 = vld [vmem:[%s11891_s0 + $0x130] sm:$0xff] }
  0x27   :  { %12145 = vst [vmem:[#allocation30_spill] sm:$0xff] %v6563_v26 }
  0x28   :  { %12151 = vst [vmem:[#allocation36_spill] sm:$0xff] %v6602_v16 }
  0x2a   :  { %565 = vrot.lane.b32.xlu0 %v6261_v31, %s6047_s1  ;;  %569 = vrot.lane.b32.xlu2 %v6280_v36, %s6047_s1 }
  0x2b   :  { %567 = vrot.lane.b32.xlu1 %v6285_v37, %s6047_s1 }
  0x32   :  { %571 = vrot.lane.b32.xlu0 %v6300_v40, %s6047_s1  ;;  %575 = vrot.lane.b32.xlu2 %v6319_v45, %s6047_s1 }
  0x33   :  { %573 = vrot.lane.b32.xlu1 %v6324_v46, %s6047_s1 }
  0x3a   :  { %577 = vrot.lane.b32.xlu0 %v6339_v49, %s6047_s1  ;;  %581 = vrot.lane.b32.xlu2 %v6358_v54, %s6047_s1 }
  0x3b   :  { %579 = vrot.lane.b32.xlu1 %v6363_v55, %s6047_s1 }
  0x42   :  { %583 = vrot.lane.b32.xlu0 %v6378_v58, %s6047_s1  ;;  %587 = vrot.lane.b32.xlu2 %v6397_v63, %s6047_s1 }
  0x43   :  { %585 = vrot.lane.b32.xlu1 %v6402_v0, %s6047_s1 }
  0x4a   :  { %589 = vrot.lane.b32.xlu0 %v6417_v60, %s6047_s1  ;;  %593 = vrot.lane.b32.xlu2 %v6436_v43, %s6047_s1 }
  0x4b   :  { %591 = vrot.lane.b32.xlu1 %v6441_v42, %s6047_s1 }
  0x52   :  { %595 = vrot.lane.b32.xlu0 %v6456_v51, %s6047_s1  ;;  %599 = vrot.lane.b32.xlu2 %v6475_v25, %s6047_s1  ;;  %v6643_v25 = vld [vmem:[%s11891_s0 + $0x148] sm:$0xff] }
  0x53   :  { %597 = vrot.lane.b32.xlu1 %v6480_v24, %s6047_s1  ;;  %v6524_v24 = vld [vmem:[%s11891_s0 + $0x100] sm:$0xff]  ;;  %12158 = vst [vmem:[#allocation43_spill] sm:$0xff] %v6643_v25 }
  0x54   :  { %12139 = vst [vmem:[#allocation24_spill] sm:$0xff] %v6524_v24  ;;  %v11946_v15 = vrot.slane %v6524_v24, 7 }
  0x5a   :  { %601 = vrot.lane.b32.xlu0 %v6495_v33, %s6047_s1  ;;  %v6529_v33 = vld [vmem:[%s11891_s0 + $0xf0] sm:$0xff]  ;;  %605 = vrot.lane.b32.xlu2 %v6514_v8, %s6047_s1  ;;  %v6553_v8 = vsel %vm353_vm0, 0.0, %v11946_v15  ;;  %v6573_v15 = vsel %vm353_vm0, 0.0, %v11950_v62 }
  0x5b   :  { %12140 = vst [vmem:[#allocation25_spill] sm:$0xff] %v6529_v33  ;;  %603 = vrot.lane.b32.xlu1 %v6519_v7, %s6047_s1  ;;  %v11947_v17 = vrot.slane %v6529_v33, 7  ;;  %v11958_v33 = vrot.slane %v6563_v26, 7 }
  0x5c   :  { %12143 = vst [vmem:[#allocation28_spill] sm:$0xff] %v6553_v8 }
  0x5d   :  { %v6558_v7 = vsel %vm353_vm0, 0.0, %v11947_v17  ;;  %12147 = vst [vmem:[#allocation32_spill] sm:$0xff] %v6573_v15  ;;  %v6582_v17 = vld [vmem:[%s11891_s0 + $0x120] sm:$0xff] }
  0x5e   :  { %12144 = vst [vmem:[#allocation29_spill] sm:$0xff] %v6558_v7  ;;  %v11962_v62 = vrot.slane %v6582_v17, 7 }
  0x5f   :  { %12148 = vst [vmem:[#allocation33_spill] sm:$0xff] %v6582_v17 }
  0x62   :  { %607 = vrot.lane.b32.xlu0 %v6534_v6, %s6047_s1  ;;  %v6568_v6 = vld [vmem:[%s11891_s0 + $0x110] sm:$0xff]  ;;  %611 = vrot.lane.b32.xlu2 %v6553_v8, %s6047_s1  ;;  %v6592_v8 = vsel %vm353_vm0, 0.0, %v11958_v33  ;;  %v6612_v33 = vsel %vm353_vm0, 0.0, %v11962_v62 }
  0x63   :  { %12146 = vst [vmem:[#allocation31_spill] sm:$0xff] %v6568_v6  ;;  %609 = vrot.lane.b32.xlu1 %v6558_v7, %s6047_s1  ;;  %v11959_v24 = vrot.slane %v6568_v6, 7  ;;  %v11970_v6 = vrot.slane %v6602_v16, 7 }
  0x64   :  { %12149 = vst [vmem:[#allocation34_spill] sm:$0xff] %v6592_v8 }
  0x65   :  { %v6597_v7 = vsel %vm353_vm0, 0.0, %v11959_v24  ;;  %12153 = vst [vmem:[#allocation38_spill] sm:$0xff] %v6612_v33  ;;  %v6621_v24 = vld [vmem:[%s11891_s0 + $0x138] sm:$0xff] }
  0x66   :  { %12150 = vst [vmem:[#allocation35_spill] sm:$0xff] %v6597_v7  ;;  %v11974_v17 = vrot.slane %v6621_v24, 7 }
  0x67   :  { %12154 = vst [vmem:[#allocation39_spill] sm:$0xff] %v6621_v24 }
  0x6a   :  { %613 = vrot.lane.b32.xlu0 %v6573_v15, %s6047_s1  ;;  %v6607_v15 = vld [vmem:[%s11891_s0 + $0x128] sm:$0xff]  ;;  %617 = vrot.lane.b32.xlu2 %v6592_v8, %s6047_s1 }
  0x6b   :  { %12152 = vst [vmem:[#allocation37_spill] sm:$0xff] %v6607_v15  ;;  %615 = vrot.lane.b32.xlu1 %v6597_v7, %s6047_s1  ;;  %v11971_v26 = vrot.slane %v6607_v15, 7  ;;  %v6633_v7 = vsel %vm353_vm0, 0.0, %v11970_v6  ;;  %v6653_v6 = vsel %vm353_vm0, 0.0, %v11974_v17  ;;  %v11982_v15 = vrot.slane %v6643_v25, 7 }
  0x6c   :  { %v6627_v62 = vpop.permute.xlu2 %555  ;;  %12156 = vst [vmem:[#allocation41_spill] sm:$0xff] %v6633_v7 }
  0x6d   :  { %12155 = vst [vmem:[#allocation40_spill] sm:$0xff] %v6627_v62  ;;  %v6638_v8 = vsel %vm353_vm0, 0.0, %v11971_v26  ;;  %v6648_v62 = vld [vmem:[%s11891_s0 + $0x140] sm:$0xff]  ;;  %v6662_v26 = vld [vmem:[%s11891_s0 + $0x150] sm:$0xff] }
  0x6e   :  { %12157 = vst [vmem:[#allocation42_spill] sm:$0xff] %v6638_v8  ;;  %v11983_v16 = vrot.slane %v6648_v62, 7  ;;  %v11986_v24 = vrot.slane %v6662_v26, 7 }
  0x6f   :  { %12159 = vst [vmem:[#allocation44_spill] sm:$0xff] %v6648_v62 }
  0x70   :  { %12160 = vst [vmem:[#allocation45_spill] sm:$0xff] %v6653_v6 }
  0x71   :  { %12161 = vst [vmem:[#allocation46_spill] sm:$0xff] %v6662_v26 }
  0x72   :  { %619 = vrot.lane.b32.xlu0 %v6612_v33, %s6047_s1  ;;  %623 = vrot.lane.b32.xlu2 %v6633_v7, %s6047_s1  ;;  %v6679_v7 = vsel %vm353_vm0, 0.0, %v11983_v16  ;;  %v6684_v33 = vld [vmem:[%s11891_s0 + $0x160] sm:$0xff]  ;;  %v6703_v16 = vld [vmem:[%s11891_s0 + $0x168] sm:$0xff] }
  0x73   :  { %621 = vrot.lane.b32.xlu1 %v6638_v8, %s6047_s1  ;;  %v6674_v8 = vsel %vm353_vm0, 0.0, %v11982_v15  ;;  %12164 = vst [vmem:[#allocation49_spill] sm:$0xff] %v6679_v7  ;;  %v6694_v15 = vsel %vm353_vm0, 0.0, %v11986_v24  ;;  %v11996_v62 = vrot.slane %v6684_v33, 7 }
  0x74   :  { %v6668_v17 = vpop.permute.xlu2 %557  ;;  %12163 = vst [vmem:[#allocation48_spill] sm:$0xff] %v6674_v8 }
  0x75   :  { %12162 = vst [vmem:[#allocation47_spill] sm:$0xff] %v6668_v17  ;;  %v6689_v17 = vld [vmem:[%s11891_s0 + $0x158] sm:$0xff] }
  0x76   :  { %12165 = vst [vmem:[#allocation50_spill] sm:$0xff] %v6684_v33  ;;  %v11997_v25 = vrot.slane %v6689_v17, 7 }
  0x77   :  { %12166 = vst [vmem:[#allocation51_spill] sm:$0xff] %v6689_v17 }
  0x78   :  { %12167 = vst [vmem:[#allocation52_spill] sm:$0xff] %v6694_v15 }
  0x79   :  { %12168 = vst [vmem:[#allocation53_spill] sm:$0xff] %v6703_v16 }
  0x7a   :  { %625 = vrot.lane.b32.xlu0 %v6653_v6, %s6047_s1  ;;  %629 = vrot.lane.b32.xlu2 %v6674_v8, %s6047_s1  ;;  %v11999_v8 = vrot.slane %v6703_v16, 7  ;;  %v6722_v6 = vsel %vm353_vm0, 0.0, %v11997_v25  ;;  %v6746_v25 = vld [vmem:[%s11891_s0 + $0x180] sm:$0xff] }
  0x7b   :  { %627 = vrot.lane.b32.xlu1 %v6679_v7, %s6047_s1  ;;  %v6717_v7 = vsel %vm353_vm0, 0.0, %v11996_v62  ;;  %12172 = vst [vmem:[#allocation57_spill] sm:$0xff] %v6722_v6 }
  0x7c   :  { %v6709_v24 = vpop.permute.xlu2 %563  ;;  %12171 = vst [vmem:[#allocation56_spill] sm:$0xff] %v6717_v7  ;;  %v6737_v62 = vsel %vm353_vm0, 0.0, %v11999_v8 }
  0x7d   :  { %12169 = vst [vmem:[#allocation54_spill] sm:$0xff] %v6709_v24 }
  0x7e   :  { %12175 = vst [vmem:[#allocation60_spill] sm:$0xff] %v6737_v62 }
  0x7f   :  { %12176 = vst [vmem:[#allocation61_spill] sm:$0xff] %v6746_v25 }
  0x82   :  { %631 = vrot.lane.b32.xlu0 %v6694_v15, %s6047_s1  ;;  %v6727_v15 = vld [vmem:[%s11891_s0 + $0x178] sm:$0xff]  ;;  %635 = vrot.lane.b32.xlu2 %v6717_v7, %s6047_s1  ;;  %v6777_v7 = vld [vmem:[%s11891_s0 + $0x188] sm:$0xff] }
  0x83   :  { %12173 = vst [vmem:[#allocation58_spill] sm:$0xff] %v6727_v15  ;;  %633 = vrot.lane.b32.xlu1 %v6722_v6, %s6047_s1  ;;  %v12007_v24 = vrot.slane %v6727_v15, 7 }
  0x84   :  { %v6711_v26 = vpop.permute.xlu0 %547  ;;  %v6752_v8 = vpop.permute.xlu2 %569  ;;  %12183 = vst [vmem:[#allocation68_spill] sm:$0xff] %v6777_v7 }
  0x85   :  { %12170 = vst [vmem:[#allocation55_spill] sm:$0xff] %v6711_v26  ;;  %v6732_v26 = vld [vmem:[%s11891_s0 + $0x170] sm:$0xff]  ;;  %v6754_v16 = vpop.permute.xlu1 %551  ;;  %v6762_v6 = vsel %vm353_vm0, 0.0, %v12007_v24 }
  0x86   :  { %12174 = vst [vmem:[#allocation59_spill] sm:$0xff] %v6732_v26  ;;  %v12008_v17 = vrot.slane %v6732_v26, 7  ;;  %v12019_v26 = vrot.slane %v6777_v7, 7 }
  0x87   :  { %12177 = vst [vmem:[#allocation62_spill] sm:$0xff] %v6752_v8  ;;  %v6772_v8 = vld [vmem:[%s11891_s0 + $0x190] sm:$0xff] }
  0x88   :  { %12178 = vst [vmem:[#allocation63_spill] sm:$0xff] %v6754_v16  ;;  %v6767_v44 = vsel %vm353_vm0, 0.0, %v12008_v17  ;;  %v6791_v17 = vld [vmem:[%s11891_s0 + $0x198] sm:$0xff]  ;;  %v12018_v16 = vrot.slane %v6772_v8, 7 }
  0x89   :  { %12180 = vst [vmem:[#allocation65_spill] sm:$0xff] %v6762_v6 }
  0x8a   :  { %637 = vrot.lane.b32.xlu0 %v6737_v62, %s6047_s1  ;;  %12181 = vst [vmem:[#allocation66_spill] sm:$0xff] %v6767_v44  ;;  %641 = vrot.lane.b32.xlu2 %v6762_v6, %s6047_s1  ;;  %v6812_v62 = vsel %vm353_vm0, 0.0, %v12019_v26  ;;  %v6822_v6 = vld [vmem:[%s11891_s0 + $0x1a0] sm:$0xff]  ;;  %v6836_v26 = vld [vmem:[%s11891_s0 + $0x1b0] sm:$0xff] }
  0x8b   :  { %12182 = vst [vmem:[#allocation67_spill] sm:$0xff] %v6772_v8  ;;  %639 = vrot.lane.b32.xlu1 %v6767_v44, %s6047_s1  ;;  %v6807_v44 = vsel %vm353_vm0, 0.0, %v12018_v16  ;;  %v12030_v7 = vrot.slane %v6822_v6, 7 }
  0x8c   :  { %v6757_v33 = vpop.permute.xlu0 %549  ;;  %12186 = vst [vmem:[#allocation70_spill] sm:$0xff] %v6791_v17 }
  0x8d   :  { %12179 = vst [vmem:[#allocation64_spill] sm:$0xff] %v6757_v33  ;;  %v12184_v33 = vrot.slane %v6746_v25, 7  ;;  %v6799_v25 = vpop.permute.xlu1 %553 }
  0x8e   :  { %12188 = vst [vmem:[#allocation72_spill] sm:$0xff] %v6799_v25 }
  0x8f   :  { %v6782_v24 = vsel %vm353_vm0, 0.0, %v12184_v33  ;;  %v6797_v33 = vpop.permute.xlu2 %575  ;;  %12190 = vst [vmem:[#allocation74_spill] sm:$0xff] %v6807_v44 }
  0x90   :  { %12185 = vst [vmem:[#allocation69_spill] sm:$0xff] %v6782_v24 }
  0x91   :  { %12187 = vst [vmem:[#allocation71_spill] sm:$0xff] %v6797_v33  ;;  %v6817_v33 = vld [vmem:[%s11891_s0 + $0x1a8] sm:$0xff] }
  0x92   :  { %643 = vrot.lane.b32.xlu0 %v6782_v24, %s6047_s1  ;;  %12191 = vst [vmem:[#allocation75_spill] sm:$0xff] %v6812_v62  ;;  %647 = vrot.lane.b32.xlu2 %v6807_v44, %s6047_s1  ;;  %v12029_v25 = vrot.slane %v6817_v33, 7  ;;  %v6857_v24 = vsel %vm353_vm0, 0.0, %v12030_v7  ;;  %v6867_v44 = vld [vmem:[%s11891_s0 + $0x1b8] sm:$0xff]  ;;  %v6881_v7 = vld [vmem:[%s11891_s0 + $0x1c8] sm:$0xff] }
  0x93   :  { %12192 = vst [vmem:[#allocation76_spill] sm:$0xff] %v6817_v33  ;;  %645 = vrot.lane.b32.xlu1 %v6812_v62, %s6047_s1 }
  0x94   :  { %v6802_v15 = vpop.permute.xlu0 %559  ;;  %12193 = vst [vmem:[#allocation77_spill] sm:$0xff] %v6822_v6  ;;  %v6852_v62 = vsel %vm353_vm0, 0.0, %v12029_v25  ;;  %v12041_v6 = vrot.slane %v6867_v44, 7 }
  0x95   :  { %12189 = vst [vmem:[#allocation73_spill] sm:$0xff] %v6802_v15  ;;  %v12194_v15 = vrot.slane %v6791_v17, 7  ;;  %v6844_v17 = vpop.permute.xlu1 %561 }
  0x96   :  { %12196 = vst [vmem:[#allocation79_spill] sm:$0xff] %v6836_v26 }
  0x97   :  { %v6827_v16 = vsel %vm353_vm0, 0.0, %v12194_v15  ;;  %v6842_v15 = vpop.permute.xlu2 %581  ;;  %12198 = vst [vmem:[#allocation81_spill] sm:$0xff] %v6844_v17 }
  0x98   :  { %12195 = vst [vmem:[#allocation78_spill] sm:$0xff] %v6827_v16 }
  0x99   :  { %12197 = vst [vmem:[#allocation80_spill] sm:$0xff] %v6842_v15  ;;  %v6862_v15 = vld [vmem:[%s11891_s0 + $0x1c0] sm:$0xff] }
  0x9a   :  { %649 = vrot.lane.b32.xlu0 %v6827_v16, %s6047_s1  ;;  %12200 = vst [vmem:[#allocation83_spill] sm:$0xff] %v6852_v62  ;;  %653 = vrot.lane.b32.xlu2 %v6852_v62, %s6047_s1  ;;  %v12040_v17 = vrot.slane %v6862_v15, 7  ;;  %v6902_v16 = vsel %vm353_vm0, 0.0, %v12041_v6  ;;  %v6912_v62 = vld [vmem:[%s11891_s0 + $0x1d0] sm:$0xff]  ;;  %v6926_v6 = vld [vmem:[%s11891_s0 + $0x1e0] sm:$0xff] }
  0x9b   :  { %12201 = vst [vmem:[#allocation84_spill] sm:$0xff] %v6857_v24  ;;  %651 = vrot.lane.b32.xlu1 %v6857_v24, %s6047_s1 }
  0x9c   :  { %v6847_v8 = vpop.permute.xlu0 %565  ;;  %12202 = vst [vmem:[#allocation85_spill] sm:$0xff] %v6862_v15  ;;  %v6897_v24 = vsel %vm353_vm0, 0.0, %v12040_v17 }
  0x9d   :  { %12199 = vst [vmem:[#allocation82_spill] sm:$0xff] %v6847_v8  ;;  %v12204_v8 = vrot.slane %v6836_v26, 7  ;;  %v6889_v26 = vpop.permute.xlu1 %567 }
  0x9e   :  { %12203 = vst [vmem:[#allocation86_spill] sm:$0xff] %v6867_v44  ;;  %v12052_v44 = vrot.slane %v6912_v62, 7 }
  0x9f   :  { %v6872_v25 = vsel %vm353_vm0, 0.0, %v12204_v8  ;;  %12206 = vst [vmem:[#allocation88_spill] sm:$0xff] %v6881_v7  ;;  %v6887_v8 = vpop.permute.xlu2 %587 }
  0xa0   :  { %12205 = vst [vmem:[#allocation87_spill] sm:$0xff] %v6872_v25 }
  0xa1   :  { %12207 = vst [vmem:[#allocation89_spill] sm:$0xff] %v6887_v8  ;;  %v6907_v8 = vld [vmem:[%s11891_s0 + $0x1d8] sm:$0xff] }
  0xa2   :  { %655 = vrot.lane.b32.xlu0 %v6872_v25, %s6047_s1  ;;  %12208 = vst [vmem:[#allocation90_spill] sm:$0xff] %v6889_v26  ;;  %659 = vrot.lane.b32.xlu2 %v6897_v24, %s6047_s1  ;;  %v12051_v26 = vrot.slane %v6907_v8, 7  ;;  %v6947_v25 = vsel %vm353_vm0, 0.0, %v12052_v44  ;;  %v6970_v44 = vsel %vm353_vm0, %v6134_v1, 0.0 }
  0xa3   :  { %12210 = vst [vmem:[#allocation92_spill] sm:$0xff] %v6897_v24  ;;  %657 = vrot.lane.b32.xlu1 %v6902_v16, %s6047_s1  ;;  %v6957_v24 = vld [vmem:[%s11891_s0 + $0x1e8] sm:$0xff] }
  0xa4   :  { %v6892_v33 = vpop.permute.xlu0 %571  ;;  %12211 = vst [vmem:[#allocation93_spill] sm:$0xff] %v6902_v16  ;;  %v6942_v16 = vsel %vm353_vm0, 0.0, %v12051_v26 }
  0xa5   :  { %12209 = vst [vmem:[#allocation91_spill] sm:$0xff] %v6892_v33  ;;  %v12214_v33 = vrot.slane %v6881_v7, 7  ;;  %v6934_v7 = vpop.permute.xlu1 %573 }
  0xa6   :  { %12212 = vst [vmem:[#allocation94_spill] sm:$0xff] %v6907_v8  ;;  %v801_v8 = vrot.slane %v6970_v44, 1 }
  0xa7   :  { %12213 = vst [vmem:[#allocation95_spill] sm:$0xff] %v6912_v62  ;;  %v6917_v17 = vsel %vm353_vm0, 0.0, %v12214_v33  ;;  %v6932_v33 = vpop.permute.xlu2 %593  ;;  %v12067_v62 = vrot.slane %v6957_v24, 7 }
  0xa8   :  { %12215 = vst [vmem:[#allocation96_spill] sm:$0xff] %v6917_v17 }
  0xa9   :  { %12216 = vst [vmem:[#allocation97_spill] sm:$0xff] %v6926_v6 }
  0xaa   :  { %661 = vrot.lane.b32.xlu0 %v6917_v17, %s6047_s1  ;;  %12217 = vst [vmem:[#allocation98_spill] sm:$0xff] %v6932_v33  ;;  %v6952_v33 = vld [vmem:[%s11891_s0 + $0x1f0] sm:$0xff]  ;;  %665 = vrot.lane.b32.xlu2 %v6942_v16, %s6047_s1 }
  0xab   :  { %12218 = vst [vmem:[#allocation99_spill] sm:$0xff] %v6934_v7  ;;  %663 = vrot.lane.b32.xlu1 %v6947_v25, %s6047_s1  ;;  %v12065_v7 = vrot.slane %v6952_v33, 7 }
  0xac   :  { %v6937_v15 = vpop.permute.xlu0 %577  ;;  %12220 = vst [vmem:[#allocation101_spill] sm:$0xff] %v6942_v16  ;;  %v800_v16 = vrot.slane %v6138_v2, 1 }
  0xad   :  { %12219 = vst [vmem:[#allocation100_spill] sm:$0xff] %v6937_v15  ;;  %v12223_v15 = vrot.slane %v6926_v6, 7  ;;  %v6987_v1 = vsel %vm353_vm0, 0.0, %v12065_v7  ;;  %v12236_v7 = vrot.slane %v6168_v10, 7 }
  0xae   :  { %12221 = vst [vmem:[#allocation102_spill] sm:$0xff] %v6947_v25  ;;  %v7005_v2 = vsel %vm799_vm1, %v800_v16, %v801_v8 }
  0xaf   :  { %12222 = vst [vmem:[#allocation103_spill] sm:$0xff] %v6957_v24  ;;  %v6962_v26 = vsel %vm353_vm0, 0.0, %v12223_v15  ;;  %v6976_v6 = vpop.permute.xlu2 %599  ;;  %v6978_v15 = vpop.permute.xlu1 %579  ;;  %v7010_v24 = vsel %vm353_vm0, %v12236_v7, 0.0 }
  0xb0   :  { %12224 = vst [vmem:[#allocation104_spill] sm:$0xff] %v6962_v26  ;;  %v810_v8 = vrot.slane %v7010_v24, 1 }
  0xb1   :  { %12225 = vst [vmem:[#allocation105_spill] sm:$0xff] %v6970_v44  ;;  %v12233_v44 = vrot.slane %v6155_v5, 7  ;;  %v803_v5 = vrot.slane %v6192_v14, 1 }
  0xb2   :  { %667 = vrot.lane.b32.xlu0 %v6962_v26, %s6047_s1  ;;  %12226 = vst [vmem:[#allocation106_spill] sm:$0xff] %v6976_v6  ;;  %v6992_v26 = vsel %vm353_vm0, 0.0, %v12067_v62  ;;  %v12231_v6 = vrot.slane %v6150_v4, 7  ;;  %671 = vrot.lane.b32.xlu2 %v6987_v1, %s6047_s1  ;;  %v806_v4 = vrot.slane %v6178_v12, 1 }
  0xb3   :  { %12227 = vst [vmem:[#allocation107_spill] sm:$0xff] %v6978_v15  ;;  %669 = vrot.lane.b32.xlu1 %v6992_v26, %s6047_s1 }
  0xb4   :  { %v6982_v25 = vpop.permute.xlu0 %583  ;;  %12229 = vst [vmem:[#allocation109_spill] sm:$0xff] %v6987_v1  ;;  %v6997_v15 = vsel %vm353_vm0, %v12231_v6, 0.0 }
  0xb5   :  { %12228 = vst [vmem:[#allocation108_spill] sm:$0xff] %v6982_v25  ;;  %v7002_v25 = vsel %vm353_vm0, %v12233_v44, 0.0  ;;  %v807_v6 = vrot.slane %v6997_v15, 1  ;;  %v809_v44 = vrot.slane %v6207_v19, 1 }
  0xb6   :  { %12230 = vst [vmem:[#allocation110_spill] sm:$0xff] %v6992_v26  ;;  %v804_v16 = vrot.slane %v7002_v25, 1 }
  0xb7   :  { %12232 = vst [vmem:[#allocation111_spill] sm:$0xff] %v6997_v15  ;;  %v7022_v7 = vpop.permute.xlu2 %605  ;;  %v7024_v10 = vpop.permute.xlu1 %585  ;;  %v808_v14 = vsel %vm799_vm1, %v806_v4, %v807_v6 }
  0xb8   :  { %12234 = vst [vmem:[#allocation112_spill] sm:$0xff] %v7002_v25  ;;  %v805_v15 = vsel %vm799_vm1, %v803_v5, %v804_v16  ;;  %v12241_v25 = vrot.slane %v6145_v3, 7  ;;  %v812_v3 = vrot.slane %v6173_v11, 1  ;;  %v12247_v16 = vrot.slane %v6212_v20, 7 }
  0xb9   :  { %12235 = vst [vmem:[#allocation113_spill] sm:$0xff] %v7005_v2  ;;  %v824_v20 = vrot.slane %v6241_v27, 1 }
  0xba   :  { %12237 = vst [vmem:[#allocation114_spill] sm:$0xff] %v7010_v24  ;;  %989 = vrot.lane.b32.xlu0 %v7005_v2, %s6048_s17  ;;  %v7035_v12 = vsel %vm353_vm0, %v12241_v25, 0.0  ;;  %v12242_v2 = vrot.slane %v6163_v9, 7  ;;  %v12243_v24 = vrot.slane %v6187_v13, 7  ;;  %993 = vrot.lane.b32.xlu2 %v808_v14, %s6048_s17  ;;  %v815_v25 = vrot.slane %v6202_v18, 1 }
  0xbb   :  { %12238 = vst [vmem:[#allocation115_spill] sm:$0xff] %v7022_v7  ;;  %991 = vrot.lane.b32.xlu1 %v805_v15, %s6048_s17 }
  0xbc   :  { %12239 = vst [vmem:[#allocation116_spill] sm:$0xff] %v7024_v10  ;;  %v7028_v62 = vpop.permute.xlu0 %589  ;;  %v7040_v7 = vsel %vm353_vm0, %v12242_v2, 0.0  ;;  %v811_v10 = vsel %vm799_vm1, %v809_v44, %v810_v8  ;;  %v813_v2 = vrot.slane %v7035_v12, 1  ;;  %v7068_v44 = vsel %vm353_vm0, %v12247_v16, 0.0 }
  0xbd   :  { %12240 = vst [vmem:[#allocation117_spill] sm:$0xff] %v7028_v62  ;;  %v7046_v62 = vsel %vm353_vm0, %v12243_v24, 0.0  ;;  %v816_v9 = vrot.slane %v7040_v7, 1  ;;  %v818_v24 = vrot.slane %v6222_v22, 1 }
  0xbe   :  { %v819_v14 = vrot.slane %v7046_v62, 1  ;;  %v814_v6 = vsel %vm799_vm1, %v812_v3, %v813_v2  ;;  %v821_v3 = vrot.slane %v6246_v28, 1  ;;  %v827_v2 = vrot.slane %v6261_v31, 1 }
  0xbf   :  { %v7055_v4 = vpop.permute.xlu2 %611  ;;  %v7057_v13 = vpop.permute.xlu1 %591  ;;  %v817_v15 = vsel %vm799_vm1, %v815_v25, %v816_v9 }
  0xc0   :  { %12244 = vst [vmem:[#allocation118_spill] sm:$0xff] %v7055_v4  ;;  %v820_v4 = vsel %vm799_vm1, %v818_v24, %v819_v14 }
  0xc1   :  { %12245 = vst [vmem:[#allocation119_spill] sm:$0xff] %v7057_v13  ;;  %v12249_v13 = vrot.slane %v6231_v23, 7 }
  0xc2   :  { %995 = vrot.lane.b32.xlu0 %v811_v10, %s6048_s17  ;;  %v12248_v10 = vrot.slane %v6217_v21, 7  ;;  %999 = vrot.lane.b32.xlu2 %v817_v15, %s6048_s17  ;;  %v825_v21 = vrot.slane %v7068_v44, 1 }
  0xc3   :  { %997 = vrot.lane.b32.xlu1 %v814_v6, %s6048_s17  ;;  %v12253_v6 = vrot.slane %v6251_v29, 7  ;;  %v833_v29 = vrot.slane %v6280_v36, 1 }
  0xc4   :  { %v7061_v5 = vpop.permute.xlu0 %595  ;;  %v7073_v8 = vsel %vm353_vm0, %v12248_v10, 0.0  ;;  %v826_v14 = vsel %vm799_vm1, %v824_v20, %v825_v21  ;;  %v830_v20 = vrot.slane %v6285_v37, 1 }
  0xc5   :  { %12246 = vst [vmem:[#allocation120_spill] sm:$0xff] %v7061_v5  ;;  %v7079_v5 = vsel %vm353_vm0, %v12249_v13, 0.0  ;;  %v822_v25 = vrot.slane %v7073_v8, 1  ;;  %v7101_v16 = vsel %vm353_vm0, %v12253_v6, 0.0 }
  0xc6   :  { %v828_v13 = vrot.slane %v7079_v5, 1 }
  0xc7   :  { %v7088_v9 = vpop.permute.xlu2 %617  ;;  %v7090_v23 = vpop.permute.xlu1 %597  ;;  %v823_v15 = vsel %vm799_vm1, %v821_v3, %v822_v25  ;;  %v836_v25 = vrot.slane %v6300_v40, 1 }
  0xc8   :  { %12250 = vst [vmem:[#allocation121_spill] sm:$0xff] %v7088_v9  ;;  %v829_v9 = vsel %vm799_vm1, %v827_v2, %v828_v13 }
  0xc9   :  { %12251 = vst [vmem:[#allocation122_spill] sm:$0xff] %v7090_v23  ;;  %v12255_v23 = vrot.slane %v6270_v32, 7 }
  0xca   :  { %1001 = vrot.lane.b32.xlu0 %v820_v4, %s6048_s17  ;;  %v12254_v4 = vrot.slane %v6256_v30, 7  ;;  %1005 = vrot.lane.b32.xlu2 %v826_v14, %s6048_s17  ;;  %v834_v30 = vrot.slane %v7101_v16, 1 }
  0xcb   :  { %1003 = vrot.lane.b32.xlu1 %v823_v15, %s6048_s17  ;;  %v12259_v15 = vrot.slane %v6290_v38, 7  ;;  %v842_v38 = vrot.slane %v6319_v45, 1 }
  0xcc   :  { %v7094_v24 = vpop.permute.xlu0 %601  ;;  %v7106_v10 = vsel %vm353_vm0, %v12254_v4, 0.0  ;;  %v835_v13 = vsel %vm799_vm1, %v833_v29, %v834_v30  ;;  %v839_v29 = vrot.slane %v6324_v46, 1 }
  0xcd   :  { %12252 = vst [vmem:[#allocation123_spill] sm:$0xff] %v7094_v24  ;;  %v7112_v24 = vsel %vm353_vm0, %v12255_v23, 0.0  ;;  %v831_v3 = vrot.slane %v7106_v10, 1  ;;  %v7134_v6 = vsel %vm353_vm0, %v12259_v15, 0.0 }
  0xce   :  { %v837_v23 = vrot.slane %v7112_v24, 1 }
  0xcf   :  { %v7121_v21 = vpop.permute.xlu2 %623  ;;  %v7123_v32 = vpop.permute.xlu1 %603  ;;  %v832_v14 = vsel %vm799_vm1, %v830_v20, %v831_v3  ;;  %v845_v3 = vrot.slane %v6339_v49, 1 }
  0xd0   :  { %12256 = vst [vmem:[#allocation124_spill] sm:$0xff] %v7121_v21  ;;  %v838_v21 = vsel %vm799_vm1, %v836_v25, %v837_v23 }
  0xd1   :  { %12257 = vst [vmem:[#allocation125_spill] sm:$0xff] %v7123_v32  ;;  %v12261_v32 = vrot.slane %v6309_v41, 7 }
  0xd2   :  { %1007 = vrot.lane.b32.xlu0 %v829_v9, %s6048_s17  ;;  %v12260_v9 = vrot.slane %v6295_v39, 7  ;;  %1011 = vrot.lane.b32.xlu2 %v835_v13, %s6048_s17  ;;  %v843_v39 = vrot.slane %v7134_v6, 1 }
  0xd3   :  { %1009 = vrot.lane.b32.xlu1 %v832_v14, %s6048_s17  ;;  %v12265_v14 = vrot.slane %v6329_v47, 7  ;;  %v851_v47 = vrot.slane %v6358_v54, 1 }
  0xd4   :  { %v7127_v2 = vpop.permute.xlu0 %607  ;;  %v7139_v4 = vsel %vm353_vm0, %v12260_v9, 0.0  ;;  %v844_v23 = vsel %vm799_vm1, %v842_v38, %v843_v39  ;;  %v848_v38 = vrot.slane %v6363_v55, 1 }
  0xd5   :  { %12258 = vst [vmem:[#allocation126_spill] sm:$0xff] %v7127_v2  ;;  %v7145_v2 = vsel %vm353_vm0, %v12261_v32, 0.0  ;;  %v840_v20 = vrot.slane %v7139_v4, 1  ;;  %v7167_v15 = vsel %vm353_vm0, %v12265_v14, 0.0 }
  0xd6   :  { %v846_v32 = vrot.slane %v7145_v2, 1 }
  0xd7   :  { %v7154_v30 = vpop.permute.xlu2 %629  ;;  %v7156_v41 = vpop.permute.xlu1 %609  ;;  %v841_v13 = vsel %vm799_vm1, %v839_v29, %v840_v20  ;;  %v854_v20 = vrot.slane %v6378_v58, 1 }
  0xd8   :  { %12262 = vst [vmem:[#allocation127_spill] sm:$0xff] %v7154_v30  ;;  %v847_v30 = vsel %vm799_vm1, %v845_v3, %v846_v32 }
  0xd9   :  { %12263 = vst [vmem:[#allocation128_spill] sm:$0xff] %v7156_v41  ;;  %v12267_v41 = vrot.slane %v6348_v50, 7 }
  0xda   :  { %1013 = vrot.lane.b32.xlu0 %v838_v21, %s6048_s17  ;;  %v12266_v21 = vrot.slane %v6334_v48, 7  ;;  %1017 = vrot.lane.b32.xlu2 %v844_v23, %s6048_s17  ;;  %v852_v48 = vrot.slane %v7167_v15, 1 }
  0xdb   :  { %1015 = vrot.lane.b32.xlu1 %v841_v13, %s6048_s17  ;;  %v12271_v13 = vrot.slane %v6368_v56, 7  ;;  %v860_v56 = vrot.slane %v6397_v63, 1 }
  0xdc   :  { %v7160_v25 = vpop.permute.xlu0 %613  ;;  %v7172_v9 = vsel %vm353_vm0, %v12266_v21, 0.0  ;;  %v853_v32 = vsel %vm799_vm1, %v851_v47, %v852_v48  ;;  %v857_v47 = vrot.slane %v6402_v0, 1 }
  0xdd   :  { %12264 = vst [vmem:[#allocation129_spill] sm:$0xff] %v7160_v25  ;;  %v7178_v25 = vsel %vm353_vm0, %v12267_v41, 0.0  ;;  %v849_v29 = vrot.slane %v7172_v9, 1  ;;  %v7200_v14 = vsel %vm353_vm0, %v12271_v13, 0.0 }
  0xde   :  { %v855_v41 = vrot.slane %v7178_v25, 1 }
  0xdf   :  { %v7187_v39 = vpop.permute.xlu2 %635  ;;  %v7189_v50 = vpop.permute.xlu1 %615  ;;  %v850_v23 = vsel %vm799_vm1, %v848_v38, %v849_v29  ;;  %v863_v29 = vrot.slane %v6417_v60, 1 }
  0xe0   :  { %12268 = vst [vmem:[#allocation130_spill] sm:$0xff] %v7187_v39  ;;  %v856_v39 = vsel %vm799_vm1, %v854_v20, %v855_v41 }
  0xe1   :  { %12269 = vst [vmem:[#allocation131_spill] sm:$0xff] %v7189_v50  ;;  %v12273_v50 = vrot.slane %v6387_v59, 7 }
  0xe2   :  { %1019 = vrot.lane.b32.xlu0 %v847_v30, %s6048_s17  ;;  %v12272_v30 = vrot.slane %v6373_v57, 7  ;;  %1023 = vrot.lane.b32.xlu2 %v853_v32, %s6048_s17  ;;  %v861_v57 = vrot.slane %v7200_v14, 1 }
  0xe3   :  { %1021 = vrot.lane.b32.xlu1 %v850_v23, %s6048_s17  ;;  %v12277_v23 = vrot.slane %v6407_v53, 7  ;;  %v869_v53 = vrot.slane %v6436_v43, 1 }
  0xe4   :  { %v7193_v3 = vpop.permute.xlu0 %619  ;;  %v7205_v21 = vsel %vm353_vm0, %v12272_v30, 0.0  ;;  %v862_v41 = vsel %vm799_vm1, %v860_v56, %v861_v57  ;;  %v866_v56 = vrot.slane %v6441_v42, 1 }
  0xe5   :  { %12270 = vst [vmem:[#allocation132_spill] sm:$0xff] %v7193_v3  ;;  %v7211_v3 = vsel %vm353_vm0, %v12273_v50, 0.0  ;;  %v858_v38 = vrot.slane %v7205_v21, 1  ;;  %v7233_v13 = vsel %vm353_vm0, %v12277_v23, 0.0 }
  0xe6   :  { %v864_v50 = vrot.slane %v7211_v3, 1 }
  0xe7   :  { %v7220_v48 = vpop.permute.xlu2 %641  ;;  %v7222_v59 = vpop.permute.xlu1 %621  ;;  %v859_v32 = vsel %vm799_vm1, %v857_v47, %v858_v38  ;;  %v872_v38 = vrot.slane %v6456_v51, 1 }
  0xe8   :  { %12274 = vst [vmem:[#allocation133_spill] sm:$0xff] %v7220_v48  ;;  %v865_v48 = vsel %vm799_vm1, %v863_v29, %v864_v50 }
  0xe9   :  { %12275 = vst [vmem:[#allocation134_spill] sm:$0xff] %v7222_v59  ;;  %v12279_v59 = vrot.slane %v6426_v61, 7 }
  0xea   :  { %1025 = vrot.lane.b32.xlu0 %v856_v39, %s6048_s17  ;;  %v12278_v39 = vrot.slane %v6412_v52, 7  ;;  %1029 = vrot.lane.b32.xlu2 %v862_v41, %s6048_s17  ;;  %v870_v52 = vrot.slane %v7233_v13, 1 }
  0xeb   :  { %1027 = vrot.lane.b32.xlu1 %v859_v32, %s6048_s17  ;;  %v12284_v32 = vrot.slane %v6446_v35, 7  ;;  %v12291_v35 = vld [vmem:[#allocation16_spill] sm:$0xff] }
  0xec   :  { %v7226_v20 = vpop.permute.xlu0 %625  ;;  %v7238_v30 = vsel %vm353_vm0, %v12278_v39, 0.0  ;;  %v871_v50 = vsel %vm799_vm1, %v869_v53, %v870_v52  ;;  %v878_v53 = vrot.slane %v12291_v35, 1 }
  0xed   :  { %12276 = vst [vmem:[#allocation135_spill] sm:$0xff] %v7226_v20  ;;  %v7244_v20 = vsel %vm353_vm0, %v12279_v59, 0.0  ;;  %v867_v47 = vrot.slane %v7238_v30, 1  ;;  %v7266_v23 = vsel %vm353_vm0, %v12284_v32, 0.0 }
  0xee   :  { %12280 = vst [vmem:[#allocation136_spill] sm:$0xff] %v7244_v20  ;;  %v873_v59 = vrot.slane %v7244_v20, 1 }
  0xef   :  { %v7253_v57 = vpop.permute.xlu2 %647  ;;  %v7255_v61 = vpop.permute.xlu1 %627  ;;  %v868_v41 = vsel %vm799_vm1, %v866_v56, %v867_v47  ;;  %12285 = vst [vmem:[#allocation140_spill] sm:$0xff] %v7266_v23  ;;  %v12292_v56 = vld [vmem:[#allocation17_spill] sm:$0xff] }
  0xf0   :  { %12281 = vst [vmem:[#allocation137_spill] sm:$0xff] %v7253_v57  ;;  %v874_v57 = vsel %vm799_vm1, %v872_v38, %v873_v59  ;;  %v875_v52 = vrot.slane %v12292_v56, 1  ;;  %v12297_v56 = vld [vmem:[#allocation18_spill] sm:$0xff] }
  0xf1   :  { %12282 = vst [vmem:[#allocation138_spill] sm:$0xff] %v7255_v61  ;;  %v12288_v61 = vld [vmem:[#allocation15_spill] sm:$0xff] }
  0xf2   :  { %1031 = vrot.lane.b32.xlu0 %v865_v48, %s6048_s17  ;;  %v12286_v48 = vrot.slane %v6451_v34, 7  ;;  %v12289_v20 = vrot.slane %v12288_v61, 7  ;;  %1035 = vrot.lane.b32.xlu2 %v871_v50, %s6048_s17  ;;  %v879_v34 = vrot.slane %v7266_v23, 1  ;;  %v12298_v23 = vrot.slane %v12297_v56, 7 }
  0xf3   :  { %1033 = vrot.lane.b32.xlu1 %v868_v41, %s6048_s17 }
  0xf4   :  { %v7259_v29 = vpop.permute.xlu0 %631  ;;  %v7271_v39 = vsel %vm353_vm0, %v12286_v48, 0.0  ;;  %v880_v41 = vsel %vm799_vm1, %v878_v53, %v879_v34  ;;  %v12306_v53 = vld [vmem:[#allocation22_spill] sm:$0xff] }
  0xf5   :  { %12283 = vst [vmem:[#allocation139_spill] sm:$0xff] %v7259_v29  ;;  %v7277_v29 = vsel %vm353_vm0, %v12289_v20, 0.0  ;;  %v876_v47 = vrot.slane %v7271_v39, 1  ;;  %v12295_v20 = vld [vmem:[#allocation20_spill] sm:$0xff]  ;;  %v887_v56 = vrot.slane %v12306_v53, 1 }
  0xf6   :  { %12287 = vst [vmem:[#allocation141_spill] sm:$0xff] %v7271_v39  ;;  %v881_v59 = vrot.slane %v12295_v20, 1  ;;  %v882_v50 = vrot.slane %v7277_v29, 1  ;;  %v7299_v39 = vsel %vm353_vm0, %v12298_v23, 0.0  ;;  %v12303_v20 = vld [vmem:[#allocation21_spill] sm:$0xff]  ;;  %v12307_v23 = vld [vmem:[#allocation23_spill] sm:$0xff] }
  0xf7   :  { %12290 = vst [vmem:[#allocation15_spill] sm:$0xff] %v7277_v29  ;;  %v7286_v38 = vpop.permute.xlu2 %653  ;;  %v7288_v61 = vpop.permute.xlu1 %633  ;;  %v877_v48 = vsel %vm799_vm1, %v875_v52, %v876_v47  ;;  %v12304_v29 = vrot.slane %v12303_v20, 7  ;;  %v884_v52 = vrot.slane %v12307_v23, 1  ;;  %v888_v34 = vrot.slane %v7299_v39, 1  ;;  %v12312_v23 = vld [vmem:[#allocation24_spill] sm:$0xff] }
  0xf8   :  { %12293 = vst [vmem:[#allocation142_spill] sm:$0xff] %v7286_v38 }
  0xf9   :  { %12294 = vst [vmem:[#allocation143_spill] sm:$0xff] %v7288_v61  ;;  %v883_v61 = vsel %vm799_vm1, %v881_v59, %v882_v50 }
  0xfa   :  { %1037 = vrot.lane.b32.xlu0 %v874_v57, %s6048_s17  ;;  %12299 = vst [vmem:[#allocation18_spill] sm:$0xff] %v7299_v39  ;;  %v12300_v57 = vld [vmem:[#allocation19_spill] sm:$0xff]  ;;  %1041 = vrot.lane.b32.xlu2 %v880_v41, %s6048_s17  ;;  %v12313_v39 = vrot.slane %v12312_v23, 7 }
  0xfb   :  { %v12301_v35 = vrot.slane %v12300_v57, 7  ;;  %1039 = vrot.lane.b32.xlu1 %v877_v48, %s6048_s17  ;;  %v889_v48 = vsel %vm799_vm1, %v887_v56, %v888_v34  ;;  %v12321_v56 = vld [vmem:[#allocation28_spill] sm:$0xff] }
  0xfc   :  { %v7292_v32 = vpop.permute.xlu0 %637  ;;  %v896_v23 = vrot.slane %v12321_v56, 1 }
  0xfd   :  { %12296 = vst [vmem:[#allocation144_spill] sm:$0xff] %v7292_v32  ;;  %v7304_v38 = vsel %vm353_vm0, %v12301_v35, 0.0  ;;  %v7310_v32 = vsel %vm353_vm0, %v12304_v29, 0.0  ;;  %v12310_v29 = vld [vmem:[#allocation26_spill] sm:$0xff] }
  0xfe   :  { %12302 = vst [vmem:[#allocation19_spill] sm:$0xff] %v7304_v38  ;;  %v885_v35 = vrot.slane %v7304_v38, 1  ;;  %v890_v59 = vrot.slane %v12310_v29, 1  ;;  %v891_v50 = vrot.slane %v7310_v32, 1  ;;  %v7332_v38 = vsel %vm353_vm0, %v12313_v39, 0.0  ;;  %v12318_v29 = vld [vmem:[#allocation27_spill] sm:$0xff] }
  0xff   :  { %12305 = vst [vmem:[#allocation21_spill] sm:$0xff] %v7310_v32  ;;  %v7319_v47 = vpop.permute.xlu2 %659  ;;  %v7321_v20 = vpop.permute.xlu1 %639  ;;  %v12319_v32 = vrot.slane %v12318_v29, 7  ;;  %v12322_v39 = vld [vmem:[#allocation29_spill] sm:$0xff]  ;;  %v897_v34 = vrot.slane %v7332_v38, 1 }
 0x100   :  { %12308 = vst [vmem:[#allocation145_spill] sm:$0xff] %v7319_v47  ;;  %v886_v57 = vsel %vm799_vm1, %v884_v52, %v885_v35  ;;  %v893_v52 = vrot.slane %v12322_v39, 1  ;;  %v12327_v39 = vld [vmem:[#allocation30_spill] sm:$0xff] }
 0x101   :  { %12309 = vst [vmem:[#allocation146_spill] sm:$0xff] %v7321_v20  ;;  %v892_v20 = vsel %vm799_vm1, %v890_v59, %v891_v50 }
 0x102   :  { %1043 = vrot.lane.b32.xlu0 %v883_v61, %s6048_s17  ;;  %12314 = vst [vmem:[#allocation24_spill] sm:$0xff] %v7332_v38  ;;  %v12315_v61 = vld [vmem:[#allocation25_spill] sm:$0xff]  ;;  %1047 = vrot.lane.b32.xlu2 %v889_v48, %s6048_s17  ;;  %v12328_v38 = vrot.slane %v12327_v39, 7 }
 0x103   :  { %v12316_v53 = vrot.slane %v12315_v61, 7  ;;  %1045 = vrot.lane.b32.xlu1 %v886_v57, %s6048_s17  ;;  %v898_v57 = vsel %vm799_vm1, %v896_v23, %v897_v34  ;;  %v12336_v23 = vld [vmem:[#allocation34_spill] sm:$0xff] }
 0x104   :  { %v7325_v41 = vpop.permute.xlu0 %643  ;;  %v905_v39 = vrot.slane %v12336_v23, 1 }
 0x105   :  { %12311 = vst [vmem:[#allocation147_spill] sm:$0xff] %v7325_v41  ;;  %v7337_v47 = vsel %vm353_vm0, %v12316_v53, 0.0  ;;  %v7343_v41 = vsel %vm353_vm0, %v12319_v32, 0.0  ;;  %v12325_v32 = vld [vmem:[#allocation32_spill] sm:$0xff] }
 0x106   :  { %12317 = vst [vmem:[#allocation25_spill] sm:$0xff] %v7337_v47  ;;  %v894_v53 = vrot.slane %v7337_v47, 1  ;;  %v899_v59 = vrot.slane %v12325_v32, 1  ;;  %v900_v50 = vrot.slane %v7343_v41, 1  ;;  %v7365_v47 = vsel %vm353_vm0, %v12328_v38, 0.0  ;;  %v12333_v32 = vld [vmem:[#allocation33_spill] sm:$0xff] }
 0x107   :  { %12320 = vst [vmem:[#allocation27_spill] sm:$0xff] %v7343_v41  ;;  %v7352_v35 = vpop.permute.xlu2 %665  ;;  %v7354_v29 = vpop.permute.xlu1 %645  ;;  %v12334_v41 = vrot.slane %v12333_v32, 7  ;;  %v12337_v38 = vld [vmem:[#allocation35_spill] sm:$0xff]  ;;  %v906_v34 = vrot.slane %v7365_v47, 1 }
 0x108   :  { %12323 = vst [vmem:[#allocation148_spill] sm:$0xff] %v7352_v35  ;;  %v895_v61 = vsel %vm799_vm1, %v893_v52, %v894_v53  ;;  %v902_v52 = vrot.slane %v12337_v38, 1  ;;  %v12342_v38 = vld [vmem:[#allocation36_spill] sm:$0xff] }
 0x109   :  { %12324 = vst [vmem:[#allocation149_spill] sm:$0xff] %v7354_v29  ;;  %v901_v29 = vsel %vm799_vm1, %v899_v59, %v900_v50 }
 0x10a   :  { %1049 = vrot.lane.b32.xlu0 %v892_v20, %s6048_s17  ;;  %12329 = vst [vmem:[#allocation30_spill] sm:$0xff] %v7365_v47  ;;  %v12330_v20 = vld [vmem:[#allocation31_spill] sm:$0xff]  ;;  %1053 = vrot.lane.b32.xlu2 %v898_v57, %s6048_s17  ;;  %v12343_v47 = vrot.slane %v12342_v38, 7 }
 0x10b   :  { %v12331_v56 = vrot.slane %v12330_v20, 7  ;;  %1051 = vrot.lane.b32.xlu1 %v895_v61, %s6048_s17  ;;  %v907_v61 = vsel %vm799_vm1, %v905_v39, %v906_v34  ;;  %v12351_v39 = vld [vmem:[#allocation41_spill] sm:$0xff] }
 0x10c   :  { %v7358_v48 = vpop.permute.xlu0 %649  ;;  %v914_v38 = vrot.slane %v12351_v39, 1  ;;  %v12357_v39 = vld [vmem:[#allocation43_spill] sm:$0xff] }
 0x10d   :  { %12326 = vst [vmem:[#allocation150_spill] sm:$0xff] %v7358_v48  ;;  %v7370_v35 = vsel %vm353_vm0, %v12331_v56, 0.0  ;;  %v7376_v48 = vsel %vm353_vm0, %v12334_v41, 0.0  ;;  %v12340_v41 = vld [vmem:[#allocation38_spill] sm:$0xff] }
 0x10e   :  { %12332 = vst [vmem:[#allocation31_spill] sm:$0xff] %v7370_v35  ;;  %v903_v56 = vrot.slane %v7370_v35, 1  ;;  %v908_v59 = vrot.slane %v12340_v41, 1  ;;  %v909_v50 = vrot.slane %v7376_v48, 1  ;;  %v7398_v35 = vsel %vm353_vm0, %v12343_v47, 0.0  ;;  %v12348_v41 = vld [vmem:[#allocation39_spill] sm:$0xff] }
 0x10f   :  { %12335 = vst [vmem:[#allocation33_spill] sm:$0xff] %v7376_v48  ;;  %v7385_v53 = vpop.permute.xlu2 %671  ;;  %v7387_v32 = vpop.permute.xlu1 %651  ;;  %v12349_v48 = vrot.slane %v12348_v41, 7  ;;  %v12352_v47 = vld [vmem:[#allocation42_spill] sm:$0xff]  ;;  %v915_v34 = vrot.slane %v7398_v35, 1 }
 0x110   :  { %12338 = vst [vmem:[#allocation151_spill] sm:$0xff] %v7385_v53  ;;  %v904_v20 = vsel %vm799_vm1, %v902_v52, %v903_v56  ;;  %v911_v52 = vrot.slane %v12352_v47, 1 }
 0x111   :  { %12339 = vst [vmem:[#allocation152_spill] sm:$0xff] %v7387_v32  ;;  %v910_v32 = vsel %vm799_vm1, %v908_v59, %v909_v50 }
 0x112   :  { %1055 = vrot.lane.b32.xlu0 %v901_v29, %s6048_s17  ;;  %12344 = vst [vmem:[#allocation36_spill] sm:$0xff] %v7398_v35  ;;  %v12345_v29 = vld [vmem:[#allocation37_spill] sm:$0xff]  ;;  %1059 = vrot.lane.b32.xlu2 %v907_v61, %s6048_s17  ;;  %v12358_v35 = vrot.slane %v12357_v39, 7  ;;  %v12366_v39 = vld [vmem:[#allocation48_spill] sm:$0xff] }
 0x113   :  { %v12346_v23 = vrot.slane %v12345_v29, 7  ;;  %1057 = vrot.lane.b32.xlu1 %v904_v20, %s6048_s17  ;;  %v916_v20 = vsel %vm799_vm1, %v914_v38, %v915_v34  ;;  %v923_v38 = vrot.slane %v12366_v39, 1  ;;  %v12372_v39 = vld [vmem:[#allocation50_spill] sm:$0xff] }
 0x114   :  { %v7391_v57 = vpop.permute.xlu0 %655 }
 0x115   :  { %12341 = vst [vmem:[#allocation153_spill] sm:$0xff] %v7391_v57  ;;  %v7403_v53 = vsel %vm353_vm0, %v12346_v23, 0.0  ;;  %v7409_v57 = vsel %vm353_vm0, %v12349_v48, 0.0  ;;  %v12355_v48 = vld [vmem:[#allocation45_spill] sm:$0xff] }
 0x116   :  { %12347 = vst [vmem:[#allocation37_spill] sm:$0xff] %v7403_v53  ;;  %v912_v23 = vrot.slane %v7403_v53, 1  ;;  %v917_v59 = vrot.slane %v12355_v48, 1  ;;  %v918_v50 = vrot.slane %v7409_v57, 1  ;;  %v7431_v53 = vsel %vm353_vm0, %v12358_v35, 0.0  ;;  %v12367_v35 = vld [vmem:[#allocation49_spill] sm:$0xff] }
 0x117   :  { %12350 = vst [vmem:[#allocation39_spill] sm:$0xff] %v7409_v57  ;;  %v7418_v56 = vpop.permute.xlu1 %657  ;;  %v7420_v41 = vpop.permute.xlu2 %993  ;;  %v924_v34 = vrot.slane %v7431_v53, 1 }
 0x118   :  { %12353 = vst [vmem:[#allocation154_spill] sm:$0xff] %v7418_v56  ;;  %v913_v29 = vsel %vm799_vm1, %v911_v52, %v912_v23  ;;  %v919_v48 = vsel %vm799_vm1, %v917_v59, %v918_v50  ;;  %v920_v52 = vrot.slane %v12367_v35, 1 }
 0x119   :  { %12354 = vst [vmem:[#allocation155_spill] sm:$0xff] %v7420_v41  ;;  %v12363_v41 = vld [vmem:[#allocation46_spill] sm:$0xff] }
 0x11a   :  { %1061 = vrot.lane.b32.xlu0 %v910_v32, %s6048_s17  ;;  %12359 = vst [vmem:[#allocation43_spill] sm:$0xff] %v7431_v53  ;;  %v12360_v32 = vld [vmem:[#allocation44_spill] sm:$0xff]  ;;  %v12364_v57 = vrot.slane %v12363_v41, 7  ;;  %1065 = vrot.lane.b32.xlu2 %v916_v20, %s6048_s17  ;;  %v12373_v53 = vrot.slane %v12372_v39, 7 }
 0x11b   :  { %v12361_v47 = vrot.slane %v12360_v32, 7  ;;  %1063 = vrot.lane.b32.xlu1 %v913_v29, %s6048_s17  ;;  %v925_v29 = vsel %vm799_vm1, %v923_v38, %v924_v34  ;;  %v12381_v39 = vld [vmem:[#allocation56_spill] sm:$0xff] }
 0x11c   :  { %v7424_v61 = vpop.permute.xlu0 %661  ;;  %v932_v38 = vrot.slane %v12381_v39, 1  ;;  %v12387_v39 = vld [vmem:[#allocation58_spill] sm:$0xff] }
 0x11d   :  { %12356 = vst [vmem:[#allocation156_spill] sm:$0xff] %v7424_v61  ;;  %v7436_v56 = vsel %vm353_vm0, %v12361_v47, 0.0  ;;  %v7442_v61 = vsel %vm353_vm0, %v12364_v57, 0.0  ;;  %v12370_v57 = vld [vmem:[#allocation52_spill] sm:$0xff] }
 0x11e   :  { %12362 = vst [vmem:[#allocation44_spill] sm:$0xff] %v7436_v56  ;;  %v921_v47 = vrot.slane %v7436_v56, 1  ;;  %v926_v59 = vrot.slane %v12370_v57, 1  ;;  %v927_v50 = vrot.slane %v7442_v61, 1  ;;  %v7464_v56 = vsel %vm353_vm0, %v12373_v53, 0.0  ;;  %v12382_v53 = vld [vmem:[#allocation57_spill] sm:$0xff] }
 0x11f   :  { %12365 = vst [vmem:[#allocation46_spill] sm:$0xff] %v7442_v61  ;;  %v7451_v23 = vpop.permute.xlu1 %663  ;;  %v7453_v41 = vpop.permute.xlu2 %999  ;;  %v933_v34 = vrot.slane %v7464_v56, 1 }
 0x120   :  { %12368 = vst [vmem:[#allocation157_spill] sm:$0xff] %v7451_v23  ;;  %v922_v32 = vsel %vm799_vm1, %v920_v52, %v921_v47  ;;  %v928_v57 = vsel %vm799_vm1, %v926_v59, %v927_v50  ;;  %v929_v52 = vrot.slane %v12382_v53, 1 }
 0x121   :  { %12369 = vst [vmem:[#allocation158_spill] sm:$0xff] %v7453_v41  ;;  %v12378_v41 = vld [vmem:[#allocation53_spill] sm:$0xff] }
 0x122   :  { %1067 = vrot.lane.b32.xlu0 %v919_v48, %s6048_s17  ;;  %12374 = vst [vmem:[#allocation50_spill] sm:$0xff] %v7464_v56  ;;  %v12375_v48 = vld [vmem:[#allocation51_spill] sm:$0xff]  ;;  %v12379_v61 = vrot.slane %v12378_v41, 7  ;;  %1071 = vrot.lane.b32.xlu2 %v925_v29, %s6048_s17  ;;  %v12388_v56 = vrot.slane %v12387_v39, 7  ;;  %v12396_v39 = vld [vmem:[#allocation65_spill] sm:$0xff] }
 0x123   :  { %v12376_v35 = vrot.slane %v12375_v48, 7  ;;  %1069 = vrot.lane.b32.xlu1 %v922_v32, %s6048_s17  ;;  %v934_v32 = vsel %vm799_vm1, %v932_v38, %v933_v34  ;;  %v941_v38 = vrot.slane %v12396_v39, 1  ;;  %v12402_v39 = vld [vmem:[#allocation67_spill] sm:$0xff] }
 0x124   :  { %v7457_v20 = vpop.permute.xlu0 %667 }
 0x125   :  { %12371 = vst [vmem:[#allocation159_spill] sm:$0xff] %v7457_v20  ;;  %v7469_v23 = vsel %vm353_vm0, %v12376_v35, 0.0  ;;  %v7475_v20 = vsel %vm353_vm0, %v12379_v61, 0.0  ;;  %v12385_v61 = vld [vmem:[#allocation60_spill] sm:$0xff] }
 0x126   :  { %12377 = vst [vmem:[#allocation51_spill] sm:$0xff] %v7469_v23  ;;  %v930_v35 = vrot.slane %v7469_v23, 1  ;;  %v935_v59 = vrot.slane %v12385_v61, 1  ;;  %v936_v50 = vrot.slane %v7475_v20, 1  ;;  %v7497_v23 = vsel %vm353_vm0, %v12388_v56, 0.0  ;;  %v12397_v56 = vld [vmem:[#allocation66_spill] sm:$0xff] }
 0x127   :  { %12380 = vst [vmem:[#allocation53_spill] sm:$0xff] %v7475_v20  ;;  %v7484_v47 = vpop.permute.xlu1 %669  ;;  %v7486_v41 = vpop.permute.xlu2 %1005  ;;  %v942_v34 = vrot.slane %v7497_v23, 1 }
 0x128   :  { %12383 = vst [vmem:[#allocation160_spill] sm:$0xff] %v7484_v47  ;;  %v931_v48 = vsel %vm799_vm1, %v929_v52, %v930_v35  ;;  %v937_v61 = vsel %vm799_vm1, %v935_v59, %v936_v50  ;;  %v938_v52 = vrot.slane %v12397_v56, 1 }
 0x129   :  { %12384 = vst [vmem:[#allocation161_spill] sm:$0xff] %v7486_v41  ;;  %v12393_v41 = vld [vmem:[#allocation61_spill] sm:$0xff] }
 0x12a   :  { %1073 = vrot.lane.b32.xlu0 %v928_v57, %s6048_s17  ;;  %12389 = vst [vmem:[#allocation58_spill] sm:$0xff] %v7497_v23  ;;  %v12390_v57 = vld [vmem:[#allocation59_spill] sm:$0xff]  ;;  %v12394_v20 = vrot.slane %v12393_v41, 7  ;;  %1077 = vrot.lane.b32.xlu2 %v934_v32, %s6048_s17  ;;  %v12403_v23 = vrot.slane %v12402_v39, 7  ;;  %v12411_v39 = vld [vmem:[#allocation74_spill] sm:$0xff] }
 0x12b   :  { %v12391_v53 = vrot.slane %v12390_v57, 7  ;;  %1075 = vrot.lane.b32.xlu1 %v931_v48, %s6048_s17  ;;  %v943_v48 = vsel %vm799_vm1, %v941_v38, %v942_v34  ;;  %v950_v38 = vrot.slane %v12411_v39, 1  ;;  %v12417_v39 = vld [vmem:[#allocation76_spill] sm:$0xff] }
 0x12c   :  { %v7490_v29 = vpop.permute.xlu0 %989 }
 0x12d   :  { %12386 = vst [vmem:[#allocation162_spill] sm:$0xff] %v7490_v29  ;;  %v7502_v47 = vsel %vm353_vm0, %v12391_v53, 0.0  ;;  %v7508_v29 = vsel %vm353_vm0, %v12394_v20, 0.0  ;;  %v12400_v20 = vld [vmem:[#allocation69_spill] sm:$0xff] }
 0x12e   :  { %12392 = vst [vmem:[#allocation59_spill] sm:$0xff] %v7502_v47  ;;  %v939_v53 = vrot.slane %v7502_v47, 1  ;;  %v944_v59 = vrot.slane %v12400_v20, 1  ;;  %v945_v50 = vrot.slane %v7508_v29, 1  ;;  %v7530_v47 = vsel %vm353_vm0, %v12403_v23, 0.0  ;;  %v12412_v23 = vld [vmem:[#allocation75_spill] sm:$0xff] }
 0x12f   :  { %12395 = vst [vmem:[#allocation61_spill] sm:$0xff] %v7508_v29  ;;  %v7517_v35 = vpop.permute.xlu2 %1011  ;;  %v7519_v41 = vpop.permute.xlu1 %991  ;;  %v951_v34 = vrot.slane %v7530_v47, 1 }
 0x130   :  { %12398 = vst [vmem:[#allocation163_spill] sm:$0xff] %v7517_v35  ;;  %v940_v57 = vsel %vm799_vm1, %v938_v52, %v939_v53  ;;  %v946_v20 = vsel %vm799_vm1, %v944_v59, %v945_v50  ;;  %v947_v52 = vrot.slane %v12412_v23, 1 }
 0x131   :  { %12399 = vst [vmem:[#allocation164_spill] sm:$0xff] %v7519_v41  ;;  %v12408_v41 = vld [vmem:[#allocation70_spill] sm:$0xff] }
 0x132   :  { %1079 = vrot.lane.b32.xlu0 %v937_v61, %s6048_s17  ;;  %12404 = vst [vmem:[#allocation67_spill] sm:$0xff] %v7530_v47  ;;  %v12405_v61 = vld [vmem:[#allocation68_spill] sm:$0xff]  ;;  %v12409_v29 = vrot.slane %v12408_v41, 7  ;;  %1083 = vrot.lane.b32.xlu2 %v943_v48, %s6048_s17  ;;  %v12418_v47 = vrot.slane %v12417_v39, 7  ;;  %v12426_v39 = vld [vmem:[#allocation83_spill] sm:$0xff] }
 0x133   :  { %v12406_v56 = vrot.slane %v12405_v61, 7  ;;  %1081 = vrot.lane.b32.xlu1 %v940_v57, %s6048_s17  ;;  %v952_v57 = vsel %vm799_vm1, %v950_v38, %v951_v34  ;;  %v959_v38 = vrot.slane %v12426_v39, 1  ;;  %v12432_v39 = vld [vmem:[#allocation85_spill] sm:$0xff] }
 0x134   :  { %v7523_v32 = vpop.permute.xlu0 %995 }
 0x135   :  { %12401 = vst [vmem:[#allocation165_spill] sm:$0xff] %v7523_v32  ;;  %v7535_v35 = vsel %vm353_vm0, %v12406_v56, 0.0  ;;  %v7541_v32 = vsel %vm353_vm0, %v12409_v29, 0.0  ;;  %v12415_v29 = vld [vmem:[#allocation78_spill] sm:$0xff] }
 0x136   :  { %12407 = vst [vmem:[#allocation68_spill] sm:$0xff] %v7535_v35  ;;  %v948_v56 = vrot.slane %v7535_v35, 1  ;;  %v953_v59 = vrot.slane %v12415_v29, 1  ;;  %v954_v50 = vrot.slane %v7541_v32, 1  ;;  %v7563_v35 = vsel %vm353_vm0, %v12418_v47, 0.0  ;;  %v12427_v47 = vld [vmem:[#allocation84_spill] sm:$0xff] }
 0x137   :  { %12410 = vst [vmem:[#allocation70_spill] sm:$0xff] %v7541_v32  ;;  %v7550_v53 = vpop.permute.xlu2 %1017  ;;  %v7552_v41 = vpop.permute.xlu1 %997  ;;  %v960_v34 = vrot.slane %v7563_v35, 1 }
 0x138   :  { %12413 = vst [vmem:[#allocation166_spill] sm:$0xff] %v7550_v53  ;;  %v949_v61 = vsel %vm799_vm1, %v947_v52, %v948_v56  ;;  %v955_v29 = vsel %vm799_vm1, %v953_v59, %v954_v50  ;;  %v956_v52 = vrot.slane %v12427_v47, 1 }
 0x139   :  { %12414 = vst [vmem:[#allocation167_spill] sm:$0xff] %v7552_v41  ;;  %v12423_v41 = vld [vmem:[#allocation79_spill] sm:$0xff] }
 0x13a   :  { %1085 = vrot.lane.b32.xlu0 %v946_v20, %s6048_s17  ;;  %12419 = vst [vmem:[#allocation76_spill] sm:$0xff] %v7563_v35  ;;  %v12420_v20 = vld [vmem:[#allocation77_spill] sm:$0xff]  ;;  %v12424_v32 = vrot.slane %v12423_v41, 7  ;;  %1089 = vrot.lane.b32.xlu2 %v952_v57, %s6048_s17  ;;  %v12433_v35 = vrot.slane %v12432_v39, 7  ;;  %v12441_v39 = vld [vmem:[#allocation92_spill] sm:$0xff] }
 0x13b   :  { %v12421_v23 = vrot.slane %v12420_v20, 7  ;;  %1087 = vrot.lane.b32.xlu1 %v949_v61, %s6048_s17  ;;  %v961_v61 = vsel %vm799_vm1, %v959_v38, %v960_v34  ;;  %v968_v38 = vrot.slane %v12441_v39, 1 }
 0x13c   :  { %v7556_v48 = vpop.permute.xlu0 %1001 }
 0x13d   :  { %12416 = vst [vmem:[#allocation168_spill] sm:$0xff] %v7556_v48  ;;  %v7568_v53 = vsel %vm353_vm0, %v12421_v23, 0.0  ;;  %v7574_v48 = vsel %vm353_vm0, %v12424_v32, 0.0  ;;  %v12430_v32 = vld [vmem:[#allocation87_spill] sm:$0xff] }
 0x13e   :  { %12422 = vst [vmem:[#allocation77_spill] sm:$0xff] %v7568_v53  ;;  %v957_v23 = vrot.slane %v7568_v53, 1  ;;  %v962_v59 = vrot.slane %v12430_v32, 1  ;;  %v963_v50 = vrot.slane %v7574_v48, 1  ;;  %v7596_v53 = vsel %vm353_vm0, %v12433_v35, 0.0  ;;  %v12442_v35 = vld [vmem:[#allocation93_spill] sm:$0xff] }
 0x13f   :  { %12425 = vst [vmem:[#allocation79_spill] sm:$0xff] %v7574_v48  ;;  %v7583_v56 = vpop.permute.xlu2 %1023  ;;  %v7585_v41 = vpop.permute.xlu1 %1003  ;;  %v969_v34 = vrot.slane %v7596_v53, 1 }
 0x140   :  { %12428 = vst [vmem:[#allocation169_spill] sm:$0xff] %v7583_v56  ;;  %v958_v20 = vsel %vm799_vm1, %v956_v52, %v957_v23  ;;  %v964_v32 = vsel %vm799_vm1, %v962_v59, %v963_v50  ;;  %v965_v52 = vrot.slane %v12442_v35, 1 }
 0x141   :  { %12429 = vst [vmem:[#allocation170_spill] sm:$0xff] %v7585_v41  ;;  %v12438_v41 = vld [vmem:[#allocation88_spill] sm:$0xff] }
 0x142   :  { %1091 = vrot.lane.b32.xlu0 %v955_v29, %s6048_s17  ;;  %12434 = vst [vmem:[#allocation85_spill] sm:$0xff] %v7596_v53  ;;  %v12435_v29 = vld [vmem:[#allocation86_spill] sm:$0xff]  ;;  %v12439_v48 = vrot.slane %v12438_v41, 7  ;;  %1095 = vrot.lane.b32.xlu2 %v961_v61, %s6048_s17  ;;  %v970_v61 = vsel %vm799_vm1, %v968_v38, %v969_v34  ;;  %v12454_v38 = vld [vmem:[#allocation101_spill] sm:$0xff] }
 0x143   :  { %v12436_v47 = vrot.slane %v12435_v29, 7  ;;  %1093 = vrot.lane.b32.xlu1 %v958_v20, %s6048_s17  ;;  %v12445_v29 = vld [vmem:[#allocation94_spill] sm:$0xff] }
 0x144   :  { %v7589_v57 = vpop.permute.xlu0 %1007  ;;  %v12446_v53 = vrot.slane %v12445_v29, 7 }
 0x145   :  { %12431 = vst [vmem:[#allocation171_spill] sm:$0xff] %v7589_v57  ;;  %v7601_v56 = vsel %vm353_vm0, %v12436_v47, 0.0  ;;  %v7607_v57 = vsel %vm353_vm0, %v12439_v48, 0.0  ;;  %v971_v48 = vrot.slane %v6917_v17, 1 }
 0x146   :  { %12437 = vst [vmem:[#allocation86_spill] sm:$0xff] %v7601_v56  ;;  %v966_v47 = vrot.slane %v7601_v56, 1  ;;  %v972_v59 = vrot.slane %v7607_v57, 1  ;;  %v7629_v39 = vsel %vm353_vm0, %v12446_v53, 0.0  ;;  %v12455_v53 = vld [vmem:[#allocation102_spill] sm:$0xff] }
 0x147   :  { %12440 = vst [vmem:[#allocation88_spill] sm:$0xff] %v7607_v57  ;;  %v7616_v23 = vpop.permute.xlu2 %1029  ;;  %v7618_v41 = vpop.permute.xlu1 %1009  ;;  %v974_v34 = vrot.slane %v12455_v53, 1 }
 0x148   :  { %12443 = vst [vmem:[#allocation172_spill] sm:$0xff] %v7616_v23  ;;  %v967_v20 = vsel %vm799_vm1, %v965_v52, %v966_v47  ;;  %v973_v17 = vsel %vm799_vm1, %v971_v48, %v972_v59  ;;  %v12451_v23 = vld [vmem:[#allocation97_spill] sm:$0xff]  ;;  %v977_v52 = vrot.slane %v12454_v38, 1  ;;  %v978_v47 = vrot.slane %v7629_v39, 1 }
 0x149   :  { %12447 = vst [vmem:[#allocation94_spill] sm:$0xff] %v7629_v39  ;;  %v12452_v57 = vrot.slane %v12451_v23, 7  ;;  %v12458_v39 = vrot.slane %v6952_v33, 7 }
 0x14a   :  { %1097 = vrot.lane.b32.xlu0 %v964_v32, %s6048_s17  ;;  %v12448_v32 = vld [vmem:[#allocation95_spill] sm:$0xff]  ;;  %1101 = vrot.lane.b32.xlu2 %v970_v61, %s6048_s17 }
 0x14b   :  { %v12449_v56 = vrot.slane %v12448_v32, 7  ;;  %1099 = vrot.lane.b32.xlu1 %v967_v20, %s6048_s17  ;;  %v979_v20 = vsel %vm799_vm1, %v977_v52, %v978_v47  ;;  %v7662_v38 = vsel %vm353_vm0, %v12458_v39, 0.0  ;;  %v986_v52 = vrot.slane %v6987_v1, 1 }
 0x14c   :  { %v7622_v50 = vpop.permute.xlu0 %1013  ;;  %12459 = vst [vmem:[#allocation175_spill] sm:$0xff] %v7662_v38  ;;  %v987_v33 = vrot.slane %v7662_v38, 1 }
 0x14d   :  { %12444 = vst [vmem:[#allocation173_spill] sm:$0xff] %v7622_v50  ;;  %v7634_v35 = vsel %vm353_vm0, %v12449_v56, 0.0  ;;  %v7640_v50 = vsel %vm353_vm0, %v12452_v57, 0.0  ;;  %v12457_v57 = vld [vmem:[#allocation104_spill] sm:$0xff] }
 0x14e   :  { %12450 = vst [vmem:[#allocation95_spill] sm:$0xff] %v7634_v35  ;;  %v975_v56 = vrot.slane %v7634_v35, 1  ;;  %v980_v59 = vrot.slane %v12457_v57, 1  ;;  %v981_v61 = vrot.slane %v7640_v50, 1 }
 0x14f   :  { %12453 = vst [vmem:[#allocation97_spill] sm:$0xff] %v7640_v50  ;;  %v7649_v48 = vpop.permute.xlu2 %1035  ;;  %v7651_v23 = vpop.permute.xlu1 %1015  ;;  %v12469_v50 = vld [vmem:[#allocation111_spill] sm:$0xff] }
 0x150   :  { %12456 = vst [vmem:[#allocation174_spill] sm:$0xff] %v7649_v48  ;;  %v976_v32 = vsel %vm799_vm1, %v974_v34, %v975_v56  ;;  %v982_v57 = vsel %vm799_vm1, %v980_v59, %v981_v61  ;;  %v983_v34 = vrot.slane %v6992_v26, 1  ;;  %v12464_v56 = vld [vmem:[#allocation12_spill] sm:$0xff]  ;;  %v12465_v61 = vld [vmem:[#allocation105_spill] sm:$0xff]  ;;  %v12468_v26 = vld [vmem:[#allocation14_spill] sm:$0xff] }
 0x151   :  { %v1179_v59 = vrot.slane %v12464_v56, 2  ;;  %v1182_v56 = vrot.slane %v12468_v26, 2 }
 0x152   :  { %1103 = vrot.lane.b32.xlu0 %v973_v17, %s6048_s17  ;;  %v12460_v17 = vld [vmem:[#allocation103_spill] sm:$0xff]  ;;  %1107 = vrot.lane.b32.xlu2 %v979_v20, %s6048_s17  ;;  %v1180_v20 = vrot.slane %v12465_v61, 2  ;;  %v1186_v61 = vrot.slane %v12469_v50, 2 }
 0x153   :  { %v12461_v35 = vrot.slane %v12460_v17, 7  ;;  %1105 = vrot.lane.b32.xlu1 %v976_v32, %s6048_s17  ;;  %v988_v32 = vsel %vm799_vm1, %v986_v52, %v987_v33  ;;  %v1188_v33 = vrot.slane %v6207_v19, 2  ;;  %v1195_v19 = vrot.slane %v7040_v7, 2 }
 0x154   :  { %v7655_v29 = vpop.permute.xlu0 %1019  ;;  %v7688_v38 = vsel %vm1178_vm2, %v1179_v59, %v1180_v20  ;;  %v1191_v20 = vrot.slane %v6173_v11, 2 }
 0x155   :  { %v7667_v53 = vsel %vm353_vm0, %v12461_v35, 0.0  ;;  %12466 = vst [vmem:[#allocation105_spill] sm:$0xff] %v7688_v38 }
 0x156   :  { %12462 = vst [vmem:[#allocation103_spill] sm:$0xff] %v7667_v53  ;;  %v984_v39 = vrot.slane %v7667_v53, 1 }
 0x157   :  { %v7677_v47 = vpop.permute.xlu2 %1041  ;;  %v7679_v35 = vpop.permute.xlu1 %1021 }
 0x158   :  { %12463 = vst [vmem:[#allocation176_spill] sm:$0xff] %v7677_v47  ;;  %v985_v1 = vsel %vm799_vm1, %v983_v34, %v984_v39  ;;  %v12470_v47 = vld [vmem:[#allocation112_spill] sm:$0xff]  ;;  %v12471_v39 = vld [vmem:[#allocation114_spill] sm:$0xff] }
 0x159   :  { %v1183_v48 = vrot.slane %v12470_v47, 2 }
 0x15a   :  { %1109 = vrot.lane.b32.xlu0 %v982_v57, %s6048_s17  ;;  %1113 = vrot.lane.b32.xlu2 %v988_v32, %s6048_s17  ;;  %v12467_v57 = vld [vmem:[#allocation13_spill] sm:$0xff]  ;;  %v1194_v32 = vrot.slane %v6202_v18, 2 }
 0x15b   :  { %1111 = vrot.lane.b32.xlu1 %v985_v1, %s6048_s17  ;;  %v1185_v53 = vrot.slane %v12467_v57, 2  ;;  %v1189_v1 = vrot.slane %v12471_v39, 2  ;;  %v1184_v50 = vsel %vm1178_vm2, %v1182_v56, %v1183_v48  ;;  %v1192_v57 = vrot.slane %v7035_v12, 2 }
 0x15c   :  { %v7683_v17 = vpop.permute.xlu0 %1025  ;;  %v1197_v48 = vrot.slane %v6222_v22, 2  ;;  %v1198_v56 = vrot.slane %v7046_v62, 2  ;;  %v1196_v11 = vsel %vm1178_vm2, %v1194_v32, %v1195_v19  ;;  %v1203_v12 = vrot.slane %v6241_v27, 2 }
 0x15d   :  { %v1187_v26 = vsel %vm1178_vm2, %v1185_v53, %v1186_v61  ;;  %v1190_v47 = vsel %vm1178_vm2, %v1188_v33, %v1189_v1  ;;  %v1193_v18 = vsel %vm1178_vm2, %v1191_v20, %v1192_v57  ;;  %v1200_v33 = vrot.slane %v6246_v28, 2 }
 0x15e   :  { %v1199_v7 = vsel %vm1178_vm2, %v1197_v48, %v1198_v56  ;;  %v1204_v22 = vrot.slane %v7068_v44, 2  ;;  %v1201_v62 = vrot.slane %v7073_v8, 2  ;;  %v1212_v8 = vrot.slane %v6280_v36, 2 }
 0x15f   :  { %v7698_v52 = vpop.permute.xlu2 %1047  ;;  %v7700_v34 = vpop.permute.xlu1 %1027  ;;  %v1209_v32 = vrot.slane %v6285_v37, 2  ;;  %v1215_v48 = vrot.slane %v6300_v40, 2  ;;  %v1216_v56 = vrot.slane %v7112_v24, 2  ;;  %v1222_v40 = vrot.slane %v7134_v6, 2 }
 0x160   :  { %v1205_v27 = vsel %vm1178_vm2, %v1203_v12, %v1204_v22  ;;  %v1202_v28 = vsel %vm1178_vm2, %v1200_v33, %v1201_v62  ;;  %v1219_v24 = vrot.slane %v7139_v4, 2  ;;  %v1224_v33 = vrot.slane %v6339_v49, 2 }
 0x161   :  { %v1225_v22 = vrot.slane %v7145_v2, 2  ;;  %v1230_v4 = vrot.slane %v6358_v54, 2  ;;  %v1231_v49 = vrot.slane %v7167_v15, 2  ;;  %v1228_v2 = vrot.slane %v7172_v9, 2 }
 0x162   :  { %1368 = vrot.lane.b32.xlu0 %v7688_v38, %s6049_s18  ;;  %1372 = vrot.lane.b32.xlu2 %v1187_v26, %s6049_s18  ;;  %v1239_v9 = vrot.slane %v6397_v63, 2  ;;  %v12538_v38 = vld [vmem:[#allocation47_spill] sm:$0xff] }
 0x163   :  { %1370 = vrot.lane.b32.xlu1 %v1184_v50, %s6049_s18  ;;  %v1206_v50 = vrot.slane %v6261_v31, 2  ;;  %v1213_v31 = vrot.slane %v7101_v16, 2  ;;  %v1217_v16 = vsel %vm1178_vm2, %v1215_v48, %v1216_v56  ;;  %v1226_v6 = vsel %vm1178_vm2, %v1224_v33, %v1225_v22 }
 0x164   :  { %v7704_v59 = vpop.permute.xlu0 %1031  ;;  %v1232_v54 = vsel %vm1178_vm2, %v1230_v4, %v1231_v49  ;;  %v1242_v48 = vrot.slane %v6417_v60, 2  ;;  %v1243_v56 = vrot.slane %v7211_v3, 2  ;;  %v1245_v60 = vrot.slane %v6441_v42, 2  ;;  %v12486_v4 = vld [vmem:[#allocation141_spill] sm:$0xff] }
 0x165   :  { %v1214_v36 = vsel %vm1178_vm2, %v1212_v8, %v1213_v31  ;;  %v1246_v3 = vrot.slane %v7238_v30, 2  ;;  %v12483_v30 = vld [vmem:[#allocation16_spill] sm:$0xff] }
 0x166   :  { %v1257_v22 = vrot.slane %v12483_v30, 2 }
 0x167   :  { %v7716_v39 = vpop.permute.xlu2 %1053  ;;  %v7718_v53 = vpop.permute.xlu1 %1033 }
 0x168   :  { %12472 = vst [vmem:[#allocation13_spill] sm:$0xff] %v7716_v39 }
 0x16a   :  { %1374 = vrot.lane.b32.xlu0 %v1190_v47, %s6049_s18  ;;  %1378 = vrot.lane.b32.xlu2 %v1196_v11, %s6049_s18  ;;  %v1207_v47 = vrot.slane %v7079_v5, 2  ;;  %v1210_v5 = vrot.slane %v7106_v10, 2  ;;  %v1221_v10 = vrot.slane %v6319_v45, 2 }
 0x16b   :  { %1376 = vrot.lane.b32.xlu1 %v1193_v18, %s6049_s18  ;;  %v1218_v18 = vrot.slane %v6324_v46, 2 }
 0x16c   :  { %v7722_v61 = vpop.permute.xlu0 %1037  ;;  %v1208_v44 = vsel %vm1178_vm2, %v1206_v50, %v1207_v47  ;;  %v1211_v37 = vsel %vm1178_vm2, %v1209_v32, %v1210_v5  ;;  %v1223_v45 = vsel %vm1178_vm2, %v1221_v10, %v1222_v40  ;;  %v1227_v50 = vrot.slane %v6363_v55, 2  ;;  %v12481_v40 = vld [vmem:[#allocation136_spill] sm:$0xff] }
 0x16d   :  { %v1220_v46 = vsel %vm1178_vm2, %v1218_v18, %v1219_v24  ;;  %v1236_v32 = vrot.slane %v6402_v0, 2  ;;  %v1251_v18 = vrot.slane %v6456_v51, 2  ;;  %v1252_v24 = vrot.slane %v12481_v40, 2 }
 0x16e   :  { %v1229_v55 = vsel %vm1178_vm2, %v1227_v50, %v1228_v2  ;;  %v1255_v50 = vrot.slane %v12486_v4, 2  ;;  %v12502_v4 = vld [vmem:[#allocation29_spill] sm:$0xff] }
 0x16f   :  { %v7734_v1 = vpop.permute.xlu2 %1059  ;;  %v7736_v26 = vpop.permute.xlu1 %1039  ;;  %v1253_v42 = vsel %vm1178_vm2, %v1251_v18, %v1252_v24  ;;  %v12497_v18 = vld [vmem:[#allocation26_spill] sm:$0xff]  ;;  %v12498_v24 = vld [vmem:[#allocation21_spill] sm:$0xff] }
 0x170   :  { %v1269_v40 = vrot.slane %v12497_v18, 2 }
 0x172   :  { %1380 = vrot.lane.b32.xlu0 %v1199_v7, %s6049_s18  ;;  %1384 = vrot.lane.b32.xlu2 %v1205_v27, %s6049_s18 }
 0x173   :  { %1382 = vrot.lane.b32.xlu1 %v1202_v28, %s6049_s18  ;;  %v1233_v28 = vrot.slane %v6378_v58, 2  ;;  %v1240_v58 = vrot.slane %v7200_v14, 2  ;;  %v1244_v14 = vsel %vm1178_vm2, %v1242_v48, %v1243_v56  ;;  %v12493_v56 = vld [vmem:[#allocation18_spill] sm:$0xff] }
 0x174   :  { %v7740_v20 = vpop.permute.xlu0 %1043 }
 0x175   :  { %v1241_v63 = vsel %vm1178_vm2, %v1239_v9, %v1240_v58 }
 0x177   :  { %v7752_v19 = vpop.permute.xlu2 %1065  ;;  %v7754_v57 = vpop.permute.xlu1 %1045 }
 0x178   :  { %12473 = vst [vmem:[#allocation14_spill] sm:$0xff] %v7752_v19 }
 0x17a   :  { %1386 = vrot.lane.b32.xlu0 %v1208_v44, %s6049_s18  ;;  %1390 = vrot.lane.b32.xlu2 %v1214_v36, %s6049_s18  ;;  %v1234_v44 = vrot.slane %v7178_v25, 2  ;;  %v1237_v25 = vrot.slane %v7205_v21, 2  ;;  %v1248_v21 = vrot.slane %v6436_v43, 2 }
 0x17b   :  { %1388 = vrot.lane.b32.xlu1 %v1211_v37, %s6049_s18  ;;  %v1249_v37 = vrot.slane %v7233_v13, 2  ;;  %v1247_v13 = vsel %vm1178_vm2, %v1245_v60, %v1246_v3 }
 0x17c   :  { %v7758_v11 = vpop.permute.xlu0 %1049  ;;  %v1235_v15 = vsel %vm1178_vm2, %v1233_v28, %v1234_v44  ;;  %v1238_v0 = vsel %vm1178_vm2, %v1236_v32, %v1237_v25  ;;  %v12489_v28 = vld [vmem:[#allocation20_spill] sm:$0xff]  ;;  %v12492_v25 = vld [vmem:[#allocation22_spill] sm:$0xff] }
 0x17d   :  { %v1250_v43 = vsel %vm1178_vm2, %v1248_v21, %v1249_v37  ;;  %v1260_v44 = vrot.slane %v12489_v28, 2  ;;  %v1266_v48 = vrot.slane %v12492_v25, 2  ;;  %v12495_v21 = vld [vmem:[#allocation19_spill] sm:$0xff]  ;;  %v12503_v28 = vld [vmem:[#allocation25_spill] sm:$0xff] }
 0x17e   :  { %v1264_v37 = vrot.slane %v12495_v21, 2 }
 0x17f   :  { %v7770_v7 = vpop.permute.xlu2 %1071  ;;  %v7772_v12 = vpop.permute.xlu1 %1051 }
 0x180   :  { %12474 = vst [vmem:[#allocation111_spill] sm:$0xff] %v7770_v7 }
 0x181   :  { %12475 = vst [vmem:[#allocation112_spill] sm:$0xff] %v7772_v12  ;;  %v12588_v12 = vld [vmem:[#allocation162_spill] sm:$0xff] }
 0x182   :  { %1392 = vrot.lane.b32.xlu0 %v1217_v16, %s6049_s18  ;;  %1396 = vrot.lane.b32.xlu2 %v1223_v45, %s6049_s18  ;;  %v12484_v45 = vld [vmem:[#allocation140_spill] sm:$0xff] }
 0x183   :  { %1394 = vrot.lane.b32.xlu1 %v1220_v46, %s6049_s18  ;;  %v1258_v46 = vrot.slane %v12484_v45, 2  ;;  %v12500_v45 = vld [vmem:[#allocation28_spill] sm:$0xff] }
 0x184   :  { %v7776_v62 = vpop.permute.xlu0 %1055 }
 0x185   :  { %v1259_v9 = vsel %vm1178_vm2, %v1257_v22, %v1258_v46  ;;  %v1275_v46 = vrot.slane %v12500_v45, 2  ;;  %v12515_v45 = vld [vmem:[#allocation38_spill] sm:$0xff] }
 0x187   :  { %v7788_v47 = vpop.permute.xlu2 %1077  ;;  %v7790_v27 = vpop.permute.xlu1 %1057 }
 0x188   :  { %12476 = vst [vmem:[#allocation114_spill] sm:$0xff] %v7788_v47 }
 0x18a   :  { %1398 = vrot.lane.b32.xlu0 %v1226_v6, %s6049_s18  ;;  %1402 = vrot.lane.b32.xlu2 %v1232_v54, %s6049_s18  ;;  %v12485_v6 = vld [vmem:[#allocation17_spill] sm:$0xff]  ;;  %v12490_v54 = vld [vmem:[#allocation15_spill] sm:$0xff] }
 0x18b   :  { %1400 = vrot.lane.b32.xlu1 %v1229_v55, %s6049_s18  ;;  %v1254_v51 = vrot.slane %v12485_v6, 2  ;;  %v1261_v55 = vrot.slane %v12490_v54, 2  ;;  %v12501_v6 = vld [vmem:[#allocation24_spill] sm:$0xff] }
 0x18c   :  { %v7794_v8 = vpop.permute.xlu0 %1061 }
 0x18d   :  { %v1256_v32 = vsel %vm1178_vm2, %v1254_v51, %v1255_v50  ;;  %v1262_v58 = vsel %vm1178_vm2, %v1260_v44, %v1261_v55  ;;  %v1276_v51 = vrot.slane %v12501_v6, 2  ;;  %v1272_v50 = vrot.slane %v12502_v4, 2  ;;  %v12516_v6 = vld [vmem:[#allocation33_spill] sm:$0xff] }
 0x18e   :  { %v1273_v44 = vrot.slane %v12503_v28, 2 }
 0x18f   :  { %v7806_v31 = vpop.permute.xlu2 %1083  ;;  %v7808_v5 = vpop.permute.xlu1 %1063 }
 0x190   :  { %12477 = vst [vmem:[#allocation177_spill] sm:$0xff] %v7806_v31 }
 0x192   :  { %1404 = vrot.lane.b32.xlu0 %v1235_v15, %s6049_s18  ;;  %1408 = vrot.lane.b32.xlu2 %v1241_v63, %s6049_s18  ;;  %v1267_v63 = vrot.slane %v12493_v56, 2  ;;  %v1277_v56 = vsel %vm1178_vm2, %v1275_v46, %v1276_v51  ;;  %v1287_v46 = vrot.slane %v12515_v45, 2  ;;  %v1288_v51 = vrot.slane %v12516_v6, 2 }
 0x193   :  { %1406 = vrot.lane.b32.xlu1 %v1238_v0, %s6049_s18  ;;  %v12494_v0 = vld [vmem:[#allocation23_spill] sm:$0xff] }
 0x194   :  { %v7812_v36 = vpop.permute.xlu0 %1067 }
 0x195   :  { %12478 = vst [vmem:[#allocation178_spill] sm:$0xff] %v7812_v36 }
 0x197   :  { %v7824_v16 = vpop.permute.xlu2 %1089  ;;  %v7826_v10 = vpop.permute.xlu1 %1069 }
 0x198   :  { %12479 = vst [vmem:[#allocation179_spill] sm:$0xff] %v7824_v16  ;;  %v12559_v16 = vld [vmem:[#allocation50_spill] sm:$0xff] }
 0x199   :  { %12480 = vst [vmem:[#allocation180_spill] sm:$0xff] %v7826_v10  ;;  %v12567_v10 = vld [vmem:[#allocation71_spill] sm:$0xff] }
 0x19a   :  { %1410 = vrot.lane.b32.xlu0 %v1244_v14, %s6049_s18  ;;  %1414 = vrot.lane.b32.xlu2 %v1250_v43, %s6049_s18  ;;  %v1263_v14 = vrot.slane %v12494_v0, 2  ;;  %v1270_v43 = vrot.slane %v12498_v24, 2 }
 0x19b   :  { %1412 = vrot.lane.b32.xlu1 %v1247_v13, %s6049_s18 }
 0x19c   :  { %v7830_v33 = vpop.permute.xlu0 %1073  ;;  %v1265_v30 = vsel %vm1178_vm2, %v1263_v14, %v1264_v37  ;;  %v1271_v22 = vsel %vm1178_vm2, %v1269_v40, %v1270_v43  ;;  %v12509_v14 = vld [vmem:[#allocation34_spill] sm:$0xff]  ;;  %v12511_v40 = vld [vmem:[#allocation35_spill] sm:$0xff] }
 0x19d   :  { %12482 = vst [vmem:[#allocation136_spill] sm:$0xff] %v7830_v33  ;;  %v1284_v21 = vrot.slane %v12509_v14, 2  ;;  %v12510_v37 = vld [vmem:[#allocation30_spill] sm:$0xff]  ;;  %v1281_v24 = vrot.slane %v12511_v40, 2  ;;  %v12512_v43 = vld [vmem:[#allocation31_spill] sm:$0xff] }
 0x19e   :  { %v1285_v18 = vrot.slane %v12510_v37, 2  ;;  %v12522_v14 = vld [vmem:[#allocation155_spill] sm:$0xff]  ;;  %v12557_v33 = vld [vmem:[#allocation62_spill] sm:$0xff] }
 0x19f   :  { %v7842_v49 = vpop.permute.xlu2 %1095  ;;  %v7844_v2 = vpop.permute.xlu1 %1075 }
 0x1a0   :  { %12487 = vst [vmem:[#allocation16_spill] sm:$0xff] %v7842_v49 }
 0x1a1   :  { %12488 = vst [vmem:[#allocation140_spill] sm:$0xff] %v7844_v2 }
 0x1a2   :  { %1416 = vrot.lane.b32.xlu0 %v1253_v42, %s6049_s18  ;;  %1420 = vrot.lane.b32.xlu2 %v1259_v9, %s6049_s18  ;;  %v1268_v42 = vsel %vm1178_vm2, %v1266_v48, %v1267_v63  ;;  %v12506_v9 = vld [vmem:[#allocation32_spill] sm:$0xff]  ;;  %v1274_v63 = vsel %vm1178_vm2, %v1272_v50, %v1273_v44  ;;  %v1286_v50 = vsel %vm1178_vm2, %v1284_v21, %v1285_v18  ;;  %v12523_v21 = vld [vmem:[#allocation63_spill] sm:$0xff] }
 0x1a3   :  { %1418 = vrot.lane.b32.xlu1 %v1256_v32, %s6049_s18  ;;  %v1278_v32 = vrot.slane %v12506_v9, 2  ;;  %v1289_v44 = vsel %vm1178_vm2, %v1287_v46, %v1288_v51  ;;  %v1560_v37 = vsel %vm1557_vm3, %v12523_v21, %v12522_v14  ;;  %v12526_v46 = vld [vmem:[#allocation36_spill] sm:$0xff] }
 0x1a4   :  { %v7848_v15 = vpop.permute.xlu0 %1079  ;;  %v1294_v6 = vrot.slane %v12526_v46, 2 }
 0x1a5   :  { %12491 = vst [vmem:[#allocation17_spill] sm:$0xff] %v7848_v15 }
 0x1a7   :  { %v7860_v60 = vpop.permute.xlu2 %1101  ;;  %v7862_v3 = vpop.permute.xlu1 %1081 }
 0x1a8   :  { %12496 = vst [vmem:[#allocation141_spill] sm:$0xff] %v7860_v60 }
 0x1aa   :  { %1422 = vrot.lane.b32.xlu0 %v1262_v58, %s6049_s18  ;;  %1426 = vrot.lane.b32.xlu2 %v1268_v42, %s6049_s18  ;;  %v12507_v58 = vld [vmem:[#allocation27_spill] sm:$0xff]  ;;  %v1282_v42 = vrot.slane %v12512_v43, 2 }
 0x1ab   :  { %1424 = vrot.lane.b32.xlu1 %v1265_v30, %s6049_s18  ;;  %v1279_v25 = vrot.slane %v12507_v58, 2  ;;  %v12519_v58 = vld [vmem:[#allocation42_spill] sm:$0xff] }
 0x1ac   :  { %v7866_v13 = vpop.permute.xlu0 %1085  ;;  %v1283_v28 = vsel %vm1178_vm2, %v1281_v24, %v1282_v42  ;;  %v12525_v42 = vld [vmem:[#allocation41_spill] sm:$0xff] }
 0x1ad   :  { %12499 = vst [vmem:[#allocation20_spill] sm:$0xff] %v7866_v13  ;;  %v1280_v0 = vsel %vm1178_vm2, %v1278_v32, %v1279_v25  ;;  %v1290_v25 = vrot.slane %v12519_v58, 2  ;;  %v1293_v45 = vrot.slane %v12525_v42, 2  ;;  %v12529_v58 = vld [vmem:[#allocation164_spill] sm:$0xff]  ;;  %v152_v13 = vld [vmem:[#allocation2 + $0x10] sm:$0xff] }
 0x1af   :  { %v7878_v54 = vpop.permute.xlu2 %1107  ;;  %v7880_v55 = vpop.permute.xlu1 %1087 }
 0x1b0   :  { %12504 = vst [vmem:[#allocation15_spill] sm:$0xff] %v7878_v54 }
 0x1b1   :  { %12505 = vst [vmem:[#allocation22_spill] sm:$0xff] %v7880_v55  ;;  %v12566_v55 = vld [vmem:[#allocation166_spill] sm:$0xff] }
 0x1b2   :  { %1428 = vrot.lane.b32.xlu0 %v1271_v22, %s6049_s18  ;;  %1432 = vrot.lane.b32.xlu2 %v1277_v56, %s6049_s18  ;;  %v12520_v56 = vld [vmem:[#allocation37_spill] sm:$0xff]  ;;  %v1572_v36 = vsel %vm1557_vm3, %v12567_v10, %v12566_v55  ;;  %v12568_v55 = vld [vmem:[#allocation66_spill] sm:$0xff] }
 0x1b3   :  { %1430 = vrot.lane.b32.xlu1 %v1274_v63, %s6049_s18  ;;  %v1291_v63 = vrot.slane %v12520_v56, 2  ;;  %v151_v10 = vld [vmem:[#allocation2 + $0x8] sm:$0xff] }
 0x1b4   :  { %v7884_v48 = vpop.permute.xlu0 %1091 }
 0x1b5   :  { %12508 = vst [vmem:[#allocation18_spill] sm:$0xff] %v7884_v48  ;;  %v1292_v40 = vsel %vm1178_vm2, %v1290_v25, %v1291_v63  ;;  %v12530_v25 = vld [vmem:[#allocation64_spill] sm:$0xff]  ;;  %v12555_v48 = vld [vmem:[#allocation51_spill] sm:$0xff] }
 0x1b6   :  { %v1559_v56 = vsel %vm1557_vm3, %v12530_v25, %v12529_v58 }
 0x1b7   :  { %v7896_v30 = vpop.permute.xlu2 %1113  ;;  %v7898_v22 = vpop.permute.xlu1 %1093 }
 0x1b8   :  { %12513 = vst [vmem:[#allocation23_spill] sm:$0xff] %v7896_v30 }
 0x1b9   :  { %12514 = vst [vmem:[#allocation19_spill] sm:$0xff] %v7898_v22  ;;  %v12553_v22 = vld [vmem:[#allocation46_spill] sm:$0xff] }
 0x1ba   :  { %1434 = vrot.lane.b32.xlu0 %v1280_v0, %s6049_s18  ;;  %1438 = vrot.lane.b32.xlu2 %v1286_v50, %s6049_s18  ;;  %v1295_v50 = vsel %vm1178_vm2, %v1293_v45, %v1294_v6  ;;  %v12533_v6 = vld [vmem:[#allocation167_spill] sm:$0xff] }
 0x1bb   :  { %1436 = vrot.lane.b32.xlu1 %v1283_v28, %s6049_s18 }
 0x1bc   :  { %v7902_v4 = vpop.permute.xlu0 %1097 }
 0x1bd   :  { %12517 = vst [vmem:[#allocation26_spill] sm:$0xff] %v7902_v4  ;;  %v12550_v4 = vld [vmem:[#allocation43_spill] sm:$0xff] }
 0x1be   :  { %v1303_v49 = vrot.slane %v12550_v4, 2  ;;  %v12552_v4 = vld [vmem:[#allocation52_spill] sm:$0xff] }
 0x1bf   :  { %v1373_v9 = vpop.permute.xlu2 %1372  ;;  %v7910_v32 = vpop.permute.xlu1 %1099 }
 0x1c0   :  { %12518 = vst [vmem:[#allocation21_spill] sm:$0xff] %v7910_v32  ;;  %v7920_v18 = vsel %vm1621_vm4, %v1560_v37, %v1373_v9  ;;  %v12531_v37 = vld [vmem:[#allocation165_spill] sm:$0xff] }
 0x1c2   :  { %1440 = vrot.lane.b32.xlu0 %v1289_v44, %s6049_s18  ;;  %1980 = vrot.lane.b32.xlu2 %v7920_v18, %s6050_s19 }
 0x1c4   :  { %v7914_v0 = vpop.permute.xlu0 %1103 }
 0x1c5   :  { %12521 = vst [vmem:[#allocation28_spill] sm:$0xff] %v7914_v0  ;;  %v12542_v0 = vld [vmem:[#allocation73_spill] sm:$0xff] }
 0x1c7   :  { %v1379_v24 = vpop.permute.xlu2 %1378  ;;  %v7926_v43 = vpop.permute.xlu1 %1105 }
 0x1c8   :  { %12524 = vst [vmem:[#allocation24_spill] sm:$0xff] %v7926_v43  ;;  %v12541_v43 = vld [vmem:[#allocation168_spill] sm:$0xff] }
 0x1ca   :  { %1442 = vrot.lane.b32.xlu0 %v1292_v40, %s6049_s18  ;;  %v12532_v40 = vld [vmem:[#allocation72_spill] sm:$0xff] }
 0x1cb   :  { %v1561_v42 = vsel %vm1557_vm3, %v12532_v40, %v12531_v37  ;;  %v12535_v40 = vld [vmem:[#allocation45_spill] sm:$0xff] }
 0x1cc   :  { %v7930_v51 = vpop.permute.xlu0 %1109 }
 0x1cd   :  { %12527 = vst [vmem:[#allocation29_spill] sm:$0xff] %v7930_v51 }
 0x1cf   :  { %v1385_v28 = vpop.permute.xlu2 %1384  ;;  %v7934_v44 = vpop.permute.xlu1 %1111 }
 0x1d0   :  { %12528 = vst [vmem:[#allocation25_spill] sm:$0xff] %v7934_v44 }
 0x1d2   :  { %1444 = vrot.lane.b32.xlu0 %v1295_v50, %s6049_s18  ;;  %v12534_v50 = vld [vmem:[#allocation40_spill] sm:$0xff] }
 0x1d3   :  { %v1562_v58 = vsel %vm1557_vm3, %v12534_v50, %v12533_v6  ;;  %v12537_v50 = vld [vmem:[#allocation158_spill] sm:$0xff] }
 0x1d4   :  { %v7936_v9 = vpop.permute.xlu0 %1368  ;;  %v1563_v30 = vsel %vm1557_vm3, %v12538_v38, %v12537_v50  ;;  %v12540_v38 = vld [vmem:[#allocation44_spill] sm:$0xff] }
 0x1d5   :  { %v1300_v50 = vrot.slane %v12540_v38, 2  ;;  %v12544_v38 = vld [vmem:[#allocation54_spill] sm:$0xff] }
 0x1d7   :  { %v7941_v63 = vpop.permute.xlu2 %1390  ;;  %v1371_v14 = vpop.permute.xlu1 %1370 }
 0x1d8   :  { %v7944_v21 = vsel %vm1621_vm4, %v1559_v56, %v1371_v14 }
 0x1d9   :  { %1787 = vrot.lane.b32.xlu1 %v7944_v21, %s6051_s20 }
 0x1dc   :  { %v1375_v45 = vpop.permute.xlu0 %1374 }
 0x1dd   :  { %v7952_v46 = vsel %vm1621_vm4, %v1561_v42, %v1375_v45  ;;  %v1296_v42 = vrot.slane %v12535_v40, 2  ;;  %v12536_v45 = vld [vmem:[#allocation39_spill] sm:$0xff]  ;;  %v12539_v40 = vld [vmem:[#allocation49_spill] sm:$0xff] }
 0x1de   :  { %1982 = vrot.lane.b32.xlu2 %v7952_v46, %s6050_s19  ;;  %v1297_v6 = vrot.slane %v12536_v45, 2  ;;  %v1299_v45 = vrot.slane %v12539_v40, 2  ;;  %v12543_v40 = vld [vmem:[#allocation161_spill] sm:$0xff] }
 0x1df   :  { %v7959_v25 = vpop.permute.xlu2 %1396  ;;  %v1377_v56 = vpop.permute.xlu1 %1376 }
 0x1e0   :  { %v7962_v14 = vsel %vm1621_vm4, %v1562_v58, %v1377_v56  ;;  %v7978_v56 = vsel %vm1621_vm4, %v1563_v30, %v1379_v24  ;;  %v1298_v44 = vsel %vm1178_vm2, %v1296_v42, %v1297_v6  ;;  %v1564_v30 = vsel %vm1557_vm3, %v12542_v0, %v12541_v43 }
 0x1e1   :  { %1789 = vrot.lane.b32.xlu1 %v7920_v18, %s6051_s20  ;;  %1793 = vrot.lane.b32.xlu0 %v7962_v14, %s6051_s20  ;;  %v1301_v42 = vsel %vm1178_vm2, %v1299_v45, %v1300_v50  ;;  %v1566_v0 = vsel %vm1557_vm3, %v12544_v38, %v12543_v40  ;;  %v12546_v45 = vld [vmem:[#allocation81_spill] sm:$0xff]  ;;  %v12547_v40 = vld [vmem:[#allocation171_spill] sm:$0xff]  ;;  %v12548_v38 = vld [vmem:[#allocation82_spill] sm:$0xff] }
 0x1e2   :  { %v8006_v43 = vsel %vm1621_vm4, %v1566_v0, %v1385_v28  ;;  %v1567_v0 = vsel %vm1557_vm3, %v12548_v38, %v12547_v40  ;;  %v12551_v40 = vld [vmem:[#allocation90_spill] sm:$0xff] }
 0x1e3   :  { %v1568_v38 = vsel %vm1557_vm3, %v12551_v40, %v7618_v41  ;;  %v1309_v41 = vrot.slane %v12555_v48, 2  ;;  %v12558_v48 = vld [vmem:[#allocation56_spill] sm:$0xff] }
 0x1e4   :  { %v1381_v37 = vpop.permute.xlu0 %1380 }
 0x1e5   :  { %v7992_v24 = vsel %vm1621_vm4, %v1564_v30, %v1381_v37  ;;  %v12545_v37 = vld [vmem:[#allocation170_spill] sm:$0xff] }
 0x1e6   :  { %1984 = vrot.lane.b32.xlu2 %v7962_v14, %s6050_s19  ;;  %v1565_v50 = vsel %vm1557_vm3, %v12546_v45, %v12545_v37 }
 0x1e7   :  { %v7975_v58 = vpop.permute.xlu2 %1402  ;;  %v1383_v51 = vpop.permute.xlu1 %1382 }
 0x1e9   :  { %1791 = vrot.lane.b32.xlu1 %v7952_v46, %s6051_s20  ;;  %1795 = vrot.lane.b32.xlu0 %v7978_v56, %s6051_s20 }
 0x1ec   :  { %v1387_v54 = vpop.permute.xlu0 %1386 }
 0x1ed   :  { %v8028_v37 = vsel %vm1621_vm4, %v1567_v0, %v1387_v54 }
 0x1ee   :  { %1446 = vrot.lane.b32.xlu2 %v1298_v44, %s6049_s18 }
 0x1ef   :  { %v7995_v6 = vpop.permute.xlu2 %1408  ;;  %v1389_v44 = vpop.permute.xlu1 %1388 }
 0x1f0   :  { %v8049_v15 = vsel %vm1621_vm4, %v1568_v38, %v1389_v44 }
 0x1f1   :  { %1986 = vrot.lane.b32.xlu1 %v7978_v56, %s6050_s19  ;;  %1797 = vrot.lane.b32.xlu0 %v7992_v24, %s6051_s20 }
 0x1f4   :  { %v1393_v60 = vpop.permute.xlu0 %1392 }
 0x1f6   :  { %1448 = vrot.lane.b32.xlu2 %v1301_v42, %s6049_s18  ;;  %v8018_v42 = vsel %vm1621_vm4, %v1565_v50, %v1383_v51  ;;  %v12549_v51 = vld [vmem:[#allocation48_spill] sm:$0xff] }
 0x1f7   :  { %v8020_v32 = vpop.permute.xlu2 %1414  ;;  %v1395_v28 = vpop.permute.xlu1 %1394  ;;  %v1302_v50 = vrot.slane %v12549_v51, 2  ;;  %v1305_v51 = vrot.slane %v12552_v4, 2 }
 0x1f9   :  { %1988 = vrot.lane.b32.xlu1 %v7992_v24, %s6050_s19  ;;  %1992 = vrot.lane.b32.xlu0 %v8006_v43, %s6050_s19  ;;  %v1304_v54 = vsel %vm1178_vm2, %v1302_v50, %v1303_v49  ;;  %v1306_v49 = vrot.slane %v12553_v22, 2  ;;  %v12554_v50 = vld [vmem:[#allocation57_spill] sm:$0xff] }
 0x1fa   :  { %v1308_v39 = vrot.slane %v12554_v50, 2  ;;  %v1311_v50 = vrot.slane %v12558_v48, 2 }
 0x1fb   :  { %v1307_v44 = vsel %vm1178_vm2, %v1305_v51, %v1306_v49  ;;  %v1312_v51 = vrot.slane %v12559_v16, 2  ;;  %v12560_v49 = vld [vmem:[#allocation173_spill] sm:$0xff] }
 0x1fc   :  { %v8011_v30 = vpop.permute.xlu0 %1398  ;;  %v1310_v40 = vsel %vm1178_vm2, %v1308_v39, %v1309_v41  ;;  %v12561_v41 = vld [vmem:[#allocation91_spill] sm:$0xff] }
 0x1fe   :  { %1799 = vrot.lane.b32.xlu2 %v8018_v42, %s6051_s20 }
 0x1ff   :  { %v8040_v2 = vpop.permute.xlu2 %1420  ;;  %v8046_v0 = vpop.permute.xlu1 %1400 }
 0x201   :  { %1994 = vrot.lane.b32.xlu0 %v8028_v37, %s6050_s19  ;;  %1990 = vrot.lane.b32.xlu1 %v8018_v42, %s6050_s19 }
 0x204   :  { %v8030_v45 = vpop.permute.xlu0 %1404 }
 0x206   :  { %1801 = vrot.lane.b32.xlu2 %v8006_v43, %s6051_s20 }
 0x207   :  { %v8064_v38 = vpop.permute.xlu2 %1426  ;;  %v8069_v4 = vpop.permute.xlu1 %1406 }
 0x209   :  { %1450 = vrot.lane.b32.xlu1 %v1304_v54, %s6049_s18  ;;  %1996 = vrot.lane.b32.xlu0 %v8049_v15, %s6050_s19  ;;  %v12556_v54 = vld [vmem:[#allocation163_spill] sm:$0xff] }
 0x20a   :  { %v1569_v7 = vsel %vm1557_vm3, %v12557_v33, %v12556_v54  ;;  %v1313_v33 = vsel %vm1178_vm2, %v1311_v50, %v1312_v51  ;;  %v1570_v54 = vsel %vm1557_vm3, %v12561_v41, %v12560_v49  ;;  %v12565_v41 = vld [vmem:[#allocation53_spill] sm:$0xff] }
 0x20b   :  { %v8079_v39 = vsel %vm1621_vm4, %v1569_v7, %v7941_v63  ;;  %v8095_v7 = vsel %vm1621_vm4, %v1570_v54, %v1393_v60  ;;  %v12563_v63 = vld [vmem:[#allocation99_spill] sm:$0xff]  ;;  %v1315_v54 = vrot.slane %v12565_v41, 2 }
 0x20c   :  { %v8051_v47 = vpop.permute.xlu0 %1410  ;;  %v1571_v48 = vsel %vm1557_vm3, %v12563_v63, %v7651_v23  ;;  %v156_v60 = vld [vmem:[#allocation2 + $0x30] sm:$0x3f]  ;;  %v155_v23 = vld [vmem:[#allocation2 + $0x28] sm:$0xff] }
 0x20d   :  { %v8105_v50 = vsel %vm1621_vm4, %v1571_v48, %v1395_v28  ;;  %5679 = vmatpush.msk.msra.mxu0 %vm1178_vm2, %v156_v60  ;;  %5778 = vmatpush.msk.msra.mxu2 %vm1178_vm2, %v156_v60  ;;  %v12564_v28 = vld [vmem:[#allocation60_spill] sm:$0xff] }
 0x20e   :  { %1803 = vrot.lane.b32.xlu2 %v8028_v37, %s6051_s20  ;;  %5779 = vmatpush.msk.msra.mxu3 %vm1178_vm2, %v156_v60  ;;  %v1314_v49 = vrot.slane %v12564_v28, 2  ;;  %v154_v48 = vld [vmem:[#allocation2 + $0x20] sm:$0xff]  ;;  %v8129_v60 = vsel %vm1621_vm4, %v1572_v36, %v7959_v25  ;;  %v12569_v36 = vld [vmem:[#allocation59_spill] sm:$0xff] }
 0x20f   :  { %v8097_v16 = vpop.permute.xlu1 %1412  ;;  %2508 = vmatpush.msra.mxu0 %v155_v23  ;;  %5780 = vmatpush.msra.mxu2 %v155_v23  ;;  %v1318_v25 = vrot.slane %v12569_v36, 2  ;;  %v12573_v36 = vld [vmem:[#allocation80_spill] sm:$0xff] }
 0x210   :  { %5781 = vmatpush.msra.mxu3 %v155_v23  ;;  %v1316_v28 = vsel %vm1178_vm2, %v1314_v49, %v1315_v54  ;;  %v1317_v23 = vrot.slane %v12568_v55, 2  ;;  %v150_v54 = vld [vmem:[#allocation2] sm:$0xff] }
 0x211   :  { %1452 = vrot.lane.b32.xlu1 %v1307_v44, %s6049_s18  ;;  %1454 = vrot.lane.b32.xlu0 %v1310_v40, %s6049_s18  ;;  %v8087_v44 = vpop.permute.xlu2 %1432 }
 0x212   :  { %12562 = vst [vmem:[#allocation32_spill] sm:$0xff] %v8087_v44  ;;  %2509 = vmatpush.msra.mxu0 %v154_v48  ;;  %v153_v44 = vld [vmem:[#allocation2 + $0x18] sm:$0xff]  ;;  %5782 = vmatpush.msra.mxu2 %v154_v48  ;;  %v1319_v55 = vsel %vm1178_vm2, %v1317_v23, %v1318_v25 }
 0x213   :  { %5783 = vmatpush.msra.mxu3 %v154_v48  ;;  %v12570_v48 = vld [vmem:[#allocation100_spill] sm:$0xff] }
 0x214   :  { %v8071_v22 = vpop.permute.xlu0 %1416  ;;  %2510 = vmatpush.msra.mxu0 %v153_v44  ;;  %5784 = vmatpush.msra.mxu2 %v153_v44  ;;  %v1573_v19 = vsel %vm1557_vm3, %v12570_v48, %v7655_v29  ;;  %v12572_v29 = vld [vmem:[#allocation169_spill] sm:$0xff] }
 0x215   :  { %5785 = vmatpush.msra.mxu3 %v153_v44  ;;  %v8148_v44 = vsel %vm1621_vm4, %v1573_v19, %v8011_v30  ;;  %v12575_v30 = vld [vmem:[#allocation107_spill] sm:$0xff] }
 0x216   :  { %1998 = vrot.lane.b32.xlu2 %v8079_v39, %s6050_s19  ;;  %2511 = vmatpush.msra.mxu0 %v152_v13  ;;  %12571 = vst [vmem:[#allocation27_spill] sm:$0xff] %v8148_v44  ;;  %v1574_v23 = vsel %vm1557_vm3, %v12575_v30, %v7679_v35  ;;  %v12581_v30 = vld [vmem:[#allocation58_spill] sm:$0xff] }
 0x217   :  { %v8122_v63 = vpop.permute.xlu1 %1418  ;;  %5786 = vmatpush.msra.mxu2 %v152_v13  ;;  %5787 = vmatpush.msra.mxu3 %v152_v13 }
 0x218   :  { %2512 = vmatpush.msra.mxu0 %v151_v10 }
 0x219   :  { %1805 = vrot.lane.b32.xlu1 %v8049_v15, %s6051_s20  ;;  %1456 = vrot.lane.b32.xlu0 %v1313_v33, %s6049_s18  ;;  %v8113_v51 = vpop.permute.xlu2 %1438 }
 0x21a   :  { %5788 = vmatpush.msra.mxu2 %v151_v10  ;;  %2513 = vmatpush.msra.mxu0 %v150_v54 }
 0x21b   :  { %5789 = vmatpush.msra.mxu3 %v151_v10  ;;  %v1575_v10 = vsel %vm1557_vm3, %v12573_v36, %v12572_v29 }
 0x21c   :  { %v8089_v40 = vpop.permute.xlu0 %1422  ;;  %5790 = vmatpush.msra.mxu2 %v150_v54  ;;  %v8163_v19 = vsel %vm1621_vm4, %v1575_v10, %v7975_v58 }
 0x21d   :  { %5791 = vmatpush.msra.mxu3 %v150_v54  ;;  %12574 = vst [vmem:[#allocation34_spill] sm:$0xff] %v8163_v19  ;;  %v8176_v54 = vsel %vm1621_vm4, %v1574_v23, %v8046_v0  ;;  %v12580_v0 = vld [vmem:[#allocation65_spill] sm:$0xff]  ;;  %v1321_v23 = vrot.slane %v12581_v30, 2 }
 0x21e   :  { %2000 = vrot.lane.b32.xlu2 %v8095_v7, %s6050_s19  ;;  %12577 = vst [vmem:[#allocation35_spill] sm:$0xff] %v8176_v54  ;;  %v1320_v10 = vrot.slane %v12580_v0, 2  ;;  %v12584_v0 = vld [vmem:[#allocation69_spill] sm:$0xff] }
 0x21f   :  { %v1323_v31 = vrot.slane %v12584_v0, 2  ;;  %v12585_v30 = vld [vmem:[#allocation61_spill] sm:$0xff] }
 0x221   :  { %1807 = vrot.lane.b32.xlu1 %v8079_v39, %s6051_s20  ;;  %1811 = vrot.lane.b32.xlu0 %v8105_v50, %s6051_s20  ;;  %v1981_v49 = vpop.permute.xlu2 %1980 }
 0x224   :  { %v8115_v33 = vpop.permute.xlu0 %1428 }
 0x226   :  { %2002 = vrot.lane.b32.xlu2 %v8105_v50, %s6050_s19 }
 0x229   :  { %1809 = vrot.lane.b32.xlu1 %v8095_v7, %s6051_s20  ;;  %1813 = vrot.lane.b32.xlu0 %v8129_v60, %s6051_s20 }
 0x22c   :  { %v8139_v41 = vpop.permute.xlu0 %1434 }
 0x22e   :  { %1458 = vrot.lane.b32.xlu2 %v1316_v28, %s6049_s18  ;;  %v8144_v28 = vpop.permute.xlu1 %1424 }
 0x231   :  { %2004 = vrot.lane.b32.xlu1 %v8129_v60, %s6050_s19  ;;  %1815 = vrot.lane.b32.xlu0 %v8148_v44, %s6051_s20 }
 0x234   :  { %v8159_v48 = vpop.permute.xlu0 %1440 }
 0x236   :  { %1460 = vrot.lane.b32.xlu2 %v1319_v55, %s6049_s18  ;;  %v8168_v25 = vpop.permute.xlu1 %1430  ;;  %v12578_v55 = vld [vmem:[#allocation108_spill] sm:$0xff] }
 0x237   :  { %12576 = vst [vmem:[#allocation30_spill] sm:$0xff] %v8168_v25  ;;  %v1576_v35 = vsel %vm1557_vm3, %v12578_v55, %v7683_v17  ;;  %v12583_v55 = vld [vmem:[#allocation116_spill] sm:$0xff]  ;;  %v1324_v25 = vrot.slane %v12585_v30, 2 }
 0x238   :  { %v1983_v13 = vpop.permute.xlu2 %1982  ;;  %v8185_v29 = vsel %vm1621_vm4, %v1576_v35, %v8030_v45  ;;  %v1322_v45 = vsel %vm1178_vm2, %v1320_v10, %v1321_v23  ;;  %v1577_v35 = vsel %vm1557_vm3, %v12583_v55, %v7700_v34  ;;  %v12587_v23 = vld [vmem:[#allocation68_spill] sm:$0xff]  ;;  %v12589_v34 = vld [vmem:[#allocation55_spill] sm:$0xff] }
 0x239   :  { %2006 = vrot.lane.b32.xlu1 %v8148_v44, %s6050_s19  ;;  %2010 = vrot.lane.b32.xlu0 %v8163_v19, %s6050_s19  ;;  %12579 = vst [vmem:[#allocation31_spill] sm:$0xff] %v8185_v29  ;;  %v1558_v55 = vsel %vm1557_vm3, %v12589_v34, %v12588_v12  ;;  %v1325_v12 = vsel %vm1178_vm2, %v1323_v31, %v1324_v25  ;;  %v12593_v34 = vld [vmem:[#allocation89_spill] sm:$0xff] }
 0x23c   :  { %v8187_v36 = vpop.permute.xlu0 %1442 }
 0x23e   :  { %1817 = vrot.lane.b32.xlu2 %v8176_v54, %s6051_s20  ;;  %v8195_v44 = vpop.permute.xlu1 %1436 }
 0x240   :  { %v1985_v58 = vpop.permute.xlu2 %1984 }
 0x241   :  { %2012 = vrot.lane.b32.xlu0 %v8185_v29, %s6050_s19  ;;  %2008 = vrot.lane.b32.xlu1 %v8176_v54, %s6050_s19  ;;  %v8207_v54 = vsel %vm1621_vm4, %v1577_v35, %v8069_v4  ;;  %v8221_v4 = vsel %vm1621_vm4, %v1558_v55, %v7936_v9 }
 0x242   :  { %12590 = vst [vmem:[#allocation33_spill] sm:$0xff] %v8221_v4 }
 0x244   :  { %v8223_v35 = vpop.permute.xlu0 %1444 }
 0x246   :  { %1819 = vrot.lane.b32.xlu2 %v8163_v19, %s6051_s20  ;;  %v1327_v19 = vrot.slane %v12587_v23, 2  ;;  %v12592_v23 = vld [vmem:[#allocation172_spill] sm:$0xff] }
 0x247   :  { %v1578_v55 = vsel %vm1557_vm3, %v12593_v34, %v12592_v23 }
 0x248   :  { %v8199_v17 = vpop.permute.xlu2 %1446 }
 0x249   :  { %12582 = vst [vmem:[#allocation38_spill] sm:$0xff] %v8199_v17  ;;  %1462 = vrot.lane.b32.xlu1 %v1322_v45, %s6049_s18  ;;  %2014 = vrot.lane.b32.xlu0 %v8207_v54, %s6050_s19  ;;  %v12586_v17 = vld [vmem:[#allocation75_spill] sm:$0xff] }
 0x24a   :  { %v1326_v10 = vrot.slane %v12586_v17, 2 }
 0x24b   :  { %v1788_v45 = vpop.permute.xlu1 %1787 }
 0x24c   :  { %v2170_v17 = vsel %vm2169_vm5, %v8221_v4, %v1788_v45  ;;  %v1328_v9 = vsel %vm1178_vm2, %v1326_v10, %v1327_v19  ;;  %v12595_v4 = vld [vmem:[#allocation67_spill] sm:$0xff] }
 0x24d   :  { %v2235_v30 = vsel %vm2234_vm6, %v2170_v17, %v1981_v49  ;;  %v8244_v49 = vsel %vm1621_vm4, %v1578_v55, %v7995_v6  ;;  %v12598_v55 = vld [vmem:[#allocation78_spill] sm:$0xff] }
 0x24e   :  { %1821 = vrot.lane.b32.xlu2 %v8185_v29, %s6051_s20  ;;  %5680 = vmatmul.msk.f32.vlgmr.msra.gmra.mxu0 %vm2302_vm7, %v2235_v30  ;;  %v12594_v29 = vld [vmem:[#allocation74_spill] sm:$0xff] }
 0x24f   :  { %v1329_v45 = vrot.slane %v12594_v29, 2 }
 0x250   :  { %v8229_v0 = vpop.permute.xlu2 %1448 }
 0x251   :  { %12591 = vst [vmem:[#allocation42_spill] sm:$0xff] %v8229_v0  ;;  %1464 = vrot.lane.b32.xlu1 %v1325_v12, %s6049_s18  ;;  %1466 = vrot.lane.b32.xlu0 %v1328_v9, %s6049_s18  ;;  %v1330_v0 = vrot.slane %v12595_v4, 2  ;;  %v12596_v4 = vld [vmem:[#allocation117_spill] sm:$0xff]  ;;  %v12597_v9 = vld [vmem:[#allocation119_spill] sm:$0xff] }
 0x252   :  { %v1579_v6 = vsel %vm1557_vm3, %v12596_v4, %v7704_v59  ;;  %v1580_v23 = vsel %vm1557_vm3, %v12597_v9, %v7718_v53  ;;  %v1332_v53 = vrot.slane %v12598_v55, 2  ;;  %v12604_v55 = vld [vmem:[#allocation120_spill] sm:$0xff] }
 0x253   :  { %v1794_v31 = vpop.permute.xlu0 %1793  ;;  %v1790_v19 = vpop.permute.xlu1 %1789  ;;  %v1331_v29 = vsel %vm1178_vm2, %v1329_v45, %v1330_v0  ;;  %v12599_v45 = vld [vmem:[#allocation70_spill] sm:$0xff] }
 0x254   :  { %v2171_v25 = vsel %vm2169_vm5, %v7944_v21, %v1790_v19  ;;  %v8263_v21 = vsel %vm1621_vm4, %v1579_v6, %v8051_v47  ;;  %v8278_v47 = vsel %vm1621_vm4, %v1580_v23, %v8097_v16  ;;  %v1333_v19 = vrot.slane %v12599_v45, 2  ;;  %v12603_v23 = vld [vmem:[#allocation77_spill] sm:$0xff]  ;;  %v117_v45 = vld [vmem:[%s11891_s0 + $0xf8] sm:$0xff] }
 0x255   :  { %v2236_v17 = vsel %vm2234_vm6, %v2171_v25, %v1983_v13 }
 0x256   :  { %2016 = vrot.lane.b32.xlu2 %v8244_v49, %s6050_s19  ;;  %5681 = vmatmul.msk.f32.gmra.mxu0 %vm2302_vm7, %v2236_v17  ;;  %v12600_v17 = vld [vmem:[#allocation174_spill] sm:$0xff] }
 0x258   :  { %v8250_v10 = vpop.permute.xlu2 %1799 }
 0x259   :  { %1823 = vrot.lane.b32.xlu1 %v8207_v54, %s6051_s20  ;;  %1468 = vrot.lane.b32.xlu0 %v1331_v29, %s6049_s18  ;;  %v12601_v29 = vld [vmem:[#allocation98_spill] sm:$0xff] }
 0x25a   :  { %v1581_v4 = vsel %vm1557_vm3, %v12601_v29, %v12600_v17 }
 0x25b   :  { %v1796_v13 = vpop.permute.xlu0 %1795  ;;  %v1792_v30 = vpop.permute.xlu1 %1791 }
 0x25c   :  { %v2172_v0 = vsel %vm2169_vm5, %v7920_v18, %v1792_v30  ;;  %v2173_v18 = vsel %vm2169_vm5, %v7952_v46, %v1794_v31  ;;  %v8299_v46 = vsel %vm1621_vm4, %v1581_v4, %v8020_v32  ;;  %v1334_v31 = vsel %vm1178_vm2, %v1332_v53, %v1333_v19  ;;  %v12605_v4 = vld [vmem:[#allocation176_spill] sm:$0xff] }
 0x25d   :  { %v2237_v59 = vsel %vm2234_vm6, %v2172_v0, %v1985_v58  ;;  %v2174_v6 = vsel %vm2169_vm5, %v7962_v14, %v1796_v13  ;;  %v1336_v32 = vrot.slane %v12603_v23, 2  ;;  %v1582_v53 = vsel %vm1557_vm3, %v12604_v55, %v7722_v61 }
 0x25e   :  { %2018 = vrot.lane.b32.xlu2 %v8263_v21, %s6050_s19  ;;  %5682 = vmatmul.msk.f32.gmra.mxu0 %vm2302_vm7, %v2237_v59  ;;  %v12602_v59 = vld [vmem:[#allocation84_spill] sm:$0xff]  ;;  %v8320_v14 = vsel %vm1621_vm4, %v1582_v53, %v8071_v22 }
 0x25f   :  { %v1335_v9 = vrot.slane %v12602_v59, 2 }
 0x260   :  { %v8269_v12 = vpop.permute.xlu2 %1801 }
 0x261   :  { %1825 = vrot.lane.b32.xlu1 %v8244_v49, %s6051_s20  ;;  %1829 = vrot.lane.b32.xlu0 %v8278_v47, %s6051_s20  ;;  %v1337_v13 = vsel %vm1178_vm2, %v1335_v9, %v1336_v32 }
 0x263   :  { %v1798_v58 = vpop.permute.xlu0 %1797  ;;  %v1987_v34 = vpop.permute.xlu1 %1986 }
 0x264   :  { %v2238_v16 = vsel %vm2234_vm6, %v2173_v18, %v1987_v34  ;;  %v2175_v19 = vsel %vm2169_vm5, %v7978_v56, %v1798_v58  ;;  %v12607_v58 = vld [vmem:[#allocation122_spill] sm:$0xff] }
 0x265   :  { %v1583_v9 = vsel %vm1557_vm3, %v12607_v58, %v7736_v26  ;;  %v2176_v26 = vsel %vm2169_vm5, %v7992_v24, %v8250_v10 }
 0x266   :  { %2020 = vrot.lane.b32.xlu2 %v8278_v47, %s6050_s19  ;;  %5683 = vmatmul.msk.f32.gmra.mxu0 %vm2302_vm7, %v2238_v16  ;;  %v255_v16 = vrot.slane %v117_v45, 7  ;;  %v8355_v23 = vsel %vm1621_vm4, %v1583_v9, %v8122_v63  ;;  %v12608_v45 = vld [vmem:[#allocation83_spill] sm:$0xff] }
 0x267   :  { %v12610_v9 = vld [vmem:[#allocation123_spill] sm:$0xff] }
 0x268   :  { %v8291_v25 = vpop.permute.xlu2 %1803  ;;  %v451_v59 = vsel %vm353_vm0, %v255_v16, 0.0 }
 0x269   :  { %1827 = vrot.lane.b32.xlu1 %v8263_v21, %s6051_s20  ;;  %1831 = vrot.lane.b32.xlu0 %v8299_v46, %s6051_s20 }
 0x26b   :  { %v1993_v30 = vpop.permute.xlu0 %1992  ;;  %v1989_v0 = vpop.permute.xlu1 %1988 }
 0x26c   :  { %v2239_v18 = vsel %vm2234_vm6, %v2174_v6, %v1989_v0  ;;  %v386_v0 = vsel %vm353_vm0, 0.0, %v255_v16 }
 0x26d   :  { %v1695_v32 = vrot.slane %v386_v0, 1 }
 0x26e   :  { %1470 = vrot.lane.b32.xlu2 %v1334_v31, %s6049_s18  ;;  %5684 = vmatmul.msk.f32.gmra.mxu0 %vm2302_vm7, %v2239_v18  ;;  %v12606_v31 = vld [vmem:[#allocation106_spill] sm:$0xff]  ;;  %v1696_v18 = vrot.slane %v451_v59, 1 }
 0x26f   :  { %v1584_v6 = vsel %vm1557_vm3, %v12606_v31, %v12605_v4  ;;  %v1708_v4 = vrot.slane %v451_v59, 2  ;;  %v12611_v59 = vld [vmem:[#allocation131_spill] sm:$0xff] }
 0x270   :  { %v8312_v34 = vpop.permute.xlu2 %1998  ;;  %v8344_v56 = vsel %vm1621_vm4, %v1584_v6, %v8040_v2  ;;  %v1697_v63 = vsel %vm799_vm1, %v1695_v32, %v1696_v18  ;;  %v1585_v32 = vsel %vm1557_vm3, %v12610_v9, %v7740_v20  ;;  %v2178_v20 = vsel %vm2169_vm5, %v8006_v43, %v8291_v25 }
 0x271   :  { %2022 = vrot.lane.b32.xlu1 %v8299_v46, %s6050_s19  ;;  %1833 = vrot.lane.b32.xlu0 %v8320_v14, %s6051_s20  ;;  %v8392_v18 = vsel %vm1621_vm4, %v1585_v32, %v8089_v40  ;;  %v12616_v32 = vld [vmem:[#allocation126_spill] sm:$0xff] }
 0x273   :  { %v1995_v61 = vpop.permute.xlu0 %1994  ;;  %v1991_v22 = vpop.permute.xlu1 %1990 }
 0x274   :  { %v2240_v17 = vsel %vm2234_vm6, %v2175_v19, %v1991_v22  ;;  %v1338_v19 = vrot.slane %v12608_v45, 2  ;;  %v12609_v22 = vld [vmem:[#allocation76_spill] sm:$0xff]  ;;  %v12612_v45 = vld [vmem:[#allocation121_spill] sm:$0xff] }
 0x275   :  { %v1339_v16 = vrot.slane %v12609_v22, 2 }
 0x276   :  { %1472 = vrot.lane.b32.xlu2 %v1337_v13, %s6049_s18  ;;  %5685 = vmatmul.msk.f32.gmra.mxu0 %vm2302_vm7, %v2240_v17  ;;  %v2241_v13 = vsel %vm2234_vm6, %v2176_v26, %v1993_v30  ;;  %v2177_v30 = vsel %vm2169_vm5, %v8018_v42, %v8269_v12  ;;  %v1707_v17 = vrot.slane %v386_v0, 2  ;;  %v1592_v26 = vsel %vm1557_vm3, %v12611_v59, %v7790_v27 }
 0x277   :  { %v2242_v6 = vsel %vm2234_vm6, %v2177_v30, %v1995_v61  ;;  %v1340_v58 = vsel %vm1178_vm2, %v1338_v19, %v1339_v16  ;;  %v12613_v19 = vld [vmem:[#allocation129_spill] sm:$0xff] }
 0x278   :  { %v8334_v29 = vpop.permute.xlu2 %2000  ;;  %v1709_v42 = vsel %vm1178_vm2, %v1707_v17, %v1708_v4  ;;  %v12614_v30 = vld [vmem:[#allocation125_spill] sm:$0xff] }
 0x279   :  { %2024 = vrot.lane.b32.xlu1 %v8320_v14, %s6050_s19  ;;  %2028 = vrot.lane.b32.xlu0 %v8344_v56, %s6050_s19  ;;  %v1586_v17 = vsel %vm1557_vm3, %v12614_v30, %v7754_v57  ;;  %v12623_v30 = vld [vmem:[#allocation177_spill] sm:$0xff] }
 0x27a   :  { %v8460_v4 = vsel %vm1621_vm4, %v1586_v17, %v8144_v28  ;;  %v12624_v17 = vld [vmem:[#allocation133_spill] sm:$0xff] }
 0x27b   :  { %v1997_v2 = vpop.permute.xlu0 %1996  ;;  %v8359_v55 = vpop.permute.xlu1 %1450 }
 0x27c   :  { %v2243_v40 = vsel %vm2234_vm6, %v2178_v20, %v1997_v2 }
 0x27e   :  { %1835 = vrot.lane.b32.xlu2 %v8355_v23, %s6051_s20  ;;  %5686 = vmatmul.msk.f32.gmra.mxu0 %vm2302_vm7, %v2241_v13  ;;  %v8417_v13 = vsel %vm1621_vm4, %v1592_v26, %v8195_v44  ;;  %v1593_v44 = vsel %vm1557_vm3, %v12612_v45, %v7734_v1  ;;  %v12618_v26 = vld [vmem:[#allocation134_spill] sm:$0xff] }
 0x27f   :  { %v8436_v22 = vsel %vm1621_vm4, %v1593_v44, %v8113_v51 }
 0x280   :  { %v8364_v53 = vpop.permute.xlu2 %2002 }
 0x281   :  { %1701 = vrot.lane.b32.xlu0 %v1697_v63, %s6048_s17  ;;  %2026 = vrot.lane.b32.xlu1 %v8355_v23, %s6050_s19 }
 0x283   :  { %v8375_v24 = vpop.permute.xlu0 %1454  ;;  %v8377_v10 = vpop.permute.xlu1 %1452 }
 0x286   :  { %1687 = vrot.lane.b32.xlu2 %v386_v0, %s6047_s1  ;;  %5687 = vmatmul.msk.f32.gmra.mxu0 %vm2302_vm7, %v2242_v6 }
 0x288   :  { %v8382_v31 = vpop.permute.xlu2 %1458 }
 0x289   :  { %2030 = vrot.lane.b32.xlu0 %v8392_v18, %s6050_s19  ;;  %1474 = vrot.lane.b32.xlu1 %v1340_v58, %s6049_s18 }
 0x28b   :  { %v8399_v12 = vpop.permute.xlu0 %1456  ;;  %v1806_v61 = vpop.permute.xlu1 %1805 }
 0x28c   :  { %v2179_v43 = vsel %vm2169_vm5, %v8028_v37, %v1806_v61  ;;  %v1591_v37 = vsel %vm1557_vm3, %v12613_v19, %v7776_v62 }
 0x28d   :  { %v2244_v27 = vsel %vm2234_vm6, %v2179_v43, %v8312_v34  ;;  %v8440_v16 = vsel %vm1621_vm4, %v1591_v37, %v8139_v41  ;;  %v1595_v43 = vsel %vm1557_vm3, %v12618_v26, %v7808_v5 }
 0x28e   :  { %1713 = vrot.lane.b32.xlu2 %v1709_v42, %s6049_s18  ;;  %5688 = vmatmul.msk.f32.gmra.mxu0 %vm2302_vm7, %v2243_v40 }
 0x290   :  { %v8404_v0 = vpop.permute.xlu2 %1460 }
 0x291   :  { %1839 = vrot.lane.b32.xlu0 %v8392_v18, %s6051_s20  ;;  %1837 = vrot.lane.b32.xlu1 %v8344_v56, %s6051_s20 }
 0x293   :  { %v1812_v25 = vpop.permute.xlu0 %1811  ;;  %v1808_v2 = vpop.permute.xlu1 %1807 }
 0x294   :  { %v2180_v1 = vsel %vm2169_vm5, %v8049_v15, %v1808_v2  ;;  %v12615_v15 = vld [vmem:[#allocation115_spill] sm:$0xff]  ;;  %v2182_v61 = vsel %vm2169_vm5, %v8095_v7, %v1812_v25  ;;  %v8517_v7 = vsel %vm1621_vm4, %v1595_v43, %v8187_v36  ;;  %v12629_v43 = vld [vmem:[#allocation20_spill] sm:$0xff] }
 0x295   :  { %v2245_v41 = vsel %vm2234_vm6, %v2180_v1, %v8334_v29  ;;  %v1587_v6 = vsel %vm1557_vm3, %v12615_v15, %v7698_v52  ;;  %v12621_v1 = vld [vmem:[#allocation128_spill] sm:$0xff]  ;;  %v1605_v15 = vsel %vm1557_vm3, %v12624_v17, %v12623_v30  ;;  %v12635_v30 = vld [vmem:[#allocation31_spill] sm:$0xff] }
 0x296   :  { %2046 = vrot.lane.b32.xlu2 %v8417_v13, %s6050_s19  ;;  %5689 = vmatmul.msk.f32.gmra.mxu0 %vm2302_vm7, %v2244_v27  ;;  %v8471_v29 = vsel %vm1621_vm4, %v1587_v6, %v8064_v38  ;;  %v1588_v38 = vsel %vm1557_vm3, %v12616_v32, %v7758_v11  ;;  %v12619_v27 = vld [vmem:[#allocation146_spill] sm:$0xff] }
 0x297   :  { %v8487_v42 = vsel %vm1621_vm4, %v1588_v38, %v8115_v33  ;;  %v12617_v33 = vld [vmem:[#allocation132_spill] sm:$0xff]  ;;  %v1604_v45 = vsel %vm1557_vm3, %v12619_v27, %v7862_v3  ;;  %v12626_v38 = vld [vmem:[#allocation14_spill] sm:$0xff] }
 0x298   :  { %v8423_v63 = vpop.permute.xlu2 %1817  ;;  %v1594_v40 = vsel %vm1557_vm3, %v12617_v33, %v7794_v8  ;;  %v8532_v36 = vsel %vm1621_vm4, %v1604_v45, %v8404_v0  ;;  %v12620_v0 = vld [vmem:[#allocation112_spill] sm:$0xff] }
 0x299   :  { %2048 = vrot.lane.b32.xlu0 %v8436_v22, %s6050_s19  ;;  %1853 = vrot.lane.b32.xlu1 %v8440_v16, %s6051_s20  ;;  %v8506_v59 = vsel %vm1621_vm4, %v1594_v40, %v8159_v48 }
 0x29b   :  { %v1814_v62 = vpop.permute.xlu0 %1813  ;;  %v1810_v34 = vpop.permute.xlu1 %1809 }
 0x29c   :  { %v2181_v57 = vsel %vm2169_vm5, %v8079_v39, %v1810_v34  ;;  %v2183_v25 = vsel %vm2169_vm5, %v8105_v50, %v1814_v62  ;;  %v1589_v62 = vsel %vm1557_vm3, %v12621_v1, %v12620_v0  ;;  %v12622_v34 = vld [vmem:[#allocation30_spill] sm:$0xff]  ;;  %v12633_v0 = vld [vmem:[#allocation135_spill] sm:$0xff] }
 0x29d   :  { %v2246_v52 = vsel %vm2234_vm6, %v2181_v57, %v8364_v53 }
 0x29e   :  { %1855 = vrot.lane.b32.xlu2 %v8417_v13, %s6051_s20  ;;  %5690 = vmatmul.msk.f32.gmra.mxu0 %vm2302_vm7, %v2245_v41  ;;  %v8549_v41 = vsel %vm1621_vm4, %v1589_v62, %v12622_v34  ;;  %v12634_v62 = vld [vmem:[#allocation38_spill] sm:$0xff] }
 0x2a0   :  { %v8450_v51 = vpop.permute.xlu2 %1819 }
 0x2a1   :  { %1857 = vrot.lane.b32.xlu0 %v8436_v22, %s6051_s20  ;;  %2032 = vrot.lane.b32.xlu1 %v8460_v4, %s6050_s19 }
 0x2a3   :  { %v1816_v28 = vpop.permute.xlu0 %1815  ;;  %v2005_v58 = vpop.permute.xlu1 %2004 }
 0x2a4   :  { %v2247_v11 = vsel %vm2234_vm6, %v2182_v61, %v2005_v58  ;;  %v2184_v19 = vsel %vm2169_vm5, %v8129_v60, %v1816_v28  ;;  %v12625_v28 = vld [vmem:[#allocation27_spill] sm:$0xff] }
 0x2a5   :  { %v2185_v58 = vsel %vm2169_vm5, %v12625_v28, %v8423_v63  ;;  %v12636_v28 = vld [vmem:[#allocation180_spill] sm:$0xff] }
 0x2a6   :  { %2034 = vrot.lane.b32.xlu2 %v8471_v29, %s6050_s19  ;;  %5691 = vmatmul.msk.f32.gmra.mxu0 %vm2302_vm7, %v2246_v52 }
 0x2a8   :  { %v8477_v9 = vpop.permute.xlu2 %1821 }
 0x2a9   :  { %2036 = vrot.lane.b32.xlu0 %v8487_v42, %s6050_s19  ;;  %1841 = vrot.lane.b32.xlu1 %v8460_v4, %s6051_s20 }
 0x2ab   :  { %v2011_v39 = vpop.permute.xlu0 %2010  ;;  %v2007_v53 = vpop.permute.xlu1 %2006 }
 0x2ac   :  { %v2248_v5 = vsel %vm2234_vm6, %v2183_v25, %v2007_v53  ;;  %v2250_v32 = vsel %vm2234_vm6, %v2185_v58, %v2011_v39  ;;  %v12627_v53 = vld [vmem:[#allocation124_spill] sm:$0xff]  ;;  %v12628_v39 = vld [vmem:[#allocation35_spill] sm:$0xff]  ;;  %v12637_v58 = vld [vmem:[#allocation138_spill] sm:$0xff] }
 0x2ad   :  { %v1596_v61 = vsel %vm1557_vm3, %v12627_v53, %v12626_v38  ;;  %v2186_v33 = vsel %vm2169_vm5, %v12628_v39, %v8450_v51  ;;  %v12631_v51 = vld [vmem:[#allocation34_spill] sm:$0xff] }
 0x2ae   :  { %1843 = vrot.lane.b32.xlu2 %v8471_v29, %s6051_s20  ;;  %5692 = vmatmul.msk.f32.gmra.mxu0 %vm2302_vm7, %v2247_v11  ;;  %v8575_v11 = vsel %vm1621_vm4, %v1596_v61, %v8223_v35  ;;  %v2187_v45 = vsel %vm2169_vm5, %v12631_v51, %v8477_v9  ;;  %v12638_v38 = vld [vmem:[#allocation42_spill] sm:$0xff] }
 0x2b0   :  { %v8497_v20 = vpop.permute.xlu2 %2016 }
 0x2b1   :  { %1845 = vrot.lane.b32.xlu0 %v8487_v42, %s6051_s20  ;;  %2050 = vrot.lane.b32.xlu1 %v8506_v59, %s6050_s19 }
 0x2b3   :  { %v2013_v8 = vpop.permute.xlu0 %2012  ;;  %v2009_v48 = vpop.permute.xlu1 %2008 }
 0x2b4   :  { %v2249_v3 = vsel %vm2234_vm6, %v2184_v19, %v2009_v48  ;;  %v2251_v35 = vsel %vm2234_vm6, %v2186_v33, %v2013_v8  ;;  %v12630_v48 = vld [vmem:[#allocation147_spill] sm:$0xff] }
 0x2b5   :  { %v1606_v25 = vsel %vm1557_vm3, %v12630_v48, %v12629_v43  ;;  %v12640_v43 = vld [vmem:[#allocation149_spill] sm:$0xff] }
 0x2b6   :  { %2052 = vrot.lane.b32.xlu2 %v8517_v7, %s6050_s19  ;;  %5693 = vmatmul.msk.f32.gmra.mxu0 %vm2302_vm7, %v2248_v5 }
 0x2b8   :  { %v8523_v2 = vpop.permute.xlu2 %2018 }
 0x2b9   :  { %1879 = vrot.lane.b32.xlu0 %v8532_v36, %s6051_s20  ;;  %1859 = vrot.lane.b32.xlu1 %v8506_v59, %s6051_s20 }
 0x2bb   :  { %v2015_v50 = vpop.permute.xlu0 %2014  ;;  %v1463_v44 = vpop.permute.xlu1 %1462 }
 0x2bc   :  { %v8559_v60 = vsel %vm1621_vm4, %v1605_v15, %v1463_v44  ;;  %v2252_v8 = vsel %vm2234_vm6, %v2187_v45, %v2015_v50 }
 0x2be   :  { %1861 = vrot.lane.b32.xlu2 %v8517_v7, %s6051_s20  ;;  %5694 = vmatmul.msk.f32.gmra.mxu0 %vm2302_vm7, %v2249_v3  ;;  %v12632_v3 = vld [vmem:[#allocation178_spill] sm:$0xff] }
 0x2bf   :  { %v1597_v1 = vsel %vm1557_vm3, %v12633_v0, %v12632_v3  ;;  %v12642_v3 = vld [vmem:[#allocation137_spill] sm:$0xff] }
 0x2c0   :  { %v2021_v37 = vpop.permute.xlu2 %2020  ;;  %v8610_v34 = vsel %vm1621_vm4, %v1597_v1, %v12634_v62 }
 0x2c1   :  { %1847 = vrot.lane.b32.xlu0 %v8549_v41, %s6051_s20  ;;  %2038 = vrot.lane.b32.xlu1 %v8549_v41, %s6050_s19 }
 0x2c3   :  { %v1467_v6 = vpop.permute.xlu0 %1466  ;;  %v1465_v57 = vpop.permute.xlu1 %1464 }
 0x2c4   :  { %v8594_v5 = vsel %vm1621_vm4, %v1606_v25, %v1465_v57 }
 0x2c6   :  { %2072 = vrot.lane.b32.xlu2 %v8559_v60, %s6050_s19  ;;  %5695 = vmatmul.msk.f32.gmra.mxu0 %vm2302_vm7, %v2250_v32  ;;  %v1598_v32 = vsel %vm1557_vm3, %v12637_v58, %v12636_v28 }
 0x2c7   :  { %v8624_v53 = vsel %vm1621_vm4, %v1598_v32, %v12638_v38  ;;  %v12645_v38 = vld [vmem:[#allocation136_spill] sm:$0xff] }
 0x2c8   :  { %v8566_v52 = vpop.permute.xlu2 %1470 }
 0x2c9   :  { %2054 = vrot.lane.b32.xlu1 %v8575_v11, %s6050_s19  ;;  %1881 = vrot.lane.b32.xlu0 %v8559_v60, %s6051_s20 }
 0x2cb   :  { %v1469_v63 = vpop.permute.xlu0 %1468  ;;  %v1824_v40 = vpop.permute.xlu1 %1823 }
 0x2cc   :  { %v2188_v17 = vsel %vm2169_vm5, %v12635_v30, %v1824_v40 }
 0x2cd   :  { %v2253_v50 = vsel %vm2234_vm6, %v2188_v17, %v8497_v20 }
 0x2ce   :  { %1863 = vrot.lane.b32.xlu2 %v8575_v11, %s6051_s20  ;;  %5696 = vmatmul.msk.f32.gmra.mxu0 %vm2302_vm7, %v2251_v35  ;;  %v12639_v35 = vld [vmem:[#allocation22_spill] sm:$0xff] }
 0x2cf   :  { %v1607_v48 = vsel %vm1557_vm3, %v12640_v43, %v12639_v35  ;;  %v12647_v43 = vld [vmem:[#allocation33_spill] sm:$0xff] }
 0x2d0   :  { %v8586_v26 = vpop.permute.xlu2 %1472  ;;  %v8637_v25 = vsel %vm1621_vm4, %v1607_v48, %v1467_v6 }
 0x2d3   :  { %v1830_v27 = vpop.permute.xlu0 %1829  ;;  %v1826_v44 = vpop.permute.xlu1 %1825 }
 0x2d4   :  { %v2189_v61 = vsel %vm2169_vm5, %v8207_v54, %v1826_v44  ;;  %v2191_v30 = vsel %vm2169_vm5, %v8263_v21, %v1830_v27 }
 0x2d5   :  { %v2254_v20 = vsel %vm2234_vm6, %v2189_v61, %v8523_v2  ;;  %v12646_v61 = vld [vmem:[#allocation139_spill] sm:$0xff] }
 0x2d6   :  { %2074 = vrot.lane.b32.xlu2 %v8594_v5, %s6050_s19  ;;  %5697 = vmatmul.msk.f32.gmra.mxu0 %vm2302_vm7, %v2252_v8  ;;  %v12641_v8 = vld [vmem:[#allocation179_spill] sm:$0xff] }
 0x2d7   :  { %v1608_v0 = vsel %vm1557_vm3, %v12642_v3, %v12641_v8  ;;  %v12650_v8 = vld [vmem:[#allocation93_spill] sm:$0xff] }
 0x2d8   :  { %v8601_v19 = vpop.permute.xlu2 %1835  ;;  %v8649_v6 = vsel %vm1621_vm4, %v1608_v0, %v1469_v63  ;;  %v1344_v3 = vrot.slane %v12650_v8, 2  ;;  %v12651_v0 = vld [vmem:[#allocation86_spill] sm:$0xff] }
 0x2db   :  { %v1832_v9 = vpop.permute.xlu0 %1831  ;;  %v1828_v15 = vpop.permute.xlu1 %1827 }
 0x2dc   :  { %v2190_v54 = vsel %vm2169_vm5, %v8244_v49, %v1828_v15  ;;  %v12643_v15 = vld [vmem:[#allocation111_spill] sm:$0xff]  ;;  %v2192_v58 = vsel %vm2169_vm5, %v8278_v47, %v1832_v9 }
 0x2dd   :  { %v2255_v2 = vsel %vm2234_vm6, %v2190_v54, %v2021_v37 }
 0x2de   :  { %1865 = vrot.lane.b32.xlu2 %v8610_v34, %s6051_s20  ;;  %5698 = vmatmul.msk.f32.gmra.mxu0 %vm2302_vm7, %v2253_v50  ;;  %v12644_v50 = vld [vmem:[#allocation127_spill] sm:$0xff] }
 0x2df   :  { %v1599_v28 = vsel %vm1557_vm3, %v12644_v50, %v12643_v15 }
 0x2e0   :  { %v1688_v57 = vpop.permute.xlu2 %1687 }
 0x2e3   :  { %v1834_v39 = vpop.permute.xlu0 %1833  ;;  %v2023_v33 = vpop.permute.xlu1 %2022 }
 0x2e4   :  { %v2256_v63 = vsel %vm2234_vm6, %v2191_v30, %v2023_v33  ;;  %v1600_v33 = vsel %vm1557_vm3, %v12646_v61, %v12645_v38  ;;  %v2193_v35 = vsel %vm2169_vm5, %v8299_v46, %v1834_v39  ;;  %v12653_v46 = vld [vmem:[#allocation150_spill] sm:$0xff] }
 0x2e6   :  { %2058 = vrot.lane.b32.xlu2 %v8624_v53, %s6050_s19  ;;  %5699 = vmatmul.msk.f32.gmra.mxu0 %vm2302_vm7, %v2254_v20  ;;  %v8691_v20 = vpop.f32.mrf.mxu0 }
 0x2e8   :  { %v1714_v40 = vpop.permute.xlu2 %1713 }
 0x2eb   :  { %v2029_v51 = vpop.permute.xlu0 %2028  ;;  %v2025_v45 = vpop.permute.xlu1 %2024 }
 0x2ec   :  { %v2257_v32 = vsel %vm2234_vm6, %v2192_v58, %v2025_v45  ;;  %v12649_v45 = vld [vmem:[#allocation79_spill] sm:$0xff] }
 0x2ee   :  { %1885 = vrot.lane.b32.xlu2 %v8637_v25, %s6051_s20  ;;  %5700 = vmatmul.msk.f32.gmra.mxu0 %vm2302_vm7, %v2255_v2  ;;  %v1342_v2 = vrot.slane %v12649_v45, 2  ;;  %v12658_v45 = vld [vmem:[#allocation152_spill] sm:$0xff] }
 0x2f0   :  { %v2047_v44 = vpop.permute.xlu2 %2046 }
 0x2f3   :  { %v1702_v49 = vpop.permute.xlu0 %1701  ;;  %v2027_v62 = vpop.permute.xlu1 %2026 }
 0x2f4   :  { %v1719_v1 = vsel %vm1557_vm3, %v1688_v57, %v1702_v49  ;;  %v8666_v57 = vsel %vm1621_vm4, %v1599_v28, %v8359_v55  ;;  %v2258_v48 = vsel %vm2234_vm6, %v2193_v35, %v2027_v62  ;;  %v1345_v49 = vrot.slane %v12651_v0, 2  ;;  %v12654_v62 = vld [vmem:[#allocation13_spill] sm:$0xff] }
 0x2f5   :  { %v1721_v37 = vsel %vm1621_vm4, %v1719_v1, %v1714_v40  ;;  %v8687_v40 = vsel %vm1621_vm4, %v1600_v33, %v8377_v10  ;;  %v12648_v10 = vld [vmem:[#allocation87_spill] sm:$0xff]  ;;  %v12652_v1 = vld [vmem:[#allocation18_spill] sm:$0xff] }
 0x2f6   :  { %2078 = vrot.lane.b32.xlu2 %v8649_v6, %s6050_s19  ;;  %2040 = vrot.lane.b32.xlu1 %v1721_v37, %s6050_s19  ;;  %v1341_v54 = vrot.slane %v12648_v10, 2  ;;  %v1609_v39 = vsel %vm1557_vm3, %v12653_v46, %v12652_v1  ;;  %v1346_v58 = vsel %vm1178_vm2, %v1344_v3, %v1345_v49  ;;  %v8731_v10 = vpop.f32.mrf.mxu0  ;;  %v12660_v3 = vld [vmem:[#allocation95_spill] sm:$0xff] }
 0x2f7   :  { %1849 = vrot.lane.b32.xlu0 %v1721_v37, %s6051_s20  ;;  %5701 = vmatmul.msk.f32.gmra.mxu0 %vm2302_vm7, %v2256_v63  ;;  %v8710_v30 = vsel %vm1621_vm4, %v1609_v39, %v8566_v52  ;;  %v12655_v63 = vld [vmem:[#allocation118_spill] sm:$0xff]  ;;  %v2194_v52 = vsel %vm2169_vm5, %v8320_v14, %v8601_v19  ;;  %v1354_v0 = vrot.slane %v12660_v3, 2 }
 0x2f8   :  { %v1856_v17 = vpop.permute.xlu2 %1855  ;;  %v1590_v15 = vsel %vm1557_vm3, %v12655_v63, %v12654_v62  ;;  %v1343_v28 = vsel %vm1178_vm2, %v1341_v54, %v1342_v2  ;;  %v2259_v35 = vsel %vm2234_vm6, %v2194_v52, %v2029_v51  ;;  %v12657_v54 = vld [vmem:[#allocation19_spill] sm:$0xff]  ;;  %v12659_v2 = vld [vmem:[#allocation102_spill] sm:$0xff] }
 0x2f9   :  { %v1610_v14 = vsel %vm1557_vm3, %v12658_v45, %v12657_v54  ;;  %v1353_v8 = vrot.slane %v12659_v2, 2  ;;  %v2204_v46 = vsel %vm2169_vm5, %v8440_v16, %v1856_v17  ;;  %v12667_v2 = vld [vmem:[#allocation17_spill] sm:$0xff] }
 0x2fa   :  { %v8740_v19 = vsel %vm1621_vm4, %v1610_v14, %v8586_v26  ;;  %v12666_v14 = vld [vmem:[#allocation88_spill] sm:$0xff] }
 0x2fb   :  { %v2031_v21 = vpop.permute.xlu0 %2030  ;;  %v8670_v27 = vpop.permute.xlu1 %1474 }
 0x2fe   :  { %1869 = vrot.lane.b32.xlu2 %v8666_v57, %s6051_s20  ;;  %2056 = vrot.lane.b32.xlu1 %v8610_v34, %s6050_s19  ;;  %v8758_v39 = vpop.f32.mrf.mxu0 }
 0x2ff   :  { %1883 = vrot.lane.b32.xlu0 %v8594_v5, %s6051_s20  ;;  %5702 = vmatmul.msk.f32.gmra.mxu0 %vm2302_vm7, %v2257_v32  ;;  %v12656_v32 = vld [vmem:[#allocation32_spill] sm:$0xff] }
 0x300   :  { %v8680_v55 = vpop.permute.xlu2 %2034  ;;  %v1654_v38 = vsel %vm1621_vm4, %v1590_v15, %v12656_v32 }
 0x303   :  { %v1840_v47 = vpop.permute.xlu0 %1839  ;;  %v1838_v9 = vpop.permute.xlu1 %1837 }
 0x304   :  { %v2195_v51 = vsel %vm2169_vm5, %v8355_v23, %v1838_v9  ;;  %v1355_v9 = vsel %vm1178_vm2, %v1353_v8, %v1354_v0  ;;  %v2196_v63 = vsel %vm2169_vm5, %v8344_v56, %v1840_v47  ;;  %v12668_v8 = vld [vmem:[#allocation144_spill] sm:$0xff] }
 0x305   :  { %v2260_v23 = vsel %vm2234_vm6, %v2195_v51, %v2031_v21  ;;  %v1351_v51 = vrot.slane %v12666_v14, 2 }
 0x306   :  { %2062 = vrot.lane.b32.xlu2 %v8687_v40, %s6050_s19  ;;  %2042 = vrot.lane.b32.xlu1 %v12647_v43, %s6050_s19  ;;  %v8776_v56 = vpop.f32.mrf.mxu0 }
 0x307   :  { %2076 = vrot.lane.b32.xlu0 %v8637_v25, %s6050_s19  ;;  %5703 = vmatmul.msk.f32.gmra.mxu0 %vm2302_vm7, %v2258_v48 }
 0x308   :  { %v8712_v37 = vpop.permute.xlu2 %1843 }
 0x30b   :  { %v2049_v50 = vpop.permute.xlu0 %2048  ;;  %v1854_v61 = vpop.permute.xlu1 %1853 }
 0x30c   :  { %v2203_v33 = vsel %vm2169_vm5, %v1654_v38, %v1854_v61  ;;  %v2269_v26 = vsel %vm2234_vm6, %v2204_v46, %v2049_v50  ;;  %v12661_v50 = vld [vmem:[#allocation114_spill] sm:$0xff] }
 0x30d   :  { %v2268_v48 = vsel %vm2234_vm6, %v2203_v33, %v2047_v44 }
 0x30e   :  { %1889 = vrot.lane.b32.xlu2 %v8710_v30, %s6051_s20  ;;  %1476 = vrot.lane.b32.xlu1 %v1343_v28, %s6049_s18  ;;  %v12662_v28 = vld [vmem:[#allocation130_spill] sm:$0xff] }
 0x30f   :  { %1478 = vrot.lane.b32.xlu0 %v1346_v58, %s6049_s18  ;;  %5704 = vmatmul.msk.f32.gmra.mxu0 %vm2302_vm7, %v2259_v35  ;;  %v1602_v58 = vsel %vm1557_vm3, %v12662_v28, %v12661_v50  ;;  %v12663_v35 = vld [vmem:[#allocation92_spill] sm:$0xff] }
 0x310   :  { %5713 = vmatmul.msk.f32.vlgmr.msra.gmra.mxu2 %vm2302_vm7, %v2268_v48  ;;  %v2053_v49 = vpop.permute.xlu2 %2052  ;;  %v8774_v32 = vsel %vm1621_vm4, %v1602_v58, %v8399_v12  ;;  %v12664_v48 = vld [vmem:[#allocation85_spill] sm:$0xff]  ;;  %v12669_v28 = vld [vmem:[#allocation140_spill] sm:$0xff] }
 0x311   :  { %v1348_v54 = vrot.slane %v12664_v48, 2 }
 0x313   :  { %v1858_v44 = vpop.permute.xlu0 %1857  ;;  %v2033_v1 = vpop.permute.xlu1 %2032 }
 0x314   :  { %v2261_v15 = vsel %vm2234_vm6, %v2196_v63, %v2033_v1  ;;  %v2205_v61 = vsel %vm2169_vm5, %v8417_v13, %v1858_v44  ;;  %v12665_v13 = vld [vmem:[#allocation96_spill] sm:$0xff] }
 0x315   :  { %v1350_v45 = vrot.slane %v12665_v13, 2 }
 0x316   :  { %2082 = vrot.lane.b32.xlu2 %v8740_v19, %s6050_s19  ;;  %1867 = vrot.lane.b32.xlu1 %v8624_v53, %s6051_s20 }
 0x317   :  { %1851 = vrot.lane.b32.xlu0 %v1654_v38, %s6051_s20  ;;  %5705 = vmatmul.msk.f32.gmra.mxu0 %vm2302_vm7, %v2260_v23  ;;  %v1352_v23 = vsel %vm1178_vm2, %v1350_v45, %v1351_v51  ;;  %v12674_v45 = vld [vmem:[#allocation94_spill] sm:$0xff] }
 0x318   :  { %5714 = vmatmul.msk.f32.gmra.mxu2 %vm2302_vm7, %v2269_v26  ;;  %v1862_v21 = vpop.permute.xlu2 %1861  ;;  %v8806_v26 = vpop.f32.mrf.mxu0  ;;  %v1357_v14 = vrot.slane %v12674_v45, 2 }
 0x31b   :  { %v2037_v17 = vpop.permute.xlu0 %2036  ;;  %v1842_v62 = vpop.permute.xlu1 %1841 }
 0x31c   :  { %v2197_v47 = vsel %vm2169_vm5, %v8392_v18, %v1842_v62  ;;  %v1347_v18 = vrot.slane %v12663_v35, 2 }
 0x31d   :  { %v2262_v12 = vsel %vm2234_vm6, %v2197_v47, %v8680_v55 }
 0x31e   :  { %1484 = vrot.lane.b32.xlu2 %v1355_v9, %s6049_s18  ;;  %2060 = vrot.lane.b32.xlu1 %v8666_v57, %s6050_s19  ;;  %v1349_v0 = vsel %vm1178_vm2, %v1347_v18, %v1348_v54  ;;  %v2198_v9 = vsel %vm2169_vm5, %v8460_v4, %v8712_v37  ;;  %v12673_v54 = vld [vmem:[#allocation101_spill] sm:$0xff] }
 0x31f   :  { %1887 = vrot.lane.b32.xlu0 %v8649_v6, %s6051_s20  ;;  %5706 = vmatmul.msk.f32.gmra.mxu0 %vm2302_vm7, %v2261_v15  ;;  %v2263_v63 = vsel %vm2234_vm6, %v2198_v9, %v2037_v17  ;;  %v12670_v17 = vld [vmem:[#allocation143_spill] sm:$0xff]  ;;  %v1356_v13 = vrot.slane %v12673_v54, 2 }
 0x320   :  { %v2073_v44 = vpop.permute.xlu2 %2072  ;;  %v1601_v58 = vsel %vm1557_vm3, %v12670_v17, %v12669_v28 }
 0x321   :  { %v1358_v51 = vsel %vm1178_vm2, %v1356_v13, %v1357_v14 }
 0x323   :  { %v1846_v38 = vpop.permute.xlu0 %1845  ;;  %v2051_v52 = vpop.permute.xlu1 %2050 }
 0x324   :  { %v2270_v33 = vsel %vm2234_vm6, %v2205_v61, %v2051_v52  ;;  %v8833_v61 = vpop.f32.mrf.mxu0 }
 0x325   :  { %5715 = vmatmul.msk.f32.gmra.mxu2 %vm2302_vm7, %v2270_v33 }
 0x326   :  { %1875 = vrot.lane.b32.xlu2 %v8774_v32, %s6051_s20  ;;  %2044 = vrot.lane.b32.xlu1 %v8440_v16, %s6050_s19  ;;  %v1603_v16 = vsel %vm1557_vm3, %v12668_v8, %v12667_v2  ;;  %v8871_v2 = vld [vmem:[%s11893_s2] ss:$0 sm:$0xff] }
 0x327   :  { %2080 = vrot.lane.b32.xlu0 %v8710_v30, %s6050_s19  ;;  %5707 = vmatmul.msk.f32.gmra.mxu0 %vm2302_vm7, %v2262_v12  ;;  %v1667_v55 = vsel %vm1621_vm4, %v1603_v16, %v8382_v31  ;;  %v8877_v8 = vadd.f32 %v8871_v2, %v8691_v20 }
 0x328   :  { %v1864_v4 = vpop.permute.xlu2 %1863 }
 0x32b   :  { %v1880_v3 = vpop.permute.xlu0 %1879  ;;  %v1860_v46 = vpop.permute.xlu1 %1859 }
 0x32c   :  { %v2216_v1 = vsel %vm2169_vm5, %v1667_v55, %v1880_v3  ;;  %v2206_v62 = vsel %vm2169_vm5, %v8436_v22, %v1860_v46  ;;  %v2199_v22 = vsel %vm2169_vm5, %v8471_v29, %v1846_v38  ;;  %v2207_v38 = vsel %vm2169_vm5, %v8506_v59, %v1862_v21  ;;  %v12671_v59 = vld [vmem:[#allocation16_spill] sm:$0xff]  ;;  %v12672_v21 = vld [vmem:[#allocation142_spill] sm:$0xff] }
 0x32d   :  { %v2281_v31 = vsel %vm2234_vm6, %v2216_v1, %v2073_v44  ;;  %v2271_v15 = vsel %vm2234_vm6, %v2206_v62, %v2053_v49  ;;  %v8829_v49 = vsel %vm1621_vm4, %v1601_v58, %v8375_v24  ;;  %v1611_v18 = vsel %vm1557_vm3, %v12672_v21, %v12671_v59  ;;  %v8882_v1 = vpop.f32.mrf.mxu0  ;;  %v12679_v59 = vld [vmem:[#allocation21_spill] sm:$0xff]  ;;  %v12680_v21 = vld [vmem:[#allocation154_spill] sm:$0xff] }
 0x32e   :  { %2068 = vrot.lane.b32.xlu2 %v1667_v55, %s6050_s19  ;;  %1480 = vrot.lane.b32.xlu1 %v1349_v0, %s6049_s18  ;;  %v8855_v48 = vsel %vm1621_vm4, %v1611_v18, %v8670_v27  ;;  %v2707_v46 = vmax.f32 %v8877_v8, 0.0  ;;  %v1613_v18 = vsel %vm1557_vm3, %v12680_v21, %v12679_v59  ;;  %v12688_v59 = vld [vmem:[#allocation156_spill] sm:$0xff] }
 0x32f   :  { %5726 = vmatmul.msk.f32.vlgmr.msra.gmra.mxu3 %vm2302_vm7, %v2281_v31  ;;  %1482 = vrot.lane.b32.xlu0 %v1352_v23, %s6049_s18 }
 0x330   :  { %5708 = vmatmul.msk.f32.gmra.mxu0 %vm2302_vm7, %v2263_v63  ;;  %5716 = vmatmul.msk.f32.gmra.mxu2 %vm2302_vm7, %v2271_v15  ;;  %v2075_v52 = vpop.permute.xlu2 %2074 }
 0x333   :  { %v1848_v37 = vpop.permute.xlu0 %1847  ;;  %v2039_v50 = vpop.permute.xlu1 %2038 }
 0x334   :  { %v2264_v47 = vsel %vm2234_vm6, %v2199_v22, %v2039_v50  ;;  %v2200_v16 = vsel %vm2169_vm5, %v8487_v42, %v1848_v37 }
 0x335   :  { %v8905_v28 = vpop.f32.mrf.mxu0 }
 0x336   :  { %1871 = vrot.lane.b32.xlu1 %v8687_v40, %s6051_s20 }
 0x337   :  { %1873 = vrot.lane.b32.xlu0 %v8829_v49, %s6051_s20 }
 0x338   :  { %5709 = vmatmul.msk.f32.gmra.mxu0 %vm2302_vm7, %v2264_v47  ;;  %v1866_v44 = vpop.permute.xlu2 %1865 }
 0x339   :  { %v2209_v31 = vsel %vm2169_vm5, %v8575_v11, %v1866_v44 }
 0x33b   :  { %v1882_v29 = vpop.permute.xlu0 %1881  ;;  %v2055_v24 = vpop.permute.xlu1 %2054 }
 0x33c   :  { %v2217_v33 = vsel %vm2169_vm5, %v8532_v36, %v1882_v29  ;;  %v2272_v12 = vsel %vm2234_vm6, %v2207_v38, %v2055_v24 }
 0x33d   :  { %v2282_v35 = vsel %vm2234_vm6, %v2217_v33, %v2075_v52  ;;  %5717 = vmatmul.msk.f32.gmra.mxu2 %vm2302_vm7, %v2272_v12  ;;  %v12677_v33 = vld [vmem:[#allocation104_spill] sm:$0xff]  ;;  %v12678_v12 = vld [vmem:[#allocation97_spill] sm:$0xff] }
 0x33e   :  { %2064 = vrot.lane.b32.xlu1 %v8829_v49, %s6050_s19  ;;  %5727 = vmatmul.msk.f32.gmra.mxu3 %vm2302_vm7, %v2282_v35  ;;  %v1359_v24 = vrot.slane %v12677_v33, 2  ;;  %v1360_v35 = vrot.slane %v12678_v12, 2 }
 0x33f   :  { %2066 = vrot.lane.b32.xlu0 %v8774_v32, %s6050_s19 }
 0x340   :  { %v2059_v27 = vpop.permute.xlu2 %2058 }
 0x346   :  { %1891 = vrot.lane.b32.xlu1 %v8740_v19, %s6051_s20 }
 0x347   :  { %1893 = vrot.lane.b32.xlu0 %v8855_v48, %s6051_s20 }
 0x348   :  { %v1886_v23 = vpop.permute.xlu2 %1885 }
 0x349   :  { %v2219_v47 = vsel %vm2169_vm5, %v8594_v5, %v1886_v23  ;;  %v1361_v5 = vsel %vm1178_vm2, %v1359_v24, %v1360_v35 }
 0x34e   :  { %2084 = vrot.lane.b32.xlu1 %v8855_v48, %s6050_s19 }
 0x350   :  { %v2079_v62 = vpop.permute.xlu2 %2078 }
 0x351   :  { %v2284_v52 = vsel %vm2234_vm6, %v2219_v47, %v2079_v62  ;;  %v12686_v47 = vld [vmem:[#allocation145_spill] sm:$0xff] }
 0x356   :  { %1486 = vrot.lane.b32.xlu1 %v1358_v51, %s6049_s18  ;;  %v8938_v51 = vadd.f32 %v8871_v2, %v8731_v10  ;;  %v12682_v10 = vld [vmem:[#allocation103_spill] sm:$0xff] }
 0x358   :  { %v1870_v29 = vpop.permute.xlu2 %1869  ;;  %v2708_v44 = vmax.f32 %v8938_v51, 0.0 }
 0x35e   :  { %1877 = vrot.lane.b32.xlu1 %v1667_v55, %s6051_s20 }
 0x360   :  { %v2063_v14 = vpop.permute.xlu2 %2062 }
 0x366   :  { %2070 = vrot.lane.b32.xlu1 %v8532_v36, %s6050_s19  ;;  %v2208_v36 = vsel %vm2169_vm5, %v8517_v7, %v1864_v4  ;;  %v2274_v4 = vsel %vm2234_vm6, %v2209_v31, %v2059_v27 }
 0x368   :  { %v2041_v0 = vpop.permute.xlu1 %2040 }
 0x369   :  { %v1850_v3 = vpop.permute.xlu0 %1849  ;;  %v2265_v55 = vsel %vm2234_vm6, %v2200_v16, %v2041_v0 }
 0x36a   :  { %5710 = vmatmul.msk.f32.gmra.mxu0 %vm2302_vm7, %v2265_v55  ;;  %v2201_v63 = vsel %vm2169_vm5, %v8549_v41, %v1850_v3  ;;  %v12675_v41 = vld [vmem:[#allocation26_spill] sm:$0xff] }
 0x36b   :  { %v12681_v55 = vld [vmem:[#allocation110_spill] sm:$0xff] }
 0x36c   :  { %v1362_v23 = vrot.slane %v12681_v55, 2 }
 0x36e   :  { %2835 = vrot.lane.b32.xlu1 %v2707_v46, %s6052_s25 }
 0x370   :  { %v2057_v20 = vpop.permute.xlu1 %2056 }
 0x371   :  { %v1884_v42 = vpop.permute.xlu0 %1883  ;;  %v2273_v9 = vsel %vm2234_vm6, %v2208_v36, %v2057_v20  ;;  %v1363_v36 = vrot.slane %v12682_v10, 2 }
 0x372   :  { %5718 = vmatmul.msk.f32.gmra.mxu2 %vm2302_vm7, %v2273_v9  ;;  %v2218_v15 = vsel %vm2169_vm5, %v8559_v60, %v1884_v42  ;;  %v12676_v60 = vld [vmem:[#allocation153_spill] sm:$0xff]  ;;  %v1890_v42 = vpop.permute.xlu2 %1889 }
 0x373   :  { %v1612_v11 = vsel %vm1557_vm3, %v12676_v60, %v12675_v41  ;;  %v1364_v20 = vsel %vm1178_vm2, %v1362_v23, %v1363_v36  ;;  %v8972_v60 = vpop.f32.mrf.mxu0  ;;  %v2221_v24 = vsel %vm2169_vm5, %v8649_v6, %v1890_v42  ;;  %v9002_v6 = vadd.f32 %v8871_v2, %v8833_v61 }
 0x378   :  { %v8899_v22 = vpop.permute.xlu1 %2042 }
 0x379   :  { %v2077_v37 = vpop.permute.xlu0 %2076  ;;  %v2266_v7 = vsel %vm2234_vm6, %v2201_v63, %v8899_v22 }
 0x37a   :  { %v2283_v50 = vsel %vm2234_vm6, %v2218_v15, %v2077_v37  ;;  %5711 = vmatmul.msk.f32.gmra.mxu0 %vm2302_vm7, %v2266_v7  ;;  %5719 = vmatmul.msk.f32.gmra.mxu2 %vm2302_vm7, %v2274_v4  ;;  %v2211_v7 = vsel %vm2169_vm5, %v8624_v53, %v1870_v29  ;;  %v12683_v4 = vld [vmem:[#allocation109_spill] sm:$0xff] }
 0x37b   :  { %5728 = vmatmul.msk.f32.gmra.mxu3 %vm2302_vm7, %v2283_v50  ;;  %v12684_v50 = vld [vmem:[#allocation175_spill] sm:$0xff]  ;;  %v2276_v53 = vsel %vm2234_vm6, %v2211_v7, %v2063_v14 }
 0x37c   :  { %v1366_v41 = vrot.slane %v12684_v50, 2  ;;  %v2542_v50 = vpop.f32.mrf.mxu0 }
 0x380   :  { %v1477_v58 = vpop.permute.xlu1 %1476 }
 0x381   :  { %v1479_v17 = vpop.permute.xlu0 %1478  ;;  %v8916_v38 = vsel %vm1621_vm4, %v1612_v11, %v1477_v58  ;;  %v2083_v11 = vpop.permute.xlu2 %2082  ;;  %v12685_v58 = vld [vmem:[#allocation141_spill] sm:$0xff] }
 0x382   :  { %1895 = vrot.lane.b32.xlu2 %v8916_v38, %s6051_s20  ;;  %2086 = vrot.lane.b32.xlu0 %v8916_v38, %s6050_s19  ;;  %v8931_v45 = vsel %vm1621_vm4, %v1613_v18, %v1479_v17  ;;  %v1614_v29 = vsel %vm1557_vm3, %v12686_v47, %v12685_v58  ;;  %v2712_v18 = vmax.f32 %v9002_v6, 0.0  ;;  %v12689_v58 = vld [vmem:[#allocation24_spill] sm:$0xff]  ;;  %v12690_v47 = vld [vmem:[#allocation157_spill] sm:$0xff] }
 0x383   :  { %5729 = vmatmul.msk.f32.gmra.mxu3 %vm2302_vm7, %v2284_v52 }
 0x388   :  { %v1868_v13 = vpop.permute.xlu1 %1867 }
 0x389   :  { %v1852_v54 = vpop.permute.xlu0 %1851  ;;  %v2210_v27 = vsel %vm2169_vm5, %v8610_v34, %v1868_v13  ;;  %v8954_v34 = vadd.f32 %v8871_v2, %v8758_v39  ;;  %v149_v13 = vld [vmem:[%s11891_s0 + $0x1f8] sm:$0xff]  ;;  %v1485_v61 = vpop.permute.xlu2 %1484  ;;  %s6053_s0 = smov 24  }
 0x38a   :  { %2088 = vrot.lane.b32.xlu2 %v8931_v45, %s6050_s19  ;;  %1488 = vrot.lane.b32.xlu0 %v1361_v5, %s6049_s18  ;;  %v2202_v62 = vsel %vm2169_vm5, %v12647_v43, %v1852_v54  ;;  %v1365_v43 = vrot.slane %v12683_v4, 2  ;;  %v12687_v5 = vld [vmem:[#allocation28_spill] sm:$0xff] }
 0x38b   :  { %v2709_v9 = vmax.f32 %v8954_v34, 0.0  ;;  %v1615_v21 = vsel %vm1557_vm3, %v12688_v59, %v12687_v5  ;;  %v12692_v5 = vld [vmem:[#allocation148_spill] sm:$0xff]  ;;  %v12697_v34 = vld [vmem:[#allocation23_spill] sm:$0xff] }
 0x38c   :  { %v1367_v17 = vsel %vm1178_vm2, %v1365_v43, %v1366_v41  ;;  %v9056_v41 = vadd.f32 %v8871_v2, %v8905_v28 }
 0x390   :  { %v2061_v3 = vpop.permute.xlu1 %2060 }
 0x391   :  { %v1888_v16 = vpop.permute.xlu0 %1887  ;;  %v2275_v0 = vsel %vm2234_vm6, %v2210_v27, %v2061_v3  ;;  %v287_v27 = vrot.slane %v149_v13, 7 }
 0x392   :  { %2837 = vrot.lane.b32.xlu2 %v2708_v44, %s6052_s25  ;;  %1897 = vrot.lane.b32.xlu0 %v8931_v45, %s6051_s20  ;;  %v2220_v63 = vsel %vm2169_vm5, %v8637_v25, %v1888_v16  ;;  %v8979_v25 = vadd.f32 %v8871_v2, %v8776_v56  ;;  %v2286_v56 = vsel %vm2234_vm6, %v2221_v24, %v2083_v11 }
 0x393   :  { %5720 = vmatmul.msk.f32.gmra.mxu2 %vm2302_vm7, %v2275_v0  ;;  %v9023_v16 = vadd.f32 %v8871_v2, %v8806_v26  ;;  %v418_v0 = vsel %vm353_vm0, 0.0, %v287_v27  ;;  %v483_v10 = vsel %vm353_vm0, %v287_v27, 0.0 }
 0x394   :  { %v2710_v52 = vmax.f32 %v8979_v25, 0.0  ;;  %v1710_v26 = vrot.slane %v418_v0, 2 }
 0x395   :  { %v2711_v36 = vmax.f32 %v9023_v16, 0.0 }
 0x398   :  { %v2045_v31 = vpop.permute.xlu1 %2044 }
 0x399   :  { %v2081_v15 = vpop.permute.xlu0 %2080  ;;  %v2267_v37 = vsel %vm2234_vm6, %v2202_v62, %v2045_v31  ;;  %v1698_v62 = vrot.slane %v418_v0, 1  ;;  %v1699_v31 = vrot.slane %v483_v10, 1 }
 0x39a   :  { %v2285_v39 = vsel %vm2234_vm6, %v2220_v63, %v2081_v15  ;;  %2839 = vrot.lane.b32.xlu2 %v2709_v9, %s6052_s25  ;;  %1490 = vrot.lane.b32.xlu0 %v1364_v20, %s6049_s18  ;;  %v9040_v20 = vadd.f32 %v8871_v2, %v8882_v1  ;;  %v1876_v63 = vpop.permute.xlu2 %1875 }
 0x39b   :  { %5730 = vmatmul.msk.f32.gmra.mxu3 %vm2302_vm7, %v2285_v39  ;;  %5712 = vmatmul.msk.f32.gmra.mxu0 %vm2302_vm7, %v2267_v37  ;;  %v1700_v4 = vsel %vm799_vm1, %v1698_v62, %v1699_v31 }
 0x39c   :  { %5721 = vmatmul.msk.f32.gmra.mxu2 %vm2302_vm7, %v2276_v53  ;;  %v2713_v7 = vmax.f32 %v9040_v20, 0.0 }
 0x3a0   :  { %v1481_v33 = vpop.permute.xlu1 %1480 }
 0x3a1   :  { %v8990_v12 = vsel %vm1621_vm4, %v1614_v29, %v1481_v33  ;;  %v1483_v35 = vpop.permute.xlu0 %1482  ;;  %v1616_v29 = vsel %vm1557_vm3, %v12690_v47, %v12689_v58  ;;  %v2214_v33 = vsel %vm2169_vm5, %v8829_v49, %v1876_v63  ;;  %v2545_v49 = vpop.f32.mrf.mxu0  ;;  %v12693_v58 = vld [vmem:[#allocation29_spill] sm:$0xff]  ;;  %v12694_v47 = vld [vmem:[#allocation159_spill] sm:$0xff] }
 0x3a2   :  { %1492 = vrot.lane.b32.xlu2 %v1367_v17, %s6049_s18  ;;  %2841 = vrot.lane.b32.xlu0 %v2710_v52, %s6052_s25  ;;  %v9012_v14 = vsel %vm1621_vm4, %v1615_v21, %v1483_v35  ;;  %v2069_v53 = vpop.permute.xlu2 %2068  ;;  %v12691_v35 = vld [vmem:[#allocation15_spill] sm:$0xff] }
 0x3a3   :  { %5731 = vmatmul.msk.f32.gmra.mxu3 %vm2302_vm7, %v2286_v56  ;;  %2090 = vrot.lane.b32.xlu1 %v8990_v12, %s6050_s19  ;;  %v9068_v56 = vsel %vm1621_vm4, %v1616_v29, %v1485_v61  ;;  %v2279_v28 = vsel %vm2234_vm6, %v2214_v33, %v2069_v53  ;;  %v1617_v59 = vsel %vm1557_vm3, %v12692_v5, %v12691_v35  ;;  %v12695_v35 = vld [vmem:[#allocation25_spill] sm:$0xff]  ;;  %v12696_v5 = vld [vmem:[#allocation160_spill] sm:$0xff] }
 0x3a4   :  { %v1618_v29 = vsel %vm1557_vm3, %v12694_v47, %v12693_v58 }
 0x3a8   :  { %v1872_v54 = vpop.permute.xlu1 %1871 }
 0x3a9   :  { %v1874_v3 = vpop.permute.xlu0 %1873  ;;  %v2212_v55 = vsel %vm2169_vm5, %v8666_v57, %v1872_v54  ;;  %v1711_v57 = vrot.slane %v483_v10, 2  ;;  %v2548_v61 = vpop.f32.mrf.mxu0 }
 0x3aa   :  { %2845 = vrot.lane.b32.xlu2 %v2712_v18, %s6052_s25  ;;  %2092 = vrot.lane.b32.xlu0 %v9012_v14, %s6050_s19  ;;  %v2213_v43 = vsel %vm2169_vm5, %v8687_v40, %v1874_v3  ;;  %v2714_v40 = vmax.f32 %v9056_v41, 0.0 }
 0x3ab   :  { %1899 = vrot.lane.b32.xlu1 %v8990_v12, %s6051_s20  ;;  %v1712_v37 = vsel %vm1178_vm2, %v1710_v26, %v1711_v57 }
 0x3b0   :  { %v2065_v23 = vpop.permute.xlu1 %2064 }
 0x3b1   :  { %v2277_v42 = vsel %vm2234_vm6, %v2212_v55, %v2065_v23  ;;  %v2067_v15 = vpop.permute.xlu0 %2066  ;;  %v9109_v55 = vadd.f32 %v8871_v2, %v2545_v49  ;;  %v2551_v57 = vpop.f32.mrf.mxu0 }
 0x3b2   :  { %1901 = vrot.lane.b32.xlu2 %v9012_v14, %s6051_s20  ;;  %1689 = vrot.lane.b32.xlu0 %v418_v0, %s6047_s1  ;;  %v2278_v1 = vsel %vm2234_vm6, %v2213_v43, %v2067_v15  ;;  %v9106_v0 = vadd.f32 %v8871_v2, %v2548_v61  ;;  %v9124_v31 = vadd.f32 %v8871_v2, %v2551_v57 }
 0x3b3   :  { %2843 = vrot.lane.b32.xlu1 %v2711_v36, %s6052_s25  ;;  %5722 = vmatmul.msk.f32.gmra.mxu2 %vm2302_vm7, %v2277_v42  ;;  %v2717_v26 = vmax.f32 %v9109_v55, 0.0 }
 0x3b4   :  { %v2718_v23 = vmax.f32 %v9106_v0, 0.0  ;;  %v2719_v63 = vmax.f32 %v9124_v31, 0.0 }
 0x3b8   :  { %v1892_v39 = vpop.permute.xlu1 %1891 }
 0x3b9   :  { %v2222_v11 = vsel %vm2169_vm5, %v8710_v30, %v1892_v39  ;;  %v9080_v30 = vadd.f32 %v8871_v2, %v8972_v60  ;;  %v9097_v60 = vadd.f32 %v8871_v2, %v2542_v50  ;;  %v1894_v39 = vpop.permute.xlu0 %1893 }
 0x3ba   :  { %2847 = vrot.lane.b32.xlu2 %v2713_v7, %s6052_s25  ;;  %1715 = vrot.lane.b32.xlu0 %v1712_v37, %s6049_s18  ;;  %v2554_v37 = vpop.f32.mrf.mxu0  ;;  %v2223_v50 = vsel %vm2169_vm5, %v8740_v19, %v1894_v39 }
 0x3bb   :  { %1703 = vrot.lane.b32.xlu1 %v1700_v4, %s6048_s17  ;;  %5723 = vmatmul.msk.f32.gmra.mxu2 %vm2302_vm7, %v2278_v1  ;;  %v2715_v21 = vmax.f32 %v9080_v30, 0.0  ;;  %v2716_v3 = vmax.f32 %v9097_v60, 0.0  ;;  %v9155_v49 = vadd.f32 %v8871_v2, %v2554_v37 }
 0x3c0   :  { %v2085_v17 = vpop.permute.xlu1 %2084 }
 0x3c1   :  { %v2287_v24 = vsel %vm2234_vm6, %v2222_v11, %v2085_v17 }
 0x3c2   :  { %2849 = vrot.lane.b32.xlu0 %v2714_v40, %s6052_s25  ;;  %5732 = vmatmul.msk.f32.gmra.mxu3 %vm2302_vm7, %v2287_v24  ;;  %v2557_v1 = vpop.f32.mrf.mxu0 }
 0x3c3   :  { %2094 = vrot.lane.b32.xlu1 %v9068_v56, %s6050_s19  ;;  %5724 = vmatmul.msk.f32.gmra.mxu2 %vm2302_vm7, %v2279_v28 }
 0x3c8   :  { %v1487_v54 = vpop.permute.xlu1 %1486 }
 0x3c9   :  { %v9087_v13 = vsel %vm1621_vm4, %v1617_v59, %v1487_v54  ;;  %v1619_v59 = vsel %vm1557_vm3, %v12696_v5, %v12695_v35  ;;  %v2720_v54 = vmax.f32 %v9155_v49, 0.0 }
 0x3ca   :  { %2851 = vrot.lane.b32.xlu0 %v2715_v21, %s6052_s25  ;;  %2096 = vrot.lane.b32.xlu2 %v9087_v13, %s6050_s19  ;;  %v2560_v17 = vpop.f32.mrf.mxu0 }
 0x3cb   :  { %1903 = vrot.lane.b32.xlu1 %v9068_v56, %s6051_s20  ;;  %v9172_v57 = vadd.f32 %v8871_v2, %v2560_v17 }
 0x3cd   :  { %v2722_v37 = vmax.f32 %v9172_v57, 0.0 }
 0x3d0   :  { %v1878_v27 = vpop.permute.xlu1 %1877 }
 0x3d1   :  { %v2215_v10 = vsel %vm2169_vm5, %v8774_v32, %v1878_v27 }
 0x3d2   :  { %1905 = vrot.lane.b32.xlu2 %v9087_v13, %s6051_s20  ;;  %v2563_v19 = vpop.f32.mrf.mxu0 }
 0x3d3   :  { %2853 = vrot.lane.b32.xlu1 %v2716_v3, %s6052_s25 }
 0x3d8   :  { %v2071_v42 = vpop.permute.xlu1 %2070 }
 0x3d9   :  { %v2280_v62 = vsel %vm2234_vm6, %v2215_v10, %v2071_v42 }
 0x3da   :  { %2857 = vrot.lane.b32.xlu2 %v2718_v23, %s6052_s25  ;;  %5725 = vmatmul.msk.f32.gmra.mxu2 %vm2302_vm7, %v2280_v62  ;;  %v2566_v27 = vpop.f32.mrf.mxu0 }
 0x3db   :  { %2855 = vrot.lane.b32.xlu1 %v2717_v26, %s6052_s25 }
 0x3dc   :  { %v1896_v32 = vpop.permute.xlu2 %1895 }
 0x3dd   :  { %v2224_v51 = vsel %vm2169_vm5, %v8855_v48, %v1896_v32 }
 0x3e0   :  { %v2836_v10 = vpop.permute.xlu1 %2835 }
 0x3e1   :  { %v9176_v62 = vmax.f32 %v2707_v46, %v2836_v10  ;;  %v9243_v10 = vadd.f32 %v8871_v2, %v2563_v19 }
 0x3e2   :  { %2859 = vrot.lane.b32.xlu2 %v2719_v63, %s6052_s25  ;;  %v2569_v46 = vpop.f32.mrf.mxu0 }
 0x3e3   :  { %v2723_v6 = vmax.f32 %v9243_v10, 0.0 }
 0x3e4   :  { %v2089_v15 = vpop.permute.xlu2 %2088 }
 0x3e5   :  { %v2289_v24 = vsel %vm2234_vm6, %v2224_v51, %v2089_v15  ;;  %v9218_v51 = vadd.f32 %v8871_v2, %v2566_v27 }
 0x3ec   :  { %v2838_v4 = vpop.permute.xlu2 %2837 }
 0x3ed   :  { %v9132_v43 = vmax.f32 %v2708_v44, %v2838_v4 }
 0x3ef   :  { %3157 = vrot.lane.b32.xlu2 %v9132_v43, %s6052_s25 }
 0x3f4   :  { %v2087_v53 = vpop.permute.xlu0 %2086  ;;  %v2840_v48 = vpop.permute.xlu2 %2839 }
 0x3f5   :  { %v2288_v11 = vsel %vm2234_vm6, %v2223_v50, %v2087_v53  ;;  %v9180_v32 = vmax.f32 %v2709_v9, %v2840_v48  ;;  %v12698_v9 = vld [vmem:[#allocation151_spill] sm:$0xff] }
 0x3f6   :  { %5733 = vmatmul.msk.f32.gmra.mxu3 %vm2302_vm7, %v2288_v11 }
 0x3fc   :  { %v1489_v44 = vpop.permute.xlu0 %1488  ;;  %v1493_v39 = vpop.permute.xlu2 %1492 }
 0x3fd   :  { %v9146_v33 = vsel %vm1621_vm4, %v1618_v29, %v1489_v44 }
 0x3fe   :  { %2098 = vrot.lane.b32.xlu0 %v9146_v33, %s6050_s19  ;;  %5734 = vmatmul.msk.f32.gmra.mxu3 %vm2302_vm7, %v2289_v24 }
 0x404   :  { %v1898_v28 = vpop.permute.xlu0 %1897  ;;  %v2846_v29 = vpop.permute.xlu2 %2845 }
 0x405   :  { %v2225_v4 = vsel %vm2169_vm5, %v8916_v38, %v1898_v28  ;;  %v1620_v38 = vsel %vm1557_vm3, %v12698_v9, %v12697_v34  ;;  %v2724_v28 = vmax.f32 %v9218_v51, 0.0  ;;  %v9262_v34 = vadd.f32 %v8871_v2, %v2569_v46 }
 0x406   :  { %1907 = vrot.lane.b32.xlu0 %v9146_v33, %s6051_s20  ;;  %v9202_v17 = vsel %vm1621_vm4, %v1620_v38, %v1493_v39 }
 0x40c   :  { %v1491_v61 = vpop.permute.xlu0 %1490 }
 0x40d   :  { %v9162_v42 = vsel %vm1621_vm4, %v1619_v59, %v1491_v61  ;;  %v9236_v59 = vmax.f32 %v2712_v18, %v2846_v29 }
 0x40e   :  { %2861 = vrot.lane.b32.xlu0 %v2720_v54, %s6052_s25  ;;  %2100 = vrot.lane.b32.xlu1 %v9162_v42, %s6050_s19 }
 0x40f   :  { %1909 = vrot.lane.b32.xlu2 %v9162_v42, %s6051_s20 }
 0x414   :  { %v2842_v15 = vpop.permute.xlu0 %2841 }
 0x415   :  { %v2091_v50 = vpop.permute.xlu1 %2090  ;;  %v9199_v53 = vmax.f32 %v2710_v52, %v2842_v15  ;;  %v9214_v52 = vadd.f32 %v8871_v2, %v2557_v1  ;;  %v1902_v1 = vpop.permute.xlu2 %1901 }
 0x416   :  { %3159 = vrot.lane.b32.xlu0 %v9180_v32, %s6052_s25  ;;  %3155 = vrot.lane.b32.xlu1 %v9176_v62, %s6052_s25  ;;  %v2290_v8 = vsel %vm2234_vm6, %v2225_v4, %v2091_v50  ;;  %v2227_v4 = vsel %vm2169_vm5, %v8990_v12, %v1902_v1 }
 0x417   :  { %2865 = vrot.lane.b32.xlu2 %v2722_v37, %s6052_s25  ;;  %5735 = vmatmul.msk.f32.gmra.mxu3 %vm2302_vm7, %v2290_v8  ;;  %v2721_v44 = vmax.f32 %v9214_v52, 0.0 }
 0x41c   :  { %v2093_v11 = vpop.permute.xlu0 %2092 }
 0x41d   :  { %v1900_v58 = vpop.permute.xlu1 %1899  ;;  %v2848_v15 = vpop.permute.xlu2 %2847 }
 0x41e   :  { %v2226_v47 = vsel %vm2169_vm5, %v8931_v45, %v1900_v58  ;;  %2102 = vrot.lane.b32.xlu0 %v9202_v17, %s6050_s19  ;;  %3161 = vrot.lane.b32.xlu1 %v9199_v53, %s6052_s25  ;;  %v2572_v45 = vpop.f32.mrf.mxu0  ;;  %v9252_v8 = vmax.f32 %v2713_v7, %v2848_v15 }
 0x41f   :  { %1911 = vrot.lane.b32.xlu2 %v9202_v17, %s6051_s20  ;;  %v2291_v25 = vsel %vm2234_vm6, %v2226_v47, %v2093_v11  ;;  %v2725_v11 = vmax.f32 %v9262_v34, 0.0 }
 0x420   :  { %5736 = vmatmul.msk.f32.gmra.mxu3 %vm2302_vm7, %v2291_v25 }
 0x424   :  { %v1690_v24 = vpop.permute.xlu0 %1689 }
 0x425   :  { %v2844_v48 = vpop.permute.xlu1 %2843  ;;  %v2097_v12 = vpop.permute.xlu2 %2096 }
 0x426   :  { %v9224_v35 = vmax.f32 %v2711_v36, %v2844_v48  ;;  %2863 = vrot.lane.b32.xlu1 %v2721_v44, %s6052_s25  ;;  %v2575_v5 = vpop.f32.mrf.mxu0 }
 0x427   :  { %2869 = vrot.lane.b32.xlu2 %v2724_v28, %s6052_s25 }
 0x428   :  { %3163 = vrot.lane.b32.xlu0 %v9224_v35, %s6052_s25 }
 0x42c   :  { %v1716_v16 = vpop.permute.xlu0 %1715 }
 0x42d   :  { %v1704_v36 = vpop.permute.xlu1 %1703  ;;  %v1906_v47 = vpop.permute.xlu2 %1905 }
 0x42e   :  { %v1720_v61 = vsel %vm1557_vm3, %v1690_v24, %v1704_v36  ;;  %3165 = vrot.lane.b32.xlu1 %v9236_v59, %s6052_s25  ;;  %v2578_v39 = vpop.f32.mrf.mxu0  ;;  %v2229_v31 = vsel %vm2169_vm5, %v9068_v56, %v1906_v47  ;;  %vm4978_vm3 = vcmask 1046534  }
 0x42f   :  { %v1722_v27 = vsel %vm1621_vm4, %v1720_v61, %v1716_v16  ;;  %vm5237_vm4 = vcmask 130048  }
 0x430   :  { %1913 = vrot.lane.b32.xlu2 %v1722_v27, %s6051_s20  ;;  %2104 = vrot.lane.b32.xlu0 %v1722_v27, %s6050_s19 }
 0x434   :  { %v2850_v18 = vpop.permute.xlu0 %2849 }
 0x435   :  { %v2095_v50 = vpop.permute.xlu1 %2094  ;;  %v9266_v20 = vmax.f32 %v2714_v40, %v2850_v18  ;;  %v9281_v40 = vadd.f32 %v8871_v2, %v2572_v45  ;;  %v9303_v45 = vadd.f32 %v8871_v2, %v2575_v5  ;;  %v2858_v5 = vpop.permute.xlu2 %2857 }
 0x436   :  { %2867 = vrot.lane.b32.xlu1 %v2723_v6, %s6052_s25  ;;  %v2292_v19 = vsel %vm2234_vm6, %v2227_v4, %v2095_v50  ;;  %v2581_v46 = vpop.f32.mrf.mxu0  ;;  %v9329_v55 = vmax.f32 %v2718_v23, %v2858_v5 }
 0x437   :  { %5737 = vmatmul.msk.f32.gmra.mxu3 %vm2302_vm7, %v2292_v19  ;;  %v2726_v30 = vmax.f32 %v9281_v40, 0.0  ;;  %v9308_v24 = vadd.f32 %v8871_v2, %v2581_v46 }
 0x438   :  { %3167 = vrot.lane.b32.xlu0 %v9252_v8, %s6052_s25 }
 0x439   :  { %v2729_v48 = vmax.f32 %v9308_v24, 0.0 }
 0x43c   :  { %v2852_v7 = vpop.permute.xlu0 %2851 }
 0x43d   :  { %v9270_v9 = vmax.f32 %v2715_v21, %v2852_v7  ;;  %v1904_v38 = vpop.permute.xlu1 %1903  ;;  %v2860_v27 = vpop.permute.xlu2 %2859 }
 0x43e   :  { %v2228_v58 = vsel %vm2169_vm5, %v9012_v14, %v1904_v38  ;;  %3169 = vrot.lane.b32.xlu1 %v9266_v20, %s6052_s25  ;;  %v9288_v14 = vadd.f32 %v8871_v2, %v2578_v39  ;;  %v2584_v60 = vpop.f32.mrf.mxu0  ;;  %v9342_v18 = vmax.f32 %v2719_v63, %v2860_v27 }
 0x43f   :  { %3171 = vrot.lane.b32.xlu2 %v9270_v9, %s6052_s25  ;;  %v2293_v41 = vsel %vm2234_vm6, %v2228_v58, %v2097_v12  ;;  %v9325_v36 = vadd.f32 %v8871_v2, %v2584_v60 }
 0x440   :  { %2871 = vrot.lane.b32.xlu0 %v2725_v11, %s6052_s25  ;;  %5738 = vmatmul.msk.f32.gmra.mxu3 %vm2302_vm7, %v2293_v41  ;;  %v2728_v21 = vmax.f32 %v9288_v14, 0.0 }
 0x445   :  { %v2854_v29 = vpop.permute.xlu1 %2853 }
 0x446   :  { %v9294_v25 = vmax.f32 %v2716_v3, %v2854_v29  ;;  %2873 = vrot.lane.b32.xlu1 %v2726_v30, %s6052_s25  ;;  %v2727_v3 = vmax.f32 %v9303_v45, 0.0  ;;  %v2587_v61 = vpop.f32.mrf.mxu0 }
 0x447   :  { %2877 = vrot.lane.b32.xlu2 %v2728_v21, %s6052_s25  ;;  %v9338_v15 = vadd.f32 %v8871_v2, %v2587_v61 }
 0x448   :  { %3173 = vrot.lane.b32.xlu0 %v9294_v25, %s6052_s25 }
 0x449   :  { %v2731_v23 = vmax.f32 %v9338_v15, 0.0  ;;  %v3158_v19 = vpop.permute.xlu2 %3157 }
 0x44d   :  { %v2856_v1 = vpop.permute.xlu1 %2855 }
 0x44e   :  { %v9314_v16 = vmax.f32 %v2717_v26, %v2856_v1  ;;  %2875 = vrot.lane.b32.xlu1 %v2727_v3, %s6052_s25  ;;  %v2730_v26 = vmax.f32 %v9325_v36, 0.0  ;;  %v2590_v0 = vpop.f32.mrf.mxu0 }
 0x44f   :  { %2879 = vrot.lane.b32.xlu2 %v2729_v48, %s6052_s25  ;;  %v9348_v39 = vadd.f32 %v8871_v2, %v2590_v0 }
 0x450   :  { %3175 = vrot.lane.b32.xlu0 %v9314_v16, %s6052_s25 }
 0x451   :  { %v2732_v4 = vmax.f32 %v9348_v39, 0.0 }
 0x456   :  { %3177 = vrot.lane.b32.xlu1 %v9329_v55, %s6052_s25 }
 0x458   :  { %2881 = vrot.lane.b32.xlu0 %v2730_v26, %s6052_s25 }
 0x45e   :  { %3179 = vrot.lane.b32.xlu1 %v9342_v18, %s6052_s25 }
 0x460   :  { %2883 = vrot.lane.b32.xlu0 %v2731_v23, %s6052_s25 }
 0x466   :  { %2885 = vrot.lane.b32.xlu1 %v2732_v4, %s6052_s25 }
 0x469   :  { %v1910_v7 = vpop.permute.xlu2 %1909 }
 0x470   :  { %v2099_v63 = vpop.permute.xlu0 %2098 }
 0x471   :  { %v2294_v50 = vsel %vm2234_vm6, %v2229_v31, %v2099_v63  ;;  %v2866_v56 = vpop.permute.xlu2 %2865  ;;  %v2231_v31 = vsel %vm2169_vm5, %v9146_v33, %v1910_v7 }
 0x472   :  { %5739 = vmatmul.msk.f32.gmra.mxu3 %vm2302_vm7, %v2294_v50  ;;  %v9390_v33 = vmax.f32 %v2722_v37, %v2866_v56 }
 0x478   :  { %v1908_v12 = vpop.permute.xlu0 %1907 }
 0x479   :  { %v2230_v38 = vsel %vm2169_vm5, %v9087_v13, %v1908_v12  ;;  %v3349_v13 = vsel %vm3347_vm8, %v9132_v43, %v3158_v19  ;;  %v1912_v12 = vpop.permute.xlu2 %1911 }
 0x480   :  { %v2862_v58 = vpop.permute.xlu0 %2861  ;;  %v2101_v46 = vpop.permute.xlu1 %2100 }
 0x481   :  { %v9365_v41 = vmax.f32 %v2720_v54, %v2862_v58  ;;  %v2295_v29 = vsel %vm2234_vm6, %v2230_v38, %v2101_v46  ;;  %v2593_v46 = vpop.f32.mrf.mxu0  ;;  %v2870_v57 = vpop.permute.xlu2 %2869 }
 0x482   :  { %5740 = vmatmul.msk.f32.gmra.mxu3 %vm2302_vm7, %v2295_v29 }
 0x483   :  { %3181 = vrot.lane.b32.xlu2 %v9365_v41, %s6052_s25 }
 0x488   :  { %v3160_v47 = vpop.permute.xlu0 %3159  ;;  %v3156_v60 = vpop.permute.xlu1 %3155 }
 0x489   :  { %v3348_v1 = vsel %vm3347_vm8, %v9176_v62, %v3156_v60  ;;  %v3350_v43 = vsel %vm3347_vm8, %v9180_v32, %v3160_v47 }
 0x48a   :  { %v3412_v49 = vmax.f32 %v3348_v1, %v3349_v13 }
 0x48c   :  { %v3489_v54 = vrot.slane %v3412_v49, 7  ;;  %v2596_v49 = vpop.f32.mrf.mxu0 }
 0x48e   :  { %v3585_v5 = vsel %vm353_vm0, %v3489_v54, 0.0  ;;  %v3553_v61 = vsel %vm353_vm0, 0.0, %v3489_v54 }
 0x48f   :  { %3649 = vrot.lane.b32.xlu2 %v3553_v61, %s6052_s25  ;;  %v3770_v27 = vrot.slane %v3553_v61, 1  ;;  %v3771_v0 = vrot.slane %v3585_v5, 1  ;;  %v3954_v47 = vrot.slane %v3585_v5, 2  ;;  %v3953_v60 = vrot.slane %v3553_v61, 2 }
 0x490   :  { %v2103_v63 = vpop.permute.xlu0 %2102  ;;  %v3162_v50 = vpop.permute.xlu1 %3161  ;;  %v9406_v61 = vadd.f32 %v8871_v2, %v2596_v49 }
 0x491   :  { %v3351_v62 = vsel %vm3347_vm8, %v9199_v53, %v3162_v50  ;;  %v2296_v19 = vsel %vm2234_vm6, %v2231_v31, %v2103_v63  ;;  %v3772_v38 = vsel %vm799_vm1, %v3770_v27, %v3771_v0  ;;  %v3955_v52 = vsel %vm1178_vm2, %v3953_v60, %v3954_v47 }
 0x492   :  { %v3413_v58 = vmax.f32 %v3350_v43, %v3351_v62  ;;  %5741 = vmatmul.msk.f32.gmra.mxu3 %vm2302_vm7, %v2296_v19  ;;  %3862 = vrot.lane.b32.xlu0 %v3772_v38, %s6043_s26  ;;  %v2232_v31 = vsel %vm2169_vm5, %v9162_v42, %v1912_v12  ;;  %v2734_v42 = vmax.f32 %v9406_v61, 0.0  ;;  %v1914_v12 = vpop.permute.xlu2 %1913 }
 0x494   :  { %v3490_v7 = vrot.slane %v3413_v58, 7  ;;  %v2233_v58 = vsel %vm2169_vm5, %v9202_v17, %v1914_v12  ;;  %vm5242_vm5 = vcmask 392192  }
 0x495   :  { %v2298_v47 = vsel %vm2234_vm6, %v2233_v58, %v8899_v22  ;;  %v9450_v22 = vmax.f32 %v2724_v28, %v2870_v57 }
 0x496   :  { %v3554_v29 = vsel %vm353_vm0, 0.0, %v3490_v7  ;;  %v3586_v13 = vsel %vm353_vm0, %v3490_v7, 0.0 }
 0x497   :  { %3185 = vrot.lane.b32.xlu2 %v9390_v33, %s6052_s25  ;;  %v3957_v37 = vrot.slane %v3586_v13, 2  ;;  %v3956_v56 = vrot.slane %v3554_v29, 2  ;;  %v3773_v54 = vrot.slane %v3554_v29, 1 }
 0x498   :  { %v2864_v32 = vpop.permute.xlu1 %2863 }
 0x499   :  { %v9396_v53 = vmax.f32 %v2721_v44, %v2864_v32  ;;  %v3774_v44 = vrot.slane %v3586_v13, 1  ;;  %v3958_v0 = vsel %vm1178_vm2, %v3956_v56, %v3957_v37 }
 0x49a   :  { %v3164_v1 = vpop.permute.xlu0 %3163  ;;  %3651 = vrot.lane.b32.xlu0 %v3554_v29, %s6052_s25 }
 0x49b   :  { %3183 = vrot.lane.b32.xlu1 %v9396_v53, %s6052_s25  ;;  %v3352_v63 = vsel %vm3347_vm8, %v9224_v35, %v3164_v1  ;;  %v3775_v43 = vsel %vm799_vm1, %v3773_v54, %v3774_v44  ;;  %v2599_v35 = vpop.f32.mrf.mxu0 }
 0x49c   :  { %v9446_v1 = vadd.f32 %v8871_v2, %v2599_v35  ;;  %v3172_v35 = vpop.permute.xlu2 %3171 }
 0x49d   :  { %v3356_v34 = vsel %vm3347_vm8, %v9270_v9, %v3172_v35 }
 0x49e   :  { %v2735_v54 = vmax.f32 %v9446_v1, 0.0 }
 0x49f   :  { %4045 = vrot.lane.b32.xlu2 %v3955_v52, %s6053_s0 }
 0x4a0   :  { %v3166_v5 = vpop.permute.xlu1 %3165 }
 0x4a1   :  { %v3353_v27 = vsel %vm3347_vm8, %v9236_v59, %v3166_v5  ;;  %v9421_v59 = vadd.f32 %v8871_v2, %v2593_v46 }
 0x4a2   :  { %v2105_v50 = vpop.permute.xlu0 %2104  ;;  %4047 = vrot.lane.b32.xlu0 %v3958_v0, %s6053_s0  ;;  %v3414_v62 = vmax.f32 %v3352_v63, %v3353_v27 }
 0x4a3   :  { %v2297_v19 = vsel %vm2234_vm6, %v2232_v31, %v2105_v50  ;;  %3864 = vrot.lane.b32.xlu1 %v3775_v43, %s6043_s26  ;;  %v2733_v32 = vmax.f32 %v9421_v59, 0.0  ;;  %v2602_v37 = vpop.f32.mrf.mxu0  ;;  %vm5247_vm6 = vcmask 654336  }
 0x4a4   :  { %5742 = vmatmul.msk.f32.gmra.mxu3 %vm2302_vm7, %v2297_v19  ;;  %v3491_v38 = vrot.slane %v3414_v62, 7  ;;  %v9460_v52 = vadd.f32 %v8871_v2, %v2602_v37 }
 0x4a6   :  { %v3587_v46 = vsel %vm353_vm0, %v3491_v38, 0.0  ;;  %v3555_v17 = vsel %vm353_vm0, 0.0, %v3491_v38  ;;  %v2736_v27 = vmax.f32 %v9460_v52, 0.0 }
 0x4a7   :  { %2889 = vrot.lane.b32.xlu2 %v2734_v42, %s6052_s25  ;;  %v3776_v10 = vrot.slane %v3555_v17, 1  ;;  %v3960_v44 = vrot.slane %v3587_v46, 2  ;;  %v3959_v28 = vrot.slane %v3555_v17, 2 }
 0x4a8   :  { %v2868_v7 = vpop.permute.xlu1 %2867 }
 0x4a9   :  { %v9432_v29 = vmax.f32 %v2723_v6, %v2868_v7  ;;  %v3777_v6 = vrot.slane %v3587_v46, 1 }
 0x4aa   :  { %v3168_v60 = vpop.permute.xlu0 %3167 }
 0x4ab   :  { %2887 = vrot.lane.b32.xlu1 %v2733_v32, %s6052_s25  ;;  %3187 = vrot.lane.b32.xlu0 %v9432_v29, %s6052_s25  ;;  %v3778_v56 = vsel %vm799_vm1, %v3776_v10, %v3777_v6  ;;  %v3354_v51 = vsel %vm3347_vm8, %v9252_v8, %v3168_v60  ;;  %v2605_v19 = vpop.f32.mrf.mxu0 }
 0x4ac   :  { %5743 = vmatmul.msk.f32.gmra.mxu3 %vm2302_vm7, %v2298_v47  ;;  %vm5252_vm7 = vcmask 916480  }
 0x4af   :  { %3653 = vrot.lane.b32.xlu2 %v3555_v17, %s6052_s25 }
 0x4b0   :  { %v3170_v13 = vpop.permute.xlu1 %3169 }
 0x4b1   :  { %v3355_v49 = vsel %vm3347_vm8, %v9266_v20, %v3170_v13  ;;  %v3961_v20 = vsel %vm1178_vm2, %v3959_v28, %v3960_v44  ;;  %v2878_v13 = vpop.permute.xlu2 %2877 }
 0x4b2   :  { %v3415_v57 = vmax.f32 %v3354_v51, %v3355_v49  ;;  %v2872_v5 = vpop.permute.xlu0 %2871  ;;  %v9517_v51 = vmax.f32 %v2728_v21, %v2878_v13 }
 0x4b3   :  { %3189 = vrot.lane.b32.xlu1 %v9450_v22, %s6052_s25  ;;  %3866 = vrot.lane.b32.xlu0 %v3778_v56, %s6043_s26  ;;  %v9483_v43 = vmax.f32 %v2725_v11, %v2872_v5  ;;  %v2608_v60 = vpop.f32.mrf.mxu0 }
 0x4b4   :  { %v3492_v31 = vrot.slane %v3415_v57, 7  ;;  %v9504_v9 = vadd.f32 %v8871_v2, %v2608_v60 }
 0x4b6   :  { %v3588_v63 = vsel %vm353_vm0, %v3492_v31, 0.0  ;;  %v3556_v50 = vsel %vm353_vm0, 0.0, %v3492_v31  ;;  %v2738_v44 = vmax.f32 %v9504_v9, 0.0 }
 0x4b7   :  { %2891 = vrot.lane.b32.xlu2 %v2735_v54, %s6052_s25  ;;  %v3963_v12 = vrot.slane %v3588_v63, 2  ;;  %v3962_v38 = vrot.slane %v3556_v50, 2  ;;  %v3779_v11 = vrot.slane %v3556_v50, 1  ;;  %v3780_v7 = vrot.slane %v3588_v63, 1 }
 0x4b8   :  { %v2874_v0 = vpop.permute.xlu1 %2873 }
 0x4b9   :  { %v9475_v8 = vmax.f32 %v2726_v30, %v2874_v0  ;;  %v9491_v30 = vadd.f32 %v8871_v2, %v2605_v19  ;;  %v3964_v58 = vsel %vm1178_vm2, %v3962_v38, %v3963_v12  ;;  %v3781_v10 = vsel %vm799_vm1, %v3779_v11, %v3780_v7  ;;  %v2880_v31 = vpop.permute.xlu2 %2879 }
 0x4ba   :  { %v3174_v62 = vpop.permute.xlu0 %3173  ;;  %v9543_v38 = vmax.f32 %v2729_v48, %v2880_v31  ;;  %v12701_v31 = vld [vmem:[#allocation105_spill] sm:$0xff] }
 0x4bb   :  { %4049 = vrot.lane.b32.xlu1 %v3961_v20, %s6053_s0  ;;  %2893 = vrot.lane.b32.xlu0 %v2736_v27, %s6052_s25  ;;  %v3357_v40 = vsel %vm3347_vm8, %v9294_v25, %v3174_v62  ;;  %v2737_v17 = vmax.f32 %v9491_v30, 0.0 }
 0x4bc   :  { %v3416_v46 = vmax.f32 %v3356_v34, %v3357_v40  ;;  %v2611_v40 = vpop.f32.mrf.mxu0 }
 0x4bd   :  { %v9549_v36 = vadd.f32 %v8871_v2, %v2611_v40  ;;  %v9562_v2 = vld [vmem:[%s11893_s2] ss:$0 sm:$0xff] }
 0x4be   :  { %v3493_v25 = vrot.slane %v3416_v46, 7 }
 0x4bf   :  { %3193 = vrot.lane.b32.xlu2 %v9475_v8, %s6052_s25  ;;  %v2739_v24 = vmax.f32 %v9549_v36, 0.0 }
 0x4c0   :  { %v2876_v47 = vpop.permute.xlu1 %2875  ;;  %v3557_v37 = vsel %vm353_vm0, 0.0, %v3493_v25  ;;  %v3589_v56 = vsel %vm353_vm0, %v3493_v25, 0.0  ;;  %v12699_v25 = vld [vmem:[#allocation12_spill] sm:$0xff] }
 0x4c1   :  { %v9508_v6 = vmax.f32 %v2727_v3, %v2876_v47  ;;  %v3782_v57 = vrot.slane %v3557_v37, 1  ;;  %v3783_v45 = vrot.slane %v3589_v56, 1  ;;  %v3965_v5 = vrot.slane %v3557_v37, 2 }
 0x4c2   :  { %v3176_v49 = vpop.permute.xlu0 %3175  ;;  %v3966_v0 = vrot.slane %v3589_v56, 2 }
 0x4c3   :  { %3191 = vrot.lane.b32.xlu1 %v9483_v43, %s6052_s25  ;;  %3655 = vrot.lane.b32.xlu0 %v3556_v50, %s6052_s25  ;;  %v3358_v14 = vsel %vm3347_vm8, %v9314_v16, %v3176_v49  ;;  %v3784_v21 = vsel %vm799_vm1, %v3782_v57, %v3783_v45 }
 0x4c4   :  { %v3967_v50 = vsel %vm1178_vm2, %v3965_v5, %v3966_v0 }
 0x4c7   :  { %4051 = vrot.lane.b32.xlu2 %v3964_v58, %s6053_s0 }
 0x4c8   :  { %v3178_v28 = vpop.permute.xlu1 %3177 }
 0x4c9   :  { %v3359_v3 = vsel %vm3347_vm8, %v9329_v55, %v3178_v28  ;;  %v2614_v55 = vpop.f32.mrf.mxu2  ;;  %v12700_v28 = vld [vmem:[#allocation113_spill] sm:$0xff] }
 0x4ca   :  { %v3417_v20 = vmax.f32 %v3358_v14, %v3359_v3  ;;  %v2882_v63 = vpop.permute.xlu0 %2881  ;;  %v9565_v60 = vadd.f32 %v9562_v2, %v2614_v55 }
 0x4cb   :  { %2895 = vrot.lane.b32.xlu0 %v2737_v17, %s6052_s25  ;;  %3868 = vrot.lane.b32.xlu1 %v3781_v10, %s6043_s26  ;;  %v9535_v19 = vmax.f32 %v2730_v26, %v2882_v63 }
 0x4cc   :  { %v3494_v62 = vrot.slane %v3417_v20, 7 }
 0x4ce   :  { %v3590_v16 = vsel %vm353_vm0, %v3494_v62, 0.0  ;;  %v3558_v12 = vsel %vm353_vm0, 0.0, %v3494_v62 }
 0x4cf   :  { %3195 = vrot.lane.b32.xlu2 %v9508_v6, %s6052_s25  ;;  %v3969_v34 = vrot.slane %v3590_v16, 2  ;;  %v3968_v11 = vrot.slane %v3558_v12, 2  ;;  %v3785_v58 = vrot.slane %v3558_v12, 1  ;;  %v3786_v46 = vrot.slane %v3590_v16, 1 }
 0x4d0   :  { %v3180_v13 = vpop.permute.xlu1 %3179 }
 0x4d1   :  { %v2617_v26 = vpop.f32.mrf.mxu2  ;;  %v3970_v7 = vsel %vm1178_vm2, %v3968_v11, %v3969_v34  ;;  %v3787_v47 = vsel %vm799_vm1, %v3785_v58, %v3786_v46  ;;  %v3360_v0 = vsel %vm3347_vm8, %v9342_v18, %v3180_v13 }
 0x4d2   :  { %v9579_v57 = vadd.f32 %v9562_v2, %v2617_v26 }
 0x4d3   :  { %3197 = vrot.lane.b32.xlu0 %v9517_v51, %s6052_s25  ;;  %2897 = vrot.lane.b32.xlu1 %v2738_v44, %s6052_s25 }
 0x4d4   :  { %v2741_v5 = vmax.f32 %v9579_v57, 0.0 }
 0x4d7   :  { %3870 = vrot.lane.b32.xlu2 %v3784_v21, %s6043_s26 }
 0x4d8   :  { %v2886_v21 = vpop.permute.xlu1 %2885 }
 0x4d9   :  { %v2620_v10 = vpop.f32.mrf.mxu2  ;;  %v9597_v63 = vmax.f32 %v2732_v4, %v2886_v21 }
 0x4da   :  { %v9571_v56 = vadd.f32 %v9562_v2, %v2620_v10 }
 0x4db   :  { %4053 = vrot.lane.b32.xlu0 %v3967_v50, %s6053_s0  ;;  %3657 = vrot.lane.b32.xlu1 %v3557_v37, %s6052_s25  ;;  %v2740_v37 = vmax.f32 %v9565_v60, 0.0 }
 0x4dc   :  { %v2742_v45 = vmax.f32 %v9571_v56, 0.0 }
 0x4dd   :  { %v3182_v35 = vpop.permute.xlu2 %3181 }
 0x4de   :  { %v3361_v3 = vsel %vm3347_vm8, %v9365_v41, %v3182_v35  ;;  %v2884_v41 = vpop.permute.xlu0 %2883 }
 0x4df   :  { %3201 = vrot.lane.b32.xlu2 %v9535_v19, %s6052_s25  ;;  %v3418_v20 = vmax.f32 %v3360_v0, %v3361_v3  ;;  %v9603_v18 = vmax.f32 %v2731_v23, %v2884_v41 }
 0x4e1   :  { %v3495_v50 = vrot.slane %v3418_v20, 7  ;;  %v2623_v55 = vpop.f32.mrf.mxu2 }
 0x4e2   :  { %v9617_v11 = vadd.f32 %v9562_v2, %v2623_v55 }
 0x4e3   :  { %3199 = vrot.lane.b32.xlu1 %v9543_v38, %s6052_s25  ;;  %3659 = vrot.lane.b32.xlu0 %v3558_v12, %s6052_s25  ;;  %v3591_v16 = vsel %vm353_vm0, %v3495_v50, 0.0  ;;  %v3559_v12 = vsel %vm353_vm0, 0.0, %v3495_v50 }
 0x4e4   :  { %v3972_v4 = vrot.slane %v3591_v16, 2  ;;  %v3788_v40 = vrot.slane %v3559_v12, 1  ;;  %v3971_v15 = vrot.slane %v3559_v12, 2  ;;  %v3789_v34 = vrot.slane %v3591_v16, 1 }
 0x4e6   :  { %v3790_v46 = vsel %vm799_vm1, %v3788_v40, %v3789_v34 }
 0x4e7   :  { %4055 = vrot.lane.b32.xlu2 %v3970_v7, %s6053_s0  ;;  %v3973_v7 = vsel %vm1178_vm2, %v3971_v15, %v3972_v4 }
 0x4e9   :  { %v3650_v48 = vpop.permute.xlu2 %3649  ;;  %v2626_v58 = vpop.f32.mrf.mxu2 }
 0x4ea   :  { %v9625_v10 = vadd.f32 %v9562_v2, %v2626_v58 }
 0x4eb   :  { %2899 = vrot.lane.b32.xlu0 %v2739_v24, %s6052_s25  ;;  %3872 = vrot.lane.b32.xlu1 %v3787_v47, %s6043_s26  ;;  %v2743_v47 = vmax.f32 %v9617_v11, 0.0 }
 0x4ef   :  { %3647 = vrot.lane.b32.xlu2 %v12699_v25, %s6052_s25 }
 0x4f1   :  { %v3186_v49 = vpop.permute.xlu2 %3185 }
 0x4f2   :  { %v3363_v3 = vsel %vm3347_vm8, %v9390_v33, %v3186_v49  ;;  %v2629_v49 = vpop.f32.mrf.mxu2 }
 0x4f3   :  { %3860 = vrot.lane.b32.xlu0 %v12700_v28, %s6043_s26  ;;  %2901 = vrot.lane.b32.xlu1 %v2740_v37, %s6052_s25  ;;  %v2744_v28 = vmax.f32 %v9625_v10, 0.0  ;;  %v9664_v4 = vadd.f32 %v9562_v2, %v2629_v49 }
 0x4f7   :  { %2905 = vrot.lane.b32.xlu2 %v2742_v45, %s6052_s25 }
 0x4f9   :  { %v4046_v14 = vpop.permute.xlu2 %4045 }
 0x4fa   :  { %v2632_v40 = vpop.f32.mrf.mxu2 }
 0x4fb   :  { %4043 = vrot.lane.b32.xlu0 %v12701_v31, %s6053_s0  ;;  %2903 = vrot.lane.b32.xlu1 %v2741_v5, %s6052_s25  ;;  %v9672_v58 = vadd.f32 %v9562_v2, %v2632_v40 }
 0x4ff   :  { %3205 = vrot.lane.b32.xlu2 %v9597_v63, %s6052_s25 }
 0x501   :  { %v2890_v62 = vpop.permute.xlu2 %2889 }
 0x502   :  { %v9640_v20 = vmax.f32 %v2734_v42, %v2890_v62 }
 0x503   :  { %3203 = vrot.lane.b32.xlu1 %v9603_v18, %s6052_s25  ;;  %3661 = vrot.lane.b32.xlu0 %v3559_v12, %s6052_s25 }
 0x504   :  { %v3863_v39 = vpop.permute.xlu0 %3862 }
 0x505   :  { %v4137_v35 = vsel %vm3347_vm8, %v3650_v48, %v3863_v39 }
 0x506   :  { %v9612_v23 = vsel %vm4167_vm9, %v4137_v35, %v4046_v14 }
 0x507   :  { %4269 = vrot.lane.b32.xlu2 %v9612_v23, %s6054_s30 }
 0x509   :  { %v3654_v26 = vpop.permute.xlu2 %3653 }
 0x50b   :  { %4057 = vrot.lane.b32.xlu0 %v3973_v7, %s6053_s0  ;;  %3874 = vrot.lane.b32.xlu1 %v3790_v46, %s6043_s26 }
 0x50c   :  { %v3652_v48 = vpop.permute.xlu0 %3651 }
 0x50d   :  { %v3184_v25 = vpop.permute.xlu1 %3183 }
 0x50e   :  { %v3362_v13 = vsel %vm3347_vm8, %v9396_v53, %v3184_v25 }
 0x50f   :  { %2907 = vrot.lane.b32.xlu2 %v2743_v47, %s6052_s25  ;;  %v3419_v14 = vmax.f32 %v3362_v13, %v3363_v3  ;;  %v2746_v13 = vmax.f32 %v9672_v58, 0.0 }
 0x511   :  { %v2892_v0 = vpop.permute.xlu2 %2891  ;;  %v3496_v31 = vrot.slane %v3419_v14, 7 }
 0x513   :  { %2909 = vrot.lane.b32.xlu0 %v2744_v28, %s6052_s25  ;;  %v3560_v61 = vsel %vm353_vm0, 0.0, %v3496_v31  ;;  %v3592_v42 = vsel %vm353_vm0, %v3496_v31, 0.0 }
 0x514   :  { %v4048_v21 = vpop.permute.xlu0 %4047  ;;  %v3975_v16 = vrot.slane %v3592_v42, 2  ;;  %v3974_v12 = vrot.slane %v3560_v61, 2  ;;  %v3791_v34 = vrot.slane %v3560_v61, 1  ;;  %v3792_v59 = vrot.slane %v3592_v42, 1 }
 0x515   :  { %v3865_v53 = vpop.permute.xlu1 %3864 }
 0x516   :  { %v4138_v41 = vsel %vm3347_vm8, %v3652_v48, %v3865_v53  ;;  %v3976_v15 = vsel %vm1178_vm2, %v3974_v12, %v3975_v16  ;;  %v3793_v25 = vsel %vm799_vm1, %v3791_v34, %v3792_v59 }
 0x517   :  { %3209 = vrot.lane.b32.xlu2 %v9640_v20, %s6052_s25  ;;  %v9646_v33 = vsel %vm4167_vm9, %v4138_v41, %v4048_v21 }
 0x518   :  { %4366 = vrot.lane.b32.xlu1 %v9646_v33, %s6055_s12 }
 0x519   :  { %v9650_v50 = vpop.permute.xlu2 %3193 }
 0x51b   :  { %3663 = vrot.lane.b32.xlu0 %v3560_v61, %s6052_s25 }
 0x51d   :  { %v3188_v62 = vpop.permute.xlu0 %3187  ;;  %v2888_v55 = vpop.permute.xlu1 %2887 }
 0x51e   :  { %v9657_v39 = vmax.f32 %v2733_v32, %v2888_v55  ;;  %v2745_v32 = vmax.f32 %v9664_v4, 0.0  ;;  %v3364_v3 = vsel %vm3347_vm8, %v9432_v29, %v3188_v62  ;;  %v2635_v29 = vpop.f32.mrf.mxu2  ;;  %v9708_v55 = vmax.f32 %v2735_v54, %v2892_v0 }
 0x51f   :  { %4271 = vrot.lane.b32.xlu2 %v9646_v33, %s6054_s30 }
 0x520   :  { %3207 = vrot.lane.b32.xlu1 %v9657_v39, %s6052_s25 }
 0x521   :  { %v9666_v35 = vpop.permute.xlu2 %4051 }
 0x523   :  { %4059 = vrot.lane.b32.xlu0 %v3976_v15, %s6053_s0  ;;  %v9717_v15 = vadd.f32 %v9562_v2, %v2635_v29 }
 0x525   :  { %v3867_v7 = vpop.permute.xlu0 %3866  ;;  %v3190_v46 = vpop.permute.xlu1 %3189 }
 0x526   :  { %v3365_v48 = vsel %vm3347_vm8, %v9450_v22, %v3190_v46  ;;  %v4139_v22 = vsel %vm3347_vm8, %v3654_v26, %v3867_v7  ;;  %v2638_v34 = vpop.f32.mrf.mxu2 }
 0x527   :  { %2911 = vrot.lane.b32.xlu2 %v2745_v32, %s6052_s25  ;;  %v3420_v21 = vmax.f32 %v3364_v3, %v3365_v48  ;;  %v9722_v54 = vadd.f32 %v9562_v2, %v2638_v34  ;;  %v2747_v48 = vmax.f32 %v9717_v15, 0.0 }
 0x528   :  { %3876 = vrot.lane.b32.xlu1 %v3793_v25, %s6043_s26 }
 0x529   :  { %v9684_v14 = vpop.permute.xlu2 %3195  ;;  %v3497_v41 = vrot.slane %v3420_v21, 7  ;;  %v2748_v21 = vmax.f32 %v9722_v54, 0.0 }
 0x52b   :  { %2913 = vrot.lane.b32.xlu0 %v2746_v13, %s6052_s25  ;;  %v3561_v26 = vsel %vm353_vm0, 0.0, %v3497_v41  ;;  %v3593_v62 = vsel %vm353_vm0, %v3497_v41, 0.0 }
 0x52c   :  { %v3978_v16 = vrot.slane %v3593_v62, 2  ;;  %v3977_v12 = vrot.slane %v3561_v26, 2  ;;  %v3794_v7 = vrot.slane %v3561_v26, 1  ;;  %v3795_v1 = vrot.slane %v3593_v62, 1 }
 0x52d   :  { %v2894_v53 = vpop.permute.xlu0 %2893  ;;  %v4050_v31 = vpop.permute.xlu1 %4049 }
 0x52e   :  { %v9692_v49 = vmax.f32 %v2736_v27, %v2894_v53  ;;  %v9695_v61 = vsel %vm4167_vm9, %v4139_v22, %v4050_v31  ;;  %v3979_v59 = vsel %vm1178_vm2, %v3977_v12, %v3978_v16  ;;  %v3796_v3 = vsel %vm799_vm1, %v3794_v7, %v3795_v1 }
 0x52f   :  { %v3367_v22 = vsel %vm3347_vm8, %v9475_v8, %v9650_v50  ;;  %v2641_v8 = vpop.f32.mrf.mxu2  ;;  %v3368_v7 = vsel %vm3347_vm8, %v9508_v6, %v9684_v14  ;;  %v3455_v6 = vld [vmem:[#allocation5 + $0x58] sm:$0xff] }
 0x530   :  { %3213 = vrot.lane.b32.xlu2 %v9692_v49, %s6052_s25  ;;  %4368 = vrot.lane.b32.xlu1 %v9695_v61, %s6055_s12 }
 0x531   :  { %v9701_v42 = vpop.permute.xlu2 %3870  ;;  %4629 = vmatpush.msra.mxu1 %v3455_v6 }
 0x533   :  { %3665 = vrot.lane.b32.xlu0 %v3561_v26, %s6052_s25 }
 0x535   :  { %v3656_v52 = vpop.permute.xlu0 %3655  ;;  %v3192_v27 = vpop.permute.xlu1 %3191 }
 0x536   :  { %v3366_v25 = vsel %vm3347_vm8, %v9483_v43, %v3192_v27 }
 0x537   :  { %v3421_v31 = vmax.f32 %v3366_v25, %v3367_v22  ;;  %v2644_v30 = vpop.f32.mrf.mxu2 }
 0x538   :  { %4273 = vrot.lane.b32.xlu2 %v9695_v61, %s6054_s30  ;;  %3211 = vrot.lane.b32.xlu1 %v9708_v55, %s6052_s25 }
 0x539   :  { %v9714_v40 = vpop.permute.xlu2 %3201  ;;  %v3498_v26 = vrot.slane %v3421_v31, 7 }
 0x53b   :  { %4061 = vrot.lane.b32.xlu0 %v3979_v59, %s6053_s0  ;;  %v3594_v16 = vsel %vm353_vm0, %v3498_v26, 0.0 }
 0x53c   :  { %v3981_v12 = vrot.slane %v3594_v16, 2  ;;  %v3798_v25 = vrot.slane %v3594_v16, 1 }
 0x53d   :  { %v2896_v0 = vpop.permute.xlu0 %2895  ;;  %v3869_v46 = vpop.permute.xlu1 %3868 }
 0x53e   :  { %v4140_v43 = vsel %vm3347_vm8, %v3656_v52, %v3869_v46  ;;  %v3562_v52 = vsel %vm353_vm0, 0.0, %v3498_v26  ;;  %v9763_v34 = vmax.f32 %v2737_v17, %v2896_v0  ;;  %v9775_v46 = vadd.f32 %v9562_v2, %v2641_v8  ;;  %v3454_v8 = vld [vmem:[#allocation5 + $0x50] sm:$0xff] }
 0x53f   :  { %v9748_v27 = vsel %vm4167_vm9, %v4140_v43, %v9666_v35  ;;  %v3980_v59 = vrot.slane %v3562_v52, 2  ;;  %v3797_v0 = vrot.slane %v3562_v52, 1  ;;  %4630 = vmatpush.msra.mxu1 %v3454_v8 }
 0x540   :  { %2915 = vrot.lane.b32.xlu2 %v2747_v48, %s6052_s25  ;;  %3878 = vrot.lane.b32.xlu1 %v3796_v3, %s6043_s26  ;;  %v9780_v3 = vadd.f32 %v9562_v2, %v2644_v30  ;;  %v12123_v43 = vmax.f32 %v9775_v46, 0.0  ;;  %v3451_v30 = vld [vmem:[#allocation5 + $0x38] sm:$0xff] }
 0x541   :  { %v9736_v53 = vpop.permute.xlu2 %4055  ;;  %v3982_v17 = vsel %vm1178_vm2, %v3980_v59, %v3981_v12 }
 0x543   :  { %2917 = vrot.lane.b32.xlu0 %v2748_v21, %s6052_s25 }
 0x545   :  { %v3198_v41 = vpop.permute.xlu0 %3197  ;;  %v2898_v29 = vpop.permute.xlu1 %2897 }
 0x546   :  { %v9744_v62 = vmax.f32 %v2738_v44, %v2898_v29  ;;  %v3369_v9 = vsel %vm3347_vm8, %v9517_v51, %v3198_v41  ;;  %v3799_v41 = vsel %vm799_vm1, %v3797_v0, %v3798_v25  ;;  %v3450_v25 = vld [vmem:[#allocation5 + $0x30] sm:$0xff] }
 0x547   :  { %v3422_v1 = vmax.f32 %v3368_v7, %v3369_v9  ;;  %v3453_v9 = vld [vmem:[#allocation5 + $0x48] sm:$0xff] }
 0x548   :  { %4370 = vrot.lane.b32.xlu1 %v9748_v27, %s6055_s12  ;;  %3217 = vrot.lane.b32.xlu2 %v9744_v62, %s6052_s25 }
 0x549   :  { %v9754_v50 = vpop.permute.xlu2 %3647  ;;  %v3499_v14 = vrot.slane %v3422_v1, 7  ;;  %4631 = vmatpush.msra.mxu1 %v3453_v9  ;;  %v3452_v1 = vld [vmem:[#allocation5 + $0x40] sm:$0xff] }
 0x54b   :  { %3667 = vrot.lane.b32.xlu0 %v3562_v52, %s6052_s25  ;;  %v3563_v29 = vsel %vm353_vm0, 0.0, %v3499_v14  ;;  %v3595_v26 = vsel %vm353_vm0, %v3499_v14, 0.0  ;;  %v2750_v52 = vmax.f32 %v9780_v3, 0.0  ;;  %4632 = vmatpush.msra.mxu1 %v3452_v1  ;;  %v3446_v1 = vld [vmem:[#allocation5 + $0x10] sm:$0xff] }
 0x54c   :  { %v3800_v12 = vrot.slane %v3563_v29, 1  ;;  %v3801_v59 = vrot.slane %v3595_v26, 1 }
 0x54d   :  { %v4054_v44 = vpop.permute.xlu0 %4053  ;;  %v3658_v35 = vpop.permute.xlu1 %3657  ;;  %4633 = vmatpush.msra.mxu1 %v3451_v30 }
 0x54e   :  { %v4141_v7 = vsel %vm3347_vm8, %v3658_v35, %v9701_v42  ;;  %v3802_v6 = vsel %vm799_vm1, %v3800_v12, %v3801_v59  ;;  %v2647_v42 = vpop.f32.mrf.mxu2  ;;  %v3448_v35 = vld [vmem:[#allocation5 + $0x20] sm:$0xff] }
 0x54f   :  { %v9800_v14 = vsel %vm4167_vm9, %v4141_v7, %v4054_v44  ;;  %4634 = vmatpush.msra.mxu1 %v3450_v25  ;;  %v3447_v44 = vld [vmem:[#allocation5 + $0x18] sm:$0xff]  ;;  %v9811_v12 = vadd.f32 %v9562_v2, %v2647_v42  ;;  %v3445_v25 = vld [vmem:[#allocation5 + $0x8] sm:$0xff] }
 0x550   :  { %3215 = vrot.lane.b32.xlu1 %v9763_v34, %s6052_s25  ;;  %4275 = vrot.lane.b32.xlu2 %v9748_v27, %s6054_s30 }
 0x551   :  { %v9772_v51 = vpop.permute.xlu2 %2905 }
 0x553   :  { %4063 = vrot.lane.b32.xlu0 %v3982_v17, %s6053_s0 }
 0x555   :  { %v3660_v22 = vpop.permute.xlu0 %3659  ;;  %v3200_v31 = vpop.permute.xlu1 %3199 }
 0x558   :  { %3880 = vrot.lane.b32.xlu1 %v3799_v41, %s6043_s26  ;;  %2919 = vrot.lane.b32.xlu2 %v12123_v43, %s6052_s25  ;;  %v3449_v41 = vld [vmem:[#allocation5 + $0x28] sm:$0xff]  ;;  %v3370_v43 = vsel %vm3347_vm8, %v9543_v38, %v3200_v31 }
 0x559   :  { %v9791_v16 = vpop.permute.xlu2 %3205  ;;  %4635 = vmatpush.msra.mxu1 %v3449_v41  ;;  %v3984_v41 = vrot.slane %v3595_v26, 2  ;;  %v3371_v26 = vsel %vm3347_vm8, %v9535_v19, %v9714_v40  ;;  %v9854_v19 = vmax.f32 %v2742_v45, %v9772_v51 }
 0x55a   :  { %v3423_v38 = vmax.f32 %v3370_v43, %v3371_v26  ;;  %v2653_v43 = vpop.f32.mrf.mxu3 }
 0x55b   :  { %2921 = vrot.lane.b32.xlu0 %v2750_v52, %s6052_s25  ;;  %4636 = vmatpush.msra.mxu1 %v3448_v35 }
 0x55c   :  { %v3500_v60 = vrot.slane %v3423_v38, 7 }
 0x55d   :  { %v2900_v17 = vpop.permute.xlu0 %2899  ;;  %v3873_v0 = vpop.permute.xlu1 %3872  ;;  %4637 = vmatpush.msra.mxu1 %v3447_v44 }
 0x55e   :  { %v4142_v9 = vsel %vm3347_vm8, %v3660_v22, %v3873_v0  ;;  %v12124_v22 = vmax.f32 %v9811_v12, 0.0  ;;  %v9828_v35 = vmax.f32 %v2739_v24, %v2900_v17  ;;  %v2650_v44 = vpop.f32.mrf.mxu2 }
 0x55f   :  { %v9815_v30 = vsel %vm4167_vm9, %v4142_v9, %v9736_v53  ;;  %4638 = vmatpush.msra.mxu1 %v3446_v1  ;;  %v3444_v53 = vld [vmem:[#allocation5] sm:$0xff]  ;;  %v9846_v17 = vadd.f32 %v9562_v2, %v2650_v44 }
 0x560   :  { %3882 = vrot.lane.b32.xlu2 %v3802_v6, %s6043_s26  ;;  %4372 = vrot.lane.b32.xlu1 %v9800_v14, %s6055_s12  ;;  %v3983_v6 = vrot.slane %v3563_v29, 2 }
 0x561   :  { %v9805_v8 = vpop.permute.xlu2 %4269  ;;  %4639 = vmatpush.msra.mxu1 %v3445_v25  ;;  %v12125_v1 = vmax.f32 %v9846_v17, 0.0  ;;  %v3596_v25 = vsel %vm353_vm0, %v3500_v60, 0.0 }
 0x562   :  { %v3987_v45 = vrot.slane %v3596_v25, 2  ;;  %v2656_v44 = vpop.f32.mrf.mxu3  ;;  %v3804_v57 = vrot.slane %v3596_v25, 1 }
 0x563   :  { %4277 = vrot.lane.b32.xlu0 %v9800_v14, %s6054_s30  ;;  %4640 = vmatpush.msra.mxu1 %v3444_v53  ;;  %v9877_v53 = vadd.f32 %v9562_v2, %v2653_v43 }
 0x565   :  { %v3861_v59 = vpop.permute.xlu0 %3860  ;;  %v2902_v7 = vpop.permute.xlu1 %2901 }
 0x566   :  { %v9841_v36 = vmax.f32 %v2740_v37, %v2902_v7  ;;  %v3564_v7 = vsel %vm353_vm0, 0.0, %v3500_v60  ;;  %v2753_v60 = vmax.f32 %v9877_v53, 0.0 }
 0x567   :  { %v3803_v38 = vrot.slane %v3564_v7, 1 }
 0x568   :  { %3669 = vrot.lane.b32.xlu1 %v3563_v29, %s6052_s25  ;;  %4374 = vrot.lane.b32.xlu2 %v9815_v30, %s6055_s12  ;;  %v3985_v29 = vsel %vm1178_vm2, %v3983_v6, %v3984_v41  ;;  %v3986_v6 = vrot.slane %v3564_v7, 2 }
 0x569   :  { %v9821_v0 = vpop.permute.xlu2 %2907 }
 0x56a   :  { %v3988_v26 = vsel %vm1178_vm2, %v3986_v6, %v3987_v45  ;;  %v2659_v6 = vpop.f32.mrf.mxu3 }
 0x56b   :  { %2923 = vrot.lane.b32.xlu0 %v12124_v22, %s6052_s25  ;;  %v4136_v22 = vsel %vm3347_vm8, %v9754_v50, %v3861_v59  ;;  %v3373_v50 = vsel %vm3347_vm8, %v9597_v63, %v9791_v16 }
 0x56d   :  { %v4044_v42 = vpop.permute.xlu0 %4043  ;;  %v2904_v9 = vpop.permute.xlu1 %2903 }
 0x56e   :  { %v9868_v51 = vmax.f32 %v2741_v5, %v2904_v9  ;;  %v9882_v5 = vadd.f32 %v9562_v2, %v2656_v44  ;;  %v9888_v43 = vsel %vm4167_vm9, %v4136_v22, %v4044_v42 }
 0x56f   :  { %v4460_v42 = vsel %vm4459_vm10, %v9888_v43, %v9805_v8 }
 0x570   :  { %4065 = vrot.lane.b32.xlu1 %v3985_v29, %s6053_s0  ;;  %3219 = vrot.lane.b32.xlu2 %v9828_v35, %s6052_s25  ;;  %v2754_v25 = vmax.f32 %v9882_v5, 0.0 }
 0x571   :  { %v9843_v24 = vpop.permute.xlu2 %3209 }
 0x573   :  { %3221 = vrot.lane.b32.xlu0 %v9841_v36, %s6052_s25 }
 0x575   :  { %v3662_v31 = vpop.permute.xlu0 %3661  ;;  %v3204_v37 = vpop.permute.xlu1 %3203 }
 0x578   :  { %2925 = vrot.lane.b32.xlu1 %v12125_v1, %s6052_s25  ;;  %3225 = vrot.lane.b32.xlu2 %v9854_v19, %s6052_s25  ;;  %v3372_v1 = vsel %vm3347_vm8, %v9603_v18, %v3204_v37 }
 0x579   :  { %v9861_v40 = vpop.permute.xlu2 %4271  ;;  %v3424_v59 = vmax.f32 %v3372_v1, %v3373_v50 }
 0x57b   :  { %3671 = vrot.lane.b32.xlu0 %v3564_v7, %s6052_s25  ;;  %v3805_v7 = vsel %vm799_vm1, %v3803_v38, %v3804_v57  ;;  %v3501_v16 = vrot.slane %v3424_v59, 7  ;;  %v2662_v57 = vpop.f32.mrf.mxu3 }
 0x57d   :  { %v4058_v56 = vpop.permute.xlu0 %4057  ;;  %v3875_v29 = vpop.permute.xlu1 %3874 }
 0x57e   :  { %v4143_v45 = vsel %vm3347_vm8, %v3662_v31, %v3875_v29  ;;  %v3565_v29 = vsel %vm353_vm0, 0.0, %v3501_v16 }
 0x57f   :  { %v9917_v44 = vsel %vm4167_vm9, %v4143_v45, %v4058_v56  ;;  %v3989_v38 = vrot.slane %v3565_v29, 2  ;;  %v3806_v11 = vrot.slane %v3565_v29, 1 }
 0x580   :  { %4279 = vrot.lane.b32.xlu2 %v9815_v30, %s6054_s30  ;;  %3223 = vrot.lane.b32.xlu1 %v9868_v51, %s6052_s25 }
 0x581   :  { %v9874_v41 = vpop.permute.xlu2 %2911 }
 0x583   :  { %4067 = vrot.lane.b32.xlu0 %v3988_v26, %s6053_s0  ;;  %v3597_v26 = vsel %vm353_vm0, %v3501_v16, 0.0 }
 0x584   :  { %v3990_v56 = vrot.slane %v3597_v26, 2 }
 0x585   :  { %v2910_v9 = vpop.permute.xlu0 %2909 }
 0x586   :  { %v9914_v1 = vmax.f32 %v2744_v28, %v2910_v9  ;;  %v9931_v28 = vmax.f32 %v2743_v47, %v9821_v0  ;;  %v9938_v9 = vadd.f32 %v9562_v2, %v2659_v6  ;;  %v3991_v59 = vsel %vm1178_vm2, %v3989_v38, %v3990_v56 }
 0x587   :  { %v3807_v47 = vrot.slane %v3597_v26, 1  ;;  %v9945_v0 = vadd.f32 %v9562_v2, %v2662_v57  ;;  %v3375_v6 = vsel %vm3347_vm8, %v9640_v20, %v9843_v24 }
 0x588   :  { %2927 = vrot.lane.b32.xlu2 %v2753_v60, %s6052_s25  ;;  %3884 = vrot.lane.b32.xlu1 %v3805_v7, %s6043_s26 }
 0x589   :  { %v3808_v45 = vsel %vm799_vm1, %v3806_v11, %v3807_v47  ;;  %v2756_v16 = vmax.f32 %v9945_v0, 0.0 }
 0x58a   :  { %v9901_v22 = vpop.permute.xlu2 %3213  ;;  %v4367_v18 = vpop.permute.xlu1 %4366 }
 0x58b   :  { %2929 = vrot.lane.b32.xlu0 %v2754_v25, %s6052_s25  ;;  %v4493_v37 = vsel %vm4492_vm11, %v4460_v42, %v4367_v18  ;;  %v2755_v42 = vmax.f32 %v9938_v9, 0.0 }
 0x58c   :  { %5744 = vmatmul.msk.f32.vlgmr.msra.gmra.mxu1 %vm4528_vm12, %v4493_v37 }
 0x58d   :  { %v3664_v63 = vpop.permute.xlu0 %3663 }
 0x590   :  { %3229 = vrot.lane.b32.xlu2 %v9914_v1, %s6052_s25  ;;  %4376 = vrot.lane.b32.xlu1 %v9917_v44, %s6055_s12 }
 0x592   :  { %v9923_v8 = vpop.permute.xlu2 %4273  ;;  %v3208_v31 = vpop.permute.xlu1 %3207 }
 0x593   :  { %3673 = vrot.lane.b32.xlu0 %v3565_v29, %s6052_s25  ;;  %v3374_v37 = vsel %vm3347_vm8, %v9657_v39, %v3208_v31  ;;  %v4461_v29 = vsel %vm4459_vm10, %v9612_v23, %v9861_v40  ;;  %v2665_v23 = vpop.f32.mrf.mxu3 }
 0x594   :  { %v3425_v26 = vmax.f32 %v3374_v37, %v3375_v6  ;;  %v9996_v37 = vadd.f32 %v9562_v2, %v2665_v23  ;;  %v3377_v23 = vsel %vm3347_vm8, %v9692_v49, %v9901_v22 }
 0x595   :  { %v4060_v10 = vpop.permute.xlu0 %4059 }
 0x596   :  { %v3502_v20 = vrot.slane %v3425_v26, 7 }
 0x598   :  { %4281 = vrot.lane.b32.xlu2 %v9917_v44, %s6054_s30  ;;  %3227 = vrot.lane.b32.xlu1 %v9931_v28, %s6052_s25  ;;  %v3598_v11 = vsel %vm353_vm0, %v3502_v20, 0.0 }
 0x59a   :  { %v9940_v7 = vpop.permute.xlu2 %2915  ;;  %v3877_v50 = vpop.permute.xlu1 %3876 }
 0x59b   :  { %4069 = vrot.lane.b32.xlu0 %v3991_v59, %s6053_s0  ;;  %v4144_v38 = vsel %vm3347_vm8, %v3664_v63, %v3877_v50  ;;  %v3566_v50 = vsel %vm353_vm0, 0.0, %v3502_v20 }
 0x59c   :  { %v9975_v40 = vsel %vm4167_vm9, %v4144_v38, %v4060_v10  ;;  %v3993_v10 = vrot.slane %v3598_v11, 2  ;;  %v3992_v47 = vrot.slane %v3566_v50, 2  ;;  %v3809_v4 = vrot.slane %v3566_v50, 1 }
 0x59d   :  { %v2914_v18 = vpop.permute.xlu0 %2913 }
 0x59e   :  { %v9972_v24 = vmax.f32 %v2746_v13, %v2914_v18  ;;  %v9989_v13 = vmax.f32 %v2745_v32, %v9874_v41  ;;  %v2668_v18 = vpop.f32.mrf.mxu3  ;;  %v3810_v32 = vrot.slane %v3598_v11, 1 }
 0x59f   :  { %v10003_v41 = vadd.f32 %v9562_v2, %v2668_v18 }
 0x5a0   :  { %2931 = vrot.lane.b32.xlu2 %v2755_v42, %s6052_s25  ;;  %3886 = vrot.lane.b32.xlu1 %v3808_v45, %s6043_s26  ;;  %v3811_v38 = vsel %vm799_vm1, %v3809_v4, %v3810_v32 }
 0x5a1   :  { %v2758_v20 = vmax.f32 %v10003_v41, 0.0 }
 0x5a2   :  { %v9962_v39 = vpop.permute.xlu2 %3217  ;;  %v4369_v31 = vpop.permute.xlu1 %4368 }
 0x5a3   :  { %2933 = vrot.lane.b32.xlu0 %v2756_v16, %s6052_s25  ;;  %v4494_v56 = vsel %vm4492_vm11, %v4461_v29, %v4369_v31  ;;  %v3994_v29 = vsel %vm1178_vm2, %v3992_v47, %v3993_v10  ;;  %v2757_v31 = vmax.f32 %v9996_v37, 0.0 }
 0x5a4   :  { %5745 = vmatmul.msk.f32.gmra.mxu1 %vm4528_vm12, %v4494_v56 }
 0x5a5   :  { %v3666_v57 = vpop.permute.xlu0 %3665 }
 0x5a8   :  { %3233 = vrot.lane.b32.xlu2 %v9972_v24, %s6052_s25  ;;  %4378 = vrot.lane.b32.xlu1 %v9975_v40, %s6055_s12 }
 0x5aa   :  { %v9981_v59 = vpop.permute.xlu2 %4275  ;;  %v3212_v63 = vpop.permute.xlu1 %3211 }
 0x5ab   :  { %3675 = vrot.lane.b32.xlu0 %v3566_v50, %s6052_s25  ;;  %v3376_v56 = vsel %vm3347_vm8, %v9708_v55, %v3212_v63  ;;  %v4462_v50 = vsel %vm4459_vm10, %v9646_v33, %v9923_v8  ;;  %v2671_v8 = vpop.f32.mrf.mxu3 }
 0x5ac   :  { %v3426_v11 = vmax.f32 %v3376_v56, %v3377_v23  ;;  %v10052_v56 = vadd.f32 %v9562_v2, %v2671_v8  ;;  %v3379_v8 = vsel %vm3347_vm8, %v9744_v62, %v9962_v39 }
 0x5ad   :  { %v4062_v58 = vpop.permute.xlu0 %4061 }
 0x5ae   :  { %v3503_v49 = vrot.slane %v3426_v11, 7 }
 0x5b0   :  { %4283 = vrot.lane.b32.xlu2 %v9975_v40, %s6054_s30  ;;  %3231 = vrot.lane.b32.xlu1 %v9989_v13, %s6052_s25  ;;  %v3599_v4 = vsel %vm353_vm0, %v3503_v49, 0.0 }
 0x5b2   :  { %v9998_v45 = vpop.permute.xlu2 %2919  ;;  %v3879_v6 = vpop.permute.xlu1 %3878 }
 0x5b3   :  { %4071 = vrot.lane.b32.xlu0 %v3994_v29, %s6053_s0  ;;  %v4145_v47 = vsel %vm3347_vm8, %v3666_v57, %v3879_v6  ;;  %v3567_v6 = vsel %vm353_vm0, 0.0, %v3503_v49 }
 0x5b4   :  { %v10033_v33 = vsel %vm4167_vm9, %v4145_v47, %v4062_v58  ;;  %v3996_v58 = vrot.slane %v3599_v4, 2  ;;  %v3995_v32 = vrot.slane %v3567_v6, 2  ;;  %v3812_v15 = vrot.slane %v3567_v6, 1 }
 0x5b5   :  { %v2918_v26 = vpop.permute.xlu0 %2917 }
 0x5b6   :  { %v10030_v22 = vmax.f32 %v2748_v21, %v2918_v26  ;;  %v10045_v21 = vmax.f32 %v2747_v48, %v9940_v7  ;;  %v2674_v26 = vpop.f32.mrf.mxu3  ;;  %v3813_v48 = vrot.slane %v3599_v4, 1 }
 0x5b7   :  { %v10059_v7 = vadd.f32 %v9562_v2, %v2674_v26 }
 0x5b8   :  { %2935 = vrot.lane.b32.xlu2 %v2757_v31, %s6052_s25  ;;  %3888 = vrot.lane.b32.xlu1 %v3811_v38, %s6043_s26  ;;  %v3814_v47 = vsel %vm799_vm1, %v3812_v15, %v3813_v48  ;;  %v12702_v15 = vmax.f32 %v9775_v46, 0.0 }
 0x5b9   :  { %v2760_v49 = vmax.f32 %v10059_v7, 0.0 }
 0x5ba   :  { %v10020_v55 = vpop.permute.xlu2 %3882  ;;  %v4371_v63 = vpop.permute.xlu1 %4370  ;;  %v10107_v48 = vmax.f32 %v12702_v15, %v9998_v45 }
 0x5bb   :  { %2937 = vrot.lane.b32.xlu0 %v2758_v20, %s6052_s25  ;;  %v4495_v10 = vsel %vm4492_vm11, %v4462_v50, %v4371_v63  ;;  %v3997_v50 = vsel %vm1178_vm2, %v3995_v32, %v3996_v58  ;;  %v2759_v63 = vmax.f32 %v10052_v56, 0.0 }
 0x5bc   :  { %5746 = vmatmul.msk.f32.gmra.mxu1 %vm4528_vm12, %v4495_v10 }
 0x5bd   :  { %v3668_v18 = vpop.permute.xlu0 %3667 }
 0x5c0   :  { %3237 = vrot.lane.b32.xlu2 %v10030_v22, %s6052_s25  ;;  %4380 = vrot.lane.b32.xlu1 %v10033_v33, %s6055_s12 }
 0x5c2   :  { %v4375_v29 = vpop.permute.xlu2 %4374  ;;  %v3216_v57 = vpop.permute.xlu1 %3215 }
 0x5c3   :  { %3677 = vrot.lane.b32.xlu0 %v3567_v6, %s6052_s25  ;;  %v3378_v10 = vsel %vm3347_vm8, %v9763_v34, %v3216_v57  ;;  %v4463_v6 = vsel %vm4459_vm10, %v9695_v61, %v9981_v59  ;;  %v2677_v61 = vpop.f32.mrf.mxu3 }
 0x5c4   :  { %v3427_v4 = vmax.f32 %v3378_v10, %v3379_v8  ;;  %v10114_v8 = vadd.f32 %v9562_v2, %v2677_v61 }
 0x5c5   :  { %v4064_v54 = vpop.permute.xlu0 %4063 }
 0x5c6   :  { %v3504_v62 = vrot.slane %v3427_v4, 7 }
 0x5c8   :  { %4285 = vrot.lane.b32.xlu2 %v10033_v33, %s6054_s30  ;;  %3235 = vrot.lane.b32.xlu1 %v10045_v21, %s6052_s25  ;;  %v3568_v3 = vsel %vm353_vm0, 0.0, %v3504_v62 }
 0x5c9   :  { %v4221_v10 = vrot.slane %v3568_v3, 2 }
 0x5ca   :  { %v10054_v38 = vpop.permute.xlu2 %3219  ;;  %v3881_v23 = vpop.permute.xlu1 %3880 }
 0x5cb   :  { %4073 = vrot.lane.b32.xlu0 %v3997_v50, %s6053_s0  ;;  %v4146_v32 = vsel %vm3347_vm8, %v3668_v18, %v3881_v23 }
 0x5cc   :  { %v10089_v59 = vsel %vm4167_vm9, %v4146_v32, %v4064_v54  ;;  %v2761_v32 = vmax.f32 %v10114_v8, 0.0 }
 0x5cd   :  { %v2922_v11 = vpop.permute.xlu0 %2921 }
 0x5ce   :  { %v10086_v39 = vmax.f32 %v2750_v52, %v2922_v11  ;;  %v3600_v52 = vsel %vm353_vm0, %v3504_v62, 0.0 }
 0x5cf   :  { %v4222_v11 = vrot.slane %v3600_v52, 2  ;;  %v4210_v46 = vrot.slane %v3600_v52, 1 }
 0x5d0   :  { %2939 = vrot.lane.b32.xlu2 %v2759_v63, %s6052_s25  ;;  %3890 = vrot.lane.b32.xlu1 %v3814_v47, %s6043_s26  ;;  %v2680_v47 = vpop.f32.mrf.mxu3 }
 0x5d1   :  { %v4223_v4 = vsel %vm1178_vm2, %v4221_v10, %v4222_v11  ;;  %v10119_v45 = vadd.f32 %v9562_v2, %v2680_v47  ;;  %v12703_v11 = vmax.f32 %v9846_v17, 0.0  ;;  %v3380_v47 = vsel %vm3347_vm8, %v9828_v35, %v10054_v38 }
 0x5d2   :  { %v10076_v34 = vpop.permute.xlu2 %3225  ;;  %v4373_v57 = vpop.permute.xlu1 %4372 }
 0x5d3   :  { %2941 = vrot.lane.b32.xlu0 %v2760_v49, %s6052_s25  ;;  %v4496_v58 = vsel %vm4492_vm11, %v4463_v6, %v4373_v57  ;;  %v4209_v57 = vrot.slane %v3568_v3, 1  ;;  %v2762_v62 = vmax.f32 %v10119_v45, 0.0 }
 0x5d4   :  { %5747 = vmatmul.msk.f32.gmra.mxu1 %vm4528_vm12, %v4496_v58 }
 0x5d5   :  { %v4278_v26 = vpop.permute.xlu0 %4277 }
 0x5d6   :  { %v4464_v50 = vsel %vm4459_vm10, %v9748_v27, %v4278_v26  ;;  %v4211_v26 = vsel %vm799_vm1, %v4209_v57, %v4210_v46 }
 0x5d7   :  { %v4497_v54 = vsel %vm4492_vm11, %v4464_v50, %v4375_v29 }
 0x5d8   :  { %3241 = vrot.lane.b32.xlu2 %v10086_v39, %s6052_s25  ;;  %4382 = vrot.lane.b32.xlu1 %v10089_v59, %s6055_s12  ;;  %v2683_v61 = vpop.f32.mrf.mxu3 }
 0x5da   :  { %v10097_v18 = vpop.permute.xlu2 %4279  ;;  %v3670_v23 = vpop.permute.xlu1 %3669 }
 0x5db   :  { %4201 = vrot.lane.b32.xlu0 %v3568_v3, %s6052_s25  ;;  %v4147_v15 = vsel %vm3347_vm8, %v3670_v23, %v10020_v55  ;;  %v10152_v55 = vadd.f32 %v9562_v2, %v2683_v61 }
 0x5dc   :  { %5748 = vmatmul.msk.f32.gmra.mxu1 %vm4528_vm12, %v4497_v54 }
 0x5dd   :  { %v2924_v27 = vpop.permute.xlu0 %2923  ;;  %v2763_v46 = vmax.f32 %v10152_v55, 0.0 }
 0x5e0   :  { %4287 = vrot.lane.b32.xlu2 %v10089_v59, %s6054_s30  ;;  %3239 = vrot.lane.b32.xlu1 %v10107_v48, %s6052_s25 }
 0x5e2   :  { %v2928_v29 = vpop.permute.xlu2 %2927  ;;  %v4066_v6 = vpop.permute.xlu1 %4065 }
 0x5e3   :  { %4227 = vrot.lane.b32.xlu0 %v4223_v4, %s6053_s0  ;;  %v10145_v4 = vsel %vm4167_vm9, %v4147_v15, %v4066_v6 }
 0x5e5   :  { %v3222_v58 = vpop.permute.xlu0 %3221 }
 0x5e6   :  { %v3381_v52 = vsel %vm3347_vm8, %v9841_v36, %v3222_v58  ;;  %v2686_v36 = vpop.f32.mrf.mxu3  ;;  %v12704_v58 = vmax.f32 %v9811_v12, 0.0  ;;  %v3383_v12 = vsel %vm3347_vm8, %v9854_v19, %v10076_v34  ;;  %v10194_v19 = vmax.f32 %v2753_v60, %v2928_v29 }
 0x5e7   :  { %v3428_v57 = vmax.f32 %v3380_v47, %v3381_v52  ;;  %v10159_v38 = vadd.f32 %v9562_v2, %v2686_v36  ;;  %v4465_v34 = vsel %vm4459_vm10, %v9800_v14, %v10097_v18 }
 0x5e8   :  { %2943 = vrot.lane.b32.xlu2 %v2761_v32, %s6052_s25  ;;  %4215 = vrot.lane.b32.xlu1 %v4211_v26, %s6043_s26  ;;  %v10164_v26 = vmax.f32 %v12704_v58, %v2924_v27 }
 0x5e9   :  { %v3505_v35 = vrot.slane %v3428_v57, 7  ;;  %v12126_v2 = vmax.f32 %v10159_v38, 0.0 }
 0x5ea   :  { %v10128_v50 = vpop.permute.xlu2 %3229  ;;  %v2926_v3 = vpop.permute.xlu1 %2925 }
 0x5eb   :  { %2945 = vrot.lane.b32.xlu0 %v2762_v62, %s6052_s25  ;;  %v10139_v10 = vmax.f32 %v12703_v11, %v2926_v3  ;;  %v3569_v61 = vsel %vm353_vm0, 0.0, %v3505_v35  ;;  %v3601_v3 = vsel %vm353_vm0, %v3505_v35, 0.0 }
 0x5ec   :  { %v3816_v47 = vrot.slane %v3601_v3, 1 }
 0x5ed   :  { %v3672_v54 = vpop.permute.xlu0 %3671 }
 0x5ee   :  { %v2689_v14 = vpop.f32.mrf.mxu3 }
 0x5f0   :  { %4384 = vrot.lane.b32.xlu1 %v10145_v4, %s6055_s12  ;;  %3245 = vrot.lane.b32.xlu2 %v10139_v10, %s6052_s25 }
 0x5f2   :  { %v10154_v17 = vpop.permute.xlu2 %4281  ;;  %v3224_v23 = vpop.permute.xlu1 %3223 }
 0x5f3   :  { %4289 = vrot.lane.b32.xlu0 %v10145_v4, %s6054_s30  ;;  %v3382_v52 = vsel %vm3347_vm8, %v9868_v51, %v3224_v23  ;;  %v3815_v51 = vrot.slane %v3569_v61, 1 }
 0x5f4   :  { %v3429_v11 = vmax.f32 %v3382_v52, %v3383_v12 }
 0x5f5   :  { %v4068_v6 = vpop.permute.xlu0 %4067  ;;  %v3817_v35 = vsel %vm799_vm1, %v3815_v51, %v3816_v47 }
 0x5f6   :  { %v3506_v23 = vrot.slane %v3429_v11, 7 }
 0x5f8   :  { %3243 = vrot.lane.b32.xlu1 %v10164_v26, %s6052_s25  ;;  %2947 = vrot.lane.b32.xlu2 %v2763_v46, %s6052_s25  ;;  %v3602_v12 = vsel %vm353_vm0, %v3506_v23, 0.0 }
 0x5f9   :  { %v3819_v29 = vrot.slane %v3602_v12, 1 }
 0x5fa   :  { %v10179_v27 = vpop.permute.xlu2 %2931  ;;  %v3885_v15 = vpop.permute.xlu1 %3884 }
 0x5fb   :  { %2949 = vrot.lane.b32.xlu0 %v12126_v2, %s6052_s25  ;;  %v4148_v57 = vsel %vm3347_vm8, %v3672_v54, %v3885_v15  ;;  %v3570_v15 = vsel %vm353_vm0, 0.0, %v3506_v23 }
 0x5fc   :  { %v10187_v58 = vsel %vm4167_vm9, %v4148_v57, %v4068_v6  ;;  %v3818_v60 = vrot.slane %v3570_v15, 1  ;;  %v4002_v57 = vrot.slane %v3602_v12, 2 }
 0x5fd   :  { %v2930_v36 = vpop.permute.xlu0 %2929 }
 0x5fe   :  { %v3820_v51 = vsel %vm799_vm1, %v3818_v60, %v3819_v29  ;;  %v10215_v23 = vmax.f32 %v2754_v25, %v2930_v36  ;;  %v3998_v36 = vrot.slane %v3569_v61, 2 }
 0x600   :  { %3892 = vrot.lane.b32.xlu2 %v3817_v35, %s6043_s26  ;;  %4386 = vrot.lane.b32.xlu1 %v10187_v58, %s6055_s12  ;;  %v4001_v35 = vrot.slane %v3570_v15, 2 }
 0x602   :  { %v10199_v54 = vpop.permute.xlu2 %3233  ;;  %v4377_v52 = vpop.permute.xlu1 %4376  ;;  %v4003_v25 = vsel %vm1178_vm2, %v4001_v35, %v4002_v57  ;;  %v4466_v57 = vsel %vm4459_vm10, %v9815_v30, %v10154_v17 }
 0x603   :  { %3247 = vrot.lane.b32.xlu0 %v10194_v19, %s6052_s25  ;;  %v4498_v6 = vsel %vm4492_vm11, %v4465_v34, %v4377_v52  ;;  %v2692_v34 = vpop.f32.mrf.mxu3  ;;  %v10224_v52 = vld [vmem:[%s11893_s2] ss:$0 sm:$0xff] }
 0x604   :  { %5749 = vmatmul.msk.f32.gmra.mxu1 %vm4528_vm12, %v4498_v6  ;;  %v10227_v6 = vadd.f32 %v10224_v52, %v2689_v14  ;;  %v10234_v60 = vadd.f32 %v10224_v52, %v2692_v34 }
 0x605   :  { %v3674_v53 = vpop.permute.xlu0 %3673 }
 0x608   :  { %3681 = vrot.lane.b32.xlu2 %v3570_v15, %s6052_s25  ;;  %3679 = vrot.lane.b32.xlu1 %v3569_v61, %s6052_s25  ;;  %v3999_v15 = vrot.slane %v3601_v3, 2  ;;  %v2766_v61 = vmax.f32 %v10234_v60, 0.0  ;;  %v3385_v3 = vsel %vm3347_vm8, %v9914_v1, %v10128_v50 }
 0x60a   :  { %v10209_v18 = vpop.permute.xlu2 %4283  ;;  %v3228_v11 = vpop.permute.xlu1 %3227  ;;  %v4000_v14 = vsel %vm1178_vm2, %v3998_v36, %v3999_v15 }
 0x60b   :  { %3894 = vrot.lane.b32.xlu0 %v3820_v51, %s6043_s26  ;;  %v2765_v51 = vmax.f32 %v10227_v6, 0.0  ;;  %v3384_v2 = vsel %vm3347_vm8, %v9931_v28, %v3228_v11  ;;  %v2695_v17 = vpop.f32.mrf.mxu3 }
 0x60c   :  { %v3430_v35 = vmax.f32 %v3384_v2, %v3385_v3  ;;  %v10285_v3 = vadd.f32 %v10224_v52, %v2695_v17 }
 0x60d   :  { %v4070_v47 = vpop.permute.xlu0 %4069 }
 0x60e   :  { %v3507_v1 = vrot.slane %v3430_v35, 7 }
 0x610   :  { %4291 = vrot.lane.b32.xlu2 %v10187_v58, %s6054_s30  ;;  %3249 = vrot.lane.b32.xlu1 %v10215_v23, %s6052_s25  ;;  %v3603_v15 = vsel %vm353_vm0, %v3507_v1, 0.0 }
 0x612   :  { %v10229_v12 = vpop.permute.xlu2 %2935  ;;  %v3887_v5 = vpop.permute.xlu1 %3886 }
 0x613   :  { %4077 = vrot.lane.b32.xlu0 %v4003_v25, %s6053_s0  ;;  %v4149_v25 = vsel %vm3347_vm8, %v3674_v53, %v3887_v5  ;;  %v3571_v5 = vsel %vm353_vm0, 0.0, %v3507_v1 }
 0x614   :  { %v10264_v30 = vsel %vm4167_vm9, %v4149_v25, %v4070_v47  ;;  %v4005_v47 = vrot.slane %v3603_v15, 2  ;;  %v3821_v9 = vrot.slane %v3571_v5, 1  ;;  %v2767_v25 = vmax.f32 %v10285_v3, 0.0 }
 0x615   :  { %v2934_v29 = vpop.permute.xlu0 %2933 }
 0x616   :  { %v10261_v50 = vmax.f32 %v2756_v16, %v2934_v29  ;;  %v10278_v16 = vmax.f32 %v2755_v42, %v10179_v27  ;;  %v4004_v29 = vrot.slane %v3571_v5, 2  ;;  %v3822_v42 = vrot.slane %v3603_v15, 1 }
 0x617   :  { %v3387_v15 = vsel %vm3347_vm8, %v9972_v24, %v10199_v54 }
 0x618   :  { %2951 = vrot.lane.b32.xlu2 %v2765_v51, %s6052_s25  ;;  %4075 = vrot.lane.b32.xlu1 %v4000_v14, %s6053_s0  ;;  %v2698_v14 = vpop.f32.mrf.mxu3  ;;  %v3823_v17 = vsel %vm799_vm1, %v3821_v9, %v3822_v42 }
 0x619   :  { %v10292_v27 = vadd.f32 %v10224_v52, %v2698_v14 }
 0x61a   :  { %v10251_v28 = vpop.permute.xlu2 %3237  ;;  %v4379_v11 = vpop.permute.xlu1 %4378 }
 0x61b   :  { %2953 = vrot.lane.b32.xlu0 %v2766_v61, %s6052_s25  ;;  %v4499_v34 = vsel %vm4492_vm11, %v4466_v57, %v4379_v11  ;;  %v4006_v11 = vsel %vm1178_vm2, %v4004_v29, %v4005_v47  ;;  %v4467_v47 = vsel %vm4459_vm10, %v9917_v44, %v10209_v18 }
 0x61c   :  { %5750 = vmatmul.msk.f32.gmra.mxu1 %vm4528_vm12, %v4499_v34 }
 0x61d   :  { %v3676_v36 = vpop.permute.xlu0 %3675 }
 0x620   :  { %3253 = vrot.lane.b32.xlu2 %v10261_v50, %s6052_s25  ;;  %4388 = vrot.lane.b32.xlu1 %v10264_v30, %s6055_s12  ;;  %v2701_v44 = vpop.f32.mrf.mxu3 }
 0x622   :  { %v10270_v2 = vpop.permute.xlu2 %4285  ;;  %v3232_v53 = vpop.permute.xlu1 %3231 }
 0x623   :  { %3683 = vrot.lane.b32.xlu0 %v3571_v5, %s6052_s25  ;;  %v3386_v1 = vsel %vm3347_vm8, %v9989_v13, %v3232_v53  ;;  %v2768_v5 = vmax.f32 %v10292_v27, 0.0 }
 0x624   :  { %v3431_v29 = vmax.f32 %v3386_v1, %v3387_v15  ;;  %v10343_v15 = vadd.f32 %v10224_v52, %v2701_v44 }
 0x625   :  { %v4072_v0 = vpop.permute.xlu0 %4071 }
 0x626   :  { %v3508_v24 = vrot.slane %v3431_v29, 7 }
 0x628   :  { %4293 = vrot.lane.b32.xlu2 %v10264_v30, %s6054_s30  ;;  %3251 = vrot.lane.b32.xlu1 %v10278_v16, %s6052_s25  ;;  %v3604_v1 = vsel %vm353_vm0, %v3508_v24, 0.0 }
 0x629   :  { %v3825_v37 = vrot.slane %v3604_v1, 1 }
 0x62a   :  { %v10287_v57 = vpop.permute.xlu2 %2939  ;;  %v3889_v35 = vpop.permute.xlu1 %3888 }
 0x62b   :  { %4079 = vrot.lane.b32.xlu0 %v4006_v11, %s6053_s0  ;;  %v4150_v11 = vsel %vm3347_vm8, %v3676_v36, %v3889_v35  ;;  %v3572_v35 = vsel %vm353_vm0, 0.0, %v3508_v24 }
 0x62c   :  { %v10322_v18 = vsel %vm4167_vm9, %v4150_v11, %v4072_v0  ;;  %v4008_v0 = vrot.slane %v3604_v1, 2  ;;  %v2769_v11 = vmax.f32 %v10343_v15, 0.0  ;;  %v4468_v1 = vsel %vm4459_vm10, %v9975_v40, %v10270_v2 }
 0x62d   :  { %v2938_v34 = vpop.permute.xlu0 %2937 }
 0x62e   :  { %v10319_v54 = vmax.f32 %v2758_v20, %v2938_v34  ;;  %v10336_v20 = vmax.f32 %v2757_v31, %v10229_v12  ;;  %v4007_v34 = vrot.slane %v3572_v35, 2 }
 0x630   :  { %2955 = vrot.lane.b32.xlu2 %v2767_v25, %s6052_s25  ;;  %3896 = vrot.lane.b32.xlu1 %v3823_v17, %s6043_s26  ;;  %v2704_v17 = vpop.f32.mrf.mxu3 }
 0x631   :  { %v10348_v31 = vadd.f32 %v10224_v52, %v2704_v17  ;;  %v3389_v52 = vsel %vm3347_vm8, %v10030_v22, %v10251_v28 }
 0x632   :  { %v10309_v13 = vpop.permute.xlu2 %3241  ;;  %v4381_v53 = vpop.permute.xlu1 %4380 }
 0x633   :  { %2957 = vrot.lane.b32.xlu0 %v2768_v5, %s6052_s25  ;;  %v4500_v14 = vsel %vm4492_vm11, %v4467_v47, %v4381_v53  ;;  %v4009_v53 = vsel %vm1178_vm2, %v4007_v34, %v4008_v0 }
 0x634   :  { %5751 = vmatmul.msk.f32.gmra.mxu1 %vm4528_vm12, %v4500_v14  ;;  %v3824_v14 = vrot.slane %v3572_v35, 1 }
 0x635   :  { %v3678_v9 = vpop.permute.xlu0 %3677 }
 0x636   :  { %v3826_v44 = vsel %vm799_vm1, %v3824_v14, %v3825_v37 }
 0x638   :  { %3257 = vrot.lane.b32.xlu2 %v10319_v54, %s6052_s25  ;;  %4390 = vrot.lane.b32.xlu1 %v10322_v18, %s6055_s12 }
 0x63a   :  { %v10328_v42 = vpop.permute.xlu2 %4287  ;;  %v3236_v36 = vpop.permute.xlu1 %3235 }
 0x63b   :  { %3685 = vrot.lane.b32.xlu0 %v3572_v35, %s6052_s25  ;;  %v3388_v24 = vsel %vm3347_vm8, %v10045_v21, %v3236_v36  ;;  %v2770_v35 = vmax.f32 %v10348_v31, 0.0  ;;  %v4469_v8 = vsel %vm4459_vm10, %v10033_v33, %v10328_v42 }
 0x63c   :  { %v3432_v0 = vmax.f32 %v3388_v24, %v3389_v52  ;;  %v3391_v24 = vsel %vm3347_vm8, %v10086_v39, %v10309_v13 }
 0x63d   :  { %v4074_v41 = vpop.permute.xlu0 %4073 }
 0x63e   :  { %v3509_v14 = vrot.slane %v3432_v0, 7 }
 0x640   :  { %4295 = vrot.lane.b32.xlu2 %v10322_v18, %s6054_s30  ;;  %3255 = vrot.lane.b32.xlu1 %v10336_v20, %s6052_s25 }
 0x642   :  { %v2944_v47 = vpop.permute.xlu2 %2943  ;;  %v3891_v29 = vpop.permute.xlu1 %3890 }
 0x643   :  { %4081 = vrot.lane.b32.xlu0 %v4009_v53, %s6053_s0  ;;  %v4151_v17 = vsel %vm3347_vm8, %v3678_v9, %v3891_v29  ;;  %v3573_v9 = vsel %vm353_vm0, 0.0, %v3509_v14  ;;  %v3605_v29 = vsel %vm353_vm0, %v3509_v14, 0.0  ;;  %v10405_v39 = vmax.f32 %v2761_v32, %v2944_v47 }
 0x644   :  { %v10376_v40 = vsel %vm4167_vm9, %v4151_v17, %v4074_v41  ;;  %v10390_v41 = vmax.f32 %v2759_v63, %v10287_v57  ;;  %v4011_v37 = vrot.slane %v3605_v29, 2  ;;  %v3827_v63 = vrot.slane %v3573_v9, 1 }
 0x645   :  { %v2942_v12 = vpop.permute.xlu0 %2941  ;;  %v3828_v57 = vrot.slane %v3605_v29, 1 }
 0x646   :  { %v10373_v22 = vmax.f32 %v2760_v49, %v2942_v12  ;;  %v4010_v12 = vrot.slane %v3573_v9, 2 }
 0x647   :  { %v3829_v13 = vsel %vm799_vm1, %v3827_v63, %v3828_v57 }
 0x648   :  { %2959 = vrot.lane.b32.xlu2 %v2769_v11, %s6052_s25  ;;  %3898 = vrot.lane.b32.xlu1 %v3826_v44, %s6043_s26  ;;  %v4012_v56 = vsel %vm1178_vm2, %v4010_v12, %v4011_v37 }
 0x64a   :  { %v3246_v21 = vpop.permute.xlu2 %3245  ;;  %v4383_v36 = vpop.permute.xlu1 %4382 }
 0x64b   :  { %2961 = vrot.lane.b32.xlu0 %v2770_v35, %s6052_s25  ;;  %v4501_v34 = vsel %vm4492_vm11, %v4468_v1, %v4383_v36  ;;  %v3393_v37 = vsel %vm3347_vm8, %v10139_v10, %v3246_v21 }
 0x64c   :  { %5752 = vmatmul.msk.f32.gmra.mxu1 %vm4528_vm12, %v4501_v34 }
 0x64d   :  { %v4202_v53 = vpop.permute.xlu0 %4201 }
 0x650   :  { %3261 = vrot.lane.b32.xlu2 %v10373_v22, %s6052_s25  ;;  %4392 = vrot.lane.b32.xlu1 %v10376_v40, %s6055_s12 }
 0x652   :  { %v2948_v28 = vpop.permute.xlu2 %2947  ;;  %v3240_v2 = vpop.permute.xlu1 %3239 }
 0x653   :  { %3687 = vrot.lane.b32.xlu0 %v3573_v9, %s6052_s25  ;;  %v3390_v7 = vsel %vm3347_vm8, %v10107_v48, %v3240_v2 }
 0x654   :  { %v3433_v44 = vmax.f32 %v3390_v7, %v3391_v24 }
 0x655   :  { %v4228_v49 = vpop.permute.xlu0 %4227 }
 0x656   :  { %v3510_v1 = vrot.slane %v3433_v44, 7 }
 0x658   :  { %4297 = vrot.lane.b32.xlu2 %v10376_v40, %s6054_s30  ;;  %3259 = vrot.lane.b32.xlu1 %v10390_v41, %s6052_s25  ;;  %v3574_v36 = vsel %vm353_vm0, 0.0, %v3510_v1  ;;  %v3606_v34 = vsel %vm353_vm0, %v3510_v1, 0.0 }
 0x659   :  { %v3830_v2 = vrot.slane %v3574_v36, 1  ;;  %v3831_v9 = vrot.slane %v3606_v34, 1 }
 0x65a   :  { %v10399_v48 = vpop.permute.xlu2 %3892  ;;  %v4216_v52 = vpop.permute.xlu1 %4215 }
 0x65b   :  { %4083 = vrot.lane.b32.xlu0 %v4012_v56, %s6053_s0  ;;  %v4233_v29 = vsel %vm3347_vm8, %v4202_v53, %v4216_v52  ;;  %v4013_v52 = vrot.slane %v3574_v36, 2  ;;  %v4014_v56 = vrot.slane %v3606_v34, 2 }
 0x65c   :  { %v4235_v7 = vsel %vm4167_vm9, %v4233_v29, %v4228_v49  ;;  %v10439_v49 = vmax.f32 %v2763_v46, %v2948_v28 }
 0x65d   :  { %v2946_v0 = vpop.permute.xlu0 %2945 }
 0x65e   :  { %v10415_v17 = vmax.f32 %v2762_v62, %v2946_v0  ;;  %v3832_v62 = vsel %vm799_vm1, %v3830_v2, %v3831_v9  ;;  %v4015_v0 = vsel %vm1178_vm2, %v4013_v52, %v4014_v56 }
 0x660   :  { %3263 = vrot.lane.b32.xlu2 %v10405_v39, %s6052_s25  ;;  %3900 = vrot.lane.b32.xlu1 %v3829_v13, %s6043_s26 }
 0x662   :  { %v3682_v32 = vpop.permute.xlu2 %3681  ;;  %v4385_v47 = vpop.permute.xlu1 %4384 }
 0x663   :  { %3265 = vrot.lane.b32.xlu0 %v10415_v17, %s6052_s25  ;;  %v4502_v14 = vsel %vm4492_vm11, %v4469_v8, %v4385_v47 }
 0x664   :  { %5753 = vmatmul.msk.f32.gmra.mxu1 %vm4528_vm12, %v4502_v14  ;;  %v12705_v14 = vmax.f32 %v10159_v38, 0.0 }
 0x665   :  { %v4290_v45 = vpop.permute.xlu0 %4289 }
 0x666   :  { %v4470_v10 = vsel %vm4459_vm10, %v10089_v59, %v4290_v45 }
 0x668   :  { %3902 = vrot.lane.b32.xlu2 %v3832_v62, %s6043_s26  ;;  %4394 = vrot.lane.b32.xlu1 %v4235_v7, %s6055_s12 }
 0x66a   :  { %v4292_v33 = vpop.permute.xlu2 %4291  ;;  %v3244_v42 = vpop.permute.xlu1 %3243 }
 0x66b   :  { %v3392_v12 = vsel %vm3347_vm8, %v10164_v26, %v3244_v42  ;;  %4299 = vrot.lane.b32.xlu0 %v4235_v7, %s6054_s30 }
 0x66c   :  { %v3434_v53 = vmax.f32 %v3392_v12, %v3393_v37 }
 0x66d   :  { %v2950_v24 = vpop.permute.xlu0 %2949 }
 0x66e   :  { %v3511_v44 = vrot.slane %v3434_v53, 7  ;;  %v10456_v2 = vmax.f32 %v12705_v14, %v2950_v24 }
 0x670   :  { %4396 = vrot.lane.b32.xlu2 %v9888_v43, %s6055_s12  ;;  %3689 = vrot.lane.b32.xlu1 %v3574_v36, %s6052_s25  ;;  %v3607_v63 = vsel %vm353_vm0, %v3511_v44, 0.0  ;;  %v3575_v1 = vsel %vm353_vm0, 0.0, %v3511_v44 }
 0x671   :  { %v3833_v46 = vrot.slane %v3575_v1, 1  ;;  %v3834_v28 = vrot.slane %v3607_v63, 1  ;;  %v4017_v34 = vrot.slane %v3607_v63, 2  ;;  %v4016_v8 = vrot.slane %v3575_v1, 2 }
 0x672   :  { %v2952_v21 = vpop.permute.xlu2 %2951  ;;  %v4387_v26 = vpop.permute.xlu1 %4386 }
 0x673   :  { %3267 = vrot.lane.b32.xlu0 %v10439_v49, %s6052_s25  ;;  %v4503_v57 = vsel %vm4492_vm11, %v4470_v10, %v4387_v26  ;;  %v3835_v36 = vsel %vm799_vm1, %v3833_v46, %v3834_v28  ;;  %v4018_v9 = vsel %vm1178_vm2, %v4016_v8, %v4017_v34  ;;  %v10492_v56 = vmax.f32 %v2765_v51, %v2952_v21 }
 0x674   :  { %5754 = vmatmul.msk.f32.gmra.mxu1 %vm4528_vm12, %v4503_v57 }
 0x675   :  { %v3248_v55 = vpop.permute.xlu0 %3247 }
 0x676   :  { %v3394_v7 = vsel %vm3347_vm8, %v10194_v19, %v3248_v55 }
 0x678   :  { %4085 = vrot.lane.b32.xlu1 %v4015_v0, %s6053_s0  ;;  %3691 = vrot.lane.b32.xlu2 %v3575_v1, %s6052_s25 }
 0x67a   :  { %v3254_v59 = vpop.permute.xlu2 %3253  ;;  %v3680_v13 = vpop.permute.xlu1 %3679 }
 0x67b   :  { %3904 = vrot.lane.b32.xlu0 %v3835_v36, %s6043_s26  ;;  %v4152_v53 = vsel %vm3347_vm8, %v3680_v13, %v10399_v48  ;;  %v4471_v48 = vsel %vm4459_vm10, %v10145_v4, %v4292_v33  ;;  %v3397_v51 = vsel %vm3347_vm8, %v10261_v50, %v3254_v59 }
 0x67d   :  { %v3895_v47 = vpop.permute.xlu0 %3894 }
 0x67e   :  { %v4153_v42 = vsel %vm3347_vm8, %v3682_v32, %v3895_v47 }
 0x680   :  { %3269 = vrot.lane.b32.xlu1 %v10456_v2, %s6052_s25  ;;  %4087 = vrot.lane.b32.xlu2 %v4018_v9, %s6053_s0 }
 0x682   :  { %v4294_v29 = vpop.permute.xlu2 %4293  ;;  %v3250_v45 = vpop.permute.xlu1 %3249 }
 0x683   :  { %v3395_v62 = vsel %vm3347_vm8, %v10215_v23, %v3250_v45 }
 0x684   :  { %v3435_v37 = vmax.f32 %v3394_v7, %v3395_v62 }
 0x685   :  { %v4078_v38 = vpop.permute.xlu0 %4077 }
 0x686   :  { %v10468_v12 = vsel %vm4167_vm9, %v4153_v42, %v4078_v38  ;;  %v3512_v24 = vrot.slane %v3435_v37, 7  ;;  %v4472_v42 = vsel %vm4459_vm10, %v10187_v58, %v4294_v29 }
 0x687   :  { %4398 = vrot.lane.b32.xlu0 %v10468_v12, %s6055_s12 }
 0x688   :  { %v3576_v10 = vsel %vm353_vm0, 0.0, %v3512_v24  ;;  %v3608_v26 = vsel %vm353_vm0, %v3512_v24, 0.0 }
 0x689   :  { %v4020_v63 = vrot.slane %v3608_v26, 2  ;;  %v4019_v60 = vrot.slane %v3576_v10, 2  ;;  %v3836_v28 = vrot.slane %v3576_v10, 1  ;;  %v3837_v4 = vrot.slane %v3608_v26, 1 }
 0x68a   :  { %v2956_v44 = vpop.permute.xlu2 %2955  ;;  %v4076_v52 = vpop.permute.xlu1 %4075 }
 0x68b   :  { %v10475_v23 = vsel %vm4167_vm9, %v4152_v53, %v4076_v52  ;;  %v4021_v46 = vsel %vm1178_vm2, %v4019_v60, %v4020_v63  ;;  %v3838_v21 = vsel %vm799_vm1, %v3836_v28, %v3837_v4  ;;  %v10510_v36 = vmax.f32 %v2767_v25, %v2956_v44 }
 0x68c   :  { %4301 = vrot.lane.b32.xlu1 %v10475_v23, %s6054_s30 }
 0x68d   :  { %v2954_v19 = vpop.permute.xlu0 %2953 }
 0x68e   :  { %v10481_v32 = vmax.f32 %v2766_v61, %v2954_v19 }
 0x68f   :  { %3693 = vrot.lane.b32.xlu0 %v3576_v10, %s6052_s25 }
 0x690   :  { %3273 = vrot.lane.b32.xlu2 %v10481_v32, %s6052_s25 }
 0x692   :  { %v4389_v61 = vpop.permute.xlu1 %4388  ;;  %v3258_v1 = vpop.permute.xlu2 %3257 }
 0x693   :  { %v4504_v57 = vsel %vm4492_vm11, %v4471_v48, %v4389_v61  ;;  %v3399_v52 = vsel %vm3347_vm8, %v10319_v54, %v3258_v1 }
 0x694   :  { %3271 = vrot.lane.b32.xlu1 %v10492_v56, %s6052_s25  ;;  %5755 = vmatmul.msk.f32.gmra.mxu1 %vm4528_vm12, %v4504_v57 }
 0x695   :  { %v3684_v55 = vpop.permute.xlu0 %3683 }
 0x697   :  { %4089 = vrot.lane.b32.xlu0 %v4021_v46, %s6053_s0 }
 0x698   :  { %4303 = vrot.lane.b32.xlu2 %v10468_v12, %s6054_s30 }
 0x69a   :  { %v3252_v6 = vpop.permute.xlu1 %3251  ;;  %v4296_v34 = vpop.permute.xlu2 %4295 }
 0x69b   :  { %v3396_v33 = vsel %vm3347_vm8, %v10278_v16, %v3252_v6  ;;  %v4473_v28 = vsel %vm4459_vm10, %v10264_v30, %v4296_v34 }
 0x69c   :  { %v3436_v0 = vmax.f32 %v3396_v33, %v3397_v51  ;;  %3906 = vrot.lane.b32.xlu1 %v3838_v21, %s6043_s26 }
 0x69d   :  { %v4080_v13 = vpop.permute.xlu0 %4079 }
 0x69e   :  { %v3513_v8 = vrot.slane %v3436_v0, 7 }
 0x6a0   :  { %v3577_v47 = vsel %vm353_vm0, 0.0, %v3513_v8  ;;  %v3609_v14 = vsel %vm353_vm0, %v3513_v8, 0.0  ;;  %3275 = vrot.lane.b32.xlu2 %v10510_v36, %s6052_s25 }
 0x6a1   :  { %v3839_v59 = vrot.slane %v3577_v47, 1  ;;  %v3840_v9 = vrot.slane %v3609_v14, 1  ;;  %v4022_v27 = vrot.slane %v3577_v47, 2 }
 0x6a2   :  { %v3897_v50 = vpop.permute.xlu1 %3896  ;;  %v2960_v7 = vpop.permute.xlu2 %2959 }
 0x6a3   :  { %v4154_v16 = vsel %vm3347_vm8, %v3684_v55, %v3897_v50  ;;  %v3841_v62 = vsel %vm799_vm1, %v3839_v59, %v3840_v9  ;;  %v10545_v26 = vmax.f32 %v2769_v11, %v2960_v7 }
 0x6a4   :  { %v10518_v45 = vsel %vm4167_vm9, %v4154_v16, %v4080_v13 }
 0x6a5   :  { %v2958_v3 = vpop.permute.xlu0 %2957  ;;  %4400 = vrot.lane.b32.xlu1 %v10518_v45, %s6055_s12 }
 0x6a6   :  { %v10524_v25 = vmax.f32 %v2768_v5, %v2958_v3  ;;  %v4023_v5 = vrot.slane %v3609_v14, 2 }
 0x6a8   :  { %3277 = vrot.lane.b32.xlu0 %v10524_v25, %s6052_s25  ;;  %3908 = vrot.lane.b32.xlu2 %v3841_v62, %s6043_s26  ;;  %v4024_v19 = vsel %vm1178_vm2, %v4022_v27, %v4023_v5 }
 0x6aa   :  { %v4391_v38 = vpop.permute.xlu1 %4390  ;;  %v3262_v24 = vpop.permute.xlu2 %3261 }
 0x6ab   :  { %v4505_v37 = vsel %vm4492_vm11, %v4472_v42, %v4391_v38  ;;  %v3401_v0 = vsel %vm3347_vm8, %v10373_v22, %v3262_v24 }
 0x6ac   :  { %5756 = vmatmul.msk.f32.gmra.mxu1 %vm4528_vm12, %v4505_v37 }
 0x6ad   :  { %v3686_v53 = vpop.permute.xlu0 %3685  ;;  %3695 = vrot.lane.b32.xlu1 %v3577_v47, %s6052_s25 }
 0x6b0   :  { %4305 = vrot.lane.b32.xlu0 %v10518_v45, %s6054_s30 }
 0x6b2   :  { %v3256_v44 = vpop.permute.xlu1 %3255  ;;  %v4298_v1 = vpop.permute.xlu2 %4297 }
 0x6b3   :  { %v3398_v58 = vsel %vm3347_vm8, %v10336_v20, %v3256_v44  ;;  %v4474_v44 = vsel %vm4459_vm10, %v10322_v18, %v4298_v1 }
 0x6b4   :  { %v3437_v29 = vmax.f32 %v3398_v58, %v3399_v52 }
 0x6b5   :  { %v4082_v10 = vpop.permute.xlu0 %4081  ;;  %4091 = vrot.lane.b32.xlu1 %v4024_v19, %s6053_s0 }
 0x6b6   :  { %v3514_v48 = vrot.slane %v3437_v29, 7 }
 0x6b8   :  { %v3578_v63 = vsel %vm353_vm0, 0.0, %v3514_v48  ;;  %v3610_v60 = vsel %vm353_vm0, %v3514_v48, 0.0  ;;  %3279 = vrot.lane.b32.xlu0 %v10545_v26, %s6052_s25 }
 0x6b9   :  { %v3842_v61 = vrot.slane %v3578_v63, 1  ;;  %v3843_v57 = vrot.slane %v3610_v60, 1  ;;  %v4026_v33 = vrot.slane %v3610_v60, 2 }
 0x6ba   :  { %v3899_v54 = vpop.permute.xlu1 %3898  ;;  %v3264_v31 = vpop.permute.xlu2 %3263 }
 0x6bb   :  { %v4155_v20 = vsel %vm3347_vm8, %v3686_v53, %v3899_v54  ;;  %v3844_v46 = vsel %vm799_vm1, %v3842_v61, %v3843_v57  ;;  %v3402_v37 = vsel %vm3347_vm8, %v10405_v39, %v3264_v31 }
 0x6bc   :  { %v10553_v55 = vsel %vm4167_vm9, %v4155_v20, %v4082_v10 }
 0x6bd   :  { %v2962_v15 = vpop.permute.xlu0 %2961  ;;  %4402 = vrot.lane.b32.xlu2 %v10553_v55, %s6055_s12 }
 0x6be   :  { %v10559_v11 = vmax.f32 %v2770_v35, %v2962_v15  ;;  %v4025_v35 = vrot.slane %v3578_v63, 2 }
 0x6c0   :  { %3281 = vrot.lane.b32.xlu1 %v10559_v11, %s6052_s25  ;;  %3910 = vrot.lane.b32.xlu0 %v3844_v46, %s6043_s26  ;;  %v4027_v34 = vsel %vm1178_vm2, %v4025_v35, %v4026_v33 }
 0x6c2   :  { %v4393_v4 = vpop.permute.xlu1 %4392  ;;  %v3903_v14 = vpop.permute.xlu2 %3902 }
 0x6c3   :  { %v4506_v6 = vsel %vm4492_vm11, %v4473_v28, %v4393_v4 }
 0x6c4   :  { %5757 = vmatmul.msk.f32.gmra.mxu1 %vm4528_vm12, %v4506_v6 }
 0x6c5   :  { %v3688_v51 = vpop.permute.xlu0 %3687  ;;  %3697 = vrot.lane.b32.xlu2 %v3578_v63, %s6052_s25 }
 0x6c8   :  { %4307 = vrot.lane.b32.xlu1 %v10553_v55, %s6054_s30 }
 0x6ca   :  { %v3260_v21 = vpop.permute.xlu1 %3259  ;;  %v10597_v52 = vpop.permute.xlu2 %4396 }
 0x6cb   :  { %v3400_v30 = vsel %vm3347_vm8, %v10390_v41, %v3260_v21 }
 0x6cc   :  { %v3438_v13 = vmax.f32 %v3400_v30, %v3401_v0 }
 0x6cd   :  { %v4084_v8 = vpop.permute.xlu0 %4083  ;;  %4093 = vrot.lane.b32.xlu2 %v4027_v34, %s6053_s0 }
 0x6ce   :  { %v3515_v47 = vrot.slane %v3438_v13, 7 }
 0x6d0   :  { %v3611_v50 = vsel %vm353_vm0, %v3515_v47, 0.0  ;;  %v3579_v16 = vsel %vm353_vm0, 0.0, %v3515_v47 }
 0x6d1   :  { %3699 = vrot.lane.b32.xlu1 %v3579_v16, %s6052_s25  ;;  %v3845_v59 = vrot.slane %v3579_v16, 1  ;;  %v3846_v9 = vrot.slane %v3611_v50, 1  ;;  %v4029_v62 = vrot.slane %v3611_v50, 2  ;;  %v4028_v7 = vrot.slane %v3579_v16, 2 }
 0x6d2   :  { %v3901_v22 = vpop.permute.xlu1 %3900  ;;  %v3692_v20 = vpop.permute.xlu2 %3691 }
 0x6d3   :  { %v4156_v3 = vsel %vm3347_vm8, %v3688_v51, %v3901_v22  ;;  %v3847_v41 = vsel %vm799_vm1, %v3845_v59, %v3846_v9  ;;  %v4030_v5 = vsel %vm1178_vm2, %v4028_v7, %v4029_v62 }
 0x6d4   :  { %v10584_v42 = vsel %vm4167_vm9, %v4156_v3, %v4084_v8 }
 0x6d5   :  { %v3266_v38 = vpop.permute.xlu0 %3265  ;;  %3912 = vrot.lane.b32.xlu2 %v3847_v41, %s6043_s26  ;;  %4404 = vrot.lane.b32.xlu0 %v10584_v42, %s6055_s12 }
 0x6d6   :  { %v3403_v53 = vsel %vm3347_vm8, %v10415_v17, %v3266_v38 }
 0x6d7   :  { %v3439_v27 = vmax.f32 %v3402_v37, %v3403_v53 }
 0x6d9   :  { %v3516_v24 = vrot.slane %v3439_v27, 7  ;;  %4095 = vrot.lane.b32.xlu1 %v4030_v5, %s6053_s0 }
 0x6da   :  { %v4395_v58 = vpop.permute.xlu1 %4394  ;;  %v4088_v6 = vpop.permute.xlu2 %4087 }
 0x6db   :  { %v3580_v29 = vsel %vm353_vm0, 0.0, %v3516_v24  ;;  %v3612_v19 = vsel %vm353_vm0, %v3516_v24, 0.0  ;;  %v4507_v39 = vsel %vm4492_vm11, %v4474_v44, %v4395_v58 }
 0x6dc   :  { %5758 = vmatmul.msk.f32.gmra.mxu1 %vm4528_vm12, %v4507_v39  ;;  %v3848_v17 = vrot.slane %v3580_v29, 1  ;;  %v3849_v10 = vrot.slane %v3612_v19, 1  ;;  %v4031_v57 = vrot.slane %v3580_v29, 2  ;;  %v4032_v1 = vrot.slane %v3612_v19, 2 }
 0x6dd   :  { %v4300_v48 = vpop.permute.xlu0 %4299  ;;  %4309 = vrot.lane.b32.xlu0 %v10584_v42, %s6054_s30 }
 0x6de   :  { %v4475_v18 = vsel %vm4459_vm10, %v10376_v40, %v4300_v48  ;;  %v3850_v63 = vsel %vm799_vm1, %v3848_v17, %v3849_v10  ;;  %v4033_v28 = vsel %vm1178_vm2, %v4031_v57, %v4032_v1 }
 0x6df   :  { %v4508_v54 = vsel %vm4492_vm11, %v4475_v18, %v10597_v52 }
 0x6e1   :  { %3914 = vrot.lane.b32.xlu1 %v3850_v63, %s6043_s26 }
 0x6e2   :  { %v3690_v60 = vpop.permute.xlu1 %3689 }
 0x6e3   :  { %v4157_v15 = vsel %vm3347_vm8, %v3690_v60, %v3903_v14 }
 0x6e4   :  { %5759 = vmatmul.msk.f32.gmra.mxu1 %vm4528_vm12, %v4508_v54 }
 0x6e5   :  { %v3268_v61 = vpop.permute.xlu0 %3267  ;;  %3701 = vrot.lane.b32.xlu0 %v3580_v29, %s6052_s25 }
 0x6e6   :  { %v3404_v33 = vsel %vm3347_vm8, %v10439_v49, %v3268_v61 }
 0x6ea   :  { %v4086_v46 = vpop.permute.xlu1 %4085  ;;  %v3274_v8 = vpop.permute.xlu2 %3273 }
 0x6eb   :  { %v10615_v40 = vsel %vm4167_vm9, %v4157_v15, %v4086_v46  ;;  %v3407_v38 = vsel %vm3347_vm8, %v10481_v32, %v3274_v8 }
 0x6ec   :  { %4406 = vrot.lane.b32.xlu2 %v10615_v40, %s6055_s12 }
 0x6ed   :  { %v3905_v4 = vpop.permute.xlu0 %3904  ;;  %4097 = vrot.lane.b32.xlu0 %v4033_v28, %s6053_s0 }
 0x6ee   :  { %v4158_v51 = vsel %vm3347_vm8, %v3692_v20, %v3905_v4 }
 0x6ef   :  { %v10623_v31 = vsel %vm4167_vm9, %v4158_v51, %v4088_v6 }
 0x6f0   :  { %4408 = vrot.lane.b32.xlu1 %v10623_v31, %s6055_s12 }
 0x6f2   :  { %v3270_v35 = vpop.permute.xlu1 %3269  ;;  %v4304_v3 = vpop.permute.xlu2 %4303 }
 0x6f3   :  { %v3405_v21 = vsel %vm3347_vm8, %v10456_v2, %v3270_v35  ;;  %v4477_v60 = vsel %vm4459_vm10, %v10475_v23, %v4304_v3 }
 0x6f4   :  { %v3440_v0 = vmax.f32 %v3404_v33, %v3405_v21  ;;  %4311 = vrot.lane.b32.xlu2 %v10615_v40, %s6054_s30 }
 0x6f6   :  { %v3517_v30 = vrot.slane %v3440_v0, 7 }
 0x6f8   :  { %v3613_v13 = vsel %vm353_vm0, %v3517_v30, 0.0  ;;  %4313 = vrot.lane.b32.xlu1 %v10623_v31, %s6054_s30  ;;  %v3581_v34 = vsel %vm353_vm0, 0.0, %v3517_v30 }
 0x6f9   :  { %v3851_v47 = vrot.slane %v3581_v34, 1  ;;  %v3852_v14 = vrot.slane %v3613_v13, 1  ;;  %v4399_v50 = vpop.permute.xlu0 %4398  ;;  %v4035_v16 = vrot.slane %v3613_v13, 2  ;;  %v4034_v59 = vrot.slane %v3581_v34, 2 }
 0x6fa   :  { %v3276_v44 = vpop.permute.xlu2 %3275 }
 0x6fb   :  { %v3853_v49 = vsel %vm799_vm1, %v3851_v47, %v3852_v14  ;;  %v4036_v41 = vsel %vm1178_vm2, %v4034_v59, %v4035_v16  ;;  %v3408_v1 = vsel %vm3347_vm8, %v10510_v36, %v3276_v44 }
 0x6fc   :  { %3703 = vrot.lane.b32.xlu2 %v3581_v34, %s6052_s25  ;;  %3916 = vrot.lane.b32.xlu0 %v3853_v49, %s6043_s26 }
 0x6fe   :  { %v4302_v2 = vpop.permute.xlu1 %4301 }
 0x6ff   :  { %v4476_v9 = vsel %vm4459_vm10, %v9888_v43, %v4302_v2  ;;  %v10650_v43 = vpop.f32.mrf.mxu1 }
 0x700   :  { %v4509_v22 = vsel %vm4492_vm11, %v4476_v9, %v4399_v50 }
 0x701   :  { %5760 = vmatmul.msk.f32.gmra.mxu1 %vm4528_vm12, %v4509_v22  ;;  %v3694_v62 = vpop.permute.xlu0 %3693 }
 0x702   :  { %v3909_v54 = vpop.permute.xlu2 %3908 }
 0x704   :  { %4099 = vrot.lane.b32.xlu2 %v4036_v41, %s6053_s0 }
 0x706   :  { %v3272_v7 = vpop.permute.xlu1 %3271 }
 0x707   :  { %v3406_v37 = vsel %vm3347_vm8, %v10492_v56, %v3272_v7  ;;  %v10663_v18 = vpop.f32.mrf.mxu1 }
 0x708   :  { %v3441_v53 = vmax.f32 %v3406_v37, %v3407_v38 }
 0x709   :  { %v4090_v39 = vpop.permute.xlu0 %4089 }
 0x70a   :  { %v3518_v27 = vrot.slane %v3441_v53, 7 }
 0x70c   :  { %v3614_v5 = vsel %vm353_vm0, %v3518_v27, 0.0  ;;  %v3582_v24 = vsel %vm353_vm0, 0.0, %v3518_v27 }
 0x70d   :  { %3705 = vrot.lane.b32.xlu1 %v3582_v24, %s6052_s25  ;;  %v3854_v58 = vrot.slane %v3582_v24, 1  ;;  %v3855_v29 = vrot.slane %v3614_v5, 1  ;;  %v4038_v56 = vrot.slane %v3614_v5, 2  ;;  %v4037_v10 = vrot.slane %v3582_v24, 2 }
 0x70e   :  { %v3907_v19 = vpop.permute.xlu1 %3906 }
 0x70f   :  { %v4159_v32 = vsel %vm3347_vm8, %v3694_v62, %v3907_v19  ;;  %v3856_v17 = vsel %vm799_vm1, %v3854_v58, %v3855_v29  ;;  %v4039_v63 = vsel %vm1178_vm2, %v4037_v10, %v4038_v56  ;;  %v10677_v46 = vpop.f32.mrf.mxu1 }
 0x710   :  { %3918 = vrot.lane.b32.xlu2 %v3856_v17, %s6043_s26  ;;  %v10659_v48 = vsel %vm4167_vm9, %v4159_v32, %v4090_v39 }
 0x711   :  { %4410 = vrot.lane.b32.xlu0 %v10659_v48, %s6055_s12 }
 0x715   :  { %4101 = vrot.lane.b32.xlu1 %v4039_v63, %s6053_s0 }
 0x717   :  { %v4401_v20 = vpop.permute.xlu1 %4400  ;;  %v4403_v4 = vpop.permute.xlu2 %4402 }
 0x718   :  { %v4510_v61 = vsel %vm4492_vm11, %v4477_v60, %v4401_v20  ;;  %v10685_v30 = vpop.f32.mrf.mxu1 }
 0x719   :  { %4315 = vrot.lane.b32.xlu0 %v10659_v48, %s6054_s30  ;;  %5761 = vmatmul.msk.f32.gmra.mxu1 %vm4528_vm12, %v4510_v61 }
 0x71a   :  { %v3278_v57 = vpop.permute.xlu0 %3277 }
 0x71b   :  { %v3409_v15 = vsel %vm3347_vm8, %v10524_v25, %v3278_v57 }
 0x71c   :  { %v3442_v28 = vmax.f32 %v3408_v1, %v3409_v15 }
 0x71e   :  { %v3519_v23 = vrot.slane %v3442_v28, 7 }
 0x71f   :  { %v3696_v6 = vpop.permute.xlu1 %3695  ;;  %v3698_v49 = vpop.permute.xlu2 %3697 }
 0x720   :  { %v3615_v51 = vsel %vm353_vm0, %v3519_v23, 0.0  ;;  %v3583_v35 = vsel %vm353_vm0, 0.0, %v3519_v23  ;;  %v4160_v47 = vsel %vm3347_vm8, %v3696_v6, %v3909_v54  ;;  %v10698_v16 = vpop.f32.mrf.mxu1 }
 0x721   :  { %v3857_v33 = vrot.slane %v3583_v35, 1  ;;  %3707 = vrot.lane.b32.xlu0 %v3583_v35, %s6052_s25  ;;  %v3858_v21 = vrot.slane %v3615_v51, 1  ;;  %v4041_v13 = vrot.slane %v3615_v51, 2  ;;  %v4040_v34 = vrot.slane %v3583_v35, 2 }
 0x722   :  { %v4306_v0 = vpop.permute.xlu0 %4305 }
 0x723   :  { %v4478_v36 = vsel %vm4459_vm10, %v10468_v12, %v4306_v0  ;;  %v3859_v25 = vsel %vm799_vm1, %v3857_v33, %v3858_v21  ;;  %v4042_v12 = vsel %vm1178_vm2, %v4040_v34, %v4041_v13 }
 0x724   :  { %3920 = vrot.lane.b32.xlu1 %v3859_v25, %s6043_s26  ;;  %v4511_v8 = vsel %vm4492_vm11, %v4478_v36, %v4403_v4 }
 0x725   :  { %5762 = vmatmul.msk.f32.gmra.mxu1 %vm4528_vm12, %v4511_v8 }
 0x727   :  { %v4092_v14 = vpop.permute.xlu1 %4091  ;;  %v4094_v22 = vpop.permute.xlu2 %4093 }
 0x728   :  { %v10692_v50 = vsel %vm4167_vm9, %v4160_v47, %v4092_v14  ;;  %v10712_v37 = vpop.f32.mrf.mxu1 }
 0x729   :  { %4103 = vrot.lane.b32.xlu0 %v4042_v12, %s6053_s0  ;;  %4412 = vrot.lane.b32.xlu2 %v10692_v50, %s6055_s12 }
 0x72a   :  { %v3280_v2 = vpop.permute.xlu0 %3279 }
 0x72b   :  { %v3410_v3 = vsel %vm3347_vm8, %v10545_v26, %v3280_v2 }
 0x72f   :  { %v3913_v63 = vpop.permute.xlu2 %3912 }
 0x730   :  { %v10721_v19 = vpop.f32.mrf.mxu1 }
 0x731   :  { %4317 = vrot.lane.b32.xlu2 %v10692_v50, %s6054_s30 }
 0x732   :  { %v3911_v59 = vpop.permute.xlu0 %3910  ;;  %v3282_v9 = vpop.permute.xlu1 %3281 }
 0x733   :  { %v4161_v41 = vsel %vm3347_vm8, %v3698_v49, %v3911_v59  ;;  %v3411_v62 = vsel %vm3347_vm8, %v10559_v11, %v3282_v9 }
 0x734   :  { %v3443_v7 = vmax.f32 %v3410_v3, %v3411_v62  ;;  %v10708_v38 = vsel %vm4167_vm9, %v4161_v41, %v4094_v22 }
 0x735   :  { %4414 = vrot.lane.b32.xlu1 %v10708_v38, %s6055_s12 }
 0x736   :  { %v3520_v53 = vrot.slane %v3443_v7, 7 }
 0x738   :  { %v3616_v27 = vsel %vm353_vm0, %v3520_v53, 0.0  ;;  %v3584_v5 = vsel %vm353_vm0, 0.0, %v3520_v53  ;;  %v10725_v17 = vpop.f32.mrf.mxu1  ;;  %vm4972_vm0 = vcmask 1044484  }
 0x739   :  { %4203 = vrot.lane.b32.xlu2 %v3584_v5, %s6052_s25  ;;  %v4212_v26 = vrot.slane %v3584_v5, 1  ;;  %v4213_v24 = vrot.slane %v3616_v27, 1  ;;  %v4225_v58 = vrot.slane %v3616_v27, 2  ;;  %v4224_v29 = vrot.slane %v3584_v5, 2 }
 0x73a   :  { %v4308_v44 = vpop.permute.xlu1 %4307 }
 0x73b   :  { %v4214_v11 = vsel %vm799_vm1, %v4212_v26, %v4213_v24  ;;  %v4226_v39 = vsel %vm1178_vm2, %v4224_v29, %v4225_v58  ;;  %v4479_v56 = vsel %vm4459_vm10, %v10518_v45, %v4308_v44  ;;  %vm4975_vm1 = vcmask 1045509  }
 0x73c   :  { %4217 = vrot.lane.b32.xlu0 %v4214_v11, %s6043_s26  ;;  %vm4981_vm2 = vcmask 1047559  }
 0x73d   :  { %4319 = vrot.lane.b32.xlu1 %v10708_v38, %s6054_s30 }
 0x740   :  { %v10739_v57 = vpop.f32.mrf.mxu1 }
 0x741   :  { %4229 = vrot.lane.b32.xlu2 %v4226_v39, %s6053_s0 }
 0x743   :  { %v3700_v32 = vpop.permute.xlu1 %3699 }
 0x744   :  { %v4162_v54 = vsel %vm3347_vm8, %v3700_v32, %v3913_v63  ;;  %v10798_v32 = vld [vmem:[%s11895_s4] ss:$0 sm:$0xff]  ;;  %s6056_s4 = smov 112  }
 0x746   :  { %v4407_v1 = vpop.permute.xlu2 %4406 }
 0x747   :  { %v4405_v10 = vpop.permute.xlu0 %4404 }
 0x748   :  { %v4512_v60 = vsel %vm4492_vm11, %v4479_v56, %v4405_v10  ;;  %v10745_v23 = vpop.f32.mrf.mxu1 }
 0x749   :  { %5763 = vmatmul.msk.f32.gmra.mxu1 %vm4528_vm12, %v4512_v60 }
 0x74b   :  { %v4096_v20 = vpop.permute.xlu1 %4095 }
 0x74c   :  { %v10733_v61 = vsel %vm4167_vm9, %v4162_v54, %v4096_v20 }
 0x74d   :  { %4321 = vrot.lane.b32.xlu1 %v10733_v61, %s6054_s30  ;;  %4416 = vrot.lane.b32.xlu0 %v10733_v61, %s6055_s12 }
 0x74e   :  { %v4312_v51 = vpop.permute.xlu2 %4311 }
 0x74f   :  { %v4310_v45 = vpop.permute.xlu0 %4309 }
 0x750   :  { %v4480_v15 = vsel %vm4459_vm10, %v10553_v55, %v4310_v45  ;;  %v10747_v35 = vpop.f32.mrf.mxu1  ;;  %v4481_v55 = vsel %vm4459_vm10, %v10584_v42, %v4312_v51 }
 0x751   :  { %v4513_v28 = vsel %vm4492_vm11, %v4480_v15, %v4407_v1  ;;  %v10818_v1 = vadd.f32 %v10798_v32, %v10663_v18 }
 0x752   :  { %5764 = vmatmul.msk.f32.gmra.mxu1 %vm4528_vm12, %v4513_v28  ;;  %v10826_v28 = vadd.f32 %v10798_v32, %v10650_v43 }
 0x753   :  { %v3915_v6 = vpop.permute.xlu1 %3914 }
 0x756   :  { %v3704_v13 = vpop.permute.xlu2 %3703 }
 0x757   :  { %v3702_v4 = vpop.permute.xlu0 %3701 }
 0x758   :  { %v4163_v33 = vsel %vm3347_vm8, %v3702_v4, %v3915_v6  ;;  %v10761_v34 = vpop.f32.mrf.mxu1  ;;  %v4739_v6 = vmax.f32 %v10818_v1, 0.0 }
 0x75e   :  { %v4100_v14 = vpop.permute.xlu2 %4099 }
 0x75f   :  { %v4098_v21 = vpop.permute.xlu0 %4097 }
 0x760   :  { %v10751_v0 = vsel %vm4167_vm9, %v4163_v33, %v4098_v21  ;;  %v10763_v8 = vpop.f32.mrf.mxu1  ;;  %v4738_v21 = vmax.f32 %v10826_v28, 0.0 }
 0x761   :  { %4323 = vrot.lane.b32.xlu0 %v10751_v0, %s6054_s30  ;;  %4418 = vrot.lane.b32.xlu2 %v10751_v0, %s6055_s12 }
 0x762   :  { %v4409_v36 = vpop.permute.xlu1 %4408  ;;  %v5828_v43 = vpack.i.bf16 %v4739_v6, %v4738_v21 }
 0x763   :  { %v4514_v25 = vsel %vm4492_vm11, %v4481_v55, %v4409_v36  ;;  %v10841_v55 = vadd.f32 %v10798_v32, %v10712_v37  ;;  %v10845_v36 = vadd.f32 %v10798_v32, %v10698_v16 }
 0x764   :  { %5765 = vmatmul.msk.f32.gmra.mxu1 %vm4528_vm12, %v4514_v25 }
 0x765   :  { %v4743_v25 = vmax.f32 %v10841_v55, 0.0 }
 0x768   :  { %v10773_v42 = vpop.f32.mrf.mxu1 }
 0x76a   :  { %v4314_v2 = vpop.permute.xlu1 %4313  ;;  %v3919_v41 = vpop.permute.xlu2 %3918 }
 0x76b   :  { %v4482_v22 = vsel %vm4459_vm10, %v10615_v40, %v4314_v2 }
 0x76e   :  { %v3917_v47 = vpop.permute.xlu0 %3916 }
 0x76f   :  { %v4164_v12 = vsel %vm3347_vm8, %v3704_v13, %v3917_v47 }
 0x770   :  { %v10767_v49 = vsel %vm4167_vm9, %v4164_v12, %v4100_v14  ;;  %v10775_v59 = vpop.f32.mrf.mxu1  ;;  %v4742_v12 = vmax.f32 %v10845_v36, 0.0 }
 0x771   :  { %4420 = vrot.lane.b32.xlu1 %v10767_v49, %s6055_s12  ;;  %4325 = vrot.lane.b32.xlu2 %v10767_v49, %s6054_s30 }
 0x772   :  { %v5843_v16 = vpack.i.bf16 %v4743_v25, %v4742_v12 }
 0x778   :  { %v10782_v27 = vpop.f32.mrf.mxu1 }
 0x77f   :  { %v3706_v9 = vpop.permute.xlu1 %3705 }
 0x780   :  { %v4165_v7 = vsel %vm3347_vm8, %v3706_v9, %v3919_v41  ;;  %v4690_v11 = vpop.f32.mrf.mxu1 }
 0x781   :  { %v10808_v54 = vadd.f32 %v10798_v32, %v4690_v11 }
 0x783   :  { %v4411_v3 = vpop.permute.xlu0 %4410  ;;  %v4413_v26 = vpop.permute.xlu2 %4412  ;;  %v4754_v45 = vmax.f32 %v10808_v54, 0.0 }
 0x784   :  { %v4515_v62 = vsel %vm4492_vm11, %v4482_v22, %v4411_v3 }
 0x785   :  { %5766 = vmatmul.msk.f32.gmra.mxu1 %vm4528_vm12, %v4515_v62 }
 0x787   :  { %v4102_v53 = vpop.permute.xlu1 %4101 }
 0x788   :  { %v10785_v5 = vsel %vm4167_vm9, %v4165_v7, %v4102_v53 }
 0x789   :  { %4327 = vrot.lane.b32.xlu1 %v10785_v5, %s6054_s30  ;;  %4422 = vrot.lane.b32.xlu0 %v10785_v5, %s6055_s12 }
 0x78b   :  { %v4316_v40 = vpop.permute.xlu0 %4315  ;;  %v4318_v56 = vpop.permute.xlu2 %4317 }
 0x78c   :  { %v4483_v24 = vsel %vm4459_vm10, %v10623_v31, %v4316_v40  ;;  %v4484_v51 = vsel %vm4459_vm10, %v10659_v48, %v4318_v56 }
 0x78d   :  { %v4516_v44 = vsel %vm4492_vm11, %v4483_v24, %v4413_v26 }
 0x78e   :  { %5767 = vmatmul.msk.f32.gmra.mxu1 %vm4528_vm12, %v4516_v44 }
 0x793   :  { %v3708_v58 = vpop.permute.xlu0 %3707  ;;  %v4204_v4 = vpop.permute.xlu2 %4203 }
 0x796   :  { %v4693_v29 = vpop.f32.mrf.mxu1  ;;  %v3921_v39 = vpop.permute.xlu1 %3920 }
 0x797   :  { %v10801_v10 = vadd.f32 %v10798_v32, %v4693_v29  ;;  %v4166_v63 = vsel %vm3347_vm8, %v3708_v58, %v3921_v39 }
 0x799   :  { %v4755_v20 = vmax.f32 %v10801_v10, 0.0 }
 0x79b   :  { %v4104_v31 = vpop.permute.xlu0 %4103  ;;  %v5813_v15 = vpack.i.bf16 %v4755_v20, %v4754_v45  ;;  %v4230_v13 = vpop.permute.xlu2 %4229 }
 0x79c   :  { %v10805_v60 = vsel %vm4167_vm9, %v4166_v63, %v4104_v31 }
 0x79d   :  { %4329 = vrot.lane.b32.xlu0 %v10805_v60, %s6054_s30  ;;  %4424 = vrot.lane.b32.xlu2 %v10805_v60, %s6055_s12 }
 0x7a2   :  { %v4696_v2 = vpop.f32.mrf.mxu1 }
 0x7a3   :  { %v10864_v62 = vadd.f32 %v10798_v32, %v4696_v2 }
 0x7a5   :  { %5814 = vrot.lane.b32.xlu0 %v5813_v15, %s6056_s4 }
 0x7a7   :  { %v4415_v18 = vpop.permute.xlu1 %4414 }
 0x7a8   :  { %v4517_v33 = vsel %vm4492_vm11, %v4484_v51, %v4415_v18  ;;  %v10894_v18 = vadd.f32 %v10798_v32, %v10685_v30 }
 0x7a9   :  { %5768 = vmatmul.msk.f32.gmra.mxu1 %vm4528_vm12, %v4517_v33 }
 0x7ad   :  { %5829 = vrot.lane.b32.xlu0 %v5828_v43, %s6056_s4  ;;  %v4741_v43 = vmax.f32 %v10894_v18, 0.0 }
 0x7ae   :  { %v4218_v48 = vpop.permute.xlu0 %4217 }
 0x7af   :  { %v4234_v47 = vsel %vm3347_vm8, %v4204_v4, %v4218_v48  ;;  %v4320_v37 = vpop.permute.xlu1 %4319  ;;  %vm5647_vm8 = vcmask 74752  }
 0x7b0   :  { %v4236_v14 = vsel %vm4167_vm9, %v4234_v47, %v4230_v13  ;;  %v4485_v9 = vsel %vm4459_vm10, %v10692_v50, %v4320_v37  ;;  %v4756_v50 = vmax.f32 %v10864_v62, 0.0  ;;  %v10913_v13 = vadd.f32 %v10798_v32, %v10725_v17 }
 0x7b1   :  { %4426 = vrot.lane.b32.xlu1 %v4236_v14, %s6055_s12  ;;  %4331 = vrot.lane.b32.xlu2 %v4236_v14, %s6054_s30  ;;  %v10917_v47 = vadd.f32 %v10798_v32, %v10721_v19 }
 0x7b3   :  { %v4744_v14 = vmax.f32 %v10917_v47, 0.0 }
 0x7b5   :  { %5844 = vrot.lane.b32.xlu0 %v5843_v16, %s6056_s4 }
 0x7bb   :  { %v4419_v40 = vpop.permute.xlu2 %4418 }
 0x7bf   :  { %v4417_v22 = vpop.permute.xlu0 %4416  ;;  %v4322_v41 = vpop.permute.xlu1 %4321 }
 0x7c0   :  { %v4518_v3 = vsel %vm4492_vm11, %v4485_v9, %v4417_v22  ;;  %v4486_v7 = vsel %vm4459_vm10, %v10708_v38, %v4322_v41 }
 0x7c1   :  { %5769 = vmatmul.msk.f32.gmra.mxu1 %vm4528_vm12, %v4518_v3  ;;  %v4519_v24 = vsel %vm4492_vm11, %v4486_v7, %v4419_v40 }
 0x7c6   :  { %v4699_v53 = vpop.f32.mrf.mxu1 }
 0x7c7   :  { %v10869_v26 = vadd.f32 %v10798_v32, %v4699_v53 }
 0x7c9   :  { %v4757_v44 = vmax.f32 %v10869_v26, 0.0  ;;  %5770 = vmatmul.msk.f32.gmra.mxu1 %vm4528_vm12, %v4519_v24 }
 0x7cb   :  { %v5818_v11 = vpack.i.bf16 %v4757_v44, %v4756_v50  ;;  %v4326_v37 = vpop.permute.xlu2 %4325 }
 0x7cc   :  { %v4488_v17 = vsel %vm4459_vm10, %v10751_v0, %v4326_v37 }
 0x7cd   :  { %5819 = vrot.lane.b32.xlu1 %v5818_v11, %s6056_s4 }
 0x7cf   :  { %v4702_v38 = vpop.f32.mrf.mxu1 }
 0x7d0   :  { %v10881_v58 = vadd.f32 %v10798_v32, %v4702_v38 }
 0x7d2   :  { %v4758_v15 = vmax.f32 %v10881_v58, 0.0 }
 0x7d3   :  { %v4324_v29 = vpop.permute.xlu0 %4323 }
 0x7d4   :  { %v4487_v63 = vsel %vm4459_vm10, %v10733_v61, %v4324_v29  ;;  %v10902_v61 = vadd.f32 %v10798_v32, %v10677_v46  ;;  %v4745_v46 = vmax.f32 %v10913_v13, 0.0 }
 0x7d6   :  { %v4740_v48 = vmax.f32 %v10902_v61, 0.0  ;;  %v5853_v16 = vpack.i.bf16 %v4745_v46, %v4744_v14 }
 0x7d8   :  { %v5838_v30 = vpack.i.bf16 %v4741_v43, %v4740_v48 }
 0x7e1   :  { %v4705_v39 = vpop.f32.mrf.mxu1 }
 0x7e2   :  { %v10884_v56 = vadd.f32 %v10798_v32, %v4705_v39 }
 0x7e3   :  { %v4421_v31 = vpop.permute.xlu1 %4420 }
 0x7e4   :  { %v4759_v4 = vmax.f32 %v10884_v56, 0.0  ;;  %v4520_v51 = vsel %vm4492_vm11, %v4487_v63, %v4421_v31 }
 0x7e5   :  { %5771 = vmatmul.msk.f32.gmra.mxu1 %vm4528_vm12, %v4520_v51 }
 0x7e6   :  { %v5823_v33 = vpack.i.bf16 %v4759_v4, %v4758_v15 }
 0x7e8   :  { %5824 = vrot.lane.b32.xlu2 %v5823_v33, %s6056_s4 }
 0x7f0   :  { %5839 = vrot.lane.b32.xlu2 %v5838_v30, %s6056_s4 }
 0x7f7   :  { %v4425_v41 = vpop.permute.xlu2 %4424 }
 0x7f8   :  { %5854 = vrot.lane.b32.xlu2 %v5853_v16, %s6056_s4 }
 0x7fb   :  { %v4423_v2 = vpop.permute.xlu0 %4422  ;;  %v4328_v9 = vpop.permute.xlu1 %4327 }
 0x7fc   :  { %v4521_v19 = vsel %vm4492_vm11, %v4488_v17, %v4423_v2  ;;  %v4489_v22 = vsel %vm4459_vm10, %v10767_v49, %v4328_v9 }
 0x7fd   :  { %5772 = vmatmul.msk.f32.gmra.mxu1 %vm4528_vm12, %v4521_v19  ;;  %v4522_v7 = vsel %vm4492_vm11, %v4489_v22, %v4425_v41  ;;  %v10967_v41 = vadd.f32 %v10798_v32, %v10745_v23 }
 0x802   :  { %v4708_v3 = vpop.f32.mrf.mxu1 }
 0x803   :  { %v10936_v53 = vadd.f32 %v10798_v32, %v4708_v3 }
 0x805   :  { %5773 = vmatmul.msk.f32.gmra.mxu1 %vm4528_vm12, %v4522_v7  ;;  %v4760_v24 = vmax.f32 %v10936_v53, 0.0 }
 0x80b   :  { %v4711_v40 = vpop.f32.mrf.mxu1  ;;  %v4332_v31 = vpop.permute.xlu2 %4331 }
 0x80c   :  { %v10939_v0 = vadd.f32 %v10798_v32, %v4711_v40  ;;  %v4491_v51 = vsel %vm4459_vm10, %v10805_v60, %v4332_v31  ;;  %v10975_v40 = vadd.f32 %v10798_v32, %v10739_v57  ;;  %v4747_v31 = vmax.f32 %v10967_v41, 0.0 }
 0x80d   :  { %v4524_v33 = vsel %vm4492_vm11, %v4491_v51, %v10597_v52 }
 0x80e   :  { %v4761_v11 = vmax.f32 %v10939_v0, 0.0  ;;  %v4746_v51 = vmax.f32 %v10975_v40, 0.0 }
 0x80f   :  { %v4330_v38 = vpop.permute.xlu0 %4329 }
 0x810   :  { %v5833_v49 = vpack.i.bf16 %v4761_v11, %v4760_v24  ;;  %v4490_v29 = vsel %vm4459_vm10, %v10785_v5, %v4330_v38 }
 0x812   :  { %5834 = vrot.lane.b32.xlu1 %v5833_v49, %s6056_s4 }
 0x817   :  { %v5815_v30 = vpop.permute.xlu0 %5814 }
 0x818   :  { %v5817_v49 = vunpack.i.h.bf16 %v5815_v30  ;;  %v5816_v38 = vunpack.i.l.bf16 %v5815_v30 }
 0x81a   :  { %v4915_v57 = vmax.f32 %v4755_v20, %v5817_v49 }
 0x81f   :  { %v5830_v17 = vpop.permute.xlu0 %5829 }
 0x823   :  { %v4427_v39 = vpop.permute.xlu1 %4426 }
 0x824   :  { %v4523_v63 = vsel %vm4492_vm11, %v4490_v29, %v4427_v39 }
 0x825   :  { %5774 = vmatmul.msk.f32.gmra.mxu1 %vm4528_vm12, %v4523_v63 }
 0x826   :  { %v4714_v16 = vpop.f32.mrf.mxu1 }
 0x827   :  { %v10958_v37 = vadd.f32 %v10798_v32, %v4714_v16  ;;  %v5845_v30 = vpop.permute.xlu0 %5844 }
 0x828   :  { %v5846_v54 = vunpack.i.l.bf16 %v5845_v30 }
 0x829   :  { %v4762_v9 = vmax.f32 %v10958_v37, 0.0 }
 0x82d   :  { %5775 = vmatmul.msk.f32.gmra.mxu1 %vm4528_vm12, %v4524_v33  ;;  %v4914_v33 = vmax.f32 %v4754_v45, %v5816_v38 }
 0x82f   :  { %v10998_v45 = vmax.f32 %v4914_v33, %v4915_v57 }
 0x83e   :  { %v4717_v5 = vpop.f32.mrf.mxu1 }
 0x83f   :  { %v10961_v2 = vadd.f32 %v10798_v32, %v4717_v5  ;;  %v5820_v19 = vpop.permute.xlu1 %5819  ;;  %v5847_v5 = vunpack.i.h.bf16 %v5845_v30  ;;  %v11051_v30 = vadd.f32 %v10798_v32, %v10761_v34 }
 0x840   :  { %v5822_v22 = vunpack.i.h.bf16 %v5820_v19  ;;  %v5821_v3 = vunpack.i.l.bf16 %v5820_v19  ;;  %v5832_v19 = vunpack.i.h.bf16 %v5830_v17 }
 0x841   :  { %v4763_v60 = vmax.f32 %v10961_v2, 0.0 }
 0x842   :  { %v5825_v52 = vpop.permute.xlu2 %5824  ;;  %v4917_v29 = vmax.f32 %v4757_v44, %v5822_v22  ;;  %v4916_v23 = vmax.f32 %v4756_v50, %v5821_v3  ;;  %v5863_v44 = vpack.i.bf16 %v4747_v31, %v4746_v51  ;;  %v5831_v22 = vunpack.i.l.bf16 %v5830_v17 }
 0x843   :  { %v5848_v7 = vpack.i.bf16 %v4763_v60, %v4762_v9  ;;  %v5827_v39 = vunpack.i.h.bf16 %v5825_v52  ;;  %v5826_v63 = vunpack.i.l.bf16 %v5825_v52  ;;  %v4903_v3 = vmax.f32 %v4743_v25, %v5847_v5 }
 0x844   :  { %v10988_v16 = vmax.f32 %v4916_v23, %v4917_v29  ;;  %v4902_v52 = vmax.f32 %v4742_v12, %v5846_v54  ;;  %v4898_v18 = vmax.f32 %v4738_v21, %v5831_v22 }
 0x845   :  { %5849 = vrot.lane.b32.xlu1 %v5848_v7, %s6056_s4  ;;  %v4919_v26 = vmax.f32 %v4759_v4, %v5827_v39  ;;  %v4918_v62 = vmax.f32 %v4758_v15, %v5826_v63  ;;  %v4899_v7 = vmax.f32 %v4739_v6, %v5832_v19 }
 0x846   :  { %v4983_v4 = vrot.slane %v10988_v16, 7  ;;  %v11021_v25 = vmax.f32 %v4902_v52, %v4903_v3  ;;  %v4720_v23 = vpop.f32.mrf.mxu1 }
 0x847   :  { %v11001_v56 = vmax.f32 %v4918_v62, %v4919_v26  ;;  %v11027_v1 = vmax.f32 %v4898_v18, %v4899_v7  ;;  %v11059_v62 = vadd.f32 %v10798_v32, %v10747_v35 }
 0x848   :  { %v4984_v17 = vsel %vm4963_vm13, %v4983_v4, %v10998_v45  ;;  %v4965_v29 = vrot.slane %v11021_v25, 6 }
 0x84a   :  { %v5840_v50 = vpop.permute.xlu2 %5839 }
 0x84b   :  { %v5842_v10 = vunpack.i.h.bf16 %v5840_v50  ;;  %v5841_v20 = vunpack.i.l.bf16 %v5840_v50  ;;  %v4749_v50 = vmax.f32 %v11051_v30, 0.0 }
 0x84d   :  { %5864 = vrot.lane.b32.xlu1 %v5863_v44, %s6056_s4  ;;  %v4901_v58 = vmax.f32 %v4741_v43, %v5842_v10  ;;  %v4900_v15 = vmax.f32 %v4740_v48, %v5841_v20  ;;  %v4985_v48 = vrot.slane %v11001_v56, 6  ;;  %v4748_v44 = vmax.f32 %v11059_v62, 0.0 }
 0x84e   :  { %v11070_v10 = vadd.f32 %v10798_v32, %v10782_v27  ;;  %v11074_v20 = vadd.f32 %v10798_v32, %v10775_v59 }
 0x84f   :  { %v11018_v61 = vmax.f32 %v4900_v15, %v4901_v58  ;;  %v4986_v6 = vsel %vm4966_vm14, %v4985_v48, %v4984_v17  ;;  %v5873_v34 = vpack.i.bf16 %v4749_v50, %v4748_v44  ;;  %v11094_v17 = vadd.f32 %v10798_v32, %v10773_v42 }
 0x850   :  { %v4753_v35 = vmax.f32 %v11070_v10, 0.0  ;;  %v4752_v5 = vmax.f32 %v11074_v20, 0.0  ;;  %v11106_v48 = vadd.f32 %v10798_v32, %v10763_v8 }
 0x851   :  { %v4962_v28 = vrot.slane %v11018_v61, 7  ;;  %v4751_v42 = vmax.f32 %v11094_v17, 0.0 }
 0x852   :  { %v5855_v43 = vpop.permute.xlu2 %5854  ;;  %v5888_v54 = vpack.i.bf16 %v4753_v35, %v4752_v5 }
 0x853   :  { %v5857_v49 = vunpack.i.h.bf16 %v5855_v43  ;;  %v5856_v55 = vunpack.i.l.bf16 %v5855_v43  ;;  %v4964_v38 = vsel %vm4963_vm13, %v4962_v28, %v11027_v1 }
 0x854   :  { %v4967_v13 = vsel %vm4966_vm14, %v4965_v29, %v4964_v38 }
 0x855   :  { %v4905_v36 = vmax.f32 %v4745_v46, %v5857_v49  ;;  %v4904_v12 = vmax.f32 %v4744_v14, %v5856_v55  ;;  %v11042_v14 = vadd.f32 %v10798_v32, %v4720_v23 }
 0x857   :  { %v11031_v21 = vmax.f32 %v4904_v12, %v4905_v36  ;;  %v4764_v57 = vmax.f32 %v11042_v14, 0.0  ;;  %v4750_v36 = vmax.f32 %v11106_v48, 0.0 }
 0x859   :  { %v4968_v47 = vrot.slane %v11031_v21, 5 }
 0x85b   :  { %v11039_v46 = vsel %vm4969_vm15, %v4968_v47, %v4967_v13 }
 0x862   :  { %v4723_v39 = vpop.f32.mrf.mxu1 }
 0x863   :  { %v11045_v63 = vadd.f32 %v10798_v32, %v4723_v39 }
 0x865   :  { %v4765_v33 = vmax.f32 %v11045_v63, 0.0 }
 0x867   :  { %v5858_v26 = vpack.i.bf16 %v4765_v33, %v4764_v57 }
 0x869   :  { %5859 = vrot.lane.b32.xlu0 %v5858_v26, %s6056_s4 }
 0x871   :  { %5874 = vrot.lane.b32.xlu0 %v5873_v34, %s6056_s4 }
 0x879   :  { %5889 = vrot.lane.b32.xlu0 %v5888_v54, %s6056_s4 }
 0x87a   :  { %v4726_v19 = vpop.f32.mrf.mxu1 }
 0x87b   :  { %v11085_v27 = vadd.f32 %v10798_v32, %v4726_v19 }
 0x87d   :  { %v4766_v15 = vmax.f32 %v11085_v27, 0.0 }
 0x882   :  { %v4729_v22 = vpop.f32.mrf.mxu1 }
 0x883   :  { %v11088_v59 = vadd.f32 %v10798_v32, %v4729_v22 }
 0x884   :  { %v5835_v58 = vpop.permute.xlu1 %5834 }
 0x885   :  { %v4767_v4 = vmax.f32 %v11088_v59, 0.0  ;;  %v5837_v3 = vunpack.i.h.bf16 %v5835_v58  ;;  %v5836_v52 = vunpack.i.l.bf16 %v5835_v58 }
 0x887   :  { %v5868_v7 = vpack.i.bf16 %v4767_v4, %v4766_v15  ;;  %v4921_v18 = vmax.f32 %v4761_v11, %v5837_v3  ;;  %v4920_v43 = vmax.f32 %v4760_v24, %v5836_v52  ;;  %v5883_v11 = vpack.i.bf16 %v4751_v42, %v4750_v36 }
 0x889   :  { %v11108_v49 = vmax.f32 %v4920_v43, %v4921_v18  ;;  %5869 = vrot.lane.b32.xlu2 %v5868_v7, %s6056_s4 }
 0x88b   :  { %v4987_v55 = vrot.slane %v11108_v49, 5 }
 0x88d   :  { %v4988_v0 = vsel %vm4969_vm15, %v4987_v55, %v4986_v6 }
 0x891   :  { %5884 = vrot.lane.b32.xlu2 %v5883_v11, %s6056_s4 }
 0x8a2   :  { %v4732_v53 = vpop.f32.mrf.mxu1 }
 0x8a3   :  { %v11117_v24 = vadd.f32 %v10798_v32, %v4732_v53 }
 0x8a5   :  { %v4768_v28 = vmax.f32 %v11117_v24, 0.0  ;;  %v5298_v24 = vld [vmem:[%s11896_s5 + $0x58] sm:$0xff] }
 0x8aa   :  { %v4735_v8 = vpop.f32.mrf.mxu1 }
 0x8ab   :  { %v11120_v12 = vadd.f32 %v10798_v32, %v4735_v8 }
 0x8ad   :  { %v4769_v38 = vmax.f32 %v11120_v12, 0.0 }
 0x8af   :  { %v5878_v6 = vpack.i.bf16 %v4769_v38, %v4768_v28 }
 0x8b1   :  { %5879 = vrot.lane.b32.xlu1 %v5878_v6, %s6056_s4 }
 0x8b7   :  { %v5850_v29 = vpop.permute.xlu1 %5849 }
 0x8b8   :  { %v5852_v23 = vunpack.i.h.bf16 %v5850_v29  ;;  %v5851_v13 = vunpack.i.l.bf16 %v5850_v29 }
 0x8ba   :  { %v4923_v47 = vmax.f32 %v4763_v60, %v5852_v23  ;;  %v4922_v32 = vmax.f32 %v4762_v9, %v5851_v13 }
 0x8bc   :  { %v11133_v39 = vmax.f32 %v4922_v32, %v4923_v47 }
 0x8be   :  { %v4989_v34 = vrot.slane %v11133_v39, 4 }
 0x8bf   :  { %v5865_v26 = vpop.permute.xlu1 %5864 }
 0x8c0   :  { %v5867_v54 = vunpack.i.h.bf16 %v5865_v26  ;;  %v5866_v19 = vunpack.i.l.bf16 %v5865_v26  ;;  %v4990_v2 = vsel %vm4972_vm0, %v4989_v34, %v4988_v0 }
 0x8c2   :  { %v4907_v22 = vmax.f32 %v4747_v31, %v5867_v54  ;;  %v4906_v58 = vmax.f32 %v4746_v51, %v5866_v19  ;;  %v5183_v54 = vrot.slane %v10998_v45, 6  ;;  %v5149_v19 = vrot.slane %v10998_v45, 5 }
 0x8c4   :  { %v11141_v60 = vmax.f32 %v4906_v58, %v4907_v22  ;;  %v5115_v22 = vrot.slane %v10998_v45, 4  ;;  %v5217_v58 = vrot.slane %v10998_v45, 7 }
 0x8c6   :  { %v4971_v37 = vrot.slane %v11141_v60, 4 }
 0x8c8   :  { %v4973_v9 = vsel %vm4972_vm0, %v4971_v37, %v11039_v46  ;;  %v5033_v37 = vrot.slane %v11027_v1, 2 }
 0x8db   :  { %v5860_v3 = vpop.permute.xlu0 %5859 }
 0x8dc   :  { %v5862_v52 = vunpack.i.h.bf16 %v5860_v3  ;;  %v5861_v17 = vunpack.i.l.bf16 %v5860_v3  ;;  %v4999_v3 = vrot.slane %v11027_v1, 1 }
 0x8de   :  { %v4925_v7 = vmax.f32 %v4765_v33, %v5862_v52  ;;  %v4924_v41 = vmax.f32 %v4764_v57, %v5861_v17  ;;  %v5082_v52 = vrot.slane %v10988_v16, 2  ;;  %v5169_v17 = vrot.slane %v11027_v1, 6 }
 0x8e0   :  { %v11150_v40 = vmax.f32 %v4924_v41, %v4925_v7  ;;  %v5184_v7 = vrot.slane %v10988_v16, 5  ;;  %v5135_v41 = vrot.slane %v11027_v1, 5 }
 0x8e2   :  { %v4991_v18 = vrot.slane %v11150_v40, 3 }
 0x8e3   :  { %v5875_v31 = vpop.permute.xlu0 %5874  ;;  %v5870_v51 = vpop.permute.xlu2 %5869 }
 0x8e4   :  { %v4992_v43 = vsel %vm4975_vm1, %v4991_v18, %v4990_v2  ;;  %v5877_v48 = vunpack.i.h.bf16 %v5875_v31  ;;  %v5876_v46 = vunpack.i.l.bf16 %v5875_v31  ;;  %v5872_v57 = vunpack.i.h.bf16 %v5870_v51 }
 0x8e5   :  { %v5871_v33 = vunpack.i.l.bf16 %v5870_v51  ;;  %v5067_v2 = vrot.slane %v11027_v1, 3  ;;  %v5070_v31 = vrot.slane %v11021_v25, 1  ;;  %v5101_v51 = vrot.slane %v11027_v1, 4 }
 0x8e6   :  { %v4909_v63 = vmax.f32 %v4749_v50, %v5877_v48  ;;  %v4908_v14 = vmax.f32 %v4748_v44, %v5876_v46  ;;  %v4927_v23 = vmax.f32 %v4767_v4, %v5872_v57  ;;  %v5081_v4 = vrot.slane %v10998_v45, 3 }
 0x8e7   :  { %v4926_v13 = vmax.f32 %v4766_v15, %v5871_v33  ;;  %v5203_v18 = vrot.slane %v11027_v1, 7  ;;  %v5138_v48 = vrot.slane %v11021_v25, 3  ;;  %v5104_v46 = vrot.slane %v11021_v25, 2 }
 0x8e8   :  { %v11158_v29 = vmax.f32 %v4908_v14, %v4909_v63  ;;  %v5150_v14 = vrot.slane %v10988_v16, 4  ;;  %v5116_v57 = vrot.slane %v10988_v16, 3  ;;  %v5068_v33 = vrot.slane %v11018_v61, 2 }
 0x8e9   :  { %v11169_v32 = vmax.f32 %v4926_v13, %v4927_v23  ;;  %v5083_v1 = vsel %vm4963_vm13, %v5082_v52, %v5081_v4  ;;  %v5152_v23 = vrot.slane %v11001_v56, 3  ;;  %v5218_v13 = vrot.slane %v10988_v16, 6 }
 0x8ea   :  { %v4974_v47 = vrot.slane %v11158_v29, 3  ;;  %v5102_v4 = vrot.slane %v11018_v61, 3 }
 0x8eb   :  { %v5890_v55 = vpop.permute.xlu0 %5889  ;;  %v5885_v0 = vpop.permute.xlu2 %5884  ;;  %v4993_v20 = vrot.slane %v11169_v32, 2 }
 0x8ec   :  { %v5892_v11 = vunpack.i.h.bf16 %v5890_v55  ;;  %v5891_v53 = vunpack.i.l.bf16 %v5890_v55  ;;  %v5887_v8 = vunpack.i.h.bf16 %v5885_v0  ;;  %v5886_v6 = vunpack.i.l.bf16 %v5885_v0 }
 0x8ed   :  { %v4976_v59 = vsel %vm4975_vm1, %v4974_v47, %v4973_v9  ;;  %v5048_v9 = vrot.slane %v10988_v16, 1  ;;  %v5206_v55 = vrot.slane %v11021_v25, 5  ;;  %v5136_v47 = vrot.slane %v11018_v61, 4 }
 0x8ee   :  { %v4913_v30 = vmax.f32 %v4753_v35, %v5892_v11  ;;  %v4912_v62 = vmax.f32 %v4752_v5, %v5891_v53  ;;  %v4911_v50 = vmax.f32 %v4751_v42, %v5887_v8  ;;  %v4910_v44 = vmax.f32 %v4750_v36, %v5886_v6 }
 0x8ef   :  { %v11181_v5 = vsel %vm4978_vm3, %v4993_v20, %v4992_v43  ;;  %v5047_v42 = vrot.slane %v10998_v45, 2  ;;  %v5013_v36 = vrot.slane %v10998_v45, 1  ;;  %v5001_v45 = vrot.slane %v11021_v25, 7 }
 0x8f0   :  { %v11171_v26 = vmax.f32 %v4912_v62, %v4913_v30  ;;  %v11173_v34 = vmax.f32 %v4910_v44, %v4911_v50  ;;  %v5172_v43 = vrot.slane %v11021_v25, 4  ;;  %v5084_v11 = vrot.slane %v11001_v56, 1 }
 0x8f1   :  { %v5049_v0 = vsel %vm4963_vm13, %v5048_v9, %v5047_v42  ;;  %v5014_v63 = vsel %vm4963_vm13, %v10988_v16, %v5013_v36  ;;  %v5185_v53 = vsel %vm4963_vm13, %v5184_v7, %v5183_v54  ;;  %v5015_v8 = vrot.slane %v11001_v56, 7 }
 0x8f2   :  { %v4977_v27 = vrot.slane %v11173_v34, 2  ;;  %v4980_v10 = vrot.slane %v11171_v26, 1  ;;  %v5186_v6 = vrot.slane %v11001_v56, 4  ;;  %v5034_v30 = vrot.slane %v11018_v61, 1 }
 0x8f3   :  { %v5050_v62 = vsel %vm4966_vm14, %v11001_v56, %v5049_v0  ;;  %v5170_v50 = vrot.slane %v11018_v61, 5  ;;  %v5118_v44 = vrot.slane %v11001_v56, 2  ;;  %v5069_v20 = vsel %vm4963_vm13, %v5068_v33, %v5067_v2 }
 0x8f4   :  { %v4979_v35 = vsel %vm4978_vm3, %v4977_v27, %v4976_v59  ;;  %v5151_v59 = vsel %vm4963_vm13, %v5150_v14, %v5149_v19  ;;  %v5117_v27 = vsel %vm4963_vm13, %v5116_v57, %v5115_v22  ;;  %v5085_v16 = vsel %vm4966_vm14, %v5084_v11, %v5083_v1 }
 0x8f5   :  { %v11184_v15 = vsel %vm4981_vm2, %v4980_v10, %v4979_v35  ;;  %v5220_v10 = vrot.slane %v11001_v56, 5  ;;  %v5000_v35 = vsel %vm4963_vm13, %v11018_v61, %v4999_v3  ;;  %v5016_v42 = vsel %vm4966_vm14, %v5015_v8, %v5014_v63 }
 0x8f6   :  { %v5187_v36 = vsel %vm4966_vm14, %v5186_v6, %v5185_v53  ;;  %v5153_v54 = vsel %vm4966_vm14, %v5152_v23, %v5151_v59  ;;  %v5219_v19 = vsel %vm4963_vm13, %v5218_v13, %v5217_v58  ;;  %v5035_v22 = vsel %vm4963_vm13, %v5034_v30, %v5033_v37 }
 0x8f7   :  { %v5171_v56 = vsel %vm4963_vm13, %v5170_v50, %v5169_v17  ;;  %v5119_v2 = vsel %vm4966_vm14, %v5118_v44, %v5117_v27  ;;  %v5204_v9 = vrot.slane %v11018_v61, 6  ;;  %v5071_v3 = vsel %vm4966_vm14, %v5070_v31, %v5069_v20 }
 0x8f8   :  { %v5002_v52 = vsel %vm4966_vm14, %v5001_v45, %v5000_v35  ;;  %v5137_v7 = vsel %vm4963_vm13, %v5136_v47, %v5135_v41  ;;  %v11248_v0 = vsel %vm4966_vm14, %v5220_v10, %v5219_v19  ;;  %v5037_v63 = vrot.slane %v11031_v21, 7 }
 0x8f9   :  { %v5003_v58 = vrot.slane %v11031_v21, 6  ;;  %v5174_v37 = vrot.slane %v11031_v21, 3  ;;  %v5103_v17 = vsel %vm4963_vm13, %v5102_v4, %v5101_v51  ;;  %v5036_v61 = vsel %vm4966_vm14, %v11021_v25, %v5035_v22 }
 0x8fa   :  { %v5173_v31 = vsel %vm4966_vm14, %v5172_v43, %v5171_v56  ;;  %v5140_v45 = vrot.slane %v11031_v21, 2  ;;  %v5106_v41 = vrot.slane %v11031_v21, 1  ;;  %v5051_v14 = vrot.slane %v11108_v49, 7 }
 0x8fb   :  { %v5017_v57 = vrot.slane %v11108_v49, 6  ;;  %v5139_v33 = vsel %vm4966_vm14, %v5138_v48, %v5137_v7  ;;  %v11263_v1 = vsel %vm4963_vm13, %v5204_v9, %v5203_v18  ;;  %v5072_v51 = vsel %vm4969_vm15, %v11031_v21, %v5071_v3 }
 0x8fc   :  { %v5188_v11 = vrot.slane %v11108_v49, 3  ;;  %v5154_v43 = vrot.slane %v11108_v49, 2  ;;  %v5105_v53 = vsel %vm4966_vm14, %v5104_v46, %v5103_v17  ;;  %v5038_v8 = vsel %vm4969_vm15, %v5037_v63, %v5036_v61 }
 0x8fd   :  { %v5004_v6 = vsel %vm4969_vm15, %v5003_v58, %v5002_v52  ;;  %v5175_v23 = vsel %vm4969_vm15, %v5174_v37, %v5173_v31  ;;  %v5120_v48 = vrot.slane %v11108_v49, 1  ;;  %v5086_v18 = vsel %vm4969_vm15, %v11108_v49, %v5085_v16 }
 0x8fe   :  { %v5087_v13 = vrot.slane %v11133_v39, 7  ;;  %v5141_v30 = vsel %vm4969_vm15, %v5140_v45, %v5139_v33  ;;  %v5107_v50 = vsel %vm4969_vm15, %v5106_v41, %v5105_v53  ;;  %v5052_v44 = vsel %vm4969_vm15, %v5051_v14, %v5050_v62  ;;  %v5318_v45 = vld [vmem:[%s11896_s5 + $0xf8] sm:$0xff]  ;;  %v5317_v41 = vld [vmem:[%s11896_s5 + $0xf0] sm:$0xff] }
 0x8ff   :  { %v5053_v46 = vrot.slane %v11133_v39, 6  ;;  %v5018_v47 = vsel %vm4969_vm15, %v5017_v57, %v5016_v42  ;;  %v5019_v59 = vrot.slane %v11133_v39, 5  ;;  %v5189_v27 = vsel %vm4969_vm15, %v5188_v11, %v5187_v36  ;;  %5439 = vmatpush.msrb.mxu3 %v5318_v45  ;;  %v5302_v11 = vld [vmem:[%s11896_s5 + $0x78] sm:$0xff] }
 0x900   :  { %v5190_v10 = vrot.slane %v11133_v39, 2  ;;  %v5155_v20 = vsel %vm4969_vm15, %v5154_v43, %v5153_v54  ;;  %v5156_v16 = vrot.slane %v11133_v39, 1  ;;  %v5073_v35 = vrot.slane %v11141_v60, 7  ;;  %5419 = vmatpush.msrb.mxu2 %v5302_v11 }
 0x901   :  { %v5039_v4 = vrot.slane %v11141_v60, 6  ;;  %v5005_v62 = vrot.slane %v11141_v60, 5  ;;  %v5121_v19 = vsel %vm4969_vm15, %v5120_v48, %v5119_v2  ;;  %v5088_v42 = vsel %vm4972_vm0, %v5087_v13, %v5086_v18  ;;  %v5301_v48 = vld [vmem:[%s11896_s5 + $0x70] sm:$0xff]  ;;  %5440 = vmatpush.msrb.mxu3 %v5317_v41 }
 0x902   :  { %v5176_v22 = vrot.slane %v11141_v60, 2  ;;  %v5142_v36 = vrot.slane %v11141_v60, 1  ;;  %v11296_v56 = vsel %vm4972_vm0, %v11133_v39, %v5121_v19  ;;  %v5089_v54 = vrot.slane %v11150_v40, 6  ;;  %5420 = vmatpush.msrb.mxu2 %v5301_v48  ;;  %v5299_v19 = vld [vmem:[%s11896_s5 + $0x60] sm:$0xff]  ;;  %v5297_v41 = vld [vmem:[%s11896_s5 + $0x50] sm:$0xff] }
 0x903   :  { %v5054_v9 = vsel %vm4972_vm0, %v5053_v46, %v5052_v44  ;;  %v5055_v3 = vrot.slane %v11150_v40, 5  ;;  %v5020_v52 = vsel %vm4972_vm0, %v5019_v59, %v5018_v47  ;;  %v5021_v2 = vrot.slane %v11150_v40, 4  ;;  %v5300_v46 = vld [vmem:[%s11896_s5 + $0x68] sm:$0xff] }
 0x904   :  { %v5191_v7 = vsel %vm4972_vm0, %v5190_v10, %v5189_v27  ;;  %v5192_v63 = vrot.slane %v11150_v40, 1  ;;  %v5157_v58 = vsel %vm4972_vm0, %v5156_v16, %v5155_v20  ;;  %v5074_v37 = vsel %vm4972_vm0, %v5073_v35, %v5072_v51  ;;  %v5315_v20 = vld [vmem:[%s11896_s5 + $0xe0] sm:$0xff]  ;;  %5421 = vmatpush.msrb.mxu2 %v5300_v46 }
 0x905   :  { %v5040_v17 = vsel %vm4972_vm0, %v5039_v4, %v5038_v8  ;;  %v5006_v61 = vsel %vm4972_vm0, %v5005_v62, %v5004_v6  ;;  %v11311_v31 = vsel %vm4972_vm0, %v11141_v60, %v5107_v50  ;;  %v11320_v14 = vsel %vm4972_vm0, %v5176_v22, %v5175_v23  ;;  %v5316_v23 = vld [vmem:[%s11896_s5 + $0xe8] sm:$0xff] }
 0x906   :  { %v11323_v57 = vsel %vm4972_vm0, %v5142_v36, %v5141_v30  ;;  %v11327_v33 = vsel %vm4975_vm1, %v11150_v40, %v5157_v58  ;;  %v5123_v51 = vrot.slane %v11150_v40, 7  ;;  %v5075_v43 = vrot.slane %v11158_v29, 6  ;;  %5441 = vmatpush.msrb.mxu3 %v5316_v23  ;;  %v5313_v58 = vld [vmem:[%s11896_s5 + $0xd0] sm:$0xff]  ;;  %5422 = vmatpush.msrb.mxu2 %v5299_v19 }
 0x907   :  { %v5090_v53 = vsel %vm4975_vm1, %v5089_v54, %v5088_v42  ;;  %v5091_v8 = vrot.slane %v11169_v32, 5  ;;  %v5056_v6 = vsel %vm4975_vm1, %v5055_v3, %v5054_v9  ;;  %v5041_v13 = vrot.slane %v11158_v29, 5  ;;  %v5314_v9 = vld [vmem:[%s11896_s5 + $0xd8] sm:$0xff] }
 0x908   :  { %v5007_v30 = vrot.slane %v11158_v29, 4  ;;  %v5022_v50 = vsel %vm4975_vm1, %v5021_v2, %v5020_v52  ;;  %v11347_v44 = vsel %vm4975_vm1, %v5192_v63, %v5191_v7  ;;  %v5077_v27 = vrot.slane %v11173_v34, 5  ;;  %5442 = vmatpush.msrb.mxu3 %v5315_v20  ;;  %5423 = vmatpush.msrb.mxu2 %v5298_v24 }
 0x909   :  { %v5043_v10 = vrot.slane %v11173_v34, 4  ;;  %v5057_v16 = vrot.slane %v11169_v32, 4  ;;  %v5009_v35 = vrot.slane %v11173_v34, 3  ;;  %v5023_v4 = vrot.slane %v11169_v32, 3 }
 0x90a   :  { %v5178_v62 = vrot.slane %v11158_v29, 1  ;;  %v5076_v36 = vsel %vm4975_vm1, %v5075_v43, %v5074_v37  ;;  %v5092_v54 = vsel %vm4978_vm3, %v5091_v8, %v5090_v53  ;;  %v5079_v3 = vrot.slane %v11171_v26, 4  ;;  %5443 = vmatpush.msrb.mxu3 %v5314_v9  ;;  %5424 = vmatpush.msrb.mxu2 %v5297_v41 }
 0x90b   :  { %v5042_v52 = vsel %vm4975_vm1, %v5041_v13, %v5040_v17  ;;  %v5045_v2 = vrot.slane %v11171_v26, 3  ;;  %v5008_v12 = vsel %vm4975_vm1, %v5007_v30, %v5006_v61  ;;  %v5011_v63 = vrot.slane %v11171_v26, 2  ;;  %v5296_v13 = vld [vmem:[%s11896_s5 + $0x48] sm:$0xff] }
 0x90c   :  { %v5044_v7 = vsel %vm4978_vm3, %v5043_v10, %v5042_v52  ;;  %v5058_v37 = vsel %vm4978_vm3, %v5057_v16, %v5056_v6  ;;  %v5010_v17 = vsel %vm4978_vm3, %v5009_v35, %v5008_v12  ;;  %v5024_v61 = vsel %vm4978_vm3, %v5023_v4, %v5022_v50  ;;  %v5312_v6 = vld [vmem:[%s11896_s5 + $0xc8] sm:$0xff]  ;;  %5444 = vmatpush.msrb.mxu3 %v5313_v58  ;;  %v5311_v35 = vld [vmem:[%s11896_s5 + $0xc0] sm:$0xff] }
 0x90d   :  { %v5159_v45 = vrot.slane %v11169_v32, 7  ;;  %v5109_v8 = vrot.slane %v11158_v29, 7  ;;  %v5046_v48 = vsel %vm4981_vm2, %v5045_v2, %v5044_v7  ;;  %v5145_v16 = vrot.slane %v11173_v34, 7  ;;  %5425 = vmatpush.msrb.mxu2 %v5296_v13  ;;  %v5293_v13 = vld [vmem:[%s11896_s5 + $0x30] sm:$0xff] }
 0x90e   :  { %5445 = vmatpush.msrb.mxu3 %v5312_v6  ;;  %v5194_v9 = vsel %vm4978_vm3, %v11169_v32, %v11347_v44  ;;  %v5144_v44 = vsel %vm4975_vm1, %v11158_v29, %v11323_v57  ;;  %v5147_v2 = vrot.slane %v11171_v26, 6  ;;  %v5113_v24 = vrot.slane %v11171_v26, 5 }
 0x90f   :  { %v5110_v12 = vsel %vm4975_vm1, %v5109_v8, %v11311_v31  ;;  %v5224_v31 = vrot.slane %v11133_v39, 3  ;;  %v5226_v41 = vrot.slane %v11150_v40, 2  ;;  %v5212_v8 = vrot.slane %v11158_v29, 2 }
 0x910   :  { %5446 = vmatpush.msrb.mxu3 %v5311_v35  ;;  %v5228_v39 = vrot.slane %v11169_v32, 1  ;;  %v5287_v35 = vld [vmem:[%s11896_s5] sm:$0xff] }
 0x923   :  { %v5880_v18 = vpop.permute.xlu1 %5879 }
 0x924   :  { %v5882_v47 = vunpack.i.h.bf16 %v5880_v18  ;;  %v5881_v59 = vunpack.i.l.bf16 %v5880_v18  ;;  %v5125_v18 = vrot.slane %v11169_v32, 6 }
 0x926   :  { %v4929_v42 = vmax.f32 %v4769_v38, %v5882_v47  ;;  %v4928_v22 = vmax.f32 %v4768_v28, %v5881_v59  ;;  %v5078_v38 = vsel %vm4978_vm3, %v5077_v27, %v5076_v36  ;;  %v5012_v47 = vsel %vm4981_vm2, %v5011_v63, %v5010_v17 }
 0x927   :  { %v5080_v23 = vsel %vm4981_vm2, %v5079_v3, %v5078_v38  ;;  %v5124_v3 = vsel %vm4975_vm1, %v5123_v51, %v11296_v56  ;;  %v5146_v56 = vsel %vm4978_vm3, %v5145_v16, %v5144_v44  ;;  %v5160_v51 = vsel %vm4978_vm3, %v5159_v45, %v11327_v33  ;;  %v5304_v16 = vld [vmem:[%s11896_s5 + $0x88] sm:$0xff]  ;;  %v5329_v44 = vld [vmem:[%s11896_s5 + $0x150] sm:$0xff] }
 0x928   :  { %v11380_v28 = vmax.f32 %v4928_v22, %v4929_v42  ;;  %v5111_v42 = vrot.slane %v11173_v34, 6  ;;  %v5295_v22 = vld [vmem:[%s11896_s5 + $0x40] sm:$0xff]  ;;  %v5126_v63 = vsel %vm4978_vm3, %v5125_v18, %v5124_v3  ;;  %v5222_v33 = vrot.slane %v11108_v49, 4  ;;  %v5294_v18 = vld [vmem:[%s11896_s5 + $0x38] sm:$0xff]  ;;  %v5348_v3 = vld [vmem:[%s11896_s5 + $0x1e8] sm:$0xff] }
 0x929   :  { %5426 = vmatpush.msrb.mxu2 %v5295_v22  ;;  %v5210_v45 = vrot.slane %v11141_v60, 3  ;;  %v5214_v49 = vrot.slane %v11173_v34, 1  ;;  %v5333_v22 = vld [vmem:[%s11896_s5 + $0x170] sm:$0xff] }
 0x92a   :  { %v5093_v11 = vrot.slane %v11380_v28, 4  ;;  %v5059_v43 = vrot.slane %v11380_v28, 3  ;;  %v5025_v53 = vrot.slane %v11380_v28, 2  ;;  %v4995_v30 = vrot.slane %v11380_v28, 1 }
 0x92b   :  { %v5195_v4 = vrot.slane %v11380_v28, 7  ;;  %v5161_v19 = vrot.slane %v11380_v28, 6  ;;  %v5127_v52 = vrot.slane %v11380_v28, 5  ;;  %v5112_v57 = vsel %vm4978_vm3, %v5111_v42, %v5110_v12  ;;  %5427 = vmatpush.msrb.mxu2 %v5294_v18  ;;  %v5350_v42 = vld [vmem:[%s11896_s5 + $0x1f8] sm:$0xff]  ;;  %v5327_v12 = vld [vmem:[%s11896_s5 + $0x140] sm:$0xff] }
 0x92c   :  { %v5094_v50 = vsel %vm4981_vm2, %v5093_v11, %v5092_v54  ;;  %v5060_v46 = vsel %vm4981_vm2, %v5059_v43, %v5058_v37  ;;  %v5026_v59 = vsel %vm4981_vm2, %v5025_v53, %v5024_v61  ;;  %v11425_v36 = vsel %vm4981_vm2, %v4995_v30, %v11181_v5  ;;  %v5310_v5 = vld [vmem:[%s11896_s5 + $0xb8] sm:$0xff]  ;;  %v5309_v30 = vld [vmem:[%s11896_s5 + $0xb0] sm:$0xff] }
 0x92d   :  { %v5903_v27 = vpack.i.bf16 %v5080_v23, %v5094_v50  ;;  %v5898_v10 = vpack.i.bf16 %v5046_v48, %v5060_v46  ;;  %v5893_v20 = vpack.i.bf16 %v5012_v47, %v5026_v59  ;;  %v5179_v54 = vsel %vm4975_vm1, %v5178_v62, %v11320_v14  ;;  %5447 = vmatpush.msrb.mxu3 %v5310_v5  ;;  %v5307_v50 = vld [vmem:[%s11896_s5 + $0xa0] sm:$0xff]  ;;  %v5290_v47 = vld [vmem:[%s11896_s5 + $0x18] sm:$0xff] }
 0x92e   :  { %v5180_v14 = vsel %vm4978_vm3, %v11173_v34, %v5179_v54  ;;  %v5181_v62 = vrot.slane %v11171_v26, 7  ;;  %v5196_v38 = vsel %vm4981_vm2, %v5195_v4, %v5194_v9  ;;  %v5162_v7 = vsel %vm4981_vm2, %v5161_v19, %v5160_v51  ;;  %5428 = vmatpush.msrb.mxu2 %v5293_v13  ;;  %v5291_v46 = vld [vmem:[%s11896_s5 + $0x20] sm:$0xff]  ;;  %v5306_v59 = vld [vmem:[%s11896_s5 + $0x98] sm:$0xff]  ;;  %v5349_v54 = vld [vmem:[%s11896_s5 + $0x1f0] sm:$0xff] }
 0x92f   :  { %5904 = vrot.lane.b32.xlu0 %v5903_v27, %s6057_s23  ;;  %5899 = vrot.lane.b32.xlu2 %v5898_v10, %s6054_s30  ;;  %v5128_v58 = vsel %vm4981_vm2, %v5127_v52, %v5126_v63  ;;  %v5208_v37 = vrot.slane %v11031_v21, 4  ;;  %v5148_v61 = vsel %vm4981_vm2, %v5147_v2, %v5146_v56  ;;  %v5114_v53 = vsel %vm4981_vm2, %v5113_v24, %v5112_v57  ;;  %s6059_s30 = smov 96   ;;  %v5289_v27 = vld [vmem:[%s11896_s5 + $0x10] sm:$0xff]  ;;  %v5303_v4 = vld [vmem:[%s11896_s5 + $0x80] sm:$0xff] }
 0x930   :  { %5894 = vrot.lane.b32.xlu1 %v5893_v20, %s6058_s27  ;;  %v5182_v17 = vsel %vm4981_vm2, %v5181_v62, %v5180_v14  ;;  %v5913_v43 = vpack.i.bf16 %v5148_v61, %v5162_v7  ;;  %v5908_v6 = vpack.i.bf16 %v5114_v53, %v5128_v58  ;;  %v5207_v21 = vsel %vm4966_vm14, %v5206_v55, %v11263_v1  ;;  %v5305_v10 = vld [vmem:[%s11896_s5 + $0x90] sm:$0xff]  ;;  %v5288_v20 = vld [vmem:[%s11896_s5 + $0x8] sm:$0xff]  ;;  %v5334_v19 = vld [vmem:[%s11896_s5 + $0x178] sm:$0xff] }
 0x931   :  { %v5918_v11 = vpack.i.bf16 %v5182_v17, %v5196_v38  ;;  %v5209_v60 = vsel %vm4969_vm15, %v5208_v37, %v5207_v21  ;;  %v5223_v40 = vsel %vm4969_vm15, %v5222_v33, %v11248_v0  ;;  %5448 = vmatpush.msrb.mxu3 %v5309_v30  ;;  %v5332_v9 = vld [vmem:[%s11896_s5 + $0x168] sm:$0xff]  ;;  %v5331_v52 = vld [vmem:[%s11896_s5 + $0x160] sm:$0xff]  ;;  %v5330_v14 = vld [vmem:[%s11896_s5 + $0x158] sm:$0xff] }
 0x932   :  { %v5211_v29 = vsel %vm4972_vm0, %v5210_v45, %v5209_v60  ;;  %v5225_v25 = vsel %vm4972_vm0, %v5224_v31, %v5223_v40  ;;  %v5347_v5 = vld [vmem:[%s11896_s5 + $0x1e0] sm:$0xff]  ;;  %v5346_v62 = vld [vmem:[%s11896_s5 + $0x1d8] sm:$0xff]  ;;  %v5345_v2 = vld [vmem:[%s11896_s5 + $0x1d0] sm:$0xff] }
 0x933   :  { %v5213_v55 = vsel %vm4975_vm1, %v5212_v8, %v5211_v29  ;;  %v5227_v34 = vsel %vm4975_vm1, %v5226_v41, %v5225_v25  ;;  %v5328_v56 = vld [vmem:[%s11896_s5 + $0x148] sm:$0xff]  ;;  %v5343_v24 = vld [vmem:[%s11896_s5 + $0x1c0] sm:$0xff]  ;;  %v5326_v38 = vld [vmem:[%s11896_s5 + $0x138] sm:$0xff] }
 0x934   :  { %v5215_v32 = vsel %vm4978_vm3, %v5214_v49, %v5213_v55  ;;  %v5229_v1 = vsel %vm4978_vm3, %v5228_v39, %v5227_v34  ;;  %v5344_v51 = vld [vmem:[%s11896_s5 + $0x1c8] sm:$0xff]  ;;  %v5342_v7 = vld [vmem:[%s11896_s5 + $0x1b8] sm:$0xff]  ;;  %v5325_v57 = vld [vmem:[%s11896_s5 + $0x130] sm:$0xff] }
 0x935   :  { %v5230_v23 = vsel %vm4981_vm2, %v11380_v28, %v5229_v1  ;;  %v5216_v0 = vsel %vm4981_vm2, %v11171_v26, %v5215_v32  ;;  %v5308_v26 = vld [vmem:[%s11896_s5 + $0xa8] sm:$0xff]  ;;  %v5341_v63 = vld [vmem:[%s11896_s5 + $0x1b0] sm:$0xff]  ;;  %v5323_v33 = vld [vmem:[%s11896_s5 + $0x120] sm:$0xff] }
 0x936   :  { %v5923_v48 = vpack.i.bf16 %v5216_v0, %v5230_v23  ;;  %v5292_v28 = vld [vmem:[%s11896_s5 + $0x28] sm:$0xff]  ;;  %5449 = vmatpush.msrb.mxu3 %v5308_v26  ;;  %v5339_v31 = vld [vmem:[%s11896_s5 + $0x1a0] sm:$0xff]  ;;  %v5322_v17 = vld [vmem:[%s11896_s5 + $0x118] sm:$0xff] }
 0x937   :  { %5919 = vrot.lane.b32.xlu0 %v5918_v11, %s6059_s30  ;;  %5914 = vrot.lane.b32.xlu2 %v5913_v43, %s6060_s28  ;;  %v5324_v58 = vld [vmem:[%s11896_s5 + $0x128] sm:$0xff]  ;;  %v5338_v61 = vld [vmem:[%s11896_s5 + $0x198] sm:$0xff] }
 0x938   :  { %5909 = vrot.lane.b32.xlu1 %v5908_v6, %s6055_s12  ;;  %5429 = vmatpush.msrb.mxu2 %v5292_v28  ;;  %v5340_v37 = vld [vmem:[%s11896_s5 + $0x1a8] sm:$0xff]  ;;  %v5321_v45 = vld [vmem:[%s11896_s5 + $0x110] sm:$0xff]  ;;  %v5319_v53 = vld [vmem:[%s11896_s5 + $0x100] sm:$0xff] }
 0x939   :  { %5450 = vmatpush.msrb.mxu3 %v5307_v50  ;;  %v5337_v41 = vld [vmem:[%s11896_s5 + $0x190] sm:$0xff]  ;;  %v5320_v11 = vld [vmem:[%s11896_s5 + $0x108] sm:$0xff]  ;;  %v5335_v8 = vld [vmem:[%s11896_s5 + $0x180] sm:$0xff] }
 0x93a   :  { %5430 = vmatpush.msrb.mxu2 %v5291_v46  ;;  %v5336_v43 = vld [vmem:[%s11896_s5 + $0x188] sm:$0xff] }
 0x93b   :  { %5451 = vmatpush.msrb.mxu3 %v5306_v59 }
 0x93c   :  { %5431 = vmatpush.msrb.mxu2 %v5290_v47 }
 0x93d   :  { %5452 = vmatpush.msrb.mxu3 %v5305_v10 }
 0x93e   :  { %5432 = vmatpush.msrb.mxu2 %v5289_v27 }
 0x93f   :  { %5453 = vmatpush.msrb.mxu3 %v5304_v16 }
 0x940   :  { %5924 = vrot.lane.b32.xlu1 %v5923_v48, %s6056_s4  ;;  %5433 = vmatpush.msrb.mxu2 %v5288_v20 }
 0x941   :  { %5454 = vmatpush.msrb.mxu3 %v5303_v4 }
 0x942   :  { %5434 = vmatpush.msrb.mxu2 %v5287_v35 }
 0x943   :  { %5479 = vmatpush.msra.mxu3 %v5350_v42 }
 0x944   :  { %5459 = vmatpush.msra.mxu2 %v5334_v19 }
 0x945   :  { %5480 = vmatpush.msra.mxu3 %v5349_v54 }
 0x946   :  { %5460 = vmatpush.msra.mxu2 %v5333_v22 }
 0x947   :  { %5481 = vmatpush.msra.mxu3 %v5348_v3 }
 0x948   :  { %5461 = vmatpush.msra.mxu2 %v5332_v9 }
 0x949   :  { %5482 = vmatpush.msra.mxu3 %v5347_v5  ;;  %v5366_v5 = vld [vmem:[%s11896_s5 + $0x278] sm:$0xff] }
 0x94a   :  { %5462 = vmatpush.msra.mxu2 %v5331_v52 }
 0x94b   :  { %5483 = vmatpush.msra.mxu3 %v5346_v62 }
 0x94c   :  { %5463 = vmatpush.msra.mxu2 %v5330_v14  ;;  %v5382_v14 = vld [vmem:[%s11896_s5 + $0x2f8] sm:$0xff] }
 0x94d   :  { %5484 = vmatpush.msra.mxu3 %v5345_v2 }
 0x94e   :  { %5464 = vmatpush.msra.mxu2 %v5329_v44 }
 0x94f   :  { %5485 = vmatpush.msra.mxu3 %v5344_v51 }
 0x950   :  { %5465 = vmatpush.msra.mxu2 %v5328_v56 }
 0x951   :  { %5486 = vmatpush.msra.mxu3 %v5343_v24 }
 0x952   :  { %5466 = vmatpush.msra.mxu2 %v5327_v12 }
 0x953   :  { %5487 = vmatpush.msra.mxu3 %v5342_v7  ;;  %v5365_v7 = vld [vmem:[%s11896_s5 + $0x270] sm:$0xff] }
 0x954   :  { %5467 = vmatpush.msra.mxu2 %v5326_v38 }
 0x955   :  { %5488 = vmatpush.msra.mxu3 %v5341_v63 }
 0x956   :  { %5468 = vmatpush.msra.mxu2 %v5325_v57  ;;  %v5381_v57 = vld [vmem:[%s11896_s5 + $0x2f0] sm:$0xff] }
 0x957   :  { %5489 = vmatpush.msra.mxu3 %v5340_v37 }
 0x958   :  { %5469 = vmatpush.msra.mxu2 %v5324_v58 }
 0x959   :  { %5490 = vmatpush.msra.mxu3 %v5339_v31 }
 0x95a   :  { %5470 = vmatpush.msra.mxu2 %v5323_v33 }
 0x95b   :  { %5491 = vmatpush.msra.mxu3 %v5338_v61 }
 0x95c   :  { %5471 = vmatpush.msra.mxu2 %v5322_v17 }
 0x95d   :  { %5492 = vmatpush.msra.mxu3 %v5337_v41  ;;  %v5380_v41 = vld [vmem:[%s11896_s5 + $0x2e8] sm:$0xff] }
 0x95e   :  { %5472 = vmatpush.msra.mxu2 %v5321_v45  ;;  %v5364_v45 = vld [vmem:[%s11896_s5 + $0x268] sm:$0xff] }
 0x95f   :  { %5493 = vmatpush.msra.mxu3 %v5336_v43 }
 0x960   :  { %5473 = vmatpush.msra.mxu2 %v5320_v11 }
 0x961   :  { %5494 = vmatpush.msra.mxu3 %v5335_v8  ;;  %v5363_v8 = vld [vmem:[%s11896_s5 + $0x260] sm:$0xff] }
 0x962   :  { %5474 = vmatpush.msra.mxu2 %v5319_v53 }
 0x989   :  { %v5900_v6 = vpop.permute.xlu2 %5899 }
 0x98a   :  { %v5902_v25 = vunpack.i.h.bf16 %v5900_v6  ;;  %v5901_v55 = vunpack.i.l.bf16 %v5900_v6  ;;  %v5379_v6 = vld [vmem:[%s11896_s5 + $0x2e0] sm:$0xff] }
 0x991   :  { %v5915_v13 = vpop.permute.xlu2 %5914 }
 0x992   :  { %v5917_v28 = vunpack.i.h.bf16 %v5915_v13  ;;  %v5916_v50 = vunpack.i.l.bf16 %v5915_v13  ;;  %v5371_v13 = vld [vmem:[%s11896_s5 + $0x2a0] sm:$0xff] }
 0x9a1   :  { %v5905_v60 = vpop.permute.xlu0 %5904 }
 0x9a2   :  { %v5895_v21 = vpop.permute.xlu1 %5894  ;;  %v5907_v23 = vunpack.i.h.bf16 %v5905_v60  ;;  %v5906_v0 = vunpack.i.l.bf16 %v5905_v60  ;;  %v5377_v60 = vld [vmem:[%s11896_s5 + $0x2d0] sm:$0xff] }
 0x9a3   :  { %v5897_v49 = vunpack.i.h.bf16 %v5895_v21  ;;  %v5896_v39 = vunpack.i.l.bf16 %v5895_v21  ;;  %v5362_v21 = vld [vmem:[%s11896_s5 + $0x258] sm:$0xff] }
 0x9a5   :  { %v5238_v40 = vsel %vm5237_vm4, %v11184_v15, %v5897_v49  ;;  %v5239_v29 = vsel %vm5237_vm4, %v11425_v36, %v5896_v39  ;;  %v5378_v49 = vld [vmem:[%s11896_s5 + $0x2d8] sm:$0xff]  ;;  %v5361_v39 = vld [vmem:[%s11896_s5 + $0x250] sm:$0xff] }
 0x9a6   :  { %v5240_v34 = vsel %vm4459_vm10, %v5238_v40, %v5902_v25  ;;  %v5241_v32 = vsel %vm4459_vm10, %v5239_v29, %v5901_v55  ;;  %v5360_v40 = vld [vmem:[%s11896_s5 + $0x248] sm:$0xff]  ;;  %v5359_v25 = vld [vmem:[%s11896_s5 + $0x240] sm:$0xff] }
 0x9a7   :  { %v5243_v30 = vsel %vm5242_vm5, %v5240_v34, %v5907_v23  ;;  %v5244_v26 = vsel %vm5242_vm5, %v5241_v32, %v5906_v0  ;;  %v5376_v29 = vld [vmem:[%s11896_s5 + $0x2c8] sm:$0xff]  ;;  %v5375_v55 = vld [vmem:[%s11896_s5 + $0x2c0] sm:$0xff]  ;;  %v5358_v34 = vld [vmem:[%s11896_s5 + $0x238] sm:$0xff] }
 0x9a8   :  { %v5374_v32 = vld [vmem:[%s11896_s5 + $0x2b8] sm:$0xff]  ;;  %v5373_v23 = vld [vmem:[%s11896_s5 + $0x2b0] sm:$0xff]  ;;  %v5356_v0 = vld [vmem:[%s11896_s5 + $0x228] sm:$0xff] }
 0x9a9   :  { %v5920_v46 = vpop.permute.xlu0 %5919 }
 0x9aa   :  { %v5910_v1 = vpop.permute.xlu1 %5909  ;;  %v5922_v27 = vunpack.i.h.bf16 %v5920_v46  ;;  %v5921_v10 = vunpack.i.l.bf16 %v5920_v46  ;;  %v5351_v46 = vld [vmem:[%s11896_s5 + $0x200] sm:$0xff] }
 0x9ab   :  { %v5912_v48 = vunpack.i.h.bf16 %v5910_v1  ;;  %v5911_v18 = vunpack.i.l.bf16 %v5910_v1  ;;  %v5357_v1 = vld [vmem:[%s11896_s5 + $0x230] sm:$0xff] }
 0x9ad   :  { %v5245_v15 = vsel %vm4492_vm11, %v5243_v30, %v5912_v48  ;;  %v5246_v36 = vsel %vm4492_vm11, %v5244_v26, %v5911_v18  ;;  %v5372_v48 = vld [vmem:[%s11896_s5 + $0x2a8] sm:$0xff]  ;;  %v5355_v18 = vld [vmem:[%s11896_s5 + $0x220] sm:$0xff]  ;;  %v5354_v30 = vld [vmem:[%s11896_s5 + $0x218] sm:$0xff] }
 0x9ae   :  { %v5248_v47 = vsel %vm5247_vm6, %v5245_v15, %v5917_v28  ;;  %v5249_v59 = vsel %vm5247_vm6, %v5246_v36, %v5916_v50  ;;  %v5370_v26 = vld [vmem:[%s11896_s5 + $0x298] sm:$0xff]  ;;  %v5353_v15 = vld [vmem:[%s11896_s5 + $0x210] sm:$0xff]  ;;  %v5352_v28 = vld [vmem:[%s11896_s5 + $0x208] sm:$0xff] }
 0x9af   :  { %v5250_v4 = vsel %vm4528_vm12, %v5248_v47, %v5922_v27  ;;  %v5251_v19 = vsel %vm4528_vm12, %v5249_v59, %v5921_v10  ;;  %v5369_v36 = vld [vmem:[%s11896_s5 + $0x290] sm:$0xff]  ;;  %v5368_v50 = vld [vmem:[%s11896_s5 + $0x288] sm:$0xff]  ;;  %v5367_v47 = vld [vmem:[%s11896_s5 + $0x280] sm:$0xff] }
 0x9b0   :  { %v5398_v59 = vld [vmem:[%s11896_s5 + $0x378] sm:$0xff]  ;;  %v5397_v10 = vld [vmem:[%s11896_s5 + $0x370] sm:$0xff] }
 0x9b1   :  { %v5414_v27 = vld [vmem:[%s11896_s5 + $0x3f8] sm:$0xff] }
 0x9b2   :  { %v5925_v20 = vpop.permute.xlu1 %5924 }
 0x9b3   :  { %v5927_v16 = vunpack.i.h.bf16 %v5925_v20  ;;  %v5926_v35 = vunpack.i.l.bf16 %v5925_v20  ;;  %v5413_v20 = vld [vmem:[%s11896_s5 + $0x3f0] sm:$0xff] }
 0x9b5   :  { %v5253_v42 = vsel %vm5252_vm7, %v5250_v4, %v5927_v16  ;;  %v5254_v22 = vsel %vm5252_vm7, %v5251_v19, %v5926_v35  ;;  %v5396_v16 = vld [vmem:[%s11896_s5 + $0x368] sm:$0xff]  ;;  %v5395_v4 = vld [vmem:[%s11896_s5 + $0x360] sm:$0xff] }
 0x9b6   :  { %v5257_v54 = vrot.slane %v5254_v22, 7  ;;  %v5260_v9 = vrot.slane %v5253_v42, 1  ;;  %v5263_v3 = vrot.slane %v5253_v42, 2  ;;  %v5264_v52 = vrot.slane %v5254_v22, 1  ;;  %v5412_v35 = vld [vmem:[%s11896_s5 + $0x3e8] sm:$0xff]  ;;  %v5411_v19 = vld [vmem:[%s11896_s5 + $0x3e0] sm:$0xff] }
 0x9b7   :  { %v5267_v62 = vrot.slane %v5253_v42, 3  ;;  %v5268_v44 = vrot.slane %v5254_v22, 2  ;;  %v5271_v2 = vrot.slane %v5253_v42, 4  ;;  %v5272_v56 = vrot.slane %v5254_v22, 3 }
 0x9b8   :  { %v5258_v51 = vsel %vm4963_vm13, %v5257_v54, %v5253_v42  ;;  %v5261_v12 = vsel %vm4963_vm13, %v5254_v22, %v5260_v9  ;;  %v5265_v24 = vsel %vm4963_vm13, %v5264_v52, %v5263_v3  ;;  %v5275_v38 = vrot.slane %v5253_v42, 5  ;;  %v5393_v54 = vld [vmem:[%s11896_s5 + $0x350] sm:$0xff]  ;;  %v5392_v3 = vld [vmem:[%s11896_s5 + $0x348] sm:$0xff] }
 0x9b9   :  { %5435 = vmatmul.f32.vlgmr.msrb.gmra.mxu2 %v5258_v51  ;;  %5455 = vmatmul.f32.vlgmr.msrb.gmra.mxu3 %v5261_v12  ;;  %v5269_v63 = vsel %vm4963_vm13, %v5268_v44, %v5267_v62  ;;  %v11655_v58 = vsel %vm4963_vm13, %v5272_v56, %v5271_v2  ;;  %v5276_v37 = vrot.slane %v5254_v22, 4  ;;  %v5279_v33 = vrot.slane %v5253_v42, 6  ;;  %v5409_v9 = vld [vmem:[%s11896_s5 + $0x3d0] sm:$0xff]  ;;  %v5408_v52 = vld [vmem:[%s11896_s5 + $0x3c8] sm:$0xff]  ;;  %v5390_v62 = vld [vmem:[%s11896_s5 + $0x338] sm:$0xff] }
 0x9ba   :  { %5499 = vmatpush.msrb.mxu2 %v5366_v5  ;;  %5519 = vmatpush.msrb.mxu3 %v5382_v14  ;;  %v5280_v31 = vrot.slane %v5254_v22, 5  ;;  %v5283_v17 = vrot.slane %v5253_v42, 7  ;;  %v5284_v61 = vrot.slane %v5254_v22, 6  ;;  %v5394_v42 = vld [vmem:[%s11896_s5 + $0x358] sm:$0xff]  ;;  %v5391_v5 = vld [vmem:[%s11896_s5 + $0x340] sm:$0xff]  ;;  %v5389_v2 = vld [vmem:[%s11896_s5 + $0x330] sm:$0xff] }
 0x9bb   :  { %v11664_v11 = vsel %vm4963_vm13, %v5276_v37, %v5275_v38  ;;  %v5410_v22 = vld [vmem:[%s11896_s5 + $0x3d8] sm:$0xff]  ;;  %v5407_v14 = vld [vmem:[%s11896_s5 + $0x3c0] sm:$0xff]  ;;  %v5405_v56 = vld [vmem:[%s11896_s5 + $0x3b0] sm:$0xff] }
 0x9bc   :  { %5500 = vmatpush.msrb.mxu2 %v5365_v7  ;;  %5520 = vmatpush.msrb.mxu3 %v5381_v57  ;;  %v11667_v43 = vsel %vm4963_vm13, %v5280_v31, %v5279_v33  ;;  %v11670_v53 = vsel %vm4963_vm13, %v5284_v61, %v5283_v17  ;;  %v5406_v44 = vld [vmem:[%s11896_s5 + $0x3b8] sm:$0xff]  ;;  %v5388_v51 = vld [vmem:[%s11896_s5 + $0x328] sm:$0xff]  ;;  %v5403_v38 = vld [vmem:[%s11896_s5 + $0x3a0] sm:$0xff] }
 0x9bd   :  { %v5404_v12 = vld [vmem:[%s11896_s5 + $0x3a8] sm:$0xff]  ;;  %v5386_v7 = vld [vmem:[%s11896_s5 + $0x318] sm:$0xff]  ;;  %v5383_v31 = vld [vmem:[%s11896_s5 + $0x300] sm:$0xff] }
 0x9be   :  { %5501 = vmatpush.msrb.mxu2 %v5364_v45  ;;  %5521 = vmatpush.msrb.mxu3 %v5380_v41  ;;  %v5402_v57 = vld [vmem:[%s11896_s5 + $0x398] sm:$0xff]  ;;  %v5384_v37 = vld [vmem:[%s11896_s5 + $0x308] sm:$0xff]  ;;  %v5399_v17 = vld [vmem:[%s11896_s5 + $0x380] sm:$0xff] }
 0x9bf   :  { %v5400_v33 = vld [vmem:[%s11896_s5 + $0x388] sm:$0xff]  ;;  %v5587_v61 = vld [vmem:[%s11898_s7 + $0x38] sm:$0xff]  ;;  %v5586_v45 = vld [vmem:[%s11898_s7 + $0x30] sm:$0xff] }
 0x9c0   :  { %5502 = vmatpush.msrb.mxu2 %v5363_v8  ;;  %5522 = vmatpush.msrb.mxu3 %v5379_v6  ;;  %v5585_v41 = vld [vmem:[%s11898_s7 + $0x28] sm:$0xff] }
 0x9c1   :  { %5475 = vmatmul.f32.vlgmr.msra.gmra.mxu2 %v5265_v24  ;;  %5495 = vmatmul.f32.vlgmr.msra.gmra.mxu3 %v5269_v63  ;;  %v5387_v24 = vld [vmem:[%s11896_s5 + $0x320] sm:$0xff]  ;;  %v5385_v63 = vld [vmem:[%s11896_s5 + $0x310] sm:$0xff]  ;;  %v5581_v6 = vld [vmem:[%s11898_s7 + $0x8] sm:$0xff] }
 0x9c2   :  { %5503 = vmatpush.msrb.mxu2 %v5362_v21  ;;  %5523 = vmatpush.msrb.mxu3 %v5378_v49  ;;  %v5619_v21 = vld [vmem:[#allocation7 + $0x18] sm:$0xff]  ;;  %v5618_v49 = vld [vmem:[#allocation7 + $0x10] sm:$0xff] }
 0x9c4   :  { %5504 = vmatpush.msrb.mxu2 %v5361_v39  ;;  %5524 = vmatpush.msrb.mxu3 %v5377_v60  ;;  %v5580_v60 = vld [vmem:[%s11898_s7] sm:$0xff] }
 0x9c6   :  { %5505 = vmatpush.msrb.mxu2 %v5360_v40  ;;  %5525 = vmatpush.msrb.mxu3 %v5376_v29  ;;  %v5930_v40 = vld [vmem:[%s11897_s6] ss:$0 sm:$0xff] }
 0x9c8   :  { %5506 = vmatpush.msrb.mxu2 %v5359_v25  ;;  %5526 = vmatpush.msrb.mxu3 %v5375_v55 }
 0x9ca   :  { %5507 = vmatpush.msrb.mxu2 %v5358_v34  ;;  %5527 = vmatpush.msrb.mxu3 %v5374_v32 }
 0x9cc   :  { %5508 = vmatpush.msrb.mxu2 %v5357_v1  ;;  %5528 = vmatpush.msrb.mxu3 %v5373_v23 }
 0x9ce   :  { %5509 = vmatpush.msrb.mxu2 %v5356_v0  ;;  %5529 = vmatpush.msrb.mxu3 %v5372_v48 }
 0x9d0   :  { %5510 = vmatpush.msrb.mxu2 %v5355_v18  ;;  %5530 = vmatpush.msrb.mxu3 %v5371_v13 }
 0x9d2   :  { %5511 = vmatpush.msrb.mxu2 %v5354_v30  ;;  %5531 = vmatpush.msrb.mxu3 %v5370_v26 }
 0x9d4   :  { %5512 = vmatpush.msrb.mxu2 %v5353_v15  ;;  %5532 = vmatpush.msrb.mxu3 %v5369_v36 }
 0x9d6   :  { %5513 = vmatpush.msrb.mxu2 %v5352_v28  ;;  %5533 = vmatpush.msrb.mxu3 %v5368_v50  ;;  %v5617_v28 = vld [vmem:[#allocation7 + $0x8] sm:$0xff]  ;;  %v5616_v50 = vld [vmem:[#allocation7] sm:$0xff] }
 0x9d8   :  { %5514 = vmatpush.msrb.mxu2 %v5351_v46  ;;  %5534 = vmatpush.msrb.mxu3 %v5367_v47  ;;  %v5931_v46 = vld [vmem:[%s11899_s8] ss:$0 sm:$0xff]  ;;  %s6061_s8 = smov [#allocation8]  }
 0x9d9   :  { %5515 = vmatmul.f32.vlgmr.msrb.gmra.mxu2 %v11655_v58  ;;  %5535 = vmatmul.f32.vlgmr.msrb.gmra.mxu3 %v11664_v11  ;;  %v5401_v58 = vld [vmem:[%s11896_s5 + $0x390] sm:$0xff]  ;;  %v5584_v11 = vld [vmem:[%s11898_s7 + $0x20] sm:$0xff]  ;;  %s5666_s20 = sshll.u32 %s6061_s8, 4  ;;  %s5667_s20 = int_to_ptr.vmem [resolvable:$true] %s5666_s20 }
 0x9da   :  { %5539 = vmatpush.msra.mxu2 %v5398_v59  ;;  %5559 = vmatpush.msra.mxu3 %v5414_v27 }
 0x9dc   :  { %5540 = vmatpush.msra.mxu2 %v5397_v10  ;;  %5560 = vmatpush.msra.mxu3 %v5413_v20  ;;  %v5932_v10 = vld [vmem:[%s11901_s10] ss:$0 sm:$0xff] }
 0x9de   :  { %5541 = vmatpush.msra.mxu2 %v5396_v16  ;;  %5561 = vmatpush.msra.mxu3 %v5412_v35 }
 0x9e0   :  { %5542 = vmatpush.msra.mxu2 %v5395_v4  ;;  %5562 = vmatpush.msra.mxu3 %v5411_v19 }
 0x9e2   :  { %5543 = vmatpush.msra.mxu2 %v5394_v42  ;;  %5563 = vmatpush.msra.mxu3 %v5410_v22 }
 0x9e4   :  { %5544 = vmatpush.msra.mxu2 %v5393_v54  ;;  %5564 = vmatpush.msra.mxu3 %v5409_v9 }
 0x9e6   :  { %5545 = vmatpush.msra.mxu2 %v5392_v3  ;;  %5565 = vmatpush.msra.mxu3 %v5408_v52 }
 0x9e8   :  { %5546 = vmatpush.msra.mxu2 %v5391_v5  ;;  %5566 = vmatpush.msra.mxu3 %v5407_v14 }
 0x9ea   :  { %5547 = vmatpush.msra.mxu2 %v5390_v62  ;;  %5567 = vmatpush.msra.mxu3 %v5406_v44 }
 0x9ec   :  { %5548 = vmatpush.msra.mxu2 %v5389_v2  ;;  %5568 = vmatpush.msra.mxu3 %v5405_v56 }
 0x9ee   :  { %5549 = vmatpush.msra.mxu2 %v5388_v51  ;;  %5569 = vmatpush.msra.mxu3 %v5404_v12 }
 0x9f0   :  { %5550 = vmatpush.msra.mxu2 %v5387_v24  ;;  %5570 = vmatpush.msra.mxu3 %v5403_v38 }
 0x9f2   :  { %5551 = vmatpush.msra.mxu2 %v5386_v7  ;;  %5571 = vmatpush.msra.mxu3 %v5402_v57 }
 0x9f4   :  { %5552 = vmatpush.msra.mxu2 %v5385_v63  ;;  %5572 = vmatpush.msra.mxu3 %v5401_v58 }
 0x9f6   :  { %5553 = vmatpush.msra.mxu2 %v5384_v37  ;;  %5573 = vmatpush.msra.mxu3 %v5400_v33 }
 0x9f8   :  { %5554 = vmatpush.msra.mxu2 %v5383_v31  ;;  %5574 = vmatpush.msra.mxu3 %v5399_v17 }
 0x9f9   :  { %5555 = vmatmul.f32.vlgmr.msra.gmra.mxu2 %v11667_v43  ;;  %5575 = vmatmul.f32.vlgmr.msra.gmra.mxu3 %v11670_v53  ;;  %v5583_v43 = vld [vmem:[%s11898_s7 + $0x18] sm:$0xff]  ;;  %v5582_v53 = vld [vmem:[%s11898_s7 + $0x10] sm:$0xff] }
 0x9fa   :  { %5603 = vmatpush.msrb.mxu2 %v5587_v61  ;;  %5639 = vmatpush.msrb.mxu3 %v5619_v21 }
 0x9fc   :  { %5604 = vmatpush.msrb.mxu2 %v5586_v45  ;;  %5640 = vmatpush.msrb.mxu3 %v5618_v49 }
 0x9fe   :  { %5605 = vmatpush.msrb.mxu2 %v5585_v41  ;;  %5641 = vmatpush.msrb.mxu3 %v5617_v28 }
 0xa00   :  { %5606 = vmatpush.msrb.mxu2 %v5584_v11  ;;  %5642 = vmatpush.msrb.mxu3 %v5616_v50 }
 0xa02   :  { %5607 = vmatpush.msrb.mxu2 %v5583_v43 }
 0xa04   :  { %5608 = vmatpush.msrb.mxu2 %v5582_v53 }
 0xa06   :  { %5609 = vmatpush.msrb.mxu2 %v5581_v6 }
 0xa08   :  { %5610 = vmatpush.msrb.mxu2 %v5580_v60 }
 0xa3c   :  { %v5436_v8 = vpop.f32.mrf.mxu2  ;;  %v5456_v39 = vpop.f32.mrf.mxu3 }
 0xa3d   :  { %v5437_v29 = vadd.f32 %v5930_v40, %v5436_v8 }
 0xa3f   :  { %v5457_v34 = vadd.f32 %v5456_v39, %v5437_v29 }
 0xa44   :  { %v5476_v25 = vpop.f32.mrf.mxu2  ;;  %v5496_v55 = vpop.f32.mrf.mxu3 }
 0xa45   :  { %v5477_v32 = vadd.f32 %v5476_v25, %v5457_v34 }
 0xa47   :  { %v5497_v23 = vadd.f32 %v5496_v55, %v5477_v32 }
 0xa5c   :  { %v5516_v1 = vpop.f32.mrf.mxu2  ;;  %v5536_v0 = vpop.f32.mrf.mxu3 }
 0xa5d   :  { %v5517_v48 = vadd.f32 %v5516_v1, %v5497_v23 }
 0xa5f   :  { %v5537_v18 = vadd.f32 %v5536_v0, %v5517_v48 }
 0xa7c   :  { %v5556_v13 = vpop.f32.mrf.mxu2  ;;  %v5576_v26 = vpop.f32.mrf.mxu3 }
 0xa7d   :  { %v5557_v30 = vadd.f32 %v5556_v13, %v5537_v18 }
 0xa7f   :  { %v5577_v15 = vadd.f32 %v5576_v26, %v5557_v30 }
 0xa81   :  { %v5579_v36 = vmax.f32 %v5577_v15, 0.0 }
 0xa83   :  { %5776 = vmatmul.msk.f32.vlgmr.msrb.gmra.mxu2 %vm4492_vm11, %v5579_v36 }
 0xb06   :  { %v5612_v47 = vpop.f32.mrf.mxu2 }
 0xb07   :  { %v5613_v59 = vadd.f32 %v5931_v46, %v5612_v47 }
 0xb09   :  { %v5615_v27 = vmax.f32 %v5613_v59, 0.0 }
 0xb0b   :  { %5777 = vmatmul.msk.f32.vlgmr.msrb.gmra.mxu3 %vm4459_vm10, %v5615_v27 }
 0xb8e   :  { %v5644_v20 = vpop.f32.mrf.mxu3 }
 0xb8f   :  { %v5645_v16 = vadd.f32 %v5932_v10, %v5644_v20 }
 0xb91   :  { %v5648_v35 = vsel %vm5647_vm8, %v5645_v16, -inf }
 0xb92   :  { %5649 = vmax.xlane.f32.xlu2 %v5648_v35 }
 0xc05   :  { %v5650_v4 = vpop.xlane.xlu2 %5649 }
 0xc06   :  { %v5651_v19 = vsub.f32 %v5645_v16, %v5650_v4 }
 0xc08   :  { %v5652_v42 = vmul.f32 1.442695, %v5651_v19 }
 0xc0a   :  { %5933 = vpow2.f32 %v5652_v42 }
 0xc10   :  { %v5934_v22 = vpop.eup %5933 }
 0xc11   :  { %v5654_v54 = vsel %vm5647_vm8, %v5934_v22, 0.0 }
 0xc12   :  { %5655 = vadd.xlane.f32.xlu0 %v5654_v54 }
 0xc85   :  { %v5656_v9 = vpop.xlane.xlu0 %5655 }
 0xc86   :  { %5935 = vlog2.f32 %v5656_v9 }
 0xc8c   :  { %v5936_v3 = vpop.eup %5935 }
 0xc8d   :  { %v5658_v52 = vmul.f32 0.6931472, %v5936_v3 }
 0xc8f   :  { %v5659_v5 = vsub.f32 %v5651_v19, %v5658_v52 }
 0xc91   :  { %5660 = vst.msk [vmem:[#allocation8] sm:$0x3] %vm5647_vm8, %v5659_v5 }
 0xc92   :  { %5671 = dma.vmem_to_hbm [thread:$0]  %s5667_s20, 32, %s5669_s22, [#allocation4]  }
 0xc93   :  { %6039 = dma.done.wait [#allocation4], 32  }
 0xc94   :  { %6040 = vsyncadd [#allocation4], 4294967264 }
 0xc95   :  { %5676 = vsyncpa [#allocation3], 1 }
 0xc96   :  { %5677 = vsyncpa [#allocation6], 1 }
 0xc97   :  { %5678 = vsyncpa [#allocation4], 1 }

</bundles_post_ra>
